<compile_context>
chip_gen: v5e
topology: v5e:2x2
jax: 0.10.0
libtpu: 0.0.40
codegen_flags: <defaults>
</compile_context>

<pallas_src>
import numpy as np
import jax
import jax.numpy as jnp
from jax import lax
from jax.experimental import pallas as pl
from jax.experimental.pallas import tpu as pltpu

# ----------------------------- fixed geometry ------------------------------
CIN, H, W = 3, 16, 224
K = 5
C1 = 6
OH1, OW1 = H - K + 1, W - K + 1          # 12, 220
PH1, PW1 = OH1 // 2, OW1 // 2            # 6, 110
PW1_PAD = 128                            # pooled-1 maps padded to 128 lanes
C2 = 16
OH2, OW2 = PH1 - K + 1, PW1 - K + 1      # 2, 106
PW2 = OW2 // 2                           # 53
FC1_IN, FC1_OUT, FC2_OUT, FC3_OUT = 424, 120, 84, 2
GROUPS = FC1_IN // PW2                   # 8 conv2 channels per flattened row
R1 = PH1 * C1                            # 36 rows of the conv1 big matmul
RIN = H * CIN                            # 48 input rows (h*CIN + ci)


def _shift_left(x, k):
    """out[..., j] = x[..., (j + k) % n]  (k static, 0 <= k < n)."""
    if k == 0:
        return x
    return pltpu.roll(x, x.shape[-1] - k, 1)


# ------------------------------ fused kernel -------------------------------
def _make_kernel(bsz):
    def kernel(xs_ref, w1e_ref, w1o_ref, b1_ref, w2a_ref, w2b_ref, b2_ref,
               s1_ref, s2_ref, f1w_ref, f1b_ref, f2w_ref, f2b_ref,
               f3w_ref, f3b_ref, out_ref, hfc_ref):
        f32 = jnp.float32

        def mm(a, b):
            return jnp.dot(a, b, preferred_element_type=f32)

        # Hoist all weight/constant loads out of the per-sample loop.
        w1e = [w1e_ref[kw] for kw in range(K)]     # each (36, 48)
        w1o = [w1o_ref[kw] for kw in range(K)]
        w2a = [w2a_ref[kw] for kw in range(K)]     # each (16, 36)
        w2b = [w2b_ref[kw] for kw in range(K)]
        b1 = b1_ref[...]                           # (36, 1)
        b2 = b2_ref[...]                           # (16, 1)
        s1 = s1_ref[...]                           # (224, 128) even-col pick
        s2 = s2_ref[...]                           # (128,  53) even-col pick
        f1w = [f1w_ref[g] for g in range(GROUPS)]  # each (53, 120)
        f1b = f1b_ref[...]

        for b in range(bsz):
            xs = xs_ref[b]                         # (48, 224), rows = h*3+ci

            # ---- conv1: even/odd output rows as block-Toeplitz matmuls; the
            # kw lane shift is a roll of the shared input (XLU), not a slice.
            acc_e = mm(w1e[0], xs)
            acc_o = mm(w1o[0], xs)
            for kw in range(1, K):
                xsk = _shift_left(xs, kw)          # wrap lands in cols >= 220
                acc_e = acc_e + mm(w1e[kw], xsk)
                acc_o = acc_o + mm(w1o[kw], xsk)
            v1 = jnp.maximum(acc_e, acc_o)                       # row pool
            m1 = jnp.maximum(v1, _shift_left(v1, 1))             # col-pair max
            # relu(pool(conv)+b) == pool(relu(conv+b)) for per-channel bias.
            y1 = jnp.maximum(mm(m1, s1) + b1, 0.0)               # (36, 128)

            # ---- conv2: contract (kh, ci) in one (16,36)@(36,128) matmul per
            # (output-row, kw); output channels pre-permuted for the flatten.
            acc0 = mm(w2a[0], y1)
            acc1 = mm(w2b[0], y1)
            for kw in range(1, K):
                y1k = _shift_left(y1, kw)
                acc0 = acc0 + mm(w2a[kw], y1k)
                acc1 = acc1 + mm(w2b[kw], y1k)
            v2 = jnp.maximum(acc0, acc1)                         # (16, 128)
            m2 = jnp.maximum(v2, _shift_left(v2, 1))
            y2 = jnp.maximum(mm(m2, s2) + b2, 0.0)               # (16, 53)

            # ---- fc1 blocked over the 8 channel groups (no (2,424) flatten).
            z = mm(y2[0:2, :], f1w[0])
            for g in range(1, GROUPS):
                z = z + mm(y2[2 * g:2 * g + 2, :], f1w[g])
            hfc_ref[pl.ds(2 * b, 2), :] = jnp.maximum(z + f1b, 0.0)

        # ---- fc2 / fc3 / log_softmax batched over the 2*bsz rows of this step.
        h = hfc_ref[...]                                          # (2B, 120)
        h = jnp.maximum(mm(h, f2w_ref[...]) + f2b_ref[...], 0.0)  # (2B, 84)
        zf = mm(h, f3w_ref[...]) + f3b_ref[...]                   # (2B, 2)
        m = jnp.max(zf, axis=-1, keepdims=True)
        lse = m + jnp.log(jnp.sum(jnp.exp(zf - m), axis=-1, keepdims=True))
        out_ref[...] = zf - lse

    return kernel


# ------------------------------ JAX wrappers --------------------------------
def init_params(key):
    keys = jax.random.split(key, 10)

    def uni(k, shape, fan_in):
        bound = 1.0 / float(fan_in) ** 0.5
        return jax.random.uniform(k, shape, jnp.float32, -bound, bound)

    return {
        "conv1_w": uni(keys[0], (C1, CIN, K, K), CIN * K * K),
        "conv1_b": uni(keys[1], (C1,), CIN * K * K),
        "conv2_w": uni(keys[2], (C2, C1, K, K), C1 * K * K),
        "conv2_b": uni(keys[3], (C2,), C1 * K * K),
        "fc1_w": uni(keys[4], (FC1_OUT, FC1_IN), FC1_IN),
        "fc1_b": uni(keys[5], (FC1_OUT,), FC1_IN),
        "fc2_w": uni(keys[6], (FC2_OUT, FC1_OUT), FC1_OUT),
        "fc2_b": uni(keys[7], (FC2_OUT,), FC1_OUT),
        "fc3_w": uni(keys[8], (FC3_OUT, FC2_OUT), FC2_OUT),
        "fc3_b": uni(keys[9], (FC3_OUT,), FC2_OUT),
    }


def prepare_params(params):
    """One-time (outside-jit) re-layout of PyTorch-convention weights."""
    p = {k: np.asarray(jax.device_get(v)) for k, v in params.items()}
    w1, b1 = p["conv1_w"], p["conv1_b"]
    w2, b2 = p["conv2_w"], p["conv2_b"]

    # conv1 block-Toeplitz weights: row (i*C1+co) of the even (oh=2i) / odd
    # (oh=2i+1) matmul picks input row ((oh+kh)*CIN+ci).
    w1e = np.zeros((K, R1, RIN), np.float32)
    w1o = np.zeros((K, R1, RIN), np.float32)
    for kw in range(K):
        for i in range(PH1):
            for co in range(C1):
                for kh in range(K):
                    for ci in range(CIN):
                        w1e[kw, i * C1 + co, (2 * i + kh) * CIN + ci] = w1[co, ci, kh, kw]
                        w1o[kw, i * C1 + co, (2 * i + 1 + kh) * CIN + ci] = w1[co, ci, kh, kw]
    b1big = np.tile(b1.reshape(1, C1), (PH1, 1)).reshape(R1, 1).astype(np.float32)

    # conv2 block-Toeplitz weights (contract (kh, ci) at once), output channels
    # permuted so kernel rows (2g, 2g+1) hold torch channels (g, 8+g) and the
    # torch .view(-1, 424) flatten needs no in-kernel gather.
    perm = [(j % 2) * (C2 // 2) + j // 2 for j in range(C2)]
    w2a = np.zeros((K, C2, R1), np.float32)   # output row oh2 = 0
    w2b = np.zeros((K, C2, R1), np.float32)   # output row oh2 = 1
    for kw in range(K):
        for j in range(C2):
            co2 = perm[j]
            for kh in range(K):
                for co1 in range(C1):
                    w2a[kw, j, kh * C1 + co1] = w2[co2, co1, kh, kw]
                    w2b[kw, j, (kh + 1) * C1 + co1] = w2[co2, co1, kh, kw]
    b2big = b2[perm].reshape(C2, 1).astype(np.float32)

    # Hoisted even-column selection matrices for the stride-2 half of the pool.
    s1 = np.zeros((W, PW1_PAD), np.float32)
    for c in range(PW1):
        s1[2 * c, c] = 1.0
    s2 = np.zeros((PW1_PAD, PW2), np.float32)
    for c in range(PW2):
        s2[2 * c, c] = 1.0

    f1w = p["fc1_w"].T.reshape(GROUPS, PW2, FC1_OUT).astype(np.float32)
    out = dict(w1e=w1e, w1o=w1o, b1=b1big, w2a=w2a, w2b=w2b, b2=b2big,
               s1=s1, s2=s2, f1w=f1w,
               f1b=p["fc1_b"].reshape(1, FC1_OUT),
               f2w=p["fc2_w"].T, f2b=p["fc2_b"].reshape(1, FC2_OUT),
               f3w=p["fc3_w"].T, f3b=p["fc3_b"].reshape(1, FC3_OUT))
    return {k: jnp.asarray(v, jnp.float32) for k, v in out.items()}


def _pick_block_batch(n):
    # Prefer >= 2 grid steps (v7x megacore) while keeping the (2B, 2) output
    # block sublane-aligned (2B % 8 == 0); otherwise one full-batch step.
    for b in range(min(8, n // 2), 0, -1):
        if n % b == 0 and (2 * b) % 8 == 0:
            return b
    return n


@jax.jit
def net_forward(pp, x):
    n = x.shape[0]
    assert x.shape == (n, CIN, H, W)
    bsz = _pick_block_batch(n)
    # NCHW -> (N, H*CIN, W): rows = (h, ci), lanes = W (lane-dense conv input).
    xs = jnp.transpose(x, (0, 2, 1, 3)).reshape(n, H * CIN, W)

    def full(shape):
        return pl.BlockSpec(shape, lambda i, _s=shape: (0,) * len(_s))

    out = pl.pallas_call(
        _make_kernel(bsz),
        out_shape=jax.ShapeDtypeStruct((2 * n, FC3_OUT), jnp.float32),
        grid=(n // bsz,),
        in_specs=[
            pl.BlockSpec((bsz, H * CIN, W), lambda i: (i, 0, 0)),
            full((K, R1, RIN)),          # w1e
            full((K, R1, RIN)),          # w1o
            full((R1, 1)),               # b1
            full((K, C2, R1)),           # w2a
            full((K, C2, R1)),           # w2b
            full((C2, 1)),               # b2
            full((W, PW1_PAD)),          # s1
            full((PW1_PAD, PW2)),        # s2
            full((GROUPS, PW2, FC1_OUT)),
            full((1, FC1_OUT)),
            full((FC1_OUT, FC2_OUT)),
            full((1, FC2_OUT)),
            full((FC2_OUT, FC3_OUT)),
            full((1, FC3_OUT)),
        ],
        out_specs=pl.BlockSpec((2 * bsz, FC3_OUT), lambda i: (i, 0)),
        scratch_shapes=[pltpu.VMEM((2 * bsz, FC1_OUT), jnp.float32)],
        compiler_params=pltpu.CompilerParams(
            dimension_semantics=("parallel",)),
        cost_estimate=pl.CostEstimate(
            flops=11_800_000 * n,
            transcendentals=6 * n,
            bytes_accessed=43_008 * n + 500_000 + 16 * n),
    )(xs, pp["w1e"], pp["w1o"], pp["b1"], pp["w2a"], pp["w2b"], pp["b2"],
      pp["s1"], pp["s2"], pp["f1w"], pp["f1b"], pp["f2w"], pp["f2b"],
      pp["f3w"], pp["f3b"])
    return out


# ------------------------- pure-JAX reference (check) -----------------------
def reference_forward(params, x):
    def conv(x, w, b):
        y = lax.conv_general_dilated(
            x, w, (1, 1), "VALID",
            dimension_numbers=("NCHW", "OIHW", "NCHW"))
        return y + b[None, :, None, None]

    def pool(x):
        return lax.reduce_window(x, -jnp.inf, lax.max,
                                 (1, 1, 2, 2), (1, 1, 2, 2), "VALID")

    y = pool(jax.nn.relu(conv(x, params["conv1_w"], params["conv1_b"])))
    y = pool(jax.nn.relu(conv(y, params["conv2_w"], params["conv2_b"])))
    y = y.reshape(-1, FC1_IN)
    y = jax.nn.relu(y @ params["fc1_w"].T + params["fc1_b"])
    y = jax.nn.relu(y @ params["fc2_w"].T + params["fc2_b"])
    y = y @ params["fc3_w"].T + params["fc3_b"]
    return jax.nn.log_softmax(y, axis=-1)


if __name__ == "__main__":
    key = jax.random.PRNGKey(0)
    pkey, xkey = jax.random.split(key)
    params = init_params(pkey)
    pp = prepare_params(params)          # weight re-layout hoisted out of jit
    n = 8                                # -> bsz=4, grid=2 (both v7x cores busy)
    x = jax.random.normal(xkey, (n, CIN, H, W), jnp.float32)

    out = jax.block_until_ready(net_forward(pp, x))
    ref = jax.block_until_ready(reference_forward(params, x))

    assert out.shape == (2 * n, FC3_OUT) and out.dtype == jnp.float32
    assert bool(jnp.all(jnp.isfinite(out)))
    probs = jnp.exp(out)                 # log_softmax rows -> probs sum to 1
    assert bool(jnp.all(jnp.abs(jnp.sum(probs, axis=-1) - 1.0) < 1e-3))
    err = float(jnp.max(jnp.abs(out - ref)))
    assert err < 0.1, f"max |kernel - reference| = {err}"
    print("KERNEL_OK")
</pallas_src>

<mosaic_0001>
module attributes {stable_mosaic.version = 11 : i64} {
  func.func @kernel(%arg0: i32, %arg1: memref<4x48x224xf32, #tpu.memory_space<vmem>>, %arg2: memref<5x36x48xf32, #tpu.memory_space<vmem>>, %arg3: memref<5x36x48xf32, #tpu.memory_space<vmem>>, %arg4: memref<36x1xf32, #tpu.memory_space<vmem>>, %arg5: memref<5x16x36xf32, #tpu.memory_space<vmem>>, %arg6: memref<5x16x36xf32, #tpu.memory_space<vmem>>, %arg7: memref<16x1xf32, #tpu.memory_space<vmem>>, %arg8: memref<224x128xf32, #tpu.memory_space<vmem>>, %arg9: memref<128x53xf32, #tpu.memory_space<vmem>>, %arg10: memref<8x53x120xf32, #tpu.memory_space<vmem>>, %arg11: memref<1x120xf32, #tpu.memory_space<vmem>>, %arg12: memref<120x84xf32, #tpu.memory_space<vmem>>, %arg13: memref<1x84xf32, #tpu.memory_space<vmem>>, %arg14: memref<84x2xf32, #tpu.memory_space<vmem>>, %arg15: memref<1x2xf32, #tpu.memory_space<vmem>>, %arg16: memref<8x2xf32, #tpu.memory_space<vmem>>, %arg17: memref<8x120xf32, #tpu.memory_space<vmem>>) attributes {dimension_semantics = [#tpu.dimension_semantics<parallel>], iteration_bounds = array<i64: 2>, scalar_prefetch = 0 : i64, scratch_operands = 1 : i64, tpu.core_type = #tpu.core_type<tc>, window_params = [{transform_indices = @transform_0, window_bounds = array<i64: 4, 48, 224>}, {pipeline_mode = #tpu.pipeline_mode<synchronous>, transform_indices = @transform_1, window_bounds = array<i64: 5, 36, 48>}, {pipeline_mode = #tpu.pipeline_mode<synchronous>, transform_indices = @transform_2, window_bounds = array<i64: 5, 36, 48>}, {pipeline_mode = #tpu.pipeline_mode<synchronous>, transform_indices = @transform_3, window_bounds = array<i64: 36, 1>}, {pipeline_mode = #tpu.pipeline_mode<synchronous>, transform_indices = @transform_4, window_bounds = array<i64: 5, 16, 36>}, {pipeline_mode = #tpu.pipeline_mode<synchronous>, transform_indices = @transform_5, window_bounds = array<i64: 5, 16, 36>}, {pipeline_mode = #tpu.pipeline_mode<synchronous>, transform_indices = @transform_6, window_bounds = array<i64: 16, 1>}, {pipeline_mode = #tpu.pipeline_mode<synchronous>, transform_indices = @transform_7, window_bounds = array<i64: 224, 128>}, {pipeline_mode = #tpu.pipeline_mode<synchronous>, transform_indices = @transform_8, window_bounds = array<i64: 128, 53>}, {pipeline_mode = #tpu.pipeline_mode<synchronous>, transform_indices = @transform_9, window_bounds = array<i64: 8, 53, 120>}, {pipeline_mode = #tpu.pipeline_mode<synchronous>, transform_indices = @transform_10, window_bounds = array<i64: 1, 120>}, {pipeline_mode = #tpu.pipeline_mode<synchronous>, transform_indices = @transform_11, window_bounds = array<i64: 120, 84>}, {pipeline_mode = #tpu.pipeline_mode<synchronous>, transform_indices = @transform_12, window_bounds = array<i64: 1, 84>}, {pipeline_mode = #tpu.pipeline_mode<synchronous>, transform_indices = @transform_13, window_bounds = array<i64: 84, 2>}, {pipeline_mode = #tpu.pipeline_mode<synchronous>, transform_indices = @transform_14, window_bounds = array<i64: 1, 2>}, {transform_indices = @transform_15, window_bounds = array<i64: 8, 2>}]} {
    %c0 = arith.constant 0 : index
    %c0_0 = arith.constant 0 : index
    %c0_1 = arith.constant 0 : index
    %0 = vector.load %arg2[%c0, %c0_0, %c0_1] : memref<5x36x48xf32, #tpu.memory_space<vmem>>, vector<1x36x48xf32>
    %1 = vector.shape_cast %0 : vector<1x36x48xf32> to vector<36x48xf32>
    %c1 = arith.constant 1 : index
    %c0_2 = arith.constant 0 : index
    %c0_3 = arith.constant 0 : index
    %2 = vector.load %arg2[%c1, %c0_2, %c0_3] : memref<5x36x48xf32, #tpu.memory_space<vmem>>, vector<1x36x48xf32>
    %3 = vector.shape_cast %2 : vector<1x36x48xf32> to vector<36x48xf32>
    %c2 = arith.constant 2 : index
    %c0_4 = arith.constant 0 : index
    %c0_5 = arith.constant 0 : index
    %4 = vector.load %arg2[%c2, %c0_4, %c0_5] : memref<5x36x48xf32, #tpu.memory_space<vmem>>, vector<1x36x48xf32>
    %5 = vector.shape_cast %4 : vector<1x36x48xf32> to vector<36x48xf32>
    %c3 = arith.constant 3 : index
    %c0_6 = arith.constant 0 : index
    %c0_7 = arith.constant 0 : index
    %6 = vector.load %arg2[%c3, %c0_6, %c0_7] : memref<5x36x48xf32, #tpu.memory_space<vmem>>, vector<1x36x48xf32>
    %7 = vector.shape_cast %6 : vector<1x36x48xf32> to vector<36x48xf32>
    %c4 = arith.constant 4 : index
    %c0_8 = arith.constant 0 : index
    %c0_9 = arith.constant 0 : index
    %8 = vector.load %arg2[%c4, %c0_8, %c0_9] : memref<5x36x48xf32, #tpu.memory_space<vmem>>, vector<1x36x48xf32>
    %9 = vector.shape_cast %8 : vector<1x36x48xf32> to vector<36x48xf32>
    %c0_10 = arith.constant 0 : index
    %c0_11 = arith.constant 0 : index
    %c0_12 = arith.constant 0 : index
    %10 = vector.load %arg3[%c0_10, %c0_11, %c0_12] : memref<5x36x48xf32, #tpu.memory_space<vmem>>, vector<1x36x48xf32>
    %11 = vector.shape_cast %10 : vector<1x36x48xf32> to vector<36x48xf32>
    %c1_13 = arith.constant 1 : index
    %c0_14 = arith.constant 0 : index
    %c0_15 = arith.constant 0 : index
    %12 = vector.load %arg3[%c1_13, %c0_14, %c0_15] : memref<5x36x48xf32, #tpu.memory_space<vmem>>, vector<1x36x48xf32>
    %13 = vector.shape_cast %12 : vector<1x36x48xf32> to vector<36x48xf32>
    %c2_16 = arith.constant 2 : index
    %c0_17 = arith.constant 0 : index
    %c0_18 = arith.constant 0 : index
    %14 = vector.load %arg3[%c2_16, %c0_17, %c0_18] : memref<5x36x48xf32, #tpu.memory_space<vmem>>, vector<1x36x48xf32>
    %15 = vector.shape_cast %14 : vector<1x36x48xf32> to vector<36x48xf32>
    %c3_19 = arith.constant 3 : index
    %c0_20 = arith.constant 0 : index
    %c0_21 = arith.constant 0 : index
    %16 = vector.load %arg3[%c3_19, %c0_20, %c0_21] : memref<5x36x48xf32, #tpu.memory_space<vmem>>, vector<1x36x48xf32>
    %17 = vector.shape_cast %16 : vector<1x36x48xf32> to vector<36x48xf32>
    %c4_22 = arith.constant 4 : index
    %c0_23 = arith.constant 0 : index
    %c0_24 = arith.constant 0 : index
    %18 = vector.load %arg3[%c4_22, %c0_23, %c0_24] : memref<5x36x48xf32, #tpu.memory_space<vmem>>, vector<1x36x48xf32>
    %19 = vector.shape_cast %18 : vector<1x36x48xf32> to vector<36x48xf32>
    %c0_25 = arith.constant 0 : index
    %c0_26 = arith.constant 0 : index
    %c0_27 = arith.constant 0 : index
    %20 = vector.load %arg5[%c0_25, %c0_26, %c0_27] : memref<5x16x36xf32, #tpu.memory_space<vmem>>, vector<1x16x36xf32>
    %21 = vector.shape_cast %20 : vector<1x16x36xf32> to vector<16x36xf32>
    %c1_28 = arith.constant 1 : index
    %c0_29 = arith.constant 0 : index
    %c0_30 = arith.constant 0 : index
    %22 = vector.load %arg5[%c1_28, %c0_29, %c0_30] : memref<5x16x36xf32, #tpu.memory_space<vmem>>, vector<1x16x36xf32>
    %23 = vector.shape_cast %22 : vector<1x16x36xf32> to vector<16x36xf32>
    %c2_31 = arith.constant 2 : index
    %c0_32 = arith.constant 0 : index
    %c0_33 = arith.constant 0 : index
    %24 = vector.load %arg5[%c2_31, %c0_32, %c0_33] : memref<5x16x36xf32, #tpu.memory_space<vmem>>, vector<1x16x36xf32>
    %25 = vector.shape_cast %24 : vector<1x16x36xf32> to vector<16x36xf32>
    %c3_34 = arith.constant 3 : index
    %c0_35 = arith.constant 0 : index
    %c0_36 = arith.constant 0 : index
    %26 = vector.load %arg5[%c3_34, %c0_35, %c0_36] : memref<5x16x36xf32, #tpu.memory_space<vmem>>, vector<1x16x36xf32>
    %27 = vector.shape_cast %26 : vector<1x16x36xf32> to vector<16x36xf32>
    %c4_37 = arith.constant 4 : index
    %c0_38 = arith.constant 0 : index
    %c0_39 = arith.constant 0 : index
    %28 = vector.load %arg5[%c4_37, %c0_38, %c0_39] : memref<5x16x36xf32, #tpu.memory_space<vmem>>, vector<1x16x36xf32>
    %29 = vector.shape_cast %28 : vector<1x16x36xf32> to vector<16x36xf32>
    %c0_40 = arith.constant 0 : index
    %c0_41 = arith.constant 0 : index
    %c0_42 = arith.constant 0 : index
    %30 = vector.load %arg6[%c0_40, %c0_41, %c0_42] : memref<5x16x36xf32, #tpu.memory_space<vmem>>, vector<1x16x36xf32>
    %31 = vector.shape_cast %30 : vector<1x16x36xf32> to vector<16x36xf32>
    %c1_43 = arith.constant 1 : index
    %c0_44 = arith.constant 0 : index
    %c0_45 = arith.constant 0 : index
    %32 = vector.load %arg6[%c1_43, %c0_44, %c0_45] : memref<5x16x36xf32, #tpu.memory_space<vmem>>, vector<1x16x36xf32>
    %33 = vector.shape_cast %32 : vector<1x16x36xf32> to vector<16x36xf32>
    %c2_46 = arith.constant 2 : index
    %c0_47 = arith.constant 0 : index
    %c0_48 = arith.constant 0 : index
    %34 = vector.load %arg6[%c2_46, %c0_47, %c0_48] : memref<5x16x36xf32, #tpu.memory_space<vmem>>, vector<1x16x36xf32>
    %35 = vector.shape_cast %34 : vector<1x16x36xf32> to vector<16x36xf32>
    %c3_49 = arith.constant 3 : index
    %c0_50 = arith.constant 0 : index
    %c0_51 = arith.constant 0 : index
    %36 = vector.load %arg6[%c3_49, %c0_50, %c0_51] : memref<5x16x36xf32, #tpu.memory_space<vmem>>, vector<1x16x36xf32>
    %37 = vector.shape_cast %36 : vector<1x16x36xf32> to vector<16x36xf32>
    %c4_52 = arith.constant 4 : index
    %c0_53 = arith.constant 0 : index
    %c0_54 = arith.constant 0 : index
    %38 = vector.load %arg6[%c4_52, %c0_53, %c0_54] : memref<5x16x36xf32, #tpu.memory_space<vmem>>, vector<1x16x36xf32>
    %39 = vector.shape_cast %38 : vector<1x16x36xf32> to vector<16x36xf32>
    %c0_55 = arith.constant 0 : index
    %c0_56 = arith.constant 0 : index
    %40 = vector.load %arg4[%c0_55, %c0_56] : memref<36x1xf32, #tpu.memory_space<vmem>>, vector<36x1xf32>
    %c0_57 = arith.constant 0 : index
    %c0_58 = arith.constant 0 : index
    %41 = vector.load %arg7[%c0_57, %c0_58] : memref<16x1xf32, #tpu.memory_space<vmem>>, vector<16x1xf32>
    %c0_59 = arith.constant 0 : index
    %c0_60 = arith.constant 0 : index
    %42 = vector.load %arg8[%c0_59, %c0_60] : memref<224x128xf32, #tpu.memory_space<vmem>>, vector<224x128xf32>
    %c0_61 = arith.constant 0 : index
    %c0_62 = arith.constant 0 : index
    %43 = vector.load %arg9[%c0_61, %c0_62] : memref<128x53xf32, #tpu.memory_space<vmem>>, vector<128x53xf32>
    %c0_63 = arith.constant 0 : index
    %c0_64 = arith.constant 0 : index
    %c0_65 = arith.constant 0 : index
    %44 = vector.load %arg10[%c0_63, %c0_64, %c0_65] : memref<8x53x120xf32, #tpu.memory_space<vmem>>, vector<1x53x120xf32>
    %45 = vector.shape_cast %44 : vector<1x53x120xf32> to vector<53x120xf32>
    %c1_66 = arith.constant 1 : index
    %c0_67 = arith.constant 0 : index
    %c0_68 = arith.constant 0 : index
    %46 = vector.load %arg10[%c1_66, %c0_67, %c0_68] : memref<8x53x120xf32, #tpu.memory_space<vmem>>, vector<1x53x120xf32>
    %47 = vector.shape_cast %46 : vector<1x53x120xf32> to vector<53x120xf32>
    %c2_69 = arith.constant 2 : index
    %c0_70 = arith.constant 0 : index
    %c0_71 = arith.constant 0 : index
    %48 = vector.load %arg10[%c2_69, %c0_70, %c0_71] : memref<8x53x120xf32, #tpu.memory_space<vmem>>, vector<1x53x120xf32>
    %49 = vector.shape_cast %48 : vector<1x53x120xf32> to vector<53x120xf32>
    %c3_72 = arith.constant 3 : index
    %c0_73 = arith.constant 0 : index
    %c0_74 = arith.constant 0 : index
    %50 = vector.load %arg10[%c3_72, %c0_73, %c0_74] : memref<8x53x120xf32, #tpu.memory_space<vmem>>, vector<1x53x120xf32>
    %51 = vector.shape_cast %50 : vector<1x53x120xf32> to vector<53x120xf32>
    %c4_75 = arith.constant 4 : index
    %c0_76 = arith.constant 0 : index
    %c0_77 = arith.constant 0 : index
    %52 = vector.load %arg10[%c4_75, %c0_76, %c0_77] : memref<8x53x120xf32, #tpu.memory_space<vmem>>, vector<1x53x120xf32>
    %53 = vector.shape_cast %52 : vector<1x53x120xf32> to vector<53x120xf32>
    %c5 = arith.constant 5 : index
    %c0_78 = arith.constant 0 : index
    %c0_79 = arith.constant 0 : index
    %54 = vector.load %arg10[%c5, %c0_78, %c0_79] : memref<8x53x120xf32, #tpu.memory_space<vmem>>, vector<1x53x120xf32>
    %55 = vector.shape_cast %54 : vector<1x53x120xf32> to vector<53x120xf32>
    %c6 = arith.constant 6 : index
    %c0_80 = arith.constant 0 : index
    %c0_81 = arith.constant 0 : index
    %56 = vector.load %arg10[%c6, %c0_80, %c0_81] : memref<8x53x120xf32, #tpu.memory_space<vmem>>, vector<1x53x120xf32>
    %57 = vector.shape_cast %56 : vector<1x53x120xf32> to vector<53x120xf32>
    %c7 = arith.constant 7 : index
    %c0_82 = arith.constant 0 : index
    %c0_83 = arith.constant 0 : index
    %58 = vector.load %arg10[%c7, %c0_82, %c0_83] : memref<8x53x120xf32, #tpu.memory_space<vmem>>, vector<1x53x120xf32>
    %59 = vector.shape_cast %58 : vector<1x53x120xf32> to vector<53x120xf32>
    %c0_84 = arith.constant 0 : index
    %c0_85 = arith.constant 0 : index
    %60 = vector.load %arg11[%c0_84, %c0_85] : memref<1x120xf32, #tpu.memory_space<vmem>>, vector<1x120xf32>
    %c0_86 = arith.constant 0 : index
    %c0_87 = arith.constant 0 : index
    %c0_88 = arith.constant 0 : index
    %61 = vector.load %arg1[%c0_86, %c0_87, %c0_88] : memref<4x48x224xf32, #tpu.memory_space<vmem>>, vector<1x48x224xf32>
    %62 = vector.shape_cast %61 : vector<1x48x224xf32> to vector<48x224xf32>
    %cst = arith.constant dense<0.000000e+00> : vector<36x224xf32>
    %63 = tpu.matmul %1, %62, %cst {dimension_numbers = #tpu.dot_dimension_numbers<[1], [0], [0], [1], [0, 0, 1, 1], [], []>} : vector<36x48xf32>, vector<48x224xf32>, vector<36x224xf32> -> vector<36x224xf32>
    %cst_89 = arith.constant dense<0.000000e+00> : vector<36x224xf32>
    %64 = tpu.matmul %11, %62, %cst_89 {dimension_numbers = #tpu.dot_dimension_numbers<[1], [0], [0], [1], [0, 0, 1, 1], [], []>} : vector<36x48xf32>, vector<48x224xf32>, vector<36x224xf32> -> vector<36x224xf32>
    %c223_i32 = arith.constant 223 : i32
    %65 = tpu.dynamic_rotate %62 by %c223_i32 dim 1 : vector<48x224xf32>, i32 -> vector<48x224xf32>
    %cst_90 = arith.constant dense<0.000000e+00> : vector<36x224xf32>
    %66 = tpu.matmul %3, %65, %cst_90 {dimension_numbers = #tpu.dot_dimension_numbers<[1], [0], [0], [1], [0, 0, 1, 1], [], []>} : vector<36x48xf32>, vector<48x224xf32>, vector<36x224xf32> -> vector<36x224xf32>
    %67 = arith.addf %63, %66 : vector<36x224xf32>
    %cst_91 = arith.constant dense<0.000000e+00> : vector<36x224xf32>
    %68 = tpu.matmul %13, %65, %cst_91 {dimension_numbers = #tpu.dot_dimension_numbers<[1], [0], [0], [1], [0, 0, 1, 1], [], []>} : vector<36x48xf32>, vector<48x224xf32>, vector<36x224xf32> -> vector<36x224xf32>
    %69 = arith.addf %64, %68 : vector<36x224xf32>
    %c222_i32 = arith.constant 222 : i32
    %70 = tpu.dynamic_rotate %62 by %c222_i32 dim 1 : vector<48x224xf32>, i32 -> vector<48x224xf32>
    %cst_92 = arith.constant dense<0.000000e+00> : vector<36x224xf32>
    %71 = tpu.matmul %5, %70, %cst_92 {dimension_numbers = #tpu.dot_dimension_numbers<[1], [0], [0], [1], [0, 0, 1, 1], [], []>} : vector<36x48xf32>, vector<48x224xf32>, vector<36x224xf32> -> vector<36x224xf32>
    %72 = arith.addf %67, %71 : vector<36x224xf32>
    %cst_93 = arith.constant dense<0.000000e+00> : vector<36x224xf32>
    %73 = tpu.matmul %15, %70, %cst_93 {dimension_numbers = #tpu.dot_dimension_numbers<[1], [0], [0], [1], [0, 0, 1, 1], [], []>} : vector<36x48xf32>, vector<48x224xf32>, vector<36x224xf32> -> vector<36x224xf32>
    %74 = arith.addf %69, %73 : vector<36x224xf32>
    %c221_i32 = arith.constant 221 : i32
    %75 = tpu.dynamic_rotate %62 by %c221_i32 dim 1 : vector<48x224xf32>, i32 -> vector<48x224xf32>
    %cst_94 = arith.constant dense<0.000000e+00> : vector<36x224xf32>
    %76 = tpu.matmul %7, %75, %cst_94 {dimension_numbers = #tpu.dot_dimension_numbers<[1], [0], [0], [1], [0, 0, 1, 1], [], []>} : vector<36x48xf32>, vector<48x224xf32>, vector<36x224xf32> -> vector<36x224xf32>
    %77 = arith.addf %72, %76 : vector<36x224xf32>
    %cst_95 = arith.constant dense<0.000000e+00> : vector<36x224xf32>
    %78 = tpu.matmul %17, %75, %cst_95 {dimension_numbers = #tpu.dot_dimension_numbers<[1], [0], [0], [1], [0, 0, 1, 1], [], []>} : vector<36x48xf32>, vector<48x224xf32>, vector<36x224xf32> -> vector<36x224xf32>
    %79 = arith.addf %74, %78 : vector<36x224xf32>
    %c220_i32 = arith.constant 220 : i32
    %80 = tpu.dynamic_rotate %62 by %c220_i32 dim 1 : vector<48x224xf32>, i32 -> vector<48x224xf32>
    %cst_96 = arith.constant dense<0.000000e+00> : vector<36x224xf32>
    %81 = tpu.matmul %9, %80, %cst_96 {dimension_numbers = #tpu.dot_dimension_numbers<[1], [0], [0], [1], [0, 0, 1, 1], [], []>} : vector<36x48xf32>, vector<48x224xf32>, vector<36x224xf32> -> vector<36x224xf32>
    %82 = arith.addf %77, %81 : vector<36x224xf32>
    %cst_97 = arith.constant dense<0.000000e+00> : vector<36x224xf32>
    %83 = tpu.matmul %19, %80, %cst_97 {dimension_numbers = #tpu.dot_dimension_numbers<[1], [0], [0], [1], [0, 0, 1, 1], [], []>} : vector<36x48xf32>, vector<48x224xf32>, vector<36x224xf32> -> vector<36x224xf32>
    %84 = arith.addf %79, %83 : vector<36x224xf32>
    %85 = arith.maximumf %82, %84 : vector<36x224xf32>
    %c223_i32_98 = arith.constant 223 : i32
    %86 = tpu.dynamic_rotate %85 by %c223_i32_98 dim 1 : vector<36x224xf32>, i32 -> vector<36x224xf32>
    %87 = arith.maximumf %85, %86 : vector<36x224xf32>
    %cst_99 = arith.constant dense<0.000000e+00> : vector<36x128xf32>
    %88 = tpu.matmul %87, %42, %cst_99 {dimension_numbers = #tpu.dot_dimension_numbers<[1], [0], [0], [1], [0, 0, 1, 1], [], []>} : vector<36x224xf32>, vector<224x128xf32>, vector<36x128xf32> -> vector<36x128xf32>
    %89 = vector.broadcast %40 : vector<36x1xf32> to vector<36x128xf32>
    %90 = arith.addf %88, %89 : vector<36x128xf32>
    %cst_100 = arith.constant 0.000000e+00 : f32
    %91 = vector.broadcast %cst_100 : f32 to vector<36x128xf32>
    %92 = arith.maximumf %90, %91 : vector<36x128xf32>
    %cst_101 = arith.constant dense<0.000000e+00> : vector<16x128xf32>
    %93 = tpu.matmul %21, %92, %cst_101 {dimension_numbers = #tpu.dot_dimension_numbers<[1], [0], [0], [1], [0, 0, 1, 1], [], []>} : vector<16x36xf32>, vector<36x128xf32>, vector<16x128xf32> -> vector<16x128xf32>
    %cst_102 = arith.constant dense<0.000000e+00> : vector<16x128xf32>
    %94 = tpu.matmul %31, %92, %cst_102 {dimension_numbers = #tpu.dot_dimension_numbers<[1], [0], [0], [1], [0, 0, 1, 1], [], []>} : vector<16x36xf32>, vector<36x128xf32>, vector<16x128xf32> -> vector<16x128xf32>
    %c127_i32 = arith.constant 127 : i32
    %95 = tpu.dynamic_rotate %92 by %c127_i32 dim 1 : vector<36x128xf32>, i32 -> vector<36x128xf32>
    %cst_103 = arith.constant dense<0.000000e+00> : vector<16x128xf32>
    %96 = tpu.matmul %23, %95, %cst_103 {dimension_numbers = #tpu.dot_dimension_numbers<[1], [0], [0], [1], [0, 0, 1, 1], [], []>} : vector<16x36xf32>, vector<36x128xf32>, vector<16x128xf32> -> vector<16x128xf32>
    %97 = arith.addf %93, %96 : vector<16x128xf32>
    %cst_104 = arith.constant dense<0.000000e+00> : vector<16x128xf32>
    %98 = tpu.matmul %33, %95, %cst_104 {dimension_numbers = #tpu.dot_dimension_numbers<[1], [0], [0], [1], [0, 0, 1, 1], [], []>} : vector<16x36xf32>, vector<36x128xf32>, vector<16x128xf32> -> vector<16x128xf32>
    %99 = arith.addf %94, %98 : vector<16x128xf32>
    %c126_i32 = arith.constant 126 : i32
    %100 = tpu.dynamic_rotate %92 by %c126_i32 dim 1 : vector<36x128xf32>, i32 -> vector<36x128xf32>
    %cst_105 = arith.constant dense<0.000000e+00> : vector<16x128xf32>
    %101 = tpu.matmul %25, %100, %cst_105 {dimension_numbers = #tpu.dot_dimension_numbers<[1], [0], [0], [1], [0, 0, 1, 1], [], []>} : vector<16x36xf32>, vector<36x128xf32>, vector<16x128xf32> -> vector<16x128xf32>
    %102 = arith.addf %97, %101 : vector<16x128xf32>
    %cst_106 = arith.constant dense<0.000000e+00> : vector<16x128xf32>
    %103 = tpu.matmul %35, %100, %cst_106 {dimension_numbers = #tpu.dot_dimension_numbers<[1], [0], [0], [1], [0, 0, 1, 1], [], []>} : vector<16x36xf32>, vector<36x128xf32>, vector<16x128xf32> -> vector<16x128xf32>
    %104 = arith.addf %99, %103 : vector<16x128xf32>
    %c125_i32 = arith.constant 125 : i32
    %105 = tpu.dynamic_rotate %92 by %c125_i32 dim 1 : vector<36x128xf32>, i32 -> vector<36x128xf32>
    %cst_107 = arith.constant dense<0.000000e+00> : vector<16x128xf32>
    %106 = tpu.matmul %27, %105, %cst_107 {dimension_numbers = #tpu.dot_dimension_numbers<[1], [0], [0], [1], [0, 0, 1, 1], [], []>} : vector<16x36xf32>, vector<36x128xf32>, vector<16x128xf32> -> vector<16x128xf32>
    %107 = arith.addf %102, %106 : vector<16x128xf32>
    %cst_108 = arith.constant dense<0.000000e+00> : vector<16x128xf32>
    %108 = tpu.matmul %37, %105, %cst_108 {dimension_numbers = #tpu.dot_dimension_numbers<[1], [0], [0], [1], [0, 0, 1, 1], [], []>} : vector<16x36xf32>, vector<36x128xf32>, vector<16x128xf32> -> vector<16x128xf32>
    %109 = arith.addf %104, %108 : vector<16x128xf32>
    %c124_i32 = arith.constant 124 : i32
    %110 = tpu.dynamic_rotate %92 by %c124_i32 dim 1 : vector<36x128xf32>, i32 -> vector<36x128xf32>
    %cst_109 = arith.constant dense<0.000000e+00> : vector<16x128xf32>
    %111 = tpu.matmul %29, %110, %cst_109 {dimension_numbers = #tpu.dot_dimension_numbers<[1], [0], [0], [1], [0, 0, 1, 1], [], []>} : vector<16x36xf32>, vector<36x128xf32>, vector<16x128xf32> -> vector<16x128xf32>
    %112 = arith.addf %107, %111 : vector<16x128xf32>
    %cst_110 = arith.constant dense<0.000000e+00> : vector<16x128xf32>
    %113 = tpu.matmul %39, %110, %cst_110 {dimension_numbers = #tpu.dot_dimension_numbers<[1], [0], [0], [1], [0, 0, 1, 1], [], []>} : vector<16x36xf32>, vector<36x128xf32>, vector<16x128xf32> -> vector<16x128xf32>
    %114 = arith.addf %109, %113 : vector<16x128xf32>
    %115 = arith.maximumf %112, %114 : vector<16x128xf32>
    %c127_i32_111 = arith.constant 127 : i32
    %116 = tpu.dynamic_rotate %115 by %c127_i32_111 dim 1 : vector<16x128xf32>, i32 -> vector<16x128xf32>
    %117 = arith.maximumf %115, %116 : vector<16x128xf32>
    %cst_112 = arith.constant dense<0.000000e+00> : vector<16x53xf32>
    %118 = tpu.matmul %117, %43, %cst_112 {dimension_numbers = #tpu.dot_dimension_numbers<[1], [0], [0], [1], [0, 0, 1, 1], [], []>} : vector<16x128xf32>, vector<128x53xf32>, vector<16x53xf32> -> vector<16x53xf32>
    %119 = vector.broadcast %41 : vector<16x1xf32> to vector<16x53xf32>
    %120 = arith.addf %118, %119 : vector<16x53xf32>
    %cst_113 = arith.constant 0.000000e+00 : f32
    %121 = vector.broadcast %cst_113 : f32 to vector<16x53xf32>
    %122 = arith.maximumf %120, %121 : vector<16x53xf32>
    %123 = vector.extract_strided_slice %122 {offsets = [0, 0], sizes = [2, 53], strides = [1, 1]} : vector<16x53xf32> to vector<2x53xf32>
    %cst_114 = arith.constant dense<0.000000e+00> : vector<2x120xf32>
    %124 = tpu.matmul %123, %45, %cst_114 {dimension_numbers = #tpu.dot_dimension_numbers<[1], [0], [0], [1], [0, 0, 1, 1], [], []>} : vector<2x53xf32>, vector<53x120xf32>, vector<2x120xf32> -> vector<2x120xf32>
    %125 = vector.extract_strided_slice %122 {offsets = [2, 0], sizes = [2, 53], strides = [1, 1]} : vector<16x53xf32> to vector<2x53xf32>
    %cst_115 = arith.constant dense<0.000000e+00> : vector<2x120xf32>
    %126 = tpu.matmul %125, %47, %cst_115 {dimension_numbers = #tpu.dot_dimension_numbers<[1], [0], [0], [1], [0, 0, 1, 1], [], []>} : vector<2x53xf32>, vector<53x120xf32>, vector<2x120xf32> -> vector<2x120xf32>
    %127 = arith.addf %124, %126 : vector<2x120xf32>
    %128 = vector.extract_strided_slice %122 {offsets = [4, 0], sizes = [2, 53], strides = [1, 1]} : vector<16x53xf32> to vector<2x53xf32>
    %cst_116 = arith.constant dense<0.000000e+00> : vector<2x120xf32>
    %129 = tpu.matmul %128, %49, %cst_116 {dimension_numbers = #tpu.dot_dimension_numbers<[1], [0], [0], [1], [0, 0, 1, 1], [], []>} : vector<2x53xf32>, vector<53x120xf32>, vector<2x120xf32> -> vector<2x120xf32>
    %130 = arith.addf %127, %129 : vector<2x120xf32>
    %131 = vector.extract_strided_slice %122 {offsets = [6, 0], sizes = [2, 53], strides = [1, 1]} : vector<16x53xf32> to vector<2x53xf32>
    %cst_117 = arith.constant dense<0.000000e+00> : vector<2x120xf32>
    %132 = tpu.matmul %131, %51, %cst_117 {dimension_numbers = #tpu.dot_dimension_numbers<[1], [0], [0], [1], [0, 0, 1, 1], [], []>} : vector<2x53xf32>, vector<53x120xf32>, vector<2x120xf32> -> vector<2x120xf32>
    %133 = arith.addf %130, %132 : vector<2x120xf32>
    %134 = vector.extract_strided_slice %122 {offsets = [8, 0], sizes = [2, 53], strides = [1, 1]} : vector<16x53xf32> to vector<2x53xf32>
    %cst_118 = arith.constant dense<0.000000e+00> : vector<2x120xf32>
    %135 = tpu.matmul %134, %53, %cst_118 {dimension_numbers = #tpu.dot_dimension_numbers<[1], [0], [0], [1], [0, 0, 1, 1], [], []>} : vector<2x53xf32>, vector<53x120xf32>, vector<2x120xf32> -> vector<2x120xf32>
    %136 = arith.addf %133, %135 : vector<2x120xf32>
    %137 = vector.extract_strided_slice %122 {offsets = [10, 0], sizes = [2, 53], strides = [1, 1]} : vector<16x53xf32> to vector<2x53xf32>
    %cst_119 = arith.constant dense<0.000000e+00> : vector<2x120xf32>
    %138 = tpu.matmul %137, %55, %cst_119 {dimension_numbers = #tpu.dot_dimension_numbers<[1], [0], [0], [1], [0, 0, 1, 1], [], []>} : vector<2x53xf32>, vector<53x120xf32>, vector<2x120xf32> -> vector<2x120xf32>
    %139 = arith.addf %136, %138 : vector<2x120xf32>
    %140 = vector.extract_strided_slice %122 {offsets = [12, 0], sizes = [2, 53], strides = [1, 1]} : vector<16x53xf32> to vector<2x53xf32>
    %cst_120 = arith.constant dense<0.000000e+00> : vector<2x120xf32>
    %141 = tpu.matmul %140, %57, %cst_120 {dimension_numbers = #tpu.dot_dimension_numbers<[1], [0], [0], [1], [0, 0, 1, 1], [], []>} : vector<2x53xf32>, vector<53x120xf32>, vector<2x120xf32> -> vector<2x120xf32>
    %142 = arith.addf %139, %141 : vector<2x120xf32>
    %143 = vector.extract_strided_slice %122 {offsets = [14, 0], sizes = [2, 53], strides = [1, 1]} : vector<16x53xf32> to vector<2x53xf32>
    %cst_121 = arith.constant dense<0.000000e+00> : vector<2x120xf32>
    %144 = tpu.matmul %143, %59, %cst_121 {dimension_numbers = #tpu.dot_dimension_numbers<[1], [0], [0], [1], [0, 0, 1, 1], [], []>} : vector<2x53xf32>, vector<53x120xf32>, vector<2x120xf32> -> vector<2x120xf32>
    %145 = arith.addf %142, %144 : vector<2x120xf32>
    %146 = vector.broadcast %60 : vector<1x120xf32> to vector<2x120xf32>
    %147 = arith.addf %145, %146 : vector<2x120xf32>
    %cst_122 = arith.constant 0.000000e+00 : f32
    %148 = vector.broadcast %cst_122 : f32 to vector<2x120xf32>
    %149 = arith.maximumf %147, %148 : vector<2x120xf32>
    %c0_123 = arith.constant 0 : index
    %c0_124 = arith.constant 0 : index
    %150 = vector.load %arg17[%c0_123, %c0_124] : memref<8x120xf32, #tpu.memory_space<vmem>>, vector<2x120xf32>
    tpu.vector_store %arg17[%c0_123, %c0_124], %149 {strides = array<i32>} : memref<8x120xf32, #tpu.memory_space<vmem>>, vector<2x120xf32>,
    %c1_125 = arith.constant 1 : index
    %c0_126 = arith.constant 0 : index
    %c0_127 = arith.constant 0 : index
    %151 = vector.load %arg1[%c1_125, %c0_126, %c0_127] : memref<4x48x224xf32, #tpu.memory_space<vmem>>, vector<1x48x224xf32>
    %152 = vector.shape_cast %151 : vector<1x48x224xf32> to vector<48x224xf32>
    %cst_128 = arith.constant dense<0.000000e+00> : vector<36x224xf32>
    %153 = tpu.matmul %1, %152, %cst_128 {dimension_numbers = #tpu.dot_dimension_numbers<[1], [0], [0], [1], [0, 0, 1, 1], [], []>} : vector<36x48xf32>, vector<48x224xf32>, vector<36x224xf32> -> vector<36x224xf32>
    %cst_129 = arith.constant dense<0.000000e+00> : vector<36x224xf32>
    %154 = tpu.matmul %11, %152, %cst_129 {dimension_numbers = #tpu.dot_dimension_numbers<[1], [0], [0], [1], [0, 0, 1, 1], [], []>} : vector<36x48xf32>, vector<48x224xf32>, vector<36x224xf32> -> vector<36x224xf32>
    %c223_i32_130 = arith.constant 223 : i32
    %155 = tpu.dynamic_rotate %152 by %c223_i32_130 dim 1 : vector<48x224xf32>, i32 -> vector<48x224xf32>
    %cst_131 = arith.constant dense<0.000000e+00> : vector<36x224xf32>
    %156 = tpu.matmul %3, %155, %cst_131 {dimension_numbers = #tpu.dot_dimension_numbers<[1], [0], [0], [1], [0, 0, 1, 1], [], []>} : vector<36x48xf32>, vector<48x224xf32>, vector<36x224xf32> -> vector<36x224xf32>
    %157 = arith.addf %153, %156 : vector<36x224xf32>
    %cst_132 = arith.constant dense<0.000000e+00> : vector<36x224xf32>
    %158 = tpu.matmul %13, %155, %cst_132 {dimension_numbers = #tpu.dot_dimension_numbers<[1], [0], [0], [1], [0, 0, 1, 1], [], []>} : vector<36x48xf32>, vector<48x224xf32>, vector<36x224xf32> -> vector<36x224xf32>
    %159 = arith.addf %154, %158 : vector<36x224xf32>
    %c222_i32_133 = arith.constant 222 : i32
    %160 = tpu.dynamic_rotate %152 by %c222_i32_133 dim 1 : vector<48x224xf32>, i32 -> vector<48x224xf32>
    %cst_134 = arith.constant dense<0.000000e+00> : vector<36x224xf32>
    %161 = tpu.matmul %5, %160, %cst_134 {dimension_numbers = #tpu.dot_dimension_numbers<[1], [0], [0], [1], [0, 0, 1, 1], [], []>} : vector<36x48xf32>, vector<48x224xf32>, vector<36x224xf32> -> vector<36x224xf32>
    %162 = arith.addf %157, %161 : vector<36x224xf32>
    %cst_135 = arith.constant dense<0.000000e+00> : vector<36x224xf32>
    %163 = tpu.matmul %15, %160, %cst_135 {dimension_numbers = #tpu.dot_dimension_numbers<[1], [0], [0], [1], [0, 0, 1, 1], [], []>} : vector<36x48xf32>, vector<48x224xf32>, vector<36x224xf32> -> vector<36x224xf32>
    %164 = arith.addf %159, %163 : vector<36x224xf32>
    %c221_i32_136 = arith.constant 221 : i32
    %165 = tpu.dynamic_rotate %152 by %c221_i32_136 dim 1 : vector<48x224xf32>, i32 -> vector<48x224xf32>
    %cst_137 = arith.constant dense<0.000000e+00> : vector<36x224xf32>
    %166 = tpu.matmul %7, %165, %cst_137 {dimension_numbers = #tpu.dot_dimension_numbers<[1], [0], [0], [1], [0, 0, 1, 1], [], []>} : vector<36x48xf32>, vector<48x224xf32>, vector<36x224xf32> -> vector<36x224xf32>
    %167 = arith.addf %162, %166 : vector<36x224xf32>
    %cst_138 = arith.constant dense<0.000000e+00> : vector<36x224xf32>
    %168 = tpu.matmul %17, %165, %cst_138 {dimension_numbers = #tpu.dot_dimension_numbers<[1], [0], [0], [1], [0, 0, 1, 1], [], []>} : vector<36x48xf32>, vector<48x224xf32>, vector<36x224xf32> -> vector<36x224xf32>
    %169 = arith.addf %164, %168 : vector<36x224xf32>
    %c220_i32_139 = arith.constant 220 : i32
    %170 = tpu.dynamic_rotate %152 by %c220_i32_139 dim 1 : vector<48x224xf32>, i32 -> vector<48x224xf32>
    %cst_140 = arith.constant dense<0.000000e+00> : vector<36x224xf32>
    %171 = tpu.matmul %9, %170, %cst_140 {dimension_numbers = #tpu.dot_dimension_numbers<[1], [0], [0], [1], [0, 0, 1, 1], [], []>} : vector<36x48xf32>, vector<48x224xf32>, vector<36x224xf32> -> vector<36x224xf32>
    %172 = arith.addf %167, %171 : vector<36x224xf32>
    %cst_141 = arith.constant dense<0.000000e+00> : vector<36x224xf32>
    %173 = tpu.matmul %19, %170, %cst_141 {dimension_numbers = #tpu.dot_dimension_numbers<[1], [0], [0], [1], [0, 0, 1, 1], [], []>} : vector<36x48xf32>, vector<48x224xf32>, vector<36x224xf32> -> vector<36x224xf32>
    %174 = arith.addf %169, %173 : vector<36x224xf32>
    %175 = arith.maximumf %172, %174 : vector<36x224xf32>
    %c223_i32_142 = arith.constant 223 : i32
    %176 = tpu.dynamic_rotate %175 by %c223_i32_142 dim 1 : vector<36x224xf32>, i32 -> vector<36x224xf32>
    %177 = arith.maximumf %175, %176 : vector<36x224xf32>
    %cst_143 = arith.constant dense<0.000000e+00> : vector<36x128xf32>
    %178 = tpu.matmul %177, %42, %cst_143 {dimension_numbers = #tpu.dot_dimension_numbers<[1], [0], [0], [1], [0, 0, 1, 1], [], []>} : vector<36x224xf32>, vector<224x128xf32>, vector<36x128xf32> -> vector<36x128xf32>
    %179 = vector.broadcast %40 : vector<36x1xf32> to vector<36x128xf32>
    %180 = arith.addf %178, %179 : vector<36x128xf32>
    %cst_144 = arith.constant 0.000000e+00 : f32
    %181 = vector.broadcast %cst_144 : f32 to vector<36x128xf32>
    %182 = arith.maximumf %180, %181 : vector<36x128xf32>
    %cst_145 = arith.constant dense<0.000000e+00> : vector<16x128xf32>
    %183 = tpu.matmul %21, %182, %cst_145 {dimension_numbers = #tpu.dot_dimension_numbers<[1], [0], [0], [1], [0, 0, 1, 1], [], []>} : vector<16x36xf32>, vector<36x128xf32>, vector<16x128xf32> -> vector<16x128xf32>
    %cst_146 = arith.constant dense<0.000000e+00> : vector<16x128xf32>
    %184 = tpu.matmul %31, %182, %cst_146 {dimension_numbers = #tpu.dot_dimension_numbers<[1], [0], [0], [1], [0, 0, 1, 1], [], []>} : vector<16x36xf32>, vector<36x128xf32>, vector<16x128xf32> -> vector<16x128xf32>
    %c127_i32_147 = arith.constant 127 : i32
    %185 = tpu.dynamic_rotate %182 by %c127_i32_147 dim 1 : vector<36x128xf32>, i32 -> vector<36x128xf32>
    %cst_148 = arith.constant dense<0.000000e+00> : vector<16x128xf32>
    %186 = tpu.matmul %23, %185, %cst_148 {dimension_numbers = #tpu.dot_dimension_numbers<[1], [0], [0], [1], [0, 0, 1, 1], [], []>} : vector<16x36xf32>, vector<36x128xf32>, vector<16x128xf32> -> vector<16x128xf32>
    %187 = arith.addf %183, %186 : vector<16x128xf32>
    %cst_149 = arith.constant dense<0.000000e+00> : vector<16x128xf32>
    %188 = tpu.matmul %33, %185, %cst_149 {dimension_numbers = #tpu.dot_dimension_numbers<[1], [0], [0], [1], [0, 0, 1, 1], [], []>} : vector<16x36xf32>, vector<36x128xf32>, vector<16x128xf32> -> vector<16x128xf32>
    %189 = arith.addf %184, %188 : vector<16x128xf32>
    %c126_i32_150 = arith.constant 126 : i32
    %190 = tpu.dynamic_rotate %182 by %c126_i32_150 dim 1 : vector<36x128xf32>, i32 -> vector<36x128xf32>
    %cst_151 = arith.constant dense<0.000000e+00> : vector<16x128xf32>
    %191 = tpu.matmul %25, %190, %cst_151 {dimension_numbers = #tpu.dot_dimension_numbers<[1], [0], [0], [1], [0, 0, 1, 1], [], []>} : vector<16x36xf32>, vector<36x128xf32>, vector<16x128xf32> -> vector<16x128xf32>
    %192 = arith.addf %187, %191 : vector<16x128xf32>
    %cst_152 = arith.constant dense<0.000000e+00> : vector<16x128xf32>
    %193 = tpu.matmul %35, %190, %cst_152 {dimension_numbers = #tpu.dot_dimension_numbers<[1], [0], [0], [1], [0, 0, 1, 1], [], []>} : vector<16x36xf32>, vector<36x128xf32>, vector<16x128xf32> -> vector<16x128xf32>
    %194 = arith.addf %189, %193 : vector<16x128xf32>
    %c125_i32_153 = arith.constant 125 : i32
    %195 = tpu.dynamic_rotate %182 by %c125_i32_153 dim 1 : vector<36x128xf32>, i32 -> vector<36x128xf32>
    %cst_154 = arith.constant dense<0.000000e+00> : vector<16x128xf32>
    %196 = tpu.matmul %27, %195, %cst_154 {dimension_numbers = #tpu.dot_dimension_numbers<[1], [0], [0], [1], [0, 0, 1, 1], [], []>} : vector<16x36xf32>, vector<36x128xf32>, vector<16x128xf32> -> vector<16x128xf32>
    %197 = arith.addf %192, %196 : vector<16x128xf32>
    %cst_155 = arith.constant dense<0.000000e+00> : vector<16x128xf32>
    %198 = tpu.matmul %37, %195, %cst_155 {dimension_numbers = #tpu.dot_dimension_numbers<[1], [0], [0], [1], [0, 0, 1, 1], [], []>} : vector<16x36xf32>, vector<36x128xf32>, vector<16x128xf32> -> vector<16x128xf32>
    %199 = arith.addf %194, %198 : vector<16x128xf32>
    %c124_i32_156 = arith.constant 124 : i32
    %200 = tpu.dynamic_rotate %182 by %c124_i32_156 dim 1 : vector<36x128xf32>, i32 -> vector<36x128xf32>
    %cst_157 = arith.constant dense<0.000000e+00> : vector<16x128xf32>
    %201 = tpu.matmul %29, %200, %cst_157 {dimension_numbers = #tpu.dot_dimension_numbers<[1], [0], [0], [1], [0, 0, 1, 1], [], []>} : vector<16x36xf32>, vector<36x128xf32>, vector<16x128xf32> -> vector<16x128xf32>
    %202 = arith.addf %197, %201 : vector<16x128xf32>
    %cst_158 = arith.constant dense<0.000000e+00> : vector<16x128xf32>
    %203 = tpu.matmul %39, %200, %cst_158 {dimension_numbers = #tpu.dot_dimension_numbers<[1], [0], [0], [1], [0, 0, 1, 1], [], []>} : vector<16x36xf32>, vector<36x128xf32>, vector<16x128xf32> -> vector<16x128xf32>
    %204 = arith.addf %199, %203 : vector<16x128xf32>
    %205 = arith.maximumf %202, %204 : vector<16x128xf32>
    %c127_i32_159 = arith.constant 127 : i32
    %206 = tpu.dynamic_rotate %205 by %c127_i32_159 dim 1 : vector<16x128xf32>, i32 -> vector<16x128xf32>
    %207 = arith.maximumf %205, %206 : vector<16x128xf32>
    %cst_160 = arith.constant dense<0.000000e+00> : vector<16x53xf32>
    %208 = tpu.matmul %207, %43, %cst_160 {dimension_numbers = #tpu.dot_dimension_numbers<[1], [0], [0], [1], [0, 0, 1, 1], [], []>} : vector<16x128xf32>, vector<128x53xf32>, vector<16x53xf32> -> vector<16x53xf32>
    %209 = vector.broadcast %41 : vector<16x1xf32> to vector<16x53xf32>
    %210 = arith.addf %208, %209 : vector<16x53xf32>
    %cst_161 = arith.constant 0.000000e+00 : f32
    %211 = vector.broadcast %cst_161 : f32 to vector<16x53xf32>
    %212 = arith.maximumf %210, %211 : vector<16x53xf32>
    %213 = vector.extract_strided_slice %212 {offsets = [0, 0], sizes = [2, 53], strides = [1, 1]} : vector<16x53xf32> to vector<2x53xf32>
    %cst_162 = arith.constant dense<0.000000e+00> : vector<2x120xf32>
    %214 = tpu.matmul %213, %45, %cst_162 {dimension_numbers = #tpu.dot_dimension_numbers<[1], [0], [0], [1], [0, 0, 1, 1], [], []>} : vector<2x53xf32>, vector<53x120xf32>, vector<2x120xf32> -> vector<2x120xf32>
    %215 = vector.extract_strided_slice %212 {offsets = [2, 0], sizes = [2, 53], strides = [1, 1]} : vector<16x53xf32> to vector<2x53xf32>
    %cst_163 = arith.constant dense<0.000000e+00> : vector<2x120xf32>
    %216 = tpu.matmul %215, %47, %cst_163 {dimension_numbers = #tpu.dot_dimension_numbers<[1], [0], [0], [1], [0, 0, 1, 1], [], []>} : vector<2x53xf32>, vector<53x120xf32>, vector<2x120xf32> -> vector<2x120xf32>
    %217 = arith.addf %214, %216 : vector<2x120xf32>
    %218 = vector.extract_strided_slice %212 {offsets = [4, 0], sizes = [2, 53], strides = [1, 1]} : vector<16x53xf32> to vector<2x53xf32>
    %cst_164 = arith.constant dense<0.000000e+00> : vector<2x120xf32>
    %219 = tpu.matmul %218, %49, %cst_164 {dimension_numbers = #tpu.dot_dimension_numbers<[1], [0], [0], [1], [0, 0, 1, 1], [], []>} : vector<2x53xf32>, vector<53x120xf32>, vector<2x120xf32> -> vector<2x120xf32>
    %220 = arith.addf %217, %219 : vector<2x120xf32>
    %221 = vector.extract_strided_slice %212 {offsets = [6, 0], sizes = [2, 53], strides = [1, 1]} : vector<16x53xf32> to vector<2x53xf32>
    %cst_165 = arith.constant dense<0.000000e+00> : vector<2x120xf32>
    %222 = tpu.matmul %221, %51, %cst_165 {dimension_numbers = #tpu.dot_dimension_numbers<[1], [0], [0], [1], [0, 0, 1, 1], [], []>} : vector<2x53xf32>, vector<53x120xf32>, vector<2x120xf32> -> vector<2x120xf32>
    %223 = arith.addf %220, %222 : vector<2x120xf32>
    %224 = vector.extract_strided_slice %212 {offsets = [8, 0], sizes = [2, 53], strides = [1, 1]} : vector<16x53xf32> to vector<2x53xf32>
    %cst_166 = arith.constant dense<0.000000e+00> : vector<2x120xf32>
    %225 = tpu.matmul %224, %53, %cst_166 {dimension_numbers = #tpu.dot_dimension_numbers<[1], [0], [0], [1], [0, 0, 1, 1], [], []>} : vector<2x53xf32>, vector<53x120xf32>, vector<2x120xf32> -> vector<2x120xf32>
    %226 = arith.addf %223, %225 : vector<2x120xf32>
    %227 = vector.extract_strided_slice %212 {offsets = [10, 0], sizes = [2, 53], strides = [1, 1]} : vector<16x53xf32> to vector<2x53xf32>
    %cst_167 = arith.constant dense<0.000000e+00> : vector<2x120xf32>
    %228 = tpu.matmul %227, %55, %cst_167 {dimension_numbers = #tpu.dot_dimension_numbers<[1], [0], [0], [1], [0, 0, 1, 1], [], []>} : vector<2x53xf32>, vector<53x120xf32>, vector<2x120xf32> -> vector<2x120xf32>
    %229 = arith.addf %226, %228 : vector<2x120xf32>
    %230 = vector.extract_strided_slice %212 {offsets = [12, 0], sizes = [2, 53], strides = [1, 1]} : vector<16x53xf32> to vector<2x53xf32>
    %cst_168 = arith.constant dense<0.000000e+00> : vector<2x120xf32>
    %231 = tpu.matmul %230, %57, %cst_168 {dimension_numbers = #tpu.dot_dimension_numbers<[1], [0], [0], [1], [0, 0, 1, 1], [], []>} : vector<2x53xf32>, vector<53x120xf32>, vector<2x120xf32> -> vector<2x120xf32>
    %232 = arith.addf %229, %231 : vector<2x120xf32>
    %233 = vector.extract_strided_slice %212 {offsets = [14, 0], sizes = [2, 53], strides = [1, 1]} : vector<16x53xf32> to vector<2x53xf32>
    %cst_169 = arith.constant dense<0.000000e+00> : vector<2x120xf32>
    %234 = tpu.matmul %233, %59, %cst_169 {dimension_numbers = #tpu.dot_dimension_numbers<[1], [0], [0], [1], [0, 0, 1, 1], [], []>} : vector<2x53xf32>, vector<53x120xf32>, vector<2x120xf32> -> vector<2x120xf32>
    %235 = arith.addf %232, %234 : vector<2x120xf32>
    %236 = vector.broadcast %60 : vector<1x120xf32> to vector<2x120xf32>
    %237 = arith.addf %235, %236 : vector<2x120xf32>
    %cst_170 = arith.constant 0.000000e+00 : f32
    %238 = vector.broadcast %cst_170 : f32 to vector<2x120xf32>
    %239 = arith.maximumf %237, %238 : vector<2x120xf32>
    %c2_171 = arith.constant 2 : index
    %c0_172 = arith.constant 0 : index
    %240 = vector.load %arg17[%c2_171, %c0_172] : memref<8x120xf32, #tpu.memory_space<vmem>>, vector<2x120xf32>
    tpu.vector_store %arg17[%c2_171, %c0_172], %239 {strides = array<i32>} : memref<8x120xf32, #tpu.memory_space<vmem>>, vector<2x120xf32>,
    %c2_173 = arith.constant 2 : index
    %c0_174 = arith.constant 0 : index
    %c0_175 = arith.constant 0 : index
    %241 = vector.load %arg1[%c2_173, %c0_174, %c0_175] : memref<4x48x224xf32, #tpu.memory_space<vmem>>, vector<1x48x224xf32>
    %242 = vector.shape_cast %241 : vector<1x48x224xf32> to vector<48x224xf32>
    %cst_176 = arith.constant dense<0.000000e+00> : vector<36x224xf32>
    %243 = tpu.matmul %1, %242, %cst_176 {dimension_numbers = #tpu.dot_dimension_numbers<[1], [0], [0], [1], [0, 0, 1, 1], [], []>} : vector<36x48xf32>, vector<48x224xf32>, vector<36x224xf32> -> vector<36x224xf32>
    %cst_177 = arith.constant dense<0.000000e+00> : vector<36x224xf32>
    %244 = tpu.matmul %11, %242, %cst_177 {dimension_numbers = #tpu.dot_dimension_numbers<[1], [0], [0], [1], [0, 0, 1, 1], [], []>} : vector<36x48xf32>, vector<48x224xf32>, vector<36x224xf32> -> vector<36x224xf32>
    %c223_i32_178 = arith.constant 223 : i32
    %245 = tpu.dynamic_rotate %242 by %c223_i32_178 dim 1 : vector<48x224xf32>, i32 -> vector<48x224xf32>
    %cst_179 = arith.constant dense<0.000000e+00> : vector<36x224xf32>
    %246 = tpu.matmul %3, %245, %cst_179 {dimension_numbers = #tpu.dot_dimension_numbers<[1], [0], [0], [1], [0, 0, 1, 1], [], []>} : vector<36x48xf32>, vector<48x224xf32>, vector<36x224xf32> -> vector<36x224xf32>
    %247 = arith.addf %243, %246 : vector<36x224xf32>
    %cst_180 = arith.constant dense<0.000000e+00> : vector<36x224xf32>
    %248 = tpu.matmul %13, %245, %cst_180 {dimension_numbers = #tpu.dot_dimension_numbers<[1], [0], [0], [1], [0, 0, 1, 1], [], []>} : vector<36x48xf32>, vector<48x224xf32>, vector<36x224xf32> -> vector<36x224xf32>
    %249 = arith.addf %244, %248 : vector<36x224xf32>
    %c222_i32_181 = arith.constant 222 : i32
    %250 = tpu.dynamic_rotate %242 by %c222_i32_181 dim 1 : vector<48x224xf32>, i32 -> vector<48x224xf32>
    %cst_182 = arith.constant dense<0.000000e+00> : vector<36x224xf32>
    %251 = tpu.matmul %5, %250, %cst_182 {dimension_numbers = #tpu.dot_dimension_numbers<[1], [0], [0], [1], [0, 0, 1, 1], [], []>} : vector<36x48xf32>, vector<48x224xf32>, vector<36x224xf32> -> vector<36x224xf32>
    %252 = arith.addf %247, %251 : vector<36x224xf32>
    %cst_183 = arith.constant dense<0.000000e+00> : vector<36x224xf32>
    %253 = tpu.matmul %15, %250, %cst_183 {dimension_numbers = #tpu.dot_dimension_numbers<[1], [0], [0], [1], [0, 0, 1, 1], [], []>} : vector<36x48xf32>, vector<48x224xf32>, vector<36x224xf32> -> vector<36x224xf32>
    %254 = arith.addf %249, %253 : vector<36x224xf32>
    %c221_i32_184 = arith.constant 221 : i32
    %255 = tpu.dynamic_rotate %242 by %c221_i32_184 dim 1 : vector<48x224xf32>, i32 -> vector<48x224xf32>
    %cst_185 = arith.constant dense<0.000000e+00> : vector<36x224xf32>
    %256 = tpu.matmul %7, %255, %cst_185 {dimension_numbers = #tpu.dot_dimension_numbers<[1], [0], [0], [1], [0, 0, 1, 1], [], []>} : vector<36x48xf32>, vector<48x224xf32>, vector<36x224xf32> -> vector<36x224xf32>
    %257 = arith.addf %252, %256 : vector<36x224xf32>
    %cst_186 = arith.constant dense<0.000000e+00> : vector<36x224xf32>
    %258 = tpu.matmul %17, %255, %cst_186 {dimension_numbers = #tpu.dot_dimension_numbers<[1], [0], [0], [1], [0, 0, 1, 1], [], []>} : vector<36x48xf32>, vector<48x224xf32>, vector<36x224xf32> -> vector<36x224xf32>
    %259 = arith.addf %254, %258 : vector<36x224xf32>
    %c220_i32_187 = arith.constant 220 : i32
    %260 = tpu.dynamic_rotate %242 by %c220_i32_187 dim 1 : vector<48x224xf32>, i32 -> vector<48x224xf32>
    %cst_188 = arith.constant dense<0.000000e+00> : vector<36x224xf32>
    %261 = tpu.matmul %9, %260, %cst_188 {dimension_numbers = #tpu.dot_dimension_numbers<[1], [0], [0], [1], [0, 0, 1, 1], [], []>} : vector<36x48xf32>, vector<48x224xf32>, vector<36x224xf32> -> vector<36x224xf32>
    %262 = arith.addf %257, %261 : vector<36x224xf32>
    %cst_189 = arith.constant dense<0.000000e+00> : vector<36x224xf32>
    %263 = tpu.matmul %19, %260, %cst_189 {dimension_numbers = #tpu.dot_dimension_numbers<[1], [0], [0], [1], [0, 0, 1, 1], [], []>} : vector<36x48xf32>, vector<48x224xf32>, vector<36x224xf32> -> vector<36x224xf32>
    %264 = arith.addf %259, %263 : vector<36x224xf32>
    %265 = arith.maximumf %262, %264 : vector<36x224xf32>
    %c223_i32_190 = arith.constant 223 : i32
    %266 = tpu.dynamic_rotate %265 by %c223_i32_190 dim 1 : vector<36x224xf32>, i32 -> vector<36x224xf32>
    %267 = arith.maximumf %265, %266 : vector<36x224xf32>
    %cst_191 = arith.constant dense<0.000000e+00> : vector<36x128xf32>
    %268 = tpu.matmul %267, %42, %cst_191 {dimension_numbers = #tpu.dot_dimension_numbers<[1], [0], [0], [1], [0, 0, 1, 1], [], []>} : vector<36x224xf32>, vector<224x128xf32>, vector<36x128xf32> -> vector<36x128xf32>
    %269 = vector.broadcast %40 : vector<36x1xf32> to vector<36x128xf32>
    %270 = arith.addf %268, %269 : vector<36x128xf32>
    %cst_192 = arith.constant 0.000000e+00 : f32
    %271 = vector.broadcast %cst_192 : f32 to vector<36x128xf32>
    %272 = arith.maximumf %270, %271 : vector<36x128xf32>
    %cst_193 = arith.constant dense<0.000000e+00> : vector<16x128xf32>
    %273 = tpu.matmul %21, %272, %cst_193 {dimension_numbers = #tpu.dot_dimension_numbers<[1], [0], [0], [1], [0, 0, 1, 1], [], []>} : vector<16x36xf32>, vector<36x128xf32>, vector<16x128xf32> -> vector<16x128xf32>
    %cst_194 = arith.constant dense<0.000000e+00> : vector<16x128xf32>
    %274 = tpu.matmul %31, %272, %cst_194 {dimension_numbers = #tpu.dot_dimension_numbers<[1], [0], [0], [1], [0, 0, 1, 1], [], []>} : vector<16x36xf32>, vector<36x128xf32>, vector<16x128xf32> -> vector<16x128xf32>
    %c127_i32_195 = arith.constant 127 : i32
    %275 = tpu.dynamic_rotate %272 by %c127_i32_195 dim 1 : vector<36x128xf32>, i32 -> vector<36x128xf32>
    %cst_196 = arith.constant dense<0.000000e+00> : vector<16x128xf32>
    %276 = tpu.matmul %23, %275, %cst_196 {dimension_numbers = #tpu.dot_dimension_numbers<[1], [0], [0], [1], [0, 0, 1, 1], [], []>} : vector<16x36xf32>, vector<36x128xf32>, vector<16x128xf32> -> vector<16x128xf32>
    %277 = arith.addf %273, %276 : vector<16x128xf32>
    %cst_197 = arith.constant dense<0.000000e+00> : vector<16x128xf32>
    %278 = tpu.matmul %33, %275, %cst_197 {dimension_numbers = #tpu.dot_dimension_numbers<[1], [0], [0], [1], [0, 0, 1, 1], [], []>} : vector<16x36xf32>, vector<36x128xf32>, vector<16x128xf32> -> vector<16x128xf32>
    %279 = arith.addf %274, %278 : vector<16x128xf32>
    %c126_i32_198 = arith.constant 126 : i32
    %280 = tpu.dynamic_rotate %272 by %c126_i32_198 dim 1 : vector<36x128xf32>, i32 -> vector<36x128xf32>
    %cst_199 = arith.constant dense<0.000000e+00> : vector<16x128xf32>
    %281 = tpu.matmul %25, %280, %cst_199 {dimension_numbers = #tpu.dot_dimension_numbers<[1], [0], [0], [1], [0, 0, 1, 1], [], []>} : vector<16x36xf32>, vector<36x128xf32>, vector<16x128xf32> -> vector<16x128xf32>
    %282 = arith.addf %277, %281 : vector<16x128xf32>
    %cst_200 = arith.constant dense<0.000000e+00> : vector<16x128xf32>
    %283 = tpu.matmul %35, %280, %cst_200 {dimension_numbers = #tpu.dot_dimension_numbers<[1], [0], [0], [1], [0, 0, 1, 1], [], []>} : vector<16x36xf32>, vector<36x128xf32>, vector<16x128xf32> -> vector<16x128xf32>
    %284 = arith.addf %279, %283 : vector<16x128xf32>
    %c125_i32_201 = arith.constant 125 : i32
    %285 = tpu.dynamic_rotate %272 by %c125_i32_201 dim 1 : vector<36x128xf32>, i32 -> vector<36x128xf32>
    %cst_202 = arith.constant dense<0.000000e+00> : vector<16x128xf32>
    %286 = tpu.matmul %27, %285, %cst_202 {dimension_numbers = #tpu.dot_dimension_numbers<[1], [0], [0], [1], [0, 0, 1, 1], [], []>} : vector<16x36xf32>, vector<36x128xf32>, vector<16x128xf32> -> vector<16x128xf32>
    %287 = arith.addf %282, %286 : vector<16x128xf32>
    %cst_203 = arith.constant dense<0.000000e+00> : vector<16x128xf32>
    %288 = tpu.matmul %37, %285, %cst_203 {dimension_numbers = #tpu.dot_dimension_numbers<[1], [0], [0], [1], [0, 0, 1, 1], [], []>} : vector<16x36xf32>, vector<36x128xf32>, vector<16x128xf32> -> vector<16x128xf32>
    %289 = arith.addf %284, %288 : vector<16x128xf32>
    %c124_i32_204 = arith.constant 124 : i32
    %290 = tpu.dynamic_rotate %272 by %c124_i32_204 dim 1 : vector<36x128xf32>, i32 -> vector<36x128xf32>
    %cst_205 = arith.constant dense<0.000000e+00> : vector<16x128xf32>
    %291 = tpu.matmul %29, %290, %cst_205 {dimension_numbers = #tpu.dot_dimension_numbers<[1], [0], [0], [1], [0, 0, 1, 1], [], []>} : vector<16x36xf32>, vector<36x128xf32>, vector<16x128xf32> -> vector<16x128xf32>
    %292 = arith.addf %287, %291 : vector<16x128xf32>
    %cst_206 = arith.constant dense<0.000000e+00> : vector<16x128xf32>
    %293 = tpu.matmul %39, %290, %cst_206 {dimension_numbers = #tpu.dot_dimension_numbers<[1], [0], [0], [1], [0, 0, 1, 1], [], []>} : vector<16x36xf32>, vector<36x128xf32>, vector<16x128xf32> -> vector<16x128xf32>
    %294 = arith.addf %289, %293 : vector<16x128xf32>
    %295 = arith.maximumf %292, %294 : vector<16x128xf32>
    %c127_i32_207 = arith.constant 127 : i32
    %296 = tpu.dynamic_rotate %295 by %c127_i32_207 dim 1 : vector<16x128xf32>, i32 -> vector<16x128xf32>
    %297 = arith.maximumf %295, %296 : vector<16x128xf32>
    %cst_208 = arith.constant dense<0.000000e+00> : vector<16x53xf32>
    %298 = tpu.matmul %297, %43, %cst_208 {dimension_numbers = #tpu.dot_dimension_numbers<[1], [0], [0], [1], [0, 0, 1, 1], [], []>} : vector<16x128xf32>, vector<128x53xf32>, vector<16x53xf32> -> vector<16x53xf32>
    %299 = vector.broadcast %41 : vector<16x1xf32> to vector<16x53xf32>
    %300 = arith.addf %298, %299 : vector<16x53xf32>
    %cst_209 = arith.constant 0.000000e+00 : f32
    %301 = vector.broadcast %cst_209 : f32 to vector<16x53xf32>
    %302 = arith.maximumf %300, %301 : vector<16x53xf32>
    %303 = vector.extract_strided_slice %302 {offsets = [0, 0], sizes = [2, 53], strides = [1, 1]} : vector<16x53xf32> to vector<2x53xf32>
    %cst_210 = arith.constant dense<0.000000e+00> : vector<2x120xf32>
    %304 = tpu.matmul %303, %45, %cst_210 {dimension_numbers = #tpu.dot_dimension_numbers<[1], [0], [0], [1], [0, 0, 1, 1], [], []>} : vector<2x53xf32>, vector<53x120xf32>, vector<2x120xf32> -> vector<2x120xf32>
    %305 = vector.extract_strided_slice %302 {offsets = [2, 0], sizes = [2, 53], strides = [1, 1]} : vector<16x53xf32> to vector<2x53xf32>
    %cst_211 = arith.constant dense<0.000000e+00> : vector<2x120xf32>
    %306 = tpu.matmul %305, %47, %cst_211 {dimension_numbers = #tpu.dot_dimension_numbers<[1], [0], [0], [1], [0, 0, 1, 1], [], []>} : vector<2x53xf32>, vector<53x120xf32>, vector<2x120xf32> -> vector<2x120xf32>
    %307 = arith.addf %304, %306 : vector<2x120xf32>
    %308 = vector.extract_strided_slice %302 {offsets = [4, 0], sizes = [2, 53], strides = [1, 1]} : vector<16x53xf32> to vector<2x53xf32>
    %cst_212 = arith.constant dense<0.000000e+00> : vector<2x120xf32>
    %309 = tpu.matmul %308, %49, %cst_212 {dimension_numbers = #tpu.dot_dimension_numbers<[1], [0], [0], [1], [0, 0, 1, 1], [], []>} : vector<2x53xf32>, vector<53x120xf32>, vector<2x120xf32> -> vector<2x120xf32>
    %310 = arith.addf %307, %309 : vector<2x120xf32>
    %311 = vector.extract_strided_slice %302 {offsets = [6, 0], sizes = [2, 53], strides = [1, 1]} : vector<16x53xf32> to vector<2x53xf32>
    %cst_213 = arith.constant dense<0.000000e+00> : vector<2x120xf32>
    %312 = tpu.matmul %311, %51, %cst_213 {dimension_numbers = #tpu.dot_dimension_numbers<[1], [0], [0], [1], [0, 0, 1, 1], [], []>} : vector<2x53xf32>, vector<53x120xf32>, vector<2x120xf32> -> vector<2x120xf32>
    %313 = arith.addf %310, %312 : vector<2x120xf32>
    %314 = vector.extract_strided_slice %302 {offsets = [8, 0], sizes = [2, 53], strides = [1, 1]} : vector<16x53xf32> to vector<2x53xf32>
    %cst_214 = arith.constant dense<0.000000e+00> : vector<2x120xf32>
    %315 = tpu.matmul %314, %53, %cst_214 {dimension_numbers = #tpu.dot_dimension_numbers<[1], [0], [0], [1], [0, 0, 1, 1], [], []>} : vector<2x53xf32>, vector<53x120xf32>, vector<2x120xf32> -> vector<2x120xf32>
    %316 = arith.addf %313, %315 : vector<2x120xf32>
    %317 = vector.extract_strided_slice %302 {offsets = [10, 0], sizes = [2, 53], strides = [1, 1]} : vector<16x53xf32> to vector<2x53xf32>
    %cst_215 = arith.constant dense<0.000000e+00> : vector<2x120xf32>
    %318 = tpu.matmul %317, %55, %cst_215 {dimension_numbers = #tpu.dot_dimension_numbers<[1], [0], [0], [1], [0, 0, 1, 1], [], []>} : vector<2x53xf32>, vector<53x120xf32>, vector<2x120xf32> -> vector<2x120xf32>
    %319 = arith.addf %316, %318 : vector<2x120xf32>
    %320 = vector.extract_strided_slice %302 {offsets = [12, 0], sizes = [2, 53], strides = [1, 1]} : vector<16x53xf32> to vector<2x53xf32>
    %cst_216 = arith.constant dense<0.000000e+00> : vector<2x120xf32>
    %321 = tpu.matmul %320, %57, %cst_216 {dimension_numbers = #tpu.dot_dimension_numbers<[1], [0], [0], [1], [0, 0, 1, 1], [], []>} : vector<2x53xf32>, vector<53x120xf32>, vector<2x120xf32> -> vector<2x120xf32>
    %322 = arith.addf %319, %321 : vector<2x120xf32>
    %323 = vector.extract_strided_slice %302 {offsets = [14, 0], sizes = [2, 53], strides = [1, 1]} : vector<16x53xf32> to vector<2x53xf32>
    %cst_217 = arith.constant dense<0.000000e+00> : vector<2x120xf32>
    %324 = tpu.matmul %323, %59, %cst_217 {dimension_numbers = #tpu.dot_dimension_numbers<[1], [0], [0], [1], [0, 0, 1, 1], [], []>} : vector<2x53xf32>, vector<53x120xf32>, vector<2x120xf32> -> vector<2x120xf32>
    %325 = arith.addf %322, %324 : vector<2x120xf32>
    %326 = vector.broadcast %60 : vector<1x120xf32> to vector<2x120xf32>
    %327 = arith.addf %325, %326 : vector<2x120xf32>
    %cst_218 = arith.constant 0.000000e+00 : f32
    %328 = vector.broadcast %cst_218 : f32 to vector<2x120xf32>
    %329 = arith.maximumf %327, %328 : vector<2x120xf32>
    %c4_219 = arith.constant 4 : index
    %c0_220 = arith.constant 0 : index
    %330 = vector.load %arg17[%c4_219, %c0_220] : memref<8x120xf32, #tpu.memory_space<vmem>>, vector<2x120xf32>
    tpu.vector_store %arg17[%c4_219, %c0_220], %329 {strides = array<i32>} : memref<8x120xf32, #tpu.memory_space<vmem>>, vector<2x120xf32>,
    %c3_221 = arith.constant 3 : index
    %c0_222 = arith.constant 0 : index
    %c0_223 = arith.constant 0 : index
    %331 = vector.load %arg1[%c3_221, %c0_222, %c0_223] : memref<4x48x224xf32, #tpu.memory_space<vmem>>, vector<1x48x224xf32>
    %332 = vector.shape_cast %331 : vector<1x48x224xf32> to vector<48x224xf32>
    %cst_224 = arith.constant dense<0.000000e+00> : vector<36x224xf32>
    %333 = tpu.matmul %1, %332, %cst_224 {dimension_numbers = #tpu.dot_dimension_numbers<[1], [0], [0], [1], [0, 0, 1, 1], [], []>} : vector<36x48xf32>, vector<48x224xf32>, vector<36x224xf32> -> vector<36x224xf32>
    %cst_225 = arith.constant dense<0.000000e+00> : vector<36x224xf32>
    %334 = tpu.matmul %11, %332, %cst_225 {dimension_numbers = #tpu.dot_dimension_numbers<[1], [0], [0], [1], [0, 0, 1, 1], [], []>} : vector<36x48xf32>, vector<48x224xf32>, vector<36x224xf32> -> vector<36x224xf32>
    %c223_i32_226 = arith.constant 223 : i32
    %335 = tpu.dynamic_rotate %332 by %c223_i32_226 dim 1 : vector<48x224xf32>, i32 -> vector<48x224xf32>
    %cst_227 = arith.constant dense<0.000000e+00> : vector<36x224xf32>
    %336 = tpu.matmul %3, %335, %cst_227 {dimension_numbers = #tpu.dot_dimension_numbers<[1], [0], [0], [1], [0, 0, 1, 1], [], []>} : vector<36x48xf32>, vector<48x224xf32>, vector<36x224xf32> -> vector<36x224xf32>
    %337 = arith.addf %333, %336 : vector<36x224xf32>
    %cst_228 = arith.constant dense<0.000000e+00> : vector<36x224xf32>
    %338 = tpu.matmul %13, %335, %cst_228 {dimension_numbers = #tpu.dot_dimension_numbers<[1], [0], [0], [1], [0, 0, 1, 1], [], []>} : vector<36x48xf32>, vector<48x224xf32>, vector<36x224xf32> -> vector<36x224xf32>
    %339 = arith.addf %334, %338 : vector<36x224xf32>
    %c222_i32_229 = arith.constant 222 : i32
    %340 = tpu.dynamic_rotate %332 by %c222_i32_229 dim 1 : vector<48x224xf32>, i32 -> vector<48x224xf32>
    %cst_230 = arith.constant dense<0.000000e+00> : vector<36x224xf32>
    %341 = tpu.matmul %5, %340, %cst_230 {dimension_numbers = #tpu.dot_dimension_numbers<[1], [0], [0], [1], [0, 0, 1, 1], [], []>} : vector<36x48xf32>, vector<48x224xf32>, vector<36x224xf32> -> vector<36x224xf32>
    %342 = arith.addf %337, %341 : vector<36x224xf32>
    %cst_231 = arith.constant dense<0.000000e+00> : vector<36x224xf32>
    %343 = tpu.matmul %15, %340, %cst_231 {dimension_numbers = #tpu.dot_dimension_numbers<[1], [0], [0], [1], [0, 0, 1, 1], [], []>} : vector<36x48xf32>, vector<48x224xf32>, vector<36x224xf32> -> vector<36x224xf32>
    %344 = arith.addf %339, %343 : vector<36x224xf32>
    %c221_i32_232 = arith.constant 221 : i32
    %345 = tpu.dynamic_rotate %332 by %c221_i32_232 dim 1 : vector<48x224xf32>, i32 -> vector<48x224xf32>
    %cst_233 = arith.constant dense<0.000000e+00> : vector<36x224xf32>
    %346 = tpu.matmul %7, %345, %cst_233 {dimension_numbers = #tpu.dot_dimension_numbers<[1], [0], [0], [1], [0, 0, 1, 1], [], []>} : vector<36x48xf32>, vector<48x224xf32>, vector<36x224xf32> -> vector<36x224xf32>
    %347 = arith.addf %342, %346 : vector<36x224xf32>
    %cst_234 = arith.constant dense<0.000000e+00> : vector<36x224xf32>
    %348 = tpu.matmul %17, %345, %cst_234 {dimension_numbers = #tpu.dot_dimension_numbers<[1], [0], [0], [1], [0, 0, 1, 1], [], []>} : vector<36x48xf32>, vector<48x224xf32>, vector<36x224xf32> -> vector<36x224xf32>
    %349 = arith.addf %344, %348 : vector<36x224xf32>
    %c220_i32_235 = arith.constant 220 : i32
    %350 = tpu.dynamic_rotate %332 by %c220_i32_235 dim 1 : vector<48x224xf32>, i32 -> vector<48x224xf32>
    %cst_236 = arith.constant dense<0.000000e+00> : vector<36x224xf32>
    %351 = tpu.matmul %9, %350, %cst_236 {dimension_numbers = #tpu.dot_dimension_numbers<[1], [0], [0], [1], [0, 0, 1, 1], [], []>} : vector<36x48xf32>, vector<48x224xf32>, vector<36x224xf32> -> vector<36x224xf32>
    %352 = arith.addf %347, %351 : vector<36x224xf32>
    %cst_237 = arith.constant dense<0.000000e+00> : vector<36x224xf32>
    %353 = tpu.matmul %19, %350, %cst_237 {dimension_numbers = #tpu.dot_dimension_numbers<[1], [0], [0], [1], [0, 0, 1, 1], [], []>} : vector<36x48xf32>, vector<48x224xf32>, vector<36x224xf32> -> vector<36x224xf32>
    %354 = arith.addf %349, %353 : vector<36x224xf32>
    %355 = arith.maximumf %352, %354 : vector<36x224xf32>
    %c223_i32_238 = arith.constant 223 : i32
    %356 = tpu.dynamic_rotate %355 by %c223_i32_238 dim 1 : vector<36x224xf32>, i32 -> vector<36x224xf32>
    %357 = arith.maximumf %355, %356 : vector<36x224xf32>
    %cst_239 = arith.constant dense<0.000000e+00> : vector<36x128xf32>
    %358 = tpu.matmul %357, %42, %cst_239 {dimension_numbers = #tpu.dot_dimension_numbers<[1], [0], [0], [1], [0, 0, 1, 1], [], []>} : vector<36x224xf32>, vector<224x128xf32>, vector<36x128xf32> -> vector<36x128xf32>
    %359 = vector.broadcast %40 : vector<36x1xf32> to vector<36x128xf32>
    %360 = arith.addf %358, %359 : vector<36x128xf32>
    %cst_240 = arith.constant 0.000000e+00 : f32
    %361 = vector.broadcast %cst_240 : f32 to vector<36x128xf32>
    %362 = arith.maximumf %360, %361 : vector<36x128xf32>
    %cst_241 = arith.constant dense<0.000000e+00> : vector<16x128xf32>
    %363 = tpu.matmul %21, %362, %cst_241 {dimension_numbers = #tpu.dot_dimension_numbers<[1], [0], [0], [1], [0, 0, 1, 1], [], []>} : vector<16x36xf32>, vector<36x128xf32>, vector<16x128xf32> -> vector<16x128xf32>
    %cst_242 = arith.constant dense<0.000000e+00> : vector<16x128xf32>
    %364 = tpu.matmul %31, %362, %cst_242 {dimension_numbers = #tpu.dot_dimension_numbers<[1], [0], [0], [1], [0, 0, 1, 1], [], []>} : vector<16x36xf32>, vector<36x128xf32>, vector<16x128xf32> -> vector<16x128xf32>
    %c127_i32_243 = arith.constant 127 : i32
    %365 = tpu.dynamic_rotate %362 by %c127_i32_243 dim 1 : vector<36x128xf32>, i32 -> vector<36x128xf32>
    %cst_244 = arith.constant dense<0.000000e+00> : vector<16x128xf32>
    %366 = tpu.matmul %23, %365, %cst_244 {dimension_numbers = #tpu.dot_dimension_numbers<[1], [0], [0], [1], [0, 0, 1, 1], [], []>} : vector<16x36xf32>, vector<36x128xf32>, vector<16x128xf32> -> vector<16x128xf32>
    %367 = arith.addf %363, %366 : vector<16x128xf32>
    %cst_245 = arith.constant dense<0.000000e+00> : vector<16x128xf32>
    %368 = tpu.matmul %33, %365, %cst_245 {dimension_numbers = #tpu.dot_dimension_numbers<[1], [0], [0], [1], [0, 0, 1, 1], [], []>} : vector<16x36xf32>, vector<36x128xf32>, vector<16x128xf32> -> vector<16x128xf32>
    %369 = arith.addf %364, %368 : vector<16x128xf32>
    %c126_i32_246 = arith.constant 126 : i32
    %370 = tpu.dynamic_rotate %362 by %c126_i32_246 dim 1 : vector<36x128xf32>, i32 -> vector<36x128xf32>
    %cst_247 = arith.constant dense<0.000000e+00> : vector<16x128xf32>
    %371 = tpu.matmul %25, %370, %cst_247 {dimension_numbers = #tpu.dot_dimension_numbers<[1], [0], [0], [1], [0, 0, 1, 1], [], []>} : vector<16x36xf32>, vector<36x128xf32>, vector<16x128xf32> -> vector<16x128xf32>
    %372 = arith.addf %367, %371 : vector<16x128xf32>
    %cst_248 = arith.constant dense<0.000000e+00> : vector<16x128xf32>
    %373 = tpu.matmul %35, %370, %cst_248 {dimension_numbers = #tpu.dot_dimension_numbers<[1], [0], [0], [1], [0, 0, 1, 1], [], []>} : vector<16x36xf32>, vector<36x128xf32>, vector<16x128xf32> -> vector<16x128xf32>
    %374 = arith.addf %369, %373 : vector<16x128xf32>
    %c125_i32_249 = arith.constant 125 : i32
    %375 = tpu.dynamic_rotate %362 by %c125_i32_249 dim 1 : vector<36x128xf32>, i32 -> vector<36x128xf32>
    %cst_250 = arith.constant dense<0.000000e+00> : vector<16x128xf32>
    %376 = tpu.matmul %27, %375, %cst_250 {dimension_numbers = #tpu.dot_dimension_numbers<[1], [0], [0], [1], [0, 0, 1, 1], [], []>} : vector<16x36xf32>, vector<36x128xf32>, vector<16x128xf32> -> vector<16x128xf32>
    %377 = arith.addf %372, %376 : vector<16x128xf32>
    %cst_251 = arith.constant dense<0.000000e+00> : vector<16x128xf32>
    %378 = tpu.matmul %37, %375, %cst_251 {dimension_numbers = #tpu.dot_dimension_numbers<[1], [0], [0], [1], [0, 0, 1, 1], [], []>} : vector<16x36xf32>, vector<36x128xf32>, vector<16x128xf32> -> vector<16x128xf32>
    %379 = arith.addf %374, %378 : vector<16x128xf32>
    %c124_i32_252 = arith.constant 124 : i32
    %380 = tpu.dynamic_rotate %362 by %c124_i32_252 dim 1 : vector<36x128xf32>, i32 -> vector<36x128xf32>
    %cst_253 = arith.constant dense<0.000000e+00> : vector<16x128xf32>
    %381 = tpu.matmul %29, %380, %cst_253 {dimension_numbers = #tpu.dot_dimension_numbers<[1], [0], [0], [1], [0, 0, 1, 1], [], []>} : vector<16x36xf32>, vector<36x128xf32>, vector<16x128xf32> -> vector<16x128xf32>
    %382 = arith.addf %377, %381 : vector<16x128xf32>
    %cst_254 = arith.constant dense<0.000000e+00> : vector<16x128xf32>
    %383 = tpu.matmul %39, %380, %cst_254 {dimension_numbers = #tpu.dot_dimension_numbers<[1], [0], [0], [1], [0, 0, 1, 1], [], []>} : vector<16x36xf32>, vector<36x128xf32>, vector<16x128xf32> -> vector<16x128xf32>
    %384 = arith.addf %379, %383 : vector<16x128xf32>
    %385 = arith.maximumf %382, %384 : vector<16x128xf32>
    %c127_i32_255 = arith.constant 127 : i32
    %386 = tpu.dynamic_rotate %385 by %c127_i32_255 dim 1 : vector<16x128xf32>, i32 -> vector<16x128xf32>
    %387 = arith.maximumf %385, %386 : vector<16x128xf32>
    %cst_256 = arith.constant dense<0.000000e+00> : vector<16x53xf32>
    %388 = tpu.matmul %387, %43, %cst_256 {dimension_numbers = #tpu.dot_dimension_numbers<[1], [0], [0], [1], [0, 0, 1, 1], [], []>} : vector<16x128xf32>, vector<128x53xf32>, vector<16x53xf32> -> vector<16x53xf32>
    %389 = vector.broadcast %41 : vector<16x1xf32> to vector<16x53xf32>
    %390 = arith.addf %388, %389 : vector<16x53xf32>
    %cst_257 = arith.constant 0.000000e+00 : f32
    %391 = vector.broadcast %cst_257 : f32 to vector<16x53xf32>
    %392 = arith.maximumf %390, %391 : vector<16x53xf32>
    %393 = vector.extract_strided_slice %392 {offsets = [0, 0], sizes = [2, 53], strides = [1, 1]} : vector<16x53xf32> to vector<2x53xf32>
    %cst_258 = arith.constant dense<0.000000e+00> : vector<2x120xf32>
    %394 = tpu.matmul %393, %45, %cst_258 {dimension_numbers = #tpu.dot_dimension_numbers<[1], [0], [0], [1], [0, 0, 1, 1], [], []>} : vector<2x53xf32>, vector<53x120xf32>, vector<2x120xf32> -> vector<2x120xf32>
    %395 = vector.extract_strided_slice %392 {offsets = [2, 0], sizes = [2, 53], strides = [1, 1]} : vector<16x53xf32> to vector<2x53xf32>
    %cst_259 = arith.constant dense<0.000000e+00> : vector<2x120xf32>
    %396 = tpu.matmul %395, %47, %cst_259 {dimension_numbers = #tpu.dot_dimension_numbers<[1], [0], [0], [1], [0, 0, 1, 1], [], []>} : vector<2x53xf32>, vector<53x120xf32>, vector<2x120xf32> -> vector<2x120xf32>
    %397 = arith.addf %394, %396 : vector<2x120xf32>
    %398 = vector.extract_strided_slice %392 {offsets = [4, 0], sizes = [2, 53], strides = [1, 1]} : vector<16x53xf32> to vector<2x53xf32>
    %cst_260 = arith.constant dense<0.000000e+00> : vector<2x120xf32>
    %399 = tpu.matmul %398, %49, %cst_260 {dimension_numbers = #tpu.dot_dimension_numbers<[1], [0], [0], [1], [0, 0, 1, 1], [], []>} : vector<2x53xf32>, vector<53x120xf32>, vector<2x120xf32> -> vector<2x120xf32>
    %400 = arith.addf %397, %399 : vector<2x120xf32>
    %401 = vector.extract_strided_slice %392 {offsets = [6, 0], sizes = [2, 53], strides = [1, 1]} : vector<16x53xf32> to vector<2x53xf32>
    %cst_261 = arith.constant dense<0.000000e+00> : vector<2x120xf32>
    %402 = tpu.matmul %401, %51, %cst_261 {dimension_numbers = #tpu.dot_dimension_numbers<[1], [0], [0], [1], [0, 0, 1, 1], [], []>} : vector<2x53xf32>, vector<53x120xf32>, vector<2x120xf32> -> vector<2x120xf32>
    %403 = arith.addf %400, %402 : vector<2x120xf32>
    %404 = vector.extract_strided_slice %392 {offsets = [8, 0], sizes = [2, 53], strides = [1, 1]} : vector<16x53xf32> to vector<2x53xf32>
    %cst_262 = arith.constant dense<0.000000e+00> : vector<2x120xf32>
    %405 = tpu.matmul %404, %53, %cst_262 {dimension_numbers = #tpu.dot_dimension_numbers<[1], [0], [0], [1], [0, 0, 1, 1], [], []>} : vector<2x53xf32>, vector<53x120xf32>, vector<2x120xf32> -> vector<2x120xf32>
    %406 = arith.addf %403, %405 : vector<2x120xf32>
    %407 = vector.extract_strided_slice %392 {offsets = [10, 0], sizes = [2, 53], strides = [1, 1]} : vector<16x53xf32> to vector<2x53xf32>
    %cst_263 = arith.constant dense<0.000000e+00> : vector<2x120xf32>
    %408 = tpu.matmul %407, %55, %cst_263 {dimension_numbers = #tpu.dot_dimension_numbers<[1], [0], [0], [1], [0, 0, 1, 1], [], []>} : vector<2x53xf32>, vector<53x120xf32>, vector<2x120xf32> -> vector<2x120xf32>
    %409 = arith.addf %406, %408 : vector<2x120xf32>
    %410 = vector.extract_strided_slice %392 {offsets = [12, 0], sizes = [2, 53], strides = [1, 1]} : vector<16x53xf32> to vector<2x53xf32>
    %cst_264 = arith.constant dense<0.000000e+00> : vector<2x120xf32>
    %411 = tpu.matmul %410, %57, %cst_264 {dimension_numbers = #tpu.dot_dimension_numbers<[1], [0], [0], [1], [0, 0, 1, 1], [], []>} : vector<2x53xf32>, vector<53x120xf32>, vector<2x120xf32> -> vector<2x120xf32>
    %412 = arith.addf %409, %411 : vector<2x120xf32>
    %413 = vector.extract_strided_slice %392 {offsets = [14, 0], sizes = [2, 53], strides = [1, 1]} : vector<16x53xf32> to vector<2x53xf32>
    %cst_265 = arith.constant dense<0.000000e+00> : vector<2x120xf32>
    %414 = tpu.matmul %413, %59, %cst_265 {dimension_numbers = #tpu.dot_dimension_numbers<[1], [0], [0], [1], [0, 0, 1, 1], [], []>} : vector<2x53xf32>, vector<53x120xf32>, vector<2x120xf32> -> vector<2x120xf32>
    %415 = arith.addf %412, %414 : vector<2x120xf32>
    %416 = vector.broadcast %60 : vector<1x120xf32> to vector<2x120xf32>
    %417 = arith.addf %415, %416 : vector<2x120xf32>
    %cst_266 = arith.constant 0.000000e+00 : f32
    %418 = vector.broadcast %cst_266 : f32 to vector<2x120xf32>
    %419 = arith.maximumf %417, %418 : vector<2x120xf32>
    %c6_267 = arith.constant 6 : index
    %c0_268 = arith.constant 0 : index
    %420 = vector.load %arg17[%c6_267, %c0_268] : memref<8x120xf32, #tpu.memory_space<vmem>>, vector<2x120xf32>
    tpu.vector_store %arg17[%c6_267, %c0_268], %419 {strides = array<i32>} : memref<8x120xf32, #tpu.memory_space<vmem>>, vector<2x120xf32>,
    %c0_269 = arith.constant 0 : index
    %c0_270 = arith.constant 0 : index
    %421 = vector.load %arg17[%c0_269, %c0_270] : memref<8x120xf32, #tpu.memory_space<vmem>>, vector<8x120xf32>
    %c0_271 = arith.constant 0 : index
    %c0_272 = arith.constant 0 : index
    %422 = vector.load %arg12[%c0_271, %c0_272] : memref<120x84xf32, #tpu.memory_space<vmem>>, vector<120x84xf32>
    %cst_273 = arith.constant dense<0.000000e+00> : vector<8x84xf32>
    %423 = tpu.matmul %421, %422, %cst_273 {dimension_numbers = #tpu.dot_dimension_numbers<[1], [0], [0], [1], [0, 0, 1, 1], [], []>} : vector<8x120xf32>, vector<120x84xf32>, vector<8x84xf32> -> vector<8x84xf32>
    %c0_274 = arith.constant 0 : index
    %c0_275 = arith.constant 0 : index
    %424 = vector.load %arg13[%c0_274, %c0_275] : memref<1x84xf32, #tpu.memory_space<vmem>>, vector<1x84xf32>
    %425 = vector.broadcast %424 : vector<1x84xf32> to vector<8x84xf32>
    %426 = arith.addf %423, %425 : vector<8x84xf32>
    %cst_276 = arith.constant 0.000000e+00 : f32
    %427 = vector.broadcast %cst_276 : f32 to vector<8x84xf32>
    %428 = arith.maximumf %426, %427 : vector<8x84xf32>
    %c0_277 = arith.constant 0 : index
    %c0_278 = arith.constant 0 : index
    %429 = vector.load %arg14[%c0_277, %c0_278] : memref<84x2xf32, #tpu.memory_space<vmem>>, vector<84x2xf32>
    %cst_279 = arith.constant dense<0.000000e+00> : vector<8x2xf32>
    %430 = tpu.matmul %428, %429, %cst_279 {dimension_numbers = #tpu.dot_dimension_numbers<[1], [0], [0], [1], [0, 0, 1, 1], [], []>} : vector<8x84xf32>, vector<84x2xf32>, vector<8x2xf32> -> vector<8x2xf32>
    %c0_280 = arith.constant 0 : index
    %c0_281 = arith.constant 0 : index
    %431 = vector.load %arg15[%c0_280, %c0_281] : memref<1x2xf32, #tpu.memory_space<vmem>>, vector<1x2xf32>
    %432 = vector.broadcast %431 : vector<1x2xf32> to vector<8x2xf32>
    %433 = arith.addf %430, %432 : vector<8x2xf32>
    %cst_282 = arith.constant dense<0xFF800000> : vector<8xf32>
    %434 = vector.multi_reduction <maximumf>, %433, %cst_282 [1] : vector<8x2xf32> to vector<8xf32>
    %435 = vector.shape_cast %434 : vector<8xf32> to vector<8x1xf32>
    %436 = vector.broadcast %435 : vector<8x1xf32> to vector<8x2xf32>
    %437 = arith.subf %433, %436 : vector<8x2xf32>
    %438 = math.exp %437 : vector<8x2xf32>
    %cst_283 = arith.constant dense<0.000000e+00> : vector<8xf32>
    %439 = vector.multi_reduction <add>, %438, %cst_283 [1] : vector<8x2xf32> to vector<8xf32>
    %440 = vector.shape_cast %439 : vector<8xf32> to vector<8x1xf32>
    %441 = math.log %440 : vector<8x1xf32>
    %442 = arith.addf %435, %441 : vector<8x1xf32>
    %443 = vector.broadcast %442 : vector<8x1xf32> to vector<8x2xf32>
    %444 = arith.subf %433, %443 : vector<8x2xf32>
    %c0_284 = arith.constant 0 : index
    %c0_285 = arith.constant 0 : index
    %445 = vector.load %arg16[%c0_284, %c0_285] : memref<8x2xf32, #tpu.memory_space<vmem>>, vector<8x2xf32>
    tpu.vector_store %arg16[%c0_284, %c0_285], %444 {strides = array<i32>} : memref<8x2xf32, #tpu.memory_space<vmem>>, vector<8x2xf32>,
    return
  }
  func.func @transform_0(%arg0: i32) -> (i32, i32, i32) {
    %c0_i32 = arith.constant 0 : i32
    %c0_i32_0 = arith.constant 0 : i32
    %c0_i32_1 = arith.constant 0 : i32
    return %arg0, %c0_i32, %c0_i32_0 : i32, i32, i32
  }
  func.func @transform_1(%arg0: i32) -> (i32, i32, i32) {
    %c0_i32 = arith.constant 0 : i32
    %c0_i32_0 = arith.constant 0 : i32
    %c0_i32_1 = arith.constant 0 : i32
    %c0_i32_2 = arith.constant 0 : i32
    return %c0_i32, %c0_i32_0, %c0_i32_1 : i32, i32, i32
  }
  func.func @transform_2(%arg0: i32) -> (i32, i32, i32) {
    %c0_i32 = arith.constant 0 : i32
    %c0_i32_0 = arith.constant 0 : i32
    %c0_i32_1 = arith.constant 0 : i32
    %c0_i32_2 = arith.constant 0 : i32
    return %c0_i32, %c0_i32_0, %c0_i32_1 : i32, i32, i32
  }
  func.func @transform_3(%arg0: i32) -> (i32, i32) {
    %c0_i32 = arith.constant 0 : i32
    %c0_i32_0 = arith.constant 0 : i32
    %c0_i32_1 = arith.constant 0 : i32
    return %c0_i32, %c0_i32_0 : i32, i32
  }
  func.func @transform_4(%arg0: i32) -> (i32, i32, i32) {
    %c0_i32 = arith.constant 0 : i32
    %c0_i32_0 = arith.constant 0 : i32
    %c0_i32_1 = arith.constant 0 : i32
    %c0_i32_2 = arith.constant 0 : i32
    return %c0_i32, %c0_i32_0, %c0_i32_1 : i32, i32, i32
  }
  func.func @transform_5(%arg0: i32) -> (i32, i32, i32) {
    %c0_i32 = arith.constant 0 : i32
    %c0_i32_0 = arith.constant 0 : i32
    %c0_i32_1 = arith.constant 0 : i32
    %c0_i32_2 = arith.constant 0 : i32
    return %c0_i32, %c0_i32_0, %c0_i32_1 : i32, i32, i32
  }
  func.func @transform_6(%arg0: i32) -> (i32, i32) {
    %c0_i32 = arith.constant 0 : i32
    %c0_i32_0 = arith.constant 0 : i32
    %c0_i32_1 = arith.constant 0 : i32
    return %c0_i32, %c0_i32_0 : i32, i32
  }
  func.func @transform_7(%arg0: i32) -> (i32, i32) {
    %c0_i32 = arith.constant 0 : i32
    %c0_i32_0 = arith.constant 0 : i32
    %c0_i32_1 = arith.constant 0 : i32
    return %c0_i32, %c0_i32_0 : i32, i32
  }
  func.func @transform_8(%arg0: i32) -> (i32, i32) {
    %c0_i32 = arith.constant 0 : i32
    %c0_i32_0 = arith.constant 0 : i32
    %c0_i32_1 = arith.constant 0 : i32
    return %c0_i32, %c0_i32_0 : i32, i32
  }
  func.func @transform_9(%arg0: i32) -> (i32, i32, i32) {
    %c0_i32 = arith.constant 0 : i32
    %c0_i32_0 = arith.constant 0 : i32
    %c0_i32_1 = arith.constant 0 : i32
    %c0_i32_2 = arith.constant 0 : i32
    return %c0_i32, %c0_i32_0, %c0_i32_1 : i32, i32, i32
  }
  func.func @transform_10(%arg0: i32) -> (i32, i32) {
    %c0_i32 = arith.constant 0 : i32
    %c0_i32_0 = arith.constant 0 : i32
    %c0_i32_1 = arith.constant 0 : i32
    return %c0_i32, %c0_i32_0 : i32, i32
  }
  func.func @transform_11(%arg0: i32) -> (i32, i32) {
    %c0_i32 = arith.constant 0 : i32
    %c0_i32_0 = arith.constant 0 : i32
    %c0_i32_1 = arith.constant 0 : i32
    return %c0_i32, %c0_i32_0 : i32, i32
  }
  func.func @transform_12(%arg0: i32) -> (i32, i32) {
    %c0_i32 = arith.constant 0 : i32
    %c0_i32_0 = arith.constant 0 : i32
    %c0_i32_1 = arith.constant 0 : i32
    return %c0_i32, %c0_i32_0 : i32, i32
  }
  func.func @transform_13(%arg0: i32) -> (i32, i32) {
    %c0_i32 = arith.constant 0 : i32
    %c0_i32_0 = arith.constant 0 : i32
    %c0_i32_1 = arith.constant 0 : i32
    return %c0_i32, %c0_i32_0 : i32, i32
  }
  func.func @transform_14(%arg0: i32) -> (i32, i32) {
    %c0_i32 = arith.constant 0 : i32
    %c0_i32_0 = arith.constant 0 : i32
    %c0_i32_1 = arith.constant 0 : i32
    return %c0_i32, %c0_i32_0 : i32, i32
  }
  func.func @transform_15(%arg0: i32) -> (i32, i32) {
    %c0_i32 = arith.constant 0 : i32
    %c0_i32_0 = arith.constant 0 : i32
    return %arg0, %c0_i32 : i32, i32
  }
}

</mosaic_0001>

<bundles_post_ra>
// kernel: net_forward.1
= control target key start
LH: loop header
LB: loop body
LE: loop exit
PB: predicated region body
PF: predicated region fallthrough
CT: control target
= control target key end

     0   :  { %s9627_s18 = smov 0   ;;  %s14197_s0 = inlined_call_operand.vmem [shape: f32[8,48,224], index: 0, kind: input, shape index: {}]   ;;  %s14198_s1 = inlined_call_operand.vmem [shape: f32[5,36,48], index: 1, kind: input, shape index: {}]   ;;  %s14199_s2 = inlined_call_operand.vmem [shape: f32[5,36,48], index: 2, kind: input, shape index: {}]   ;;  %s14200_s3 = inlined_call_operand.vmem [shape: f32[36,1], index: 3, kind: input, shape index: {}]   ;;  %s14201_s4 = inlined_call_operand.vmem [shape: f32[5,16,36], index: 4, kind: input, shape index: {}]   ;;  %s14202_s5 = inlined_call_operand.vmem [shape: f32[5,16,36], index: 5, kind: input, shape index: {}]   ;;  %s14203_s6 = inlined_call_operand.vmem [shape: f32[16,1], index: 6, kind: input, shape index: {}]   ;;  %s14204_s7 = inlined_call_operand.vmem [shape: f32[224,128], index: 7, kind: input, shape index: {}]   ;;  %s14205_s8 = inlined_call_operand.vmem [shape: f32[128,53], index: 8, kind: input, shape index: {}]   ;;  %s14206_s9 = inlined_call_operand.vmem [shape: f32[8,53,120], index: 9, kind: input, shape index: {}]   ;;  %s14207_s10 = inlined_call_operand.vmem [shape: f32[1,120], index: 10, kind: input, shape index: {}]   ;;  %s14208_s11 = inlined_call_operand.vmem [shape: f32[120,84], index: 11, kind: input, shape index: {}]   ;;  %s14209_s12 = inlined_call_operand.vmem [shape: f32[1,84], index: 12, kind: input, shape index: {}]   ;;  %s14210_s13 = inlined_call_operand.vmem [shape: f32[84,2], index: 13, kind: input, shape index: {}]   ;;  %s14211_s14 = inlined_call_operand.vmem [shape: f32[1,2], index: 14, kind: input, shape index: {}]   ;;  %s14212_s15 = inlined_call_operand.vmem [shape: f32[16,2], index: 15, kind: output, shape index: {}]  }
   0x1   :  { %14237 = sst [smem:[#allocation40_spill]] %s14197_s0 }
   0x2   :  { %14238 = sst [smem:[#allocation41_spill]] %s14200_s3 }
   0x3   :  { %14239 = sst [smem:[#allocation42_spill]] %s14203_s6 }
   0x4 LB: > { %s9633_s19 = sadd.s32 4294967295, %s9539_s18   ;;  %p7533_p0 = scmp.ge.s32.totalorder %s9539_s18, 1  ;;  %s9539_s18 = sphi %s9627_s18, %s25_s18  }
   0x5   : > { %p439_p1 = scmp.lt.s32.totalorder %s9539_s18, 3 }
   0x7   : > { %p440_p2 = pnand %p7533_p0, %p439_p1 }
   0x9   : > { %443 = sbr.rel (%p440_p2) target bundleno = 6059 (0x17ab), region = 80 }
   0xe   : > { %s7534_s20 = sshll.u32 %s9633_s19, 2  ;;  %s14240_s0 = sld [smem:[#allocation40_spill]]  ;;  %vm711_vm0 = vcmask 1048320   ;;  %v498_v36 = vld [vmem:[%s14198_s1] sm:$0xff]  ;;  %vm785_vm1 = vcmask 392192   ;;  %v499_v37 = vld [vmem:[%s14198_s1 + $0x8] sm:$0xff] }
   0xf   : > { %p488_p3 = scmp.lt.s32.totalorder %s7534_s20, 7  ;;  %s14215_s25 = smov 96   ;;  %v500_v38 = vld [vmem:[%s14198_s1 + $0x10] sm:$0xff]  ;;  %v501_v39 = vld [vmem:[%s14198_s1 + $0x18] sm:$0xff]  ;;  %v502_v40 = vld [vmem:[%s14198_s1 + $0x20] sm:$0xf] }
  0x10   : > { %s14221_s26 = smov 127   ;;  %s14219_s27 = smov 126   ;;  %v527_v41 = vld [vmem:[%s14199_s2] sm:$0xff]  ;;  %v528_v42 = vld [vmem:[%s14199_s2 + $0x8] sm:$0xff]  ;;  %v529_v44 = vld [vmem:[%s14199_s2 + $0x10] sm:$0xff]  ;;  %vm766_vm2 = vcmask 1039360  }
  0x11   : > { %s14421_s20 = smov (!%p488_p3, %s7534_s20), 7  ;;  %s14217_s28 = smov 125   ;;  %v530_v45 = vld [vmem:[%s14199_s2 + $0x18] sm:$0xff]  ;;  %v531_v47 = vld [vmem:[%s14199_s2 + $0x20] sm:$0xf]  ;;  %vm1126_vm3 = vcmask 1031168  }
  0x12   : > { %s8293_s21 = smul.u32 96, %s14421_s20  ;;  %s14213_s22 = smov 124   ;;  %vm1347_vm4 = vcmask 1022976   ;;  %vm1568_vm5 = vcmask 1014784   ;;  %vm1870_vm6 = vcmask 785408   ;;  %vm1972_vm7 = vcmask 1043456  }
  0x13   : > { %s14269_s3 = sld [smem:[#allocation41_spill]]  ;;  %s14275_s16 = smov 125   ;;  %vm1965_vm8 = vcmask 293888   ;;  %vm2362_vm9 = vcmask 1044480   ;;  %vm2359_vm10 = vcmask 433152   ;;  %vm2578_vm11 = vcmask 975872  }
  0x14   : > { %s9641_s24 = scalar_lea.vmem %s14240_s0, %s8293_s21  ;;  %s14276_s17 = smov 124   ;;  %vm7394_vm12 = vcmask 982016   ;;  %vm7434_vm13 = vcmask 687104   ;;  %vm7461_vm14 = vcmask 15360  }
  0x15   : > { %v707_v0 = vld [vmem:[%s9641_s24 + $0x40] sm:$0xff]  ;;  %v709_v1 = vld [vmem:[%s9641_s24 + $0x50] sm:$0xff]  ;;  %v710_v9 = vld [vmem:[%s9641_s24 + $0x58] sm:$0xff]  ;;  %s14277_s20 = smov 96   ;;  %s14278_s6 = sld [smem:[#allocation42_spill]] }
  0x16   : > { %v8308_v2 = vpack.i.bf16 %v707_v0, %v709_v1  ;;  %v9646_v3 = vld [vmem:[%s9641_s24] sm:$0xff]  ;;  %v701_v4 = vld [vmem:[%s9641_s24 + $0x10] sm:$0xff]  ;;  %890 = vmatpush.msra.mxu2 %v709_v1  ;;  %922 = vmatpush.msra.mxu3 %v710_v9  ;;  %v708_v10 = vld [vmem:[%s9641_s24 + $0x48] sm:$0xff]  ;;  %s14296_s23 = smov 127   ;;  %p494_p4 = scmp.lt.s32.totalorder %s9633_s19, 1 }
  0x17   : > { %v8318_v5 = vpack.i.bf16 %v9646_v3, %v701_v4  ;;  %v703_v6 = vld [vmem:[%s9641_s24 + $0x20] sm:$0xff]  ;;  %v705_v7 = vld [vmem:[%s9641_s24 + $0x30] sm:$0xff]  ;;  %v706_v11 = vld [vmem:[%s9641_s24 + $0x38] sm:$0xff] }
  0x18   : > { %8309 = vrot.lane.b32.xlu0 %v8308_v2, %s14215_s25  ;;  %891 = vmatpush.msra.mxu2 %v707_v0  ;;  %v8313_v8 = vpack.i.bf16 %v703_v6, %v705_v7  ;;  %v704_v12 = vld [vmem:[%s9641_s24 + $0x28] sm:$0xff]  ;;  %v702_v13 = vld [vmem:[%s9641_s24 + $0x18] sm:$0xff]  ;;  %s14423_s19 = smov (!%p494_p4, %s9633_s19), 1 }
  0x19   : > { %8319 = vrot.lane.b32.xlu1 %v8318_v5, %s14215_s25  ;;  %923 = vmatpush.msra.mxu3 %v708_v10  ;;  %v700_v14 = vld [vmem:[%s9641_s24 + $0x8] sm:$0xff]  ;;  %s7536_s29 = sshll.u32 %s14423_s19, 3 }
  0x1a   : > { %892 = vmatpush.msra.mxu2 %v705_v7 }
  0x1b   : > { %924 = vmatpush.msra.mxu3 %v706_v11 }
  0x1c   : > { %893 = vmatpush.msra.mxu2 %v703_v6 }
  0x1d   : > { %925 = vmatpush.msra.mxu3 %v704_v12 }
  0x1e   : > { %894 = vmatpush.msra.mxu2 %v701_v4 }
  0x1f   : > { %926 = vmatpush.msra.mxu3 %v702_v13 }
  0x20   : > { %8314 = vrot.lane.b32.xlu0 %v8313_v8, %s14215_s25  ;;  %895 = vmatpush.msra.mxu2 %v9646_v3 }
  0x21   : > { %927 = vmatpush.msra.mxu3 %v700_v14  ;;  %7652 = vmatmul.msk.f32.vlgmr.msra.gmra.mxu2 %vm785_vm1, %v498_v36 }
  0x22   : > { %1048 = vmatpush.msrb.mxu2 %v709_v1  ;;  %7657 = vmatmul.msk.f32.vlgmr.msra.gmra.mxu3 %vm785_vm1, %v498_v36 }
  0x23   : > { %1080 = vmatpush.msrb.mxu3 %v710_v9 }
  0x24   : > { %1049 = vmatpush.msrb.mxu2 %v707_v0 }
  0x25   : > { %1081 = vmatpush.msrb.mxu3 %v708_v10 }
  0x26   : > { %1050 = vmatpush.msrb.mxu2 %v705_v7 }
  0x27   : > { %1082 = vmatpush.msrb.mxu3 %v706_v11 }
  0x28   : > { %1051 = vmatpush.msrb.mxu2 %v703_v6 }
  0x29   : > { %1083 = vmatpush.msrb.mxu3 %v704_v12  ;;  %7653 = vmatmul.msk.f32.gmra.mxu2 %vm785_vm1, %v499_v37 }
  0x2a   : > { %1052 = vmatpush.msrb.mxu2 %v701_v4  ;;  %7658 = vmatmul.msk.f32.gmra.mxu3 %vm785_vm1, %v499_v37 }
  0x2b   : > { %1084 = vmatpush.msrb.mxu3 %v702_v13 }
  0x2c   : > { %1053 = vmatpush.msrb.mxu2 %v9646_v3 }
  0x2d   : > { %1085 = vmatpush.msrb.mxu3 %v700_v14 }
  0x31   : > { %7654 = vmatmul.msk.f32.gmra.mxu2 %vm785_vm1, %v500_v38 }
  0x32   : > { %7659 = vmatmul.msk.f32.gmra.mxu3 %vm785_vm1, %v500_v38  ;;  %v7562_v38 = vld [vmem:[%s14199_s2 + $0x50] sm:$0xff] }
  0x39   : > { %7655 = vmatmul.msk.f32.gmra.mxu2 %vm785_vm1, %v501_v39 }
  0x3a   : > { %7660 = vmatmul.msk.f32.gmra.mxu3 %vm785_vm1, %v501_v39 }
  0x41   : > { %7656 = vmatmul.msk.f32.gmra.mxu2 %vm785_vm1, %v502_v40 }
  0x42   : > { %7661 = vmatmul.msk.f32.gmra.mxu3 %vm785_vm1, %v502_v40 }
  0x49   : > { %7672 = vmatmul.msk.f32.vlgmr.msrb.gmra.mxu2 %vm785_vm1, %v527_v41 }
  0x4a   : > { %7677 = vmatmul.msk.f32.vlgmr.msrb.gmra.mxu3 %vm785_vm1, %v527_v41 }
  0x51   : > { %7673 = vmatmul.msk.f32.gmra.mxu2 %vm785_vm1, %v528_v42 }
  0x52   : > { %7678 = vmatmul.msk.f32.gmra.mxu3 %vm785_vm1, %v528_v42 }
  0x59   : > { %7674 = vmatmul.msk.f32.gmra.mxu2 %vm785_vm1, %v529_v44 }
  0x5a   : > { %7679 = vmatmul.msk.f32.gmra.mxu3 %vm785_vm1, %v529_v44 }
  0x61   : > { %7675 = vmatmul.msk.f32.gmra.mxu2 %vm785_vm1, %v530_v45 }
  0x62   : > { %7680 = vmatmul.msk.f32.gmra.mxu3 %vm785_vm1, %v530_v45  ;;  %v7540_v45 = vld [vmem:[%s14198_s1 + $0x40] sm:$0xff] }
  0x69   : > { %7676 = vmatmul.msk.f32.gmra.mxu2 %vm785_vm1, %v531_v47 }
  0x6a   : > { %7681 = vmatmul.msk.f32.gmra.mxu3 %vm785_vm1, %v531_v47 }
  0x8a   : > { %v8310_v15 = vpop.permute.xlu0 %8309 }
  0x8b   : > { %v8312_v16 = vunpack.i.h.bf16 %v8310_v15  ;;  %v8311_v17 = vunpack.i.l.bf16 %v8310_v15  ;;  %v8320_v18 = vpop.permute.xlu1 %8319 }
  0x8c   : > { %v8321_v23 = vunpack.i.l.bf16 %v8320_v18  ;;  %v8322_v33 = vunpack.i.h.bf16 %v8320_v18 }
  0x8d   : > { %v728_v19 = vsel %vm711_vm0, %v8312_v16, %v708_v10  ;;  %v729_v20 = vsel %vm711_vm0, %v8311_v17, %v710_v9 }
  0x8e   : > { %v8328_v21 = vpack.i.bf16 %v728_v19, %v707_v0  ;;  %v8323_v22 = vpack.i.bf16 %v729_v20, %v709_v1  ;;  %v725_v25 = vsel %vm711_vm0, %v8321_v23, %v702_v13  ;;  %v724_v34 = vsel %vm711_vm0, %v8322_v33, %v700_v14  ;;  %v7538_v19 = vld [vmem:[%s14198_s1 + $0x30] sm:$0xff] }
  0x8f   : > { %v8343_v30 = vpack.i.bf16 %v725_v25, %v701_v4  ;;  %v8348_v35 = vpack.i.bf16 %v724_v34, %v9646_v3 }
  0x90   : > { %8329 = vrot.lane.b32.xlu2 %v8328_v21, %s14221_s26  ;;  %8324 = vrot.lane.b32.xlu1 %v8323_v22, %s14221_s26 }
  0x92   : > { %v8315_v24 = vpop.permute.xlu0 %8314 }
  0x93   : > { %v8317_v26 = vunpack.i.h.bf16 %v8315_v24  ;;  %v8316_v27 = vunpack.i.l.bf16 %v8315_v24 }
  0x95   : > { %v726_v28 = vsel %vm711_vm0, %v8317_v26, %v704_v12  ;;  %v727_v29 = vsel %vm711_vm0, %v8316_v27, %v706_v11 }
  0x96   : > { %v8338_v31 = vpack.i.bf16 %v726_v28, %v703_v6  ;;  %v8333_v32 = vpack.i.bf16 %v727_v29, %v705_v7  ;;  %v7537_v6 = vld [vmem:[%s14198_s1 + $0x28] sm:$0xff] }
  0x98   : > { %8339 = vrot.lane.b32.xlu0 %v8338_v31, %s14221_s26  ;;  %8334 = vrot.lane.b32.xlu2 %v8333_v32, %s14221_s26 }
  0x99   : > { %8344 = vrot.lane.b32.xlu1 %v8343_v30, %s14221_s26 }
  0xa0   : > { %8354 = vrot.lane.b32.xlu0 %v8323_v22, %s14219_s27  ;;  %8349 = vrot.lane.b32.xlu2 %v8348_v35, %s14221_s26 }
  0xa1   : > { %8359 = vrot.lane.b32.xlu1 %v8328_v21, %s14219_s27 }
  0xa8   : > { %8369 = vrot.lane.b32.xlu0 %v8338_v31, %s14219_s27  ;;  %8364 = vrot.lane.b32.xlu2 %v8333_v32, %s14219_s27 }
  0xa9   : > { %8374 = vrot.lane.b32.xlu1 %v8343_v30, %s14219_s27 }
  0xb0   : > { %8384 = vrot.lane.b32.xlu0 %v8323_v22, %s14217_s28  ;;  %8379 = vrot.lane.b32.xlu2 %v8348_v35, %s14219_s27 }
  0xb1   : > { %8389 = vrot.lane.b32.xlu1 %v8328_v21, %s14217_s28 }
  0xb8   : > { %8399 = vrot.lane.b32.xlu0 %v8338_v31, %s14217_s28  ;;  %8394 = vrot.lane.b32.xlu2 %v8333_v32, %s14217_s28 }
  0xb9   : > { %8404 = vrot.lane.b32.xlu1 %v8343_v30, %s14217_s28 }
  0xc0   : > { %8414 = vrot.lane.b32.xlu0 %v8323_v22, %s14213_s22  ;;  %8409 = vrot.lane.b32.xlu2 %v8348_v35, %s14217_s28  ;;  %s14279_s28 = smov 126  }
  0xc1   : > { %8419 = vrot.lane.b32.xlu1 %v8328_v21, %s14213_s22 }
  0xc8   : > { %8429 = vrot.lane.b32.xlu0 %v8338_v31, %s14213_s22  ;;  %8424 = vrot.lane.b32.xlu2 %v8333_v32, %s14213_s22  ;;  %v7539_v32 = vld [vmem:[%s14198_s1 + $0x38] sm:$0xff] }
  0xc9   : > { %8434 = vrot.lane.b32.xlu1 %v8343_v30, %s14213_s22 }
  0xd0   : > { %8439 = vrot.lane.b32.xlu2 %v8348_v35, %s14213_s22 }
  0xea   : > { %v8330_v43 = vpop.permute.xlu2 %8329 }
  0xeb   : > { %v8332_v50 = vunpack.i.h.bf16 %v8330_v43  ;;  %v8331_v51 = vunpack.i.l.bf16 %v8330_v43 }
  0xed   : > { %v771_v57 = vsel %vm766_vm2, %v8331_v51, %v8332_v50 }
  0xf2   : > { %v8335_v46 = vpop.permute.xlu2 %8334 }
  0xf3   : > { %v8337_v54 = vunpack.i.h.bf16 %v8335_v46  ;;  %v8336_v55 = vunpack.i.l.bf16 %v8335_v46 }
  0xf5   : > { %v770_v59 = vsel %vm766_vm2, %v8336_v55, %v8337_v54 }
  0xfa   : > { %v8350_v48 = vpop.permute.xlu2 %8349 }
  0xfb   : > { %v8352_v2 = vunpack.i.h.bf16 %v8350_v48  ;;  %v8351_v3 = vunpack.i.l.bf16 %v8350_v48 }
  0xfd   : > { %v767_v7 = vsel %vm766_vm2, %v8351_v3, %v8352_v2 }
 0x102   : > { %v8325_v49 = vpop.permute.xlu1 %8324  ;;  %v8365_v58 = vpop.permute.xlu2 %8364 }
 0x103   : > { %v8327_v52 = vunpack.i.h.bf16 %v8325_v49  ;;  %v8326_v53 = vunpack.i.l.bf16 %v8325_v49  ;;  %v8367_v16 = vunpack.i.h.bf16 %v8365_v58  ;;  %v8366_v17 = vunpack.i.l.bf16 %v8365_v58 }
 0x105   : > { %843 = vmatpush.msra.mxu1 %v8327_v52  ;;  %v772_v56 = vsel %vm766_vm2, %v8326_v53, %v8327_v52  ;;  %v1130_v21 = vsel %vm1126_vm3, %v8366_v17, %v8367_v16 }
 0x106   : > { %811 = vmatpush.msra.mxu0 %v772_v56 }
 0x107   : > { %844 = vmatpush.msra.mxu1 %v8332_v50 }
 0x108   : > { %812 = vmatpush.msra.mxu0 %v771_v57 }
 0x109   : > { %845 = vmatpush.msra.mxu1 %v8337_v54 }
 0x10a   : > { %v8340_v60 = vpop.permute.xlu0 %8339  ;;  %813 = vmatpush.msra.mxu0 %v770_v59  ;;  %v9754_v9 = vpop.permute.xlu2 %8379 }
 0x10b   : > { %v8342_v61 = vunpack.i.h.bf16 %v8340_v60  ;;  %v8341_v62 = vunpack.i.l.bf16 %v8340_v60  ;;  %v8345_v63 = vpop.permute.xlu1 %8344  ;;  %v8382_v29 = vunpack.i.h.bf16 %v9754_v9  ;;  %v8381_v30 = vunpack.i.l.bf16 %v9754_v9  ;;  %v7557_v9 = vld [vmem:[%s14199_s2 + $0x28] sm:$0xff] }
 0x10c   : > { %v8347_v0 = vunpack.i.h.bf16 %v8345_v63  ;;  %v8346_v1 = vunpack.i.l.bf16 %v8345_v63 }
 0x10d   : > { %846 = vmatpush.msra.mxu1 %v8342_v61  ;;  %v769_v4 = vsel %vm766_vm2, %v8341_v62, %v8342_v61  ;;  %v1127_v37 = vsel %vm1126_vm3, %v8381_v30, %v8382_v29  ;;  %v7561_v30 = vld [vmem:[%s14199_s2 + $0x48] sm:$0xf] }
 0x10e   : > { %814 = vmatpush.msra.mxu0 %v769_v4  ;;  %v768_v5 = vsel %vm766_vm2, %v8346_v1, %v8347_v0 }
 0x10f   : > { %847 = vmatpush.msra.mxu1 %v8347_v0 }
 0x110   : > { %815 = vmatpush.msra.mxu0 %v768_v5 }
 0x111   : > { %848 = vmatpush.msra.mxu1 %v8352_v2 }
 0x112   : > { %v8355_v8 = vpop.permute.xlu0 %8354  ;;  %816 = vmatpush.msra.mxu0 %v767_v7  ;;  %7647 = vmatmul.msk.f32.vlgmr.msra.gmra.mxu1 %vm785_vm1, %v7537_v6  ;;  %v8395_v27 = vpop.permute.xlu2 %8394 }
 0x113   : > { %v8357_v10 = vunpack.i.h.bf16 %v8355_v8  ;;  %v8356_v11 = vunpack.i.l.bf16 %v8355_v8  ;;  %v8360_v12 = vpop.permute.xlu1 %8359  ;;  %1001 = vmatpush.msrb.mxu1 %v8327_v52  ;;  %7642 = vmatmul.msk.f32.vlgmr.msra.gmra.mxu0 %vm785_vm1, %v7537_v6  ;;  %v9787_v42 = vunpack.i.h.bf16 %v8395_v27  ;;  %v8396_v43 = vunpack.i.l.bf16 %v8395_v27  ;;  %v7563_v52 = vld [vmem:[%s14199_s2 + $0x58] sm:$0xff] }
 0x114   : > { %v8362_v13 = vunpack.i.h.bf16 %v8360_v12  ;;  %v8361_v14 = vunpack.i.l.bf16 %v8360_v12  ;;  %969 = vmatpush.msrb.mxu0 %v772_v56  ;;  %v7567_v27 = vld [vmem:[%s14199_s2 + $0x78] sm:$0xff] }
 0x115   : > { %1002 = vmatpush.msrb.mxu1 %v8332_v50  ;;  %1291 = vmatpush.msra.mxu3 %v8357_v10  ;;  %v1132_v15 = vsel %vm1126_vm3, %v8356_v11, %v8357_v10  ;;  %v9806_v51 = vsel %vm1347_vm4, %v8396_v43, %v9787_v42 }
 0x116   : > { %970 = vmatpush.msrb.mxu0 %v771_v57  ;;  %1259 = vmatpush.msra.mxu2 %v1132_v15  ;;  %v1131_v18 = vsel %vm1126_vm3, %v8361_v14, %v8362_v13 }
 0x117   : > { %1003 = vmatpush.msrb.mxu1 %v8337_v54  ;;  %1292 = vmatpush.msra.mxu3 %v8362_v13 }
 0x118   : > { %971 = vmatpush.msrb.mxu0 %v770_v59  ;;  %1260 = vmatpush.msra.mxu2 %v1131_v18  ;;  %v7541_v59 = vld [vmem:[%s14198_s1 + $0x48] sm:$0xf] }
 0x119   : > { %1004 = vmatpush.msrb.mxu1 %v8342_v61  ;;  %1293 = vmatpush.msra.mxu3 %v8367_v16 }
 0x11a   : > { %972 = vmatpush.msrb.mxu0 %v769_v4  ;;  %v8370_v20 = vpop.permute.xlu0 %8369  ;;  %7648 = vmatmul.msk.f32.gmra.mxu1 %vm785_vm1, %v7538_v19  ;;  %v8410_v44 = vpop.permute.xlu2 %8409 }
 0x11b   : > { %v8372_v22 = vunpack.i.h.bf16 %v8370_v20  ;;  %v8371_v23 = vunpack.i.l.bf16 %v8370_v20  ;;  %v8375_v24 = vpop.permute.xlu1 %8374  ;;  %1005 = vmatpush.msrb.mxu1 %v8347_v0  ;;  %1261 = vmatpush.msra.mxu2 %v1130_v21  ;;  %v9821_v56 = vunpack.i.h.bf16 %v8410_v44  ;;  %v8411_v57 = vunpack.i.l.bf16 %v8410_v44  ;;  %v7546_v44 = vld [vmem:[%s14198_s1 + $0x70] sm:$0xf] }
 0x11c   : > { %v8377_v25 = vunpack.i.h.bf16 %v8375_v24  ;;  %v8376_v26 = vunpack.i.l.bf16 %v8375_v24  ;;  %7643 = vmatmul.msk.f32.gmra.mxu0 %vm785_vm1, %v7538_v19 }
 0x11d   : > { %973 = vmatpush.msrb.mxu0 %v768_v5  ;;  %1006 = vmatpush.msrb.mxu1 %v8352_v2  ;;  %v1129_v28 = vsel %vm1126_vm3, %v8371_v23, %v8372_v22  ;;  %v9837_v62 = vsel %vm1347_vm4, %v8411_v57, %v9821_v56  ;;  %v7564_v2 = vld [vmem:[%s14199_s2 + $0x60] sm:$0xff]  ;;  %v7558_v23 = vld [vmem:[%s14199_s2 + $0x30] sm:$0xff] }
 0x11e   : > { %1294 = vmatpush.msra.mxu3 %v8372_v22  ;;  %1262 = vmatpush.msra.mxu2 %v1129_v28  ;;  %v1128_v31 = vsel %vm1126_vm3, %v8376_v26, %v8377_v25  ;;  %v7559_v26 = vld [vmem:[%s14199_s2 + $0x38] sm:$0xff]  ;;  %v7550_v57 = vld [vmem:[%s14198_s1 + $0x90] sm:$0xff] }
 0x11f   : > { %1202 = vmatpush.msra.mxu1 %v8357_v10  ;;  %974 = vmatpush.msrb.mxu0 %v767_v7 }
 0x120   : > { %1295 = vmatpush.msra.mxu3 %v8377_v25  ;;  %1263 = vmatpush.msra.mxu2 %v1128_v31 }
 0x121   : > { %1170 = vmatpush.msra.mxu0 %v1132_v15  ;;  %1203 = vmatpush.msra.mxu1 %v8362_v13 }
 0x122   : > { %v8385_v33 = vpop.permute.xlu0 %8384  ;;  %1296 = vmatpush.msra.mxu3 %v8382_v29  ;;  %7649 = vmatmul.msk.f32.gmra.mxu1 %vm785_vm1, %v7539_v32  ;;  %v8425_v60 = vpop.permute.xlu2 %8424 }
 0x123   : > { %1171 = vmatpush.msra.mxu0 %v1131_v18  ;;  %1204 = vmatpush.msra.mxu1 %v8367_v16  ;;  %v9772_v34 = vunpack.i.h.bf16 %v8385_v33  ;;  %v8386_v35 = vunpack.i.l.bf16 %v8385_v33  ;;  %v8390_v36 = vpop.permute.xlu1 %8389  ;;  %v9855_v6 = vunpack.i.h.bf16 %v8425_v60  ;;  %v8426_v7 = vunpack.i.l.bf16 %v8425_v60  ;;  %v7565_v16 = vld [vmem:[%s14199_s2 + $0x68] sm:$0xff]  ;;  %v7542_v33 = vld [vmem:[%s14198_s1 + $0x50] sm:$0xff]  ;;  %v7551_v60 = vld [vmem:[%s14198_s1 + $0x98] sm:$0xf] }
 0x124   : > { %1264 = vmatpush.msra.mxu2 %v1127_v37  ;;  %v9779_v39 = vunpack.i.h.bf16 %v8390_v36  ;;  %v8391_v40 = vunpack.i.l.bf16 %v8390_v36  ;;  %7644 = vmatmul.msk.f32.gmra.mxu0 %vm785_vm1, %v7539_v32  ;;  %v9948_v32 = vpop.f32.mrf.mxu2 }
 0x125   : > { %1172 = vmatpush.msra.mxu0 %v1130_v21  ;;  %1205 = vmatpush.msra.mxu1 %v8372_v22  ;;  %v9784_v41 = vsel %vm1347_vm4, %v8386_v35, %v9772_v34  ;;  %v9871_v11 = vsel %vm1568_vm5, %v8426_v7, %v9855_v6  ;;  %v7543_v35 = vld [vmem:[%s14198_s1 + $0x58] sm:$0xff] }
 0x126   : > { %7692 = vmatmul.msk.f32.vlgmr.msra.gmra.mxu2 %vm785_vm1, %v7562_v38  ;;  %1512 = vmatpush.msrb.mxu3 %v9772_v34  ;;  %v9797_v46 = vsel %vm1347_vm4, %v8391_v40, %v9779_v39 }
 0x127   : > { %1173 = vmatpush.msra.mxu0 %v1129_v28  ;;  %1206 = vmatpush.msra.mxu1 %v8377_v25  ;;  %v7566_v25 = vld [vmem:[%s14199_s2 + $0x70] sm:$0xf]  ;;  %v7560_v28 = vld [vmem:[%s14199_s2 + $0x40] sm:$0xff] }
 0x128   : > { %1480 = vmatpush.msrb.mxu2 %v9784_v41  ;;  %1513 = vmatpush.msrb.mxu3 %v9779_v39 }
 0x129   : > { %1174 = vmatpush.msra.mxu0 %v1128_v31  ;;  %1207 = vmatpush.msra.mxu1 %v8382_v29  ;;  %v7568_v29 = vld [vmem:[%s14199_s2 + $0x80] sm:$0xff]  ;;  %v7569_v31 = vld [vmem:[%s14199_s2 + $0x88] sm:$0xff] }
 0x12a   : > { %1481 = vmatpush.msrb.mxu2 %v9797_v46  ;;  %v8400_v47 = vpop.permute.xlu0 %8399  ;;  %1514 = vmatpush.msrb.mxu3 %v9787_v42  ;;  %v8440_v12 = vpop.permute.xlu2 %8439 }
 0x12b   : > { %1175 = vmatpush.msra.mxu0 %v1127_v37  ;;  %v9801_v48 = vunpack.i.h.bf16 %v8400_v47  ;;  %v8401_v49 = vunpack.i.l.bf16 %v8400_v47  ;;  %v8405_v50 = vpop.permute.xlu1 %8404  ;;  %7650 = vmatmul.msk.f32.gmra.mxu1 %vm785_vm1, %v7540_v45  ;;  %v9888_v20 = vunpack.i.h.bf16 %v8440_v12  ;;  %v8441_v21 = vunpack.i.l.bf16 %v8440_v12  ;;  %v7571_v37 = vld [vmem:[%s14199_s2 + $0x98] sm:$0xf] }
 0x12c   : > { %v9811_v53 = vunpack.i.h.bf16 %v8405_v50  ;;  %v8406_v54 = vunpack.i.l.bf16 %v8405_v50  ;;  %1482 = vmatpush.msrb.mxu2 %v9806_v51  ;;  %7697 = vmatmul.msk.f32.vlgmr.msra.gmra.mxu3 %vm785_vm1, %v7562_v38  ;;  %v9968_v36 = vpop.f32.mrf.mxu2  ;;  %v7544_v38 = vld [vmem:[%s14198_s1 + $0x60] sm:$0xff]  ;;  %v7547_v47 = vld [vmem:[%s14198_s1 + $0x78] sm:$0xff] }
 0x12d   : > { %7645 = vmatmul.msk.f32.gmra.mxu0 %vm785_vm1, %v7540_v45  ;;  %1515 = vmatpush.msrb.mxu3 %v9801_v48  ;;  %v9819_v55 = vsel %vm1347_vm4, %v8401_v49, %v9801_v48  ;;  %v1569_v24 = vsel %vm1568_vm5, %v8441_v21, %v9888_v20  ;;  %v7574_v45 = vld [vmem:[%s14199_s2 + $0xb0] sm:$0xff]  ;;  %v7548_v50 = vld [vmem:[%s14198_s1 + $0x80] sm:$0xff] }
 0x12e   : > { %7693 = vmatmul.msk.f32.gmra.mxu2 %vm785_vm1, %v7563_v52  ;;  %v9828_v58 = vsel %vm1347_vm4, %v8406_v54, %v9811_v53  ;;  %v7549_v54 = vld [vmem:[%s14198_s1 + $0x88] sm:$0xff] }
 0x12f   : > { %1483 = vmatpush.msrb.mxu2 %v9819_v55  ;;  %1516 = vmatpush.msrb.mxu3 %v9811_v53 }
 0x131   : > { %1484 = vmatpush.msrb.mxu2 %v9828_v58  ;;  %1517 = vmatpush.msrb.mxu3 %v9821_v56 }
 0x132   : > { %v8415_v61 = vpop.permute.xlu0 %8414 }
 0x133   : > { %v9839_v63 = vunpack.i.h.bf16 %v8415_v61  ;;  %v8416_v0 = vunpack.i.l.bf16 %v8415_v61  ;;  %v8420_v1 = vpop.permute.xlu1 %8419  ;;  %7651 = vmatmul.msk.f32.gmra.mxu1 %vm785_vm1, %v7541_v59  ;;  %1485 = vmatpush.msrb.mxu2 %v9837_v62 }
 0x134   : > { %v9846_v3 = vunpack.i.h.bf16 %v8420_v1  ;;  %v8421_v4 = vunpack.i.l.bf16 %v8420_v1  ;;  %7698 = vmatmul.msk.f32.gmra.mxu3 %vm785_vm1, %v7563_v52  ;;  %v9987_v40 = vpop.f32.mrf.mxu2  ;;  %v7576_v52 = vld [vmem:[%s14199_s2 + $0xc0] sm:$0xf]  ;;  %v7553_v1 = vld [vmem:[%s14198_s1 + $0xa8] sm:$0xff] }
 0x135   : > { %7646 = vmatmul.msk.f32.gmra.mxu0 %vm785_vm1, %v7541_v59  ;;  %1733 = vmatpush.msra.mxu3 %v9839_v63  ;;  %v9853_v5 = vsel %vm1568_vm5, %v8416_v0, %v9839_v63 }
 0x136   : > { %7694 = vmatmul.msk.f32.gmra.mxu2 %vm785_vm1, %v7564_v2  ;;  %v9862_v8 = vsel %vm1568_vm5, %v8421_v4, %v9846_v3 }
 0x137   : > { %1701 = vmatpush.msra.mxu2 %v9853_v5  ;;  %1734 = vmatpush.msra.mxu3 %v9846_v3 }
 0x139   : > { %1702 = vmatpush.msra.mxu2 %v9862_v8  ;;  %1735 = vmatpush.msra.mxu3 %v9855_v6 }
 0x13a   : > { %v8430_v10 = vpop.permute.xlu0 %8429 }
 0x13b   : > { %v9873_v13 = vunpack.i.h.bf16 %v8430_v10  ;;  %v8431_v14 = vunpack.i.l.bf16 %v8430_v10  ;;  %v8435_v15 = vpop.permute.xlu1 %8434  ;;  %7667 = vmatmul.msk.f32.vlgmr.msrb.gmra.mxu1 %vm785_vm1, %v7557_v9  ;;  %1703 = vmatpush.msra.mxu2 %v9871_v11  ;;  %v7555_v10 = vld [vmem:[%s14198_s1 + $0xb8] sm:$0xff] }
 0x13c   : > { %v9880_v17 = vunpack.i.h.bf16 %v8435_v15  ;;  %v8436_v18 = vunpack.i.l.bf16 %v8435_v15  ;;  %1423 = vmatpush.msrb.mxu1 %v9772_v34  ;;  %7699 = vmatmul.msk.f32.gmra.mxu3 %vm785_vm1, %v7564_v2  ;;  %v7570_v34 = vld [vmem:[%s14199_s2 + $0x90] sm:$0xff]  ;;  %v10001_v43 = vpop.f32.mrf.mxu2  ;;  %v7556_v15 = vld [vmem:[%s14198_s1 + $0xc0] sm:$0xf] }
 0x13d   : > { %7662 = vmatmul.msk.f32.vlgmr.msrb.gmra.mxu0 %vm785_vm1, %v7557_v9  ;;  %1736 = vmatpush.msra.mxu3 %v9873_v13  ;;  %v1571_v19 = vsel %vm1568_vm5, %v8431_v14, %v9873_v13 }
 0x13e   : > { %7695 = vmatmul.msk.f32.gmra.mxu2 %vm785_vm1, %v7565_v16  ;;  %1391 = vmatpush.msrb.mxu0 %v9784_v41  ;;  %v1570_v22 = vsel %vm1568_vm5, %v8436_v18, %v9880_v17  ;;  %v7545_v41 = vld [vmem:[%s14198_s1 + $0x68] sm:$0xff] }
 0x13f   : > { %1424 = vmatpush.msrb.mxu1 %v9779_v39  ;;  %1704 = vmatpush.msra.mxu2 %v1571_v19  ;;  %v7572_v39 = vld [vmem:[%s14199_s2 + $0xa0] sm:$0xff] }
 0x140   : > { %1392 = vmatpush.msrb.mxu0 %v9797_v46  ;;  %1737 = vmatpush.msra.mxu3 %v9880_v17 }
 0x141   : > { %1425 = vmatpush.msrb.mxu1 %v9787_v42  ;;  %1705 = vmatpush.msra.mxu2 %v1570_v22  ;;  %v7573_v42 = vld [vmem:[%s14199_s2 + $0xa8] sm:$0xff] }
 0x142   : > { %1393 = vmatpush.msrb.mxu0 %v9806_v51  ;;  %1738 = vmatpush.msra.mxu3 %v9888_v20 }
 0x143   : > { %1426 = vmatpush.msrb.mxu1 %v9801_v48  ;;  %1706 = vmatpush.msra.mxu2 %v1569_v24  ;;  %v7575_v48 = vld [vmem:[%s14199_s2 + $0xb8] sm:$0xff] }
 0x144   : > { %1394 = vmatpush.msrb.mxu0 %v9819_v55  ;;  %7668 = vmatmul.msk.f32.gmra.mxu1 %vm785_vm1, %v7558_v23  ;;  %v10015_v46 = vpop.f32.mrf.mxu2 }
 0x145   : > { %1427 = vmatpush.msrb.mxu1 %v9811_v53  ;;  %7663 = vmatmul.msk.f32.gmra.mxu0 %vm785_vm1, %v7558_v23 }
 0x146   : > { %7696 = vmatmul.msk.f32.gmra.mxu2 %vm785_vm1, %v7566_v25  ;;  %1395 = vmatpush.msrb.mxu0 %v9828_v58 }
 0x147   : > { %1428 = vmatpush.msrb.mxu1 %v9821_v56  ;;  %7700 = vmatmul.msk.f32.gmra.mxu3 %vm785_vm1, %v7565_v16  ;;  %v10050_v56 = vpop.f32.mrf.mxu3 }
 0x148   : > { %1396 = vmatpush.msrb.mxu0 %v9837_v62 }
 0x14c   : > { %7669 = vmatmul.msk.f32.gmra.mxu1 %vm785_vm1, %v7559_v26  ;;  %v10032_v51 = vpop.f32.mrf.mxu2 }
 0x14d   : > { %7664 = vmatmul.msk.f32.gmra.mxu0 %vm785_vm1, %v7559_v26 }
 0x14e   : > { %7712 = vmatmul.msk.f32.vlgmr.msrb.gmra.mxu2 %vm785_vm1, %v7567_v27 }
 0x14f   : > { %7701 = vmatmul.msk.f32.gmra.mxu3 %vm785_vm1, %v7566_v25  ;;  %v10096_v9 = vpop.f32.mrf.mxu3 }
 0x150   : > { %14242 = vst [vmem:[#allocation4_spill] sm:$0xff] %v10096_v9 }
 0x154   : > { %7670 = vmatmul.msk.f32.gmra.mxu1 %vm785_vm1, %v7560_v28  ;;  %v10046_v55 = vpop.f32.mrf.mxu2 }
 0x155   : > { %7665 = vmatmul.msk.f32.gmra.mxu0 %vm785_vm1, %v7560_v28 }
 0x156   : > { %7713 = vmatmul.msk.f32.gmra.mxu2 %vm785_vm1, %v7568_v29 }
 0x157   : > { %7717 = vmatmul.msk.f32.vlgmr.msrb.gmra.mxu3 %vm785_vm1, %v7567_v27  ;;  %v10107_v14 = vpop.f32.mrf.mxu3 }
 0x15c   : > { %7671 = vmatmul.msk.f32.gmra.mxu1 %vm785_vm1, %v7561_v30  ;;  %v10060_v59 = vpop.f32.mrf.mxu2 }
 0x15d   : > { %7666 = vmatmul.msk.f32.gmra.mxu0 %vm785_vm1, %v7561_v30 }
 0x15e   : > { %7714 = vmatmul.msk.f32.gmra.mxu2 %vm785_vm1, %v7569_v31 }
 0x15f   : > { %7718 = vmatmul.msk.f32.gmra.mxu3 %vm785_vm1, %v7568_v29 }
 0x164   : > { %7687 = vmatmul.msk.f32.vlgmr.msra.gmra.mxu1 %vm785_vm1, %v7542_v33  ;;  %v10069_v62 = vpop.f32.mrf.mxu2 }
 0x165   : > { %1644 = vmatpush.msra.mxu1 %v9839_v63  ;;  %7682 = vmatmul.msk.f32.vlgmr.msra.gmra.mxu0 %vm785_vm1, %v7542_v33  ;;  %v7552_v63 = vld [vmem:[%s14198_s1 + $0xa0] sm:$0xff] }
 0x166   : > { %7715 = vmatmul.msk.f32.gmra.mxu2 %vm785_vm1, %v7570_v34  ;;  %1612 = vmatpush.msra.mxu0 %v9853_v5  ;;  %v7554_v5 = vld [vmem:[%s14198_s1 + $0xb0] sm:$0xff] }
 0x167   : > { %1645 = vmatpush.msra.mxu1 %v9846_v3  ;;  %7719 = vmatmul.msk.f32.gmra.mxu3 %vm785_vm1, %v7569_v31 }
 0x168   : > { %1613 = vmatpush.msra.mxu0 %v9862_v8 }
 0x169   : > { %1646 = vmatpush.msra.mxu1 %v9855_v6 }
 0x16a   : > { %1614 = vmatpush.msra.mxu0 %v9871_v11 }
 0x16b   : > { %1647 = vmatpush.msra.mxu1 %v9873_v13 }
 0x16c   : > { %1615 = vmatpush.msra.mxu0 %v1571_v19  ;;  %7688 = vmatmul.msk.f32.gmra.mxu1 %vm785_vm1, %v7543_v35  ;;  %v10081_v2 = vpop.f32.mrf.mxu2 }
 0x16d   : > { %1648 = vmatpush.msra.mxu1 %v9880_v17  ;;  %7683 = vmatmul.msk.f32.gmra.mxu0 %vm785_vm1, %v7543_v35 }
 0x16e   : > { %7716 = vmatmul.msk.f32.gmra.mxu2 %vm785_vm1, %v7571_v37  ;;  %1616 = vmatpush.msra.mxu0 %v1570_v22 }
 0x16f   : > { %1649 = vmatpush.msra.mxu1 %v9888_v20  ;;  %7720 = vmatmul.msk.f32.gmra.mxu3 %vm785_vm1, %v7570_v34  ;;  %v10122_v20 = vpop.f32.mrf.mxu3 }
 0x170   : > { %1617 = vmatpush.msra.mxu0 %v1569_v24  ;;  %14244 = vst [vmem:[#allocation6_spill] sm:$0xff] %v10122_v20 }
 0x174   : > { %7689 = vmatmul.msk.f32.gmra.mxu1 %vm785_vm1, %v7544_v38 }
 0x175   : > { %7684 = vmatmul.msk.f32.gmra.mxu0 %vm785_vm1, %v7544_v38 }
 0x176   : > { %7732 = vmatmul.msk.f32.vlgmr.msra.gmra.mxu2 %vm785_vm1, %v7572_v39 }
 0x177   : > { %7721 = vmatmul.msk.f32.gmra.mxu3 %vm785_vm1, %v7571_v37  ;;  %v10128_v24 = vpop.f32.mrf.mxu3 }
 0x178   : > { %14246 = vst [vmem:[#allocation8_spill] sm:$0xff] %v10128_v24 }
 0x17c   : > { %7690 = vmatmul.msk.f32.gmra.mxu1 %vm785_vm1, %v7545_v41 }
 0x17d   : > { %7685 = vmatmul.msk.f32.gmra.mxu0 %vm785_vm1, %v7545_v41 }
 0x17e   : > { %7733 = vmatmul.msk.f32.gmra.mxu2 %vm785_vm1, %v7573_v42 }
 0x17f   : > { %7737 = vmatmul.msk.f32.vlgmr.msra.gmra.mxu3 %vm785_vm1, %v7572_v39  ;;  %v10134_v28 = vpop.f32.mrf.mxu3 }
 0x184   : > { %7691 = vmatmul.msk.f32.gmra.mxu1 %vm785_vm1, %v7546_v44 }
 0x185   : > { %7686 = vmatmul.msk.f32.gmra.mxu0 %vm785_vm1, %v7546_v44 }
 0x186   : > { %7734 = vmatmul.msk.f32.gmra.mxu2 %vm785_vm1, %v7574_v45 }
 0x187   : > { %7738 = vmatmul.msk.f32.gmra.mxu3 %vm785_vm1, %v7573_v42  ;;  %v10138_v33 = vpop.f32.mrf.mxu3 }
 0x188   : > { %14248 = vst [vmem:[#allocation10_spill] sm:$0xff] %v10138_v33 }
 0x18c   : > { %7707 = vmatmul.msk.f32.vlgmr.msrb.gmra.mxu1 %vm785_vm1, %v7547_v47 }
 0x18d   : > { %7702 = vmatmul.msk.f32.vlgmr.msrb.gmra.mxu0 %vm785_vm1, %v7547_v47 }
 0x18e   : > { %7735 = vmatmul.msk.f32.gmra.mxu2 %vm785_vm1, %v7575_v48 }
 0x18f   : > { %7739 = vmatmul.msk.f32.gmra.mxu3 %vm785_vm1, %v7574_v45  ;;  %v10084_v4 = vpop.f32.mrf.mxu1  ;;  %v10146_v39 = vpop.f32.mrf.mxu3 }
 0x190   : > { %v10027_v49 = vpop.f32.mrf.mxu0 }
 0x194   : > { %7708 = vmatmul.msk.f32.gmra.mxu1 %vm785_vm1, %v7548_v50 }
 0x195   : > { %7703 = vmatmul.msk.f32.gmra.mxu0 %vm785_vm1, %v7548_v50 }
 0x196   : > { %7736 = vmatmul.msk.f32.gmra.mxu2 %vm785_vm1, %v7576_v52 }
 0x197   : > { %7740 = vmatmul.msk.f32.gmra.mxu3 %vm785_vm1, %v7575_v48  ;;  %v10094_v8 = vpop.f32.mrf.mxu1  ;;  %v10150_v45 = vpop.f32.mrf.mxu3 }
 0x198   : > { %14241 = vst [vmem:[#allocation3_spill] sm:$0xff] %v10094_v8 }
 0x199   : > { %v10041_v53 = vpop.f32.mrf.mxu0  ;;  %14250 = vst [vmem:[#allocation12_spill] sm:$0xff] %v10150_v45 }
 0x19c   : > { %7709 = vmatmul.msk.f32.gmra.mxu1 %vm785_vm1, %v7549_v54 }
 0x19d   : > { %7704 = vmatmul.msk.f32.gmra.mxu0 %vm785_vm1, %v7549_v54 }
 0x19f   : > { %7741 = vmatmul.msk.f32.gmra.mxu3 %vm785_vm1, %v7576_v52  ;;  %v10105_v13 = vpop.f32.mrf.mxu1  ;;  %v10154_v52 = vpop.f32.mrf.mxu3 }
 0x1a0   : > { %14252 = vst [vmem:[#allocation14_spill] sm:$0xff] %v10154_v52  ;;  %v898_v52 = vadd.f32 %v9948_v32, %v10027_v49 }
 0x1a1   : > { %v10056_v58 = vpop.f32.mrf.mxu0 }
 0x1a4   : > { %7710 = vmatmul.msk.f32.gmra.mxu1 %vm785_vm1, %v7550_v57 }
 0x1a5   : > { %7705 = vmatmul.msk.f32.gmra.mxu0 %vm785_vm1, %v7550_v57 }
 0x1a8   : > { %v10120_v19 = vpop.f32.mrf.mxu1 }
 0x1a9   : > { %v1266_v7 = vpop.f32.mrf.mxu2  ;;  %14243 = vst [vmem:[#allocation5_spill] sm:$0xff] %v10120_v19 }
 0x1aa   : > { %v10065_v61 = vpop.f32.mrf.mxu0 }
 0x1ac   : > { %7711 = vmatmul.msk.f32.gmra.mxu1 %vm785_vm1, %v7551_v60 }
 0x1ad   : > { %7706 = vmatmul.msk.f32.gmra.mxu0 %vm785_vm1, %v7551_v60 }
 0x1b0   : > { %v10126_v23 = vpop.f32.mrf.mxu1 }
 0x1b1   : > { %v1269_v12 = vpop.f32.mrf.mxu2  ;;  %14245 = vst [vmem:[#allocation7_spill] sm:$0xff] %v10126_v23 }
 0x1b2   : > { %v10074_v0 = vpop.f32.mrf.mxu0 }
 0x1b4   : > { %7727 = vmatmul.msk.f32.vlgmr.msra.gmra.mxu1 %vm785_vm1, %v7552_v63 }
 0x1b5   : > { %7722 = vmatmul.msk.f32.vlgmr.msra.gmra.mxu0 %vm785_vm1, %v7552_v63  ;;  %v10160_v63 = vpop.f32.mrf.mxu3 }
 0x1b8   : > { %v10132_v27 = vpop.f32.mrf.mxu1 }
 0x1b9   : > { %v10116_v17 = vpop.f32.mrf.mxu2 }
 0x1ba   : > { %v976_v3 = vpop.f32.mrf.mxu0 }
 0x1bc   : > { %7728 = vmatmul.msk.f32.gmra.mxu1 %vm785_vm1, %v7553_v1 }
 0x1bd   : > { %7723 = vmatmul.msk.f32.gmra.mxu0 %vm785_vm1, %v7553_v1  ;;  %v10167_v23 = vpop.f32.mrf.mxu3 }
 0x1be   : > { %14254 = vst [vmem:[#allocation16_spill] sm:$0xff] %v10167_v23 }
 0x1c1   : > { %v10124_v21 = vpop.f32.mrf.mxu2  ;;  %v10136_v31 = vpop.f32.mrf.mxu1 }
 0x1c2   : > { %v10090_v6 = vpop.f32.mrf.mxu0  ;;  %14247 = vst [vmem:[#allocation9_spill] sm:$0xff] %v10136_v31 }
 0x1c3   : > { %v1059_v8 = vadd.f32 %v10046_v55, %v10090_v6 }
 0x1c4   : > { %7729 = vmatmul.msk.f32.gmra.mxu1 %vm785_vm1, %v7554_v5 }
 0x1c5   : > { %7724 = vmatmul.msk.f32.gmra.mxu0 %vm785_vm1, %v7554_v5  ;;  %v1315_v32 = vadd.f32 %v1269_v12, %v1059_v8 }
 0x1c9   : > { %v10130_v26 = vpop.f32.mrf.mxu2  ;;  %v10144_v38 = vpop.f32.mrf.mxu1 }
 0x1ca   : > { %v10101_v11 = vpop.f32.mrf.mxu0 }
 0x1cb   : > { %v1062_v55 = vadd.f32 %v10060_v59, %v10101_v11 }
 0x1cc   : > { %7730 = vmatmul.msk.f32.gmra.mxu1 %vm785_vm1, %v7555_v10 }
 0x1cd   : > { %7725 = vmatmul.msk.f32.gmra.mxu0 %vm785_vm1, %v7555_v10  ;;  %v1317_v8 = vadd.f32 %v10116_v17, %v1062_v55 }
 0x1d1   : > { %v1487_v30 = vpop.f32.mrf.mxu2  ;;  %v10148_v44 = vpop.f32.mrf.mxu1 }
 0x1d2   : > { %v10112_v16 = vpop.f32.mrf.mxu0  ;;  %14249 = vst [vmem:[#allocation11_spill] sm:$0xff] %v10148_v44 }
 0x1d4   : > { %7731 = vmatmul.msk.f32.gmra.mxu1 %vm785_vm1, %v7556_v15 }
 0x1d5   : > { %7726 = vmatmul.msk.f32.gmra.mxu0 %vm785_vm1, %v7556_v15  ;;  %v1056_v15 = vadd.f32 %v10032_v51, %v976_v3  ;;  %v901_v51 = vadd.f32 %v9968_v36, %v10041_v53  ;;  %v904_v53 = vadd.f32 %v9987_v40, %v10056_v58  ;;  %v907_v58 = vadd.f32 %v10001_v43, %v10065_v61 }
 0x1d9   : > { %v1490_v35 = vpop.f32.mrf.mxu2  ;;  %v10152_v50 = vpop.f32.mrf.mxu1 }
 0x1da   : > { %v10118_v18 = vpop.f32.mrf.mxu0  ;;  %14251 = vst [vmem:[#allocation13_spill] sm:$0xff] %v10152_v50  ;;  %v1313_v50 = vadd.f32 %v1266_v7, %v1056_v15  ;;  %v1536_v7 = vadd.f32 %v1490_v35, %v1315_v32 }
 0x1db   : > { %v1068_v43 = vadd.f32 %v10081_v2, %v10118_v18 }
 0x1dc   : > { %v1534_v19 = vadd.f32 %v1487_v30, %v1313_v50 }
 0x1e1   : > { %v1493_v41 = vpop.f32.mrf.mxu2  ;;  %v10158_v60 = vpop.f32.mrf.mxu1 }
 0x1e2   : > { %v1177_v22 = vpop.f32.mrf.mxu0 }
 0x1e3   : > { %v1224_v20 = vadd.f32 %v1177_v22, %v898_v52 }
 0x1e9   : > { %v1496_v48 = vpop.f32.mrf.mxu2  ;;  %v10165_v24 = vpop.f32.mrf.mxu1 }
 0x1ea   : > { %v1180_v25 = vpop.f32.mrf.mxu0  ;;  %14253 = vst [vmem:[#allocation15_spill] sm:$0xff] %v10165_v24  ;;  %v10177_v24 = vpop.f32.mrf.mxu3 }
 0x1eb   : > { %v1226_v49 = vadd.f32 %v1180_v25, %v901_v51 }
 0x1f1   : > { %v10156_v57 = vpop.f32.mrf.mxu2  ;;  %v10175_v3 = vpop.f32.mrf.mxu1 }
 0x1f2   : > { %v1183_v29 = vpop.f32.mrf.mxu0  ;;  %v10192_v30 = vpop.f32.mrf.mxu3 }
 0x1f3   : > { %v1228_v12 = vadd.f32 %v1183_v29, %v904_v53  ;;  %v936_v53 = vadd.f32 %v10107_v14, %v10105_v13  ;;  %v14255_v14 = vld [vmem:[#allocation9_spill] sm:$0xff] }
 0x1f9   : > { %v1708_v5 = vpop.f32.mrf.mxu2  ;;  %v10190_v25 = vpop.f32.mrf.mxu1 }
 0x1fa   : > { %v10140_v34 = vpop.f32.mrf.mxu0  ;;  %v1755_v33 = vadd.f32 %v1708_v5, %v1534_v19 }
 0x201   : > { %v1711_v44 = vpop.f32.mrf.mxu2 }
 0x202   : > { %v10142_v37 = vpop.f32.mrf.mxu0  ;;  %v1757_v6 = vadd.f32 %v1711_v44, %v1536_v7  ;;  %v1230_v44 = vadd.f32 %v10140_v34, %v907_v58  ;;  %v1321_v34 = vadd.f32 %v10130_v26, %v1068_v43  ;;  %v14260_v43 = vld [vmem:[#allocation15_spill] sm:$0xff] }
 0x204   : > { %v1542_v2 = vadd.f32 %v10156_v57, %v1321_v34 }
 0x209   : > { %v1714_v36 = vpop.f32.mrf.mxu2 }
 0x20a   : > { %v1398_v42 = vpop.f32.mrf.mxu0 }
 0x20b   : > { %v1445_v45 = vadd.f32 %v1398_v42, %v1224_v20 }
 0x211   : > { %v1717_v29 = vpop.f32.mrf.mxu2 }
 0x212   : > { %v1401_v47 = vpop.f32.mrf.mxu0 }
 0x213   : > { %v1447_v20 = vadd.f32 %v1401_v47, %v1226_v49  ;;  %v10208_v47 = vpop.f32.mrf.mxu3 }
 0x21a   : > { %v1404_v54 = vpop.f32.mrf.mxu0 }
 0x21b   : > { %v1449_v59 = vadd.f32 %v1404_v54, %v1228_v12  ;;  %v1720_v54 = vpop.f32.mrf.mxu2  ;;  %v1229_v12 = vadd.f32 %v10175_v3, %v936_v53 }
 0x222   : > { %v1407_v1 = vpop.f32.mrf.mxu0 }
 0x22a   : > { %v10162_v10 = vpop.f32.mrf.mxu0 }
 0x232   : > { %v1619_v9 = vpop.f32.mrf.mxu0 }
 0x233   : > { %v1666_v31 = vadd.f32 %v1619_v9, %v1445_v45  ;;  %v10206_v45 = vpop.f32.mrf.mxu1 }
 0x235   : > { %v10179_v23 = vmax.f32 %v1666_v31, %v1755_v33  ;;  %v1538_v31 = vadd.f32 %v1493_v41, %v1317_v8  ;;  %v1065_v33 = vadd.f32 %v10069_v62, %v10112_v16  ;;  %v1451_v62 = vadd.f32 %v1407_v1, %v1230_v44  ;;  %v14258_v44 = vld [vmem:[#allocation4_spill] sm:$0xff] }
 0x237   : > { %1775 = vrot.lane.b32.xlu0 %v10179_v23, %s14215_s25  ;;  %v1759_v35 = vadd.f32 %v1714_v36, %v1538_v31  ;;  %v1319_v42 = vadd.f32 %v10124_v21, %v1065_v33  ;;  %v910_v21 = vadd.f32 %v10015_v46, %v10074_v0  ;;  %v1519_v46 = vpop.f32.mrf.mxu3  ;;  %v1763_v0 = vadd.f32 %v1720_v54, %v1542_v2 }
 0x238   : > { %v1094_v36 = vadd.f32 %v10146_v39, %v10144_v38  ;;  %v1088_v31 = vadd.f32 %v10134_v28, %v10132_v27  ;;  %v14257_v28 = vld [vmem:[#allocation3_spill] sm:$0xff] }
 0x239   : > { %v1540_v41 = vadd.f32 %v1496_v48, %v1319_v42  ;;  %v1232_v48 = vadd.f32 %v10142_v37, %v910_v21 }
 0x23a   : > { %v1622_v22 = vpop.f32.mrf.mxu0  ;;  %v1318_v8 = vadd.f32 %v10177_v24, %v1094_v36  ;;  %v1314_v58 = vadd.f32 %v10160_v63, %v1088_v31  ;;  %v14256_v24 = vld [vmem:[#allocation10_spill] sm:$0xff]  ;;  %v617_v36 = vld [vmem:[%s14204_s7 + $0xd0] sm:$0xff] }
 0x23b   : > { %v1668_v9 = vadd.f32 %v1622_v22, %v1447_v20  ;;  %v1761_v61 = vadd.f32 %v1717_v29, %v1540_v41  ;;  %v1453_v18 = vadd.f32 %v10162_v10, %v1232_v48  ;;  %v1430_v5 = vpop.f32.mrf.mxu1  ;;  %v1091_v29 = vadd.f32 %v14256_v24, %v14255_v14 }
 0x23c   : > { %v1535_v3 = vadd.f32 %v1519_v46, %v1314_v58  ;;  %v933_v41 = vadd.f32 %v14258_v44, %v14257_v28 }
 0x23d   : > { %v10187_v19 = vmax.f32 %v1668_v9, %v1757_v6 }
 0x23f   : > { %1777 = vrot.lane.b32.xlu1 %v10187_v19, %s14215_s25  ;;  %v1522_v37 = vpop.f32.mrf.mxu3 }
 0x242   : > { %v1625_v11 = vpop.f32.mrf.mxu0 }
 0x243   : > { %v1670_v40 = vadd.f32 %v1625_v11, %v1449_v59  ;;  %v1433_v26 = vpop.f32.mrf.mxu1 }
 0x245   : > { %v10200_v17 = vmax.f32 %v1670_v40, %v1759_v35  ;;  %v930_v35 = vadd.f32 %v10050_v56, %v10084_v4  ;;  %v14259_v4 = vld [vmem:[#allocation16_spill] sm:$0xff] }
 0x246   : > { %v1316_v63 = vadd.f32 %v14259_v4, %v1091_v29 }
 0x247   : > { %1779 = vrot.lane.b32.xlu2 %v10200_v17, %s14215_s25  ;;  %v1525_v49 = vpop.f32.mrf.mxu3  ;;  %v1225_v13 = vadd.f32 %v10158_v60, %v930_v35  ;;  %v14266_v35 = vld [vmem:[#allocation14_spill] sm:$0xff] }
 0x248   : > { %v1539_v59 = vadd.f32 %v1525_v49, %v1318_v8  ;;  %v14264_v49 = vld [vmem:[#allocation6_spill] sm:$0xff] }
 0x249   : > { %v603_v8 = vld [vmem:[%s14204_s7 + $0x60] sm:$0xff] }
 0x24a   : > { %v1628_v16 = vpop.f32.mrf.mxu0 }
 0x24b   : > { %v1672_v50 = vadd.f32 %v1628_v16, %v1451_v62  ;;  %v1436_v32 = vpop.f32.mrf.mxu1  ;;  %v1446_v62 = vadd.f32 %v1430_v5, %v1225_v13  ;;  %v14262_v5 = vld [vmem:[#allocation12_spill] sm:$0xff] }
 0x24c   : > { %v1450_v40 = vadd.f32 %v1436_v32, %v1229_v12  ;;  %v14263_v32 = vld [vmem:[#allocation5_spill] sm:$0xff]  ;;  %v616_v12 = vld [vmem:[%s14204_s7 + $0xc8] sm:$0xff] }
 0x24d   : > { %v10214_v52 = vmax.f32 %v1672_v50, %v1761_v61  ;;  %v1227_v61 = vadd.f32 %v14260_v43, %v933_v41  ;;  %v1537_v50 = vadd.f32 %v1522_v37, %v1316_v63  ;;  %v605_v37 = vld [vmem:[%s14204_s7 + $0x70] sm:$0xff]  ;;  %v614_v43 = vld [vmem:[%s14204_s7 + $0xb8] sm:$0xff] }
 0x24f   : > { %1800 = vrot.lane.b32.xlu2 %v10179_v23, %s14221_s26  ;;  %1781 = vrot.lane.b32.xlu0 %v10214_v52, %s14215_s25  ;;  %v10232_v10 = vpop.f32.mrf.mxu3  ;;  %v1448_v48 = vadd.f32 %v1433_v26, %v1227_v61  ;;  %v606_v26 = vld [vmem:[%s14204_s7 + $0x78] sm:$0xff] }
 0x250   : > { %1886 = vmatpush.msrb.mxu0 %v606_v26  ;;  %v598_v61 = vld [vmem:[%s14204_s7 + $0x38] sm:$0xff]  ;;  %v608_v26 = vld [vmem:[%s14204_s7 + $0x88] sm:$0xff] }
 0x252   : > { %v1631_v1 = vpop.f32.mrf.mxu0  ;;  %1887 = vmatpush.msrb.mxu0 %v605_v37  ;;  %v592_v37 = vld [vmem:[%s14204_s7 + $0x8] sm:$0xff] }
 0x253   : > { %v1674_v15 = vadd.f32 %v1631_v1, %v1453_v18  ;;  %v10230_v57 = vpop.f32.mrf.mxu1  ;;  %v14261_v1 = vld [vmem:[#allocation11_spill] sm:$0xff] }
 0x254   : > { %v1097_v46 = vadd.f32 %v14262_v5, %v14261_v1  ;;  %v610_v1 = vld [vmem:[%s14204_s7 + $0x98] sm:$0xff] }
 0x255   : > { %v10224_v51 = vmax.f32 %v1674_v15, %v1763_v0  ;;  %v594_v5 = vld [vmem:[%s14204_s7 + $0x18] sm:$0xff] }
 0x256   : > { %v1320_v53 = vadd.f32 %v10192_v30, %v1097_v46  ;;  %v602_v30 = vld [vmem:[%s14204_s7 + $0x58] sm:$0xff]  ;;  %v609_v46 = vld [vmem:[%s14204_s7 + $0x90] sm:$0xff] }
 0x257   : > { %1783 = vrot.lane.b32.xlu1 %v10224_v51, %s14215_s25  ;;  %v10236_v20 = vpop.f32.mrf.mxu3 }
 0x258   : > { %v1541_v58 = vadd.f32 %v10232_v10, %v1320_v53 }
 0x25b   : > { %v10234_v7 = vpop.f32.mrf.mxu1 }
 0x25f   : > { %1804 = vrot.lane.b32.xlu1 %v10187_v19, %s14221_s26  ;;  %v1740_v55 = vpop.f32.mrf.mxu3 }
 0x260   : > { %v1756_v60 = vadd.f32 %v1740_v55, %v1535_v3 }
 0x263   : > { %v1651_v22 = vpop.f32.mrf.mxu1 }
 0x264   : > { %v1667_v16 = vadd.f32 %v1651_v22, %v1446_v62  ;;  %v939_v22 = vadd.f32 %v14264_v49, %v14263_v32  ;;  %v607_v32 = vld [vmem:[%s14204_s7 + $0x80] sm:$0xff] }
 0x265   : > { %v591_v49 = vld [vmem:[%s14204_s7] sm:$0xff] }
 0x266   : > { %v10261_v21 = vmax.f32 %v1667_v16, %v1756_v60  ;;  %v1231_v31 = vadd.f32 %v10190_v25, %v939_v22  ;;  %v14267_v25 = vld [vmem:[#allocation7_spill] sm:$0xff]  ;;  %v599_v60 = vld [vmem:[%s14204_s7 + $0x40] sm:$0xff]  ;;  %v587_v22 = vld [vmem:[%s14269_s3 + $0x18] sm:$0xff] }
 0x267   : > { %v1743_v9 = vpop.f32.mrf.mxu3 }
 0x268   : > { %v1758_v18 = vadd.f32 %v1743_v9, %v1537_v50  ;;  %v604_v9 = vld [vmem:[%s14204_s7 + $0x68] sm:$0xff]  ;;  %v1452_v14 = vadd.f32 %v10230_v57, %v1231_v31  ;;  %v613_v50 = vld [vmem:[%s14204_s7 + $0xb0] sm:$0xff] }
 0x269   : > { %1888 = vmatpush.msrb.mxu0 %v604_v9 }
 0x26b   : > { %v1654_v6 = vpop.f32.mrf.mxu1  ;;  %1889 = vmatpush.msrb.mxu0 %v603_v8 }
 0x26c   : > { %v1669_v2 = vadd.f32 %v1654_v6, %v1448_v48  ;;  %v618_v6 = vld [vmem:[%s14204_s7 + $0xd8] sm:$0xff]  ;;  %v612_v48 = vld [vmem:[%s14204_s7 + $0xa8] sm:$0xff] }
 0x26d   : > { %1922 = vmatpush.msrb.mxu1 %v618_v6  ;;  %1890 = vmatpush.msrb.mxu0 %v602_v30  ;;  %v585_v6 = vld [vmem:[%s14269_s3 + $0x8] sm:$0xff]  ;;  %v588_v30 = vld [vmem:[%s14269_s3 + $0x20] sm:$0xf] }
 0x26e   : > { %v10270_v0 = vmax.f32 %v1669_v2, %v1758_v18  ;;  %v611_v2 = vld [vmem:[%s14204_s7 + $0xa0] sm:$0xff] }
 0x26f   : > { %v1746_v33 = vpop.f32.mrf.mxu3  ;;  %1923 = vmatpush.msrb.mxu1 %v617_v36  ;;  %v595_v18 = vld [vmem:[%s14204_s7 + $0x20] sm:$0xff]  ;;  %v586_v36 = vld [vmem:[%s14269_s3 + $0x10] sm:$0xff] }
 0x270   : > { %v1760_v39 = vadd.f32 %v1746_v33, %v1539_v59  ;;  %v14265_v33 = vld [vmem:[#allocation13_spill] sm:$0xff] }
 0x271   : > { %1924 = vmatpush.msrb.mxu1 %v616_v12 }
 0x273   : > { %v1657_v11 = vpop.f32.mrf.mxu1 }
 0x274   : > { %v1671_v38 = vadd.f32 %v1657_v11, %v1450_v40  ;;  %v1100_v40 = vadd.f32 %v14266_v35, %v14265_v33 }
 0x276   : > { %v10252_v42 = vmax.f32 %v1671_v38, %v1760_v39  ;;  %v601_v38 = vld [vmem:[%s14204_s7 + $0x50] sm:$0xff]  ;;  %v1322_v24 = vadd.f32 %v10208_v47, %v1100_v40 }
 0x277   : > { %v1749_v59 = vpop.f32.mrf.mxu3  ;;  %v14268_v39 = vld [vmem:[#allocation8_spill] sm:$0xff]  ;;  %1891 = vmatpush.msrb.mxu0 %v601_v38 }
 0x278   : > { %v942_v13 = vadd.f32 %v14268_v39, %v14267_v25  ;;  %v1762_v3 = vadd.f32 %v1749_v59, %v1541_v58 }
 0x27a   : > { %v1233_v10 = vadd.f32 %v10206_v45, %v942_v13 }
 0x27b   : > { %v1660_v11 = vpop.f32.mrf.mxu1 }
 0x27c   : > { %v1673_v29 = vadd.f32 %v1660_v11, %v1452_v14  ;;  %v1454_v57 = vadd.f32 %v10234_v7, %v1233_v10  ;;  %v615_v7 = vld [vmem:[%s14204_s7 + $0xc0] sm:$0xff] }
 0x27d   : > { %1925 = vmatpush.msrb.mxu1 %v615_v7  ;;  %v584_v11 = vld [vmem:[%s14269_s3] sm:$0xff] }
 0x27e   : > { %v10319_v28 = vmax.f32 %v1673_v29, %v1762_v3 }
 0x27f   : > { %v1752_v44 = vpop.f32.mrf.mxu3  ;;  %1926 = vmatpush.msrb.mxu1 %v614_v43 }
 0x281   : > { %1927 = vmatpush.msrb.mxu1 %v613_v50 }
 0x283   : > { %v1663_v41 = vpop.f32.mrf.mxu1  ;;  %1928 = vmatpush.msrb.mxu1 %v612_v48 }
 0x284   : > { %v1675_v47 = vadd.f32 %v1663_v41, %v1454_v57 }
 0x285   : > { %1929 = vmatpush.msrb.mxu1 %v611_v2 }
 0x287   : > { %1930 = vmatpush.msrb.mxu1 %v610_v1 }
 0x289   : > { %1931 = vmatpush.msrb.mxu1 %v609_v46 }
 0x28b   : > { %1932 = vmatpush.msrb.mxu1 %v608_v26 }
 0x28d   : > { %1933 = vmatpush.msrb.mxu1 %v607_v32 }
 0x2a1   : > { %v1780_v27 = vpop.permute.xlu2 %1779 }
 0x2a2   : > { %v1787_v56 = vsel %vm711_vm0, %v1780_v27, %v10252_v42  ;;  %v1543_v27 = vadd.f32 %v10236_v20, %v1322_v24  ;;  %v600_v20 = vld [vmem:[%s14204_s7 + $0x48] sm:$0xff] }
 0x2a3   : > { %1810 = vrot.lane.b32.xlu1 %v1787_v56, %s14221_s26  ;;  %1892 = vmatpush.msrb.mxu0 %v600_v20 }
 0x2a4   : > { %v1764_v4 = vadd.f32 %v1752_v44, %v1543_v27 }
 0x2a5   : > { %1893 = vmatpush.msrb.mxu0 %v599_v60 }
 0x2a6   : > { %v10325_v63 = vmax.f32 %v1675_v47, %v1764_v4 }
 0x2a7   : > { %1894 = vmatpush.msrb.mxu0 %v598_v61 }
 0x2a9   : > { %v1776_v34 = vpop.permute.xlu0 %1775  ;;  %v1801_v9 = vpop.permute.xlu2 %1800 }
 0x2aa   : > { %v1785_v54 = vsel %vm711_vm0, %v1776_v34, %v10261_v21  ;;  %v597_v34 = vld [vmem:[%s14204_s7 + $0x30] sm:$0xff] }
 0x2ab   : > { %1816 = vrot.lane.b32.xlu1 %v10224_v51, %s14221_s26  ;;  %1802 = vrot.lane.b32.xlu0 %v1785_v54, %s14221_s26  ;;  %v596_v54 = vld [vmem:[%s14204_s7 + $0x28] sm:$0xff] }
 0x2ac   : > { %1895 = vmatpush.msrb.mxu0 %v597_v34 }
 0x2ae   : > { %1896 = vmatpush.msrb.mxu0 %v596_v54 }
 0x2b0   : > { %1897 = vmatpush.msrb.mxu0 %v595_v18 }
 0x2b1   : > { %v1778_v15 = vpop.permute.xlu1 %1777 }
 0x2b2   : > { %v1786_v55 = vsel %vm711_vm0, %v1778_v15, %v10270_v0  ;;  %v593_v15 = vld [vmem:[%s14204_s7 + $0x10] sm:$0xff]  ;;  %1898 = vmatpush.msrb.mxu0 %v594_v5 }
 0x2b3   : > { %1806 = vrot.lane.b32.xlu2 %v1786_v55, %s14221_s26  ;;  %1808 = vrot.lane.b32.xlu0 %v10200_v17, %s14221_s26  ;;  %v9546_v55 = vmov 0  }
 0x2b4   : > { %1899 = vmatpush.msrb.mxu0 %v593_v15  ;;  %8444 = vset.pattern.permute.xlu1 %v9546_v55 }
 0x2b5   : > { %8445 = vset.pattern.permute.xlu2 %v9546_v55  ;;  %1862 = vperm.xlu1 %8444, %v587_v22   ;;  %v10450_v22 = vld [vmem:[%s9641_s24 + $0xb0] sm:$0xff] }
 0x2b6   : > { %1900 = vmatpush.msrb.mxu0 %v592_v37  ;;  %8443 = vset.pattern.permute.xlu0 %v9546_v55 }
 0x2b8   : > { %1901 = vmatpush.msrb.mxu0 %v591_v49  ;;  %v10447_v49 = vld [vmem:[%s9641_s24 + $0xa0] sm:$0xff] }
 0x2b9   : > { %v8486_v55 = vpack.i.bf16 %v10447_v49, %v10450_v22 }
 0x2bb   : > { %1812 = vrot.lane.b32.xlu2 %v10214_v52, %s14221_s26 }
 0x2bd   : > { %1852 = vperm.xlu1 %8444, %v585_v6   ;;  %v589_v6 = vld [vmem:[%s14278_s6] sm:$0xff] }
 0x2c1   : > { %v1782_v62 = vpop.permute.xlu0 %1781 }
 0x2c2   : > { %v1788_v56 = vsel %vm711_vm0, %v1782_v62, %v10319_v28 }
 0x2c3   : > { %1814 = vrot.lane.b32.xlu0 %v1788_v56, %s14221_s26 }
 0x2c9   : > { %v1784_v16 = vpop.permute.xlu1 %1783 }
 0x2ca   : > { %v1789_v45 = vsel %vm711_vm0, %v1784_v16, %v10325_v63 }
 0x2cb   : > { %1818 = vrot.lane.b32.xlu2 %v1789_v45, %s14221_s26  ;;  %1867 = vperm.xlu0 %8443, %v588_v30  }
 0x2d1   : > { %v1805_v33 = vpop.permute.xlu1 %1804 }
 0x2d3   : > { %1857 = vperm.xlu2 %8445, %v586_v36  }
 0x2db   : > { %1847 = vperm.xlu2 %8445, %v584_v11  }
 0x30d   : > { %v1807_v59 = vpop.permute.xlu2 %1806 }
 0x30e   : > { %v1821_v35 = vsel %vm766_vm2, %v1805_v33, %v1807_v59 }
 0x315   : > { %v1811_v58 = vpop.permute.xlu1 %1810  ;;  %v1813_v13 = vpop.permute.xlu2 %1812 }
 0x316   : > { %v1840_v25 = vmax.f32 %v10252_v42, %v1811_v58 }
 0x31d   : > { %v1803_v53 = vpop.permute.xlu0 %1802  ;;  %v1817_v3 = vpop.permute.xlu1 %1816 }
 0x31e   : > { %v1820_v8 = vsel %vm766_vm2, %v1801_v9, %v1803_v53  ;;  %v1836_v12 = vmax.f32 %v10261_v21, %v1803_v53  ;;  %v1838_v21 = vmax.f32 %v10270_v0, %v1807_v59  ;;  %v556_v9 = vld [vmem:[%s14201_s4] sm:$0xff]  ;;  %v557_v53 = vld [vmem:[%s14201_s4 + $0x8] sm:$0xff] }
 0x31f   : > { %v1835_v31 = vmax.f32 %v10179_v23, %v1820_v8  ;;  %v1837_v23 = vmax.f32 %v10187_v19, %v1821_v35  ;;  %v571_v59 = vld [vmem:[%s14202_s5 + $0x8] sm:$0xff] }
 0x320   : > { %7742 = vmatmul.msk.f32.vlgmr.msrb.gmra.mxu1 %vm1870_vm6, %v1836_v12  ;;  %v570_v12 = vld [vmem:[%s14202_s5] sm:$0xff] }
 0x321   : > { %1902 = vmatmul.f32.vlgmr.msrb.gmra.mxu0 %v1835_v31 }
 0x325   : > { %v1809_v40 = vpop.permute.xlu0 %1808  ;;  %v1819_v29 = vpop.permute.xlu2 %1818 }
 0x326   : > { %v1822_v38 = vsel %vm766_vm2, %v1809_v40, %v1811_v58  ;;  %v1824_v42 = vsel %vm766_vm2, %v1817_v3, %v1819_v29  ;;  %v7577_v58 = vld [vmem:[%s14201_s4 + $0x10] sm:$0xff] }
 0x327   : > { %v1839_v39 = vmax.f32 %v10200_v17, %v1822_v38  ;;  %v1844_v17 = vmax.f32 %v10325_v63, %v1819_v29  ;;  %v1843_v10 = vmax.f32 %v10224_v51, %v1824_v42  ;;  %v10424_v44 = vpop.permute.xlu1 %1862 }
 0x328   : > { %7743 = vmatmul.msk.f32.gmra.mxu1 %vm1870_vm6, %v1838_v21  ;;  %14271 = vst [vmem:[#allocation10_spill] sm:$0xff] %v10424_v44 }
 0x329   : > { %1905 = vmatmul.f32.gmra.mxu0 %v1837_v23 }
 0x32d   : > { %v10422_v27 = vpop.permute.xlu2 %1857 }
 0x32e   : > { %14270 = vst [vmem:[#allocation9_spill] sm:$0xff] %v10422_v27 }
 0x32f   : > { %v10429_v57 = vpop.permute.xlu1 %1852 }
 0x330   : > { %7744 = vmatmul.msk.f32.gmra.mxu1 %vm1870_vm6, %v1840_v25  ;;  %14273 = vst [vmem:[#allocation4_spill] sm:$0xff] %v10429_v57 }
 0x331   : > { %1908 = vmatmul.f32.gmra.mxu0 %v1839_v39 }
 0x335   : > { %v1815_v14 = vpop.permute.xlu0 %1814  ;;  %v10426_v41 = vpop.permute.xlu2 %1847 }
 0x336   : > { %v1823_v0 = vsel %vm766_vm2, %v1813_v13, %v1815_v14  ;;  %v1842_v19 = vmax.f32 %v10319_v28, %v1815_v14  ;;  %14272 = vst [vmem:[#allocation3_spill] sm:$0xff] %v10426_v41 }
 0x337   : > { %v1841_v24 = vmax.f32 %v10214_v52, %v1823_v0 }
 0x338   : > { %7745 = vmatmul.msk.f32.gmra.mxu1 %vm1870_vm6, %v1842_v19  ;;  %v7578_v19 = vld [vmem:[%s14201_s4 + $0x18] sm:$0xff] }
 0x339   : > { %1911 = vmatmul.f32.gmra.mxu0 %v1841_v24  ;;  %v7587_v24 = vld [vmem:[%s14202_s5 + $0x20] sm:$0xff] }
 0x33d   : > { %v10436_v1 = vpop.permute.xlu0 %1867 }
 0x33e   : > { %14274 = vst [vmem:[#allocation16_spill] sm:$0xff] %v10436_v1 }
 0x340   : > { %7746 = vmatmul.msk.f32.gmra.mxu1 %vm1870_vm6, %v1844_v17 }
 0x341   : > { %1914 = vmatmul.f32.gmra.mxu0 %v1843_v10 }
 0x39d   : > { %v1935_v28 = vpop.f32.mrf.mxu1 }
 0x39e   : > { %v1903_v52 = vpop.f32.mrf.mxu0 }
 0x39f   : > { %v1904_v62 = vadd.f32 %v1903_v52, %v10426_v41  ;;  %v7585_v52 = vld [vmem:[%s14202_s5 + $0x10] sm:$0xff] }
 0x3a1   : > { %v1936_v4 = vadd.f32 %v1935_v28, %v1904_v62  ;;  %v7588_v28 = vld [vmem:[%s14202_s5 + $0x28] sm:$0xff] }
 0x3a3   : > { %v1950_v16 = vmax.f32 %v1936_v4, 0.0 }
 0x3a5   : > { %v1938_v56 = vpop.f32.mrf.mxu1 }
 0x3a6   : > { %v1906_v47 = vpop.f32.mrf.mxu0 }
 0x3a7   : > { %v1907_v51 = vadd.f32 %v1906_v47, %v10429_v57 }
 0x3a9   : > { %v1939_v63 = vadd.f32 %v1938_v56, %v1907_v51 }
 0x3ab   : > { %v1951_v45 = vmax.f32 %v1939_v63, 0.0 }
 0x3ad   : > { %v1941_v20 = vpop.f32.mrf.mxu1  ;;  %v8451_v7 = vpack.i.bf16 %v1950_v16, %v1951_v45 }
 0x3ae   : > { %v1909_v60 = vpop.f32.mrf.mxu0 }
 0x3af   : > { %8452 = vrot.lane.b32.xlu2 %v8451_v7, %s14221_s26  ;;  %v1910_v43 = vadd.f32 %v1909_v60, %v10422_v27  ;;  %v7581_v60 = vld [vmem:[%s14201_s4 + $0x30] sm:$0xff] }
 0x3b1   : > { %v1942_v34 = vadd.f32 %v1941_v20, %v1910_v43  ;;  %v7586_v20 = vld [vmem:[%s14202_s5 + $0x18] sm:$0xff]  ;;  %v7592_v43 = vld [vmem:[%s14202_s5 + $0x48] sm:$0xff] }
 0x3b3   : > { %v1952_v2 = vmax.f32 %v1942_v34, 0.0  ;;  %v7582_v34 = vld [vmem:[%s14201_s4 + $0x38] sm:$0xff] }
 0x3b5   : > { %v1944_v61 = vpop.f32.mrf.mxu1 }
 0x3b6   : > { %v1912_v50 = vpop.f32.mrf.mxu0 }
 0x3b7   : > { %v1913_v48 = vadd.f32 %v1912_v50, %v10424_v44  ;;  %8462 = vrot.lane.b32.xlu2 %v8451_v7, %s14219_s27  ;;  %v7590_v50 = vld [vmem:[%s14202_s5 + $0x38] sm:$0xff] }
 0x3b9   : > { %v1945_v54 = vadd.f32 %v1944_v61, %v1913_v48  ;;  %v7579_v61 = vld [vmem:[%s14201_s4 + $0x20] sm:$0xff]  ;;  %v7580_v48 = vld [vmem:[%s14201_s4 + $0x28] sm:$0xff] }
 0x3bb   : > { %v1953_v18 = vmax.f32 %v1945_v54, 0.0  ;;  %v7583_v54 = vld [vmem:[%s14201_s4 + $0x40] sm:$0xff] }
 0x3bd   : > { %v8446_v5 = vpack.i.bf16 %v1952_v2, %v1953_v18  ;;  %v1947_v26 = vpop.f32.mrf.mxu1 }
 0x3be   : > { %v1915_v46 = vpop.f32.mrf.mxu0 }
 0x3bf   : > { %v1916_v15 = vadd.f32 %v1915_v46, %v10436_v1  ;;  %8447 = vrot.lane.b32.xlu1 %v8446_v5, %s14221_s26 }
 0x3c1   : > { %v1948_v37 = vadd.f32 %v1947_v26, %v1916_v15 }
 0x3c3   : > { %v1954_v32 = vmax.f32 %v1948_v37, 0.0 }
 0x3c5   : > { %2172 = vrot.lane.b32.xlu2 %v1954_v32, %s14275_s16  ;;  %1963 = vrot.lane.b32.xlu0 %v1954_v32, %s14221_s26 }
 0x3c6   : > { %7750 = vmatpush.msk.msrb.mxu3 %vm1972_vm7, %v1954_v32 }
 0x3c7   : > { %8457 = vrot.lane.b32.xlu1 %v8446_v5, %s14219_s27 }
 0x3c8   : > { %2020 = vmatpush.msrb.mxu3 %v1953_v18 }
 0x3ca   : > { %2021 = vmatpush.msrb.mxu3 %v1952_v2 }
 0x3cc   : > { %2022 = vmatpush.msrb.mxu3 %v1951_v45 }
 0x3cd   : > { %8482 = vrot.lane.b32.xlu2 %v8451_v7, %s14275_s16  ;;  %2097 = vrot.lane.b32.xlu0 %v1954_v32, %s14219_s27 }
 0x3ce   : > { %2023 = vmatpush.msrb.mxu3 %v1950_v16 }
 0x3cf   : > { %8467 = vrot.lane.b32.xlu1 %v8446_v5, %s14276_s17  ;;  %7751 = vmatmul.msk.f32.vlgmr.msrb.gmra.mxu3 %vm1965_vm8, %v556_v9 }
 0x3d0   : > { %7756 = vmatpush.msk.msra.mxu3 %vm1972_vm7, %v1954_v32 }
 0x3d2   : > { %2078 = vmatpush.msra.mxu3 %v1953_v18 }
 0x3d4   : > { %2079 = vmatpush.msra.mxu3 %v1952_v2  ;;  %v7584_v2 = vld [vmem:[%s14201_s4 + $0x48] sm:$0xff] }
 0x3d5   : > { %8487 = vrot.lane.b32.xlu2 %v8486_v55, %s14277_s20  ;;  %2247 = vrot.lane.b32.xlu0 %v1954_v32, %s14276_s17 }
 0x3d6   : > { %2080 = vmatpush.msra.mxu3 %v1951_v45 }
 0x3d7   : > { %8477 = vrot.lane.b32.xlu1 %v8451_v7, %s14276_s17  ;;  %7752 = vmatmul.msk.f32.gmra.mxu3 %vm1965_vm8, %v557_v53  ;;  %v7589_v7 = vld [vmem:[%s14202_s5 + $0x30] sm:$0xff]  ;;  %v634_v53 = vld [vmem:[%s14205_s8 + $0x78] sm:$0xff] }
 0x3d8   : > { %2081 = vmatpush.msra.mxu3 %v1950_v16  ;;  %v7591_v16 = vld [vmem:[%s14202_s5 + $0x40] sm:$0xff] }
 0x3dd   : > { %2324 = vperm.xlu2 %8445, %v589_v6   ;;  %8472 = vrot.lane.b32.xlu0 %v8446_v5, %s14275_s16 }
 0x3df   : > { %7757 = vmatmul.msk.f32.vlgmr.msra.gmra.mxu3 %vm1965_vm8, %v570_v12 }
 0x3e7   : > { %7758 = vmatmul.msk.f32.gmra.mxu3 %vm1965_vm8, %v571_v59 }
 0x409   : > { %v8453_v36 = vpop.permute.xlu2 %8452 }
 0x40a   : > { %v8454_v23 = vunpack.i.l.bf16 %v8453_v36  ;;  %v8455_v40 = vunpack.i.h.bf16 %v8453_v36 }
 0x411   : > { %v10471_v8 = vpop.permute.xlu2 %8462 }
 0x412   : > { %v8464_v14 = vunpack.i.l.bf16 %v10471_v8  ;;  %v8465_v0 = vunpack.i.h.bf16 %v10471_v8  ;;  %v633_v8 = vld [vmem:[%s14205_s8 + $0x70] sm:$0xff] }
 0x41f   : > { %v2173_v31 = vpop.permute.xlu2 %2172 }
 0x420   : > { %7765 = vmatpush.msk.msra.mxu0 %vm1972_vm7, %v2173_v31  ;;  %7768 = vmatpush.msk.msra.mxu1 %vm1972_vm7, %v2173_v31  ;;  %v632_v31 = vld [vmem:[%s14205_s8 + $0x68] sm:$0xff] }
 0x427   : > { %v8483_v4 = vpop.permute.xlu2 %8482 }
 0x428   : > { %v8484_v63 = vunpack.i.l.bf16 %v8483_v4  ;;  %v8485_v45 = vunpack.i.h.bf16 %v8483_v4  ;;  %v10587_v4 = vld [vmem:[%s9641_s24 + $0x80] sm:$0xff] }
 0x431   : > { %v8448_v11 = vpop.permute.xlu1 %8447 }
 0x432   : > { %v8449_v33 = vunpack.i.l.bf16 %v8448_v11  ;;  %v8450_v21 = vunpack.i.h.bf16 %v8448_v11 }
 0x437   : > { %v1964_v30 = vpop.permute.xlu0 %1963 }
 0x438   : > { %7747 = vmatpush.msk.msrb.mxu2 %vm1972_vm7, %v1964_v30 }
 0x439   : > { %v8458_v35 = vpop.permute.xlu1 %8457 }
 0x43a   : > { %1988 = vmatpush.msrb.mxu2 %v8449_v33  ;;  %v8459_v25 = vunpack.i.l.bf16 %v8458_v35  ;;  %v8460_v13 = vunpack.i.h.bf16 %v8458_v35 }
 0x43c   : > { %1989 = vmatpush.msrb.mxu2 %v8450_v21 }
 0x43e   : > { %1990 = vmatpush.msrb.mxu2 %v8454_v23 }
 0x43f   : > { %v2098_v38 = vpop.permute.xlu0 %2097 }
 0x440   : > { %1991 = vmatpush.msrb.mxu2 %v8455_v40  ;;  %7762 = vmatpush.msk.msrb.mxu3 %vm1972_vm7, %v2098_v38 }
 0x441   : > { %v8468_v39 = vpop.permute.xlu1 %8467  ;;  %7748 = vmatmul.msk.f32.vlgmr.msrb.gmra.mxu2 %vm1965_vm8, %v7577_v58 }
 0x442   : > { %7753 = vmatpush.msk.msra.mxu2 %vm1972_vm7, %v1964_v30  ;;  %2151 = vmatpush.msrb.mxu3 %v8459_v25  ;;  %v8469_v3 = vunpack.i.l.bf16 %v8468_v39  ;;  %v8470_v17 = vunpack.i.h.bf16 %v8468_v39  ;;  %v631_v30 = vld [vmem:[%s14205_s8 + $0x60] sm:$0xff] }
 0x444   : > { %2049 = vmatpush.msra.mxu2 %v8449_v33  ;;  %2152 = vmatpush.msrb.mxu3 %v8460_v13 }
 0x446   : > { %2050 = vmatpush.msra.mxu2 %v8450_v21  ;;  %2153 = vmatpush.msrb.mxu3 %v8464_v14 }
 0x447   : > { %v2248_v29 = vpop.permute.xlu0 %2247 }
 0x448   : > { %2051 = vmatpush.msra.mxu2 %v8454_v23  ;;  %2154 = vmatpush.msrb.mxu3 %v8465_v0 }
 0x449   : > { %7749 = vmatmul.msk.f32.gmra.mxu2 %vm1965_vm8, %v7578_v19  ;;  %7763 = vmatmul.msk.f32.vlgmr.msrb.gmra.mxu3 %vm1965_vm8, %v7587_v24  ;;  %v8478_v42 = vpop.permute.xlu1 %8477 }
 0x44a   : > { %2052 = vmatpush.msra.mxu2 %v8455_v40  ;;  %7774 = vmatpush.msk.msra.mxu3 %vm1972_vm7, %v2248_v29  ;;  %v8479_v10 = vunpack.i.l.bf16 %v8478_v42  ;;  %v8480_v62 = vunpack.i.h.bf16 %v8478_v42  ;;  %v630_v40 = vld [vmem:[%s14205_s8 + $0x58] sm:$0xff] }
 0x44c   : > { %7759 = vmatpush.msk.msrb.mxu2 %vm1972_vm7, %v2098_v38  ;;  %2301 = vmatpush.msra.mxu3 %v8469_v3  ;;  %v629_v38 = vld [vmem:[%s14205_s8 + $0x50] sm:$0xff] }
 0x44e   : > { %2120 = vmatpush.msrb.mxu2 %v8459_v25  ;;  %2302 = vmatpush.msra.mxu3 %v8470_v17 }
 0x44f   : > { %v8473_v56 = vpop.permute.xlu0 %8472 }
 0x450   : > { %2121 = vmatpush.msrb.mxu2 %v8460_v13  ;;  %2303 = vmatpush.msra.mxu3 %v8479_v10  ;;  %v8474_v47 = vunpack.i.l.bf16 %v8473_v56  ;;  %v8475_v51 = vunpack.i.h.bf16 %v8473_v56  ;;  %v625_v56 = vld [vmem:[%s14205_s8 + $0x30] sm:$0xff] }
 0x451   : > { %7764 = vmatmul.msk.f32.gmra.mxu3 %vm1965_vm8, %v7588_v28  ;;  %7754 = vmatmul.msk.f32.vlgmr.msra.gmra.mxu2 %vm1965_vm8, %v7585_v52  ;;  %v626_v28 = vld [vmem:[%s14205_s8 + $0x38] sm:$0xff] }
 0x452   : > { %2122 = vmatpush.msrb.mxu2 %v8464_v14  ;;  %2304 = vmatpush.msra.mxu3 %v8480_v62  ;;  %v2025_v18 = vpop.f32.mrf.mxu3  ;;  %v628_v14 = vld [vmem:[%s14205_s8 + $0x48] sm:$0xff] }
 0x453   : > { %2195 = vmatpush.msra.mxu0 %v8474_v47  ;;  %2226 = vmatpush.msra.mxu1 %v8474_v47 }
 0x454   : > { %2123 = vmatpush.msrb.mxu2 %v8465_v0 }
 0x455   : > { %2196 = vmatpush.msra.mxu0 %v8475_v51  ;;  %2227 = vmatpush.msra.mxu1 %v8475_v51  ;;  %v10590_v51 = vld [vmem:[%s9641_s24 + $0x90] sm:$0xff] }
 0x456   : > { %7771 = vmatpush.msk.msra.mxu2 %vm1972_vm7, %v2248_v29 }
 0x457   : > { %2197 = vmatpush.msra.mxu0 %v8484_v63  ;;  %2228 = vmatpush.msra.mxu1 %v8484_v63 }
 0x458   : > { %2270 = vmatpush.msra.mxu2 %v8469_v3  ;;  %v627_v3 = vld [vmem:[%s14205_s8 + $0x40] sm:$0xff] }
 0x459   : > { %2198 = vmatpush.msra.mxu0 %v8485_v45  ;;  %7775 = vmatmul.msk.f32.vlgmr.msra.gmra.mxu3 %vm1965_vm8, %v7591_v16 }
 0x45a   : > { %2271 = vmatpush.msra.mxu2 %v8470_v17  ;;  %2229 = vmatpush.msra.mxu1 %v8485_v45  ;;  %v2028_v5 = vpop.f32.mrf.mxu3  ;;  %v624_v45 = vld [vmem:[%s14205_s8 + $0x28] sm:$0xff] }
 0x45b   : > { %7755 = vmatmul.msk.f32.gmra.mxu2 %vm1965_vm8, %v7586_v20  ;;  %7769 = vmatmul.msk.f32.vlgmr.msra.gmra.mxu1 %vm1965_vm8, %v7589_v7 }
 0x45c   : > { %2272 = vmatpush.msra.mxu2 %v8479_v10  ;;  %7766 = vmatmul.msk.f32.vlgmr.msra.gmra.mxu0 %vm1965_vm8, %v7581_v60 }
 0x45d   : > { %2332 = vmatpush.msrb.mxu0 %v634_v53 }
 0x45e   : > { %2273 = vmatpush.msra.mxu2 %v8480_v62 }
 0x45f   : > { %2333 = vmatpush.msrb.mxu0 %v633_v8 }
 0x461   : > { %7776 = vmatmul.msk.f32.gmra.mxu3 %vm1965_vm8, %v7592_v43  ;;  %2334 = vmatpush.msrb.mxu0 %v632_v31  ;;  %v8491_v43 = vpack.i.bf16 %v10587_v4, %v10590_v51 }
 0x462   : > { %v2083_v15 = vpop.f32.mrf.mxu3 }
 0x463   : > { %7760 = vmatmul.msk.f32.vlgmr.msrb.gmra.mxu2 %vm1965_vm8, %v7579_v61  ;;  %7770 = vmatmul.msk.f32.gmra.mxu1 %vm1965_vm8, %v7590_v50  ;;  %v623_v61 = vld [vmem:[%s14205_s8 + $0x20] sm:$0xff] }
 0x464   : > { %7767 = vmatmul.msk.f32.gmra.mxu0 %vm1965_vm8, %v7582_v34  ;;  %v622_v34 = vld [vmem:[%s14205_s8 + $0x18] sm:$0xff] }
 0x465   : > { %2335 = vmatpush.msrb.mxu0 %v631_v30  ;;  %v10641_v30 = vld [vmem:[%s9641_s24 + $0x88] sm:$0xff] }
 0x467   : > { %2336 = vmatpush.msrb.mxu0 %v630_v40 }
 0x469   : > { %2337 = vmatpush.msrb.mxu0 %v629_v38 }
 0x46a   : > { %v2086_v37 = vpop.f32.mrf.mxu3 }
 0x46b   : > { %7761 = vmatmul.msk.f32.gmra.mxu2 %vm1965_vm8, %v7580_v48  ;;  %2338 = vmatpush.msrb.mxu0 %v628_v14  ;;  %v621_v48 = vld [vmem:[%s14205_s8 + $0x10] sm:$0xff]  ;;  %v10658_v14 = vld [vmem:[%s9641_s24 + $0x68] sm:$0xff] }
 0x46d   : > { %2339 = vmatpush.msrb.mxu0 %v627_v3 }
 0x46f   : > { %2340 = vmatpush.msrb.mxu0 %v626_v28  ;;  %v640_v28 = vld [vmem:[%s14206_s9 + $0x28] sm:$0xff] }
 0x471   : > { %2341 = vmatpush.msrb.mxu0 %v625_v56  ;;  %v639_v56 = vld [vmem:[%s14206_s9 + $0x20] sm:$0xff] }
 0x473   : > { %7772 = vmatmul.msk.f32.vlgmr.msra.gmra.mxu2 %vm1965_vm8, %v7583_v54  ;;  %2342 = vmatpush.msrb.mxu0 %v624_v45  ;;  %v10609_v54 = vld [vmem:[%s9641_s24 + $0x60] sm:$0xff]  ;;  %v7604_v45 = vld [vmem:[%s14206_s9 + $0x90] sm:$0xff] }
 0x475   : > { %2343 = vmatpush.msrb.mxu0 %v623_v61  ;;  %v636_v61 = vld [vmem:[%s14206_s9 + $0x8] sm:$0xff] }
 0x477   : > { %2344 = vmatpush.msrb.mxu0 %v622_v34  ;;  %v7594_v34 = vld [vmem:[%s14206_s9 + $0x40] sm:$0xff] }
 0x479   : > { %2345 = vmatpush.msrb.mxu0 %v621_v48  ;;  %v635_v48 = vld [vmem:[%s14206_s9] sm:$0xff] }
 0x47b   : > { %7773 = vmatmul.msk.f32.gmra.mxu2 %vm1965_vm8, %v7584_v2  ;;  %v10612_v2 = vld [vmem:[%s9641_s24 + $0x70] sm:$0xff] }
 0x4c4   : > { %v1993_v46 = vpop.f32.mrf.mxu2 }
 0x4c5   : > { %v2026_v11 = vadd.f32 %v2025_v18, %v1993_v46  ;;  %v620_v18 = vld [vmem:[%s14205_s8 + $0x8] sm:$0xff] }
 0x4c6   : > { %v590_v46 = vld [vmem:[%s14278_s6 + $0x8] sm:$0xff]  ;;  %2346 = vmatpush.msrb.mxu0 %v620_v18  ;;  %v7641_v18 = vld [vmem:[%s14206_s9 + $0x1b8] sm:$0x1f] }
 0x4cc   : > { %v1996_v26 = vpop.f32.mrf.mxu2  ;;  %v2156_v55 = vpop.f32.mrf.mxu3 }
 0x4cd   : > { %v2029_v19 = vadd.f32 %v2028_v5, %v1996_v26  ;;  %v8496_v5 = vpack.i.bf16 %v10609_v54, %v10612_v2 }
 0x4d4   : > { %v2054_v32 = vpop.f32.mrf.mxu2  ;;  %v2159_v36 = vpop.f32.mrf.mxu3 }
 0x4d5   : > { %v2084_v12 = vadd.f32 %v2083_v15, %v2054_v32  ;;  %v8488_v15 = vpop.permute.xlu2 %8487  ;;  %v10627_v32 = vld [vmem:[%s9641_s24 + $0xb8] sm:$0xff] }
 0x4d6   : > { %v8489_v26 = vunpack.i.l.bf16 %v8488_v15 }
 0x4d7   : > { %v2162_v21 = vadd.f32 %v2156_v55, %v2084_v12 }
 0x4d8   : > { %v2231_v33 = vpop.f32.mrf.mxu1  ;;  %v2610_v55 = vsel %vm711_vm0, %v8489_v26, %v10627_v32  ;;  %v7600_v26 = vld [vmem:[%s14206_s9 + $0x70] sm:$0xff] }
 0x4d9   : > { %v2200_v35 = vpop.f32.mrf.mxu0  ;;  %v2237_v25 = vadd.f32 %v2231_v33, %v2162_v21  ;;  %v10644_v33 = vld [vmem:[%s9641_s24 + $0x98] sm:$0xff] }
 0x4dc   : > { %v2306_v58 = vpop.f32.mrf.mxu3 }
 0x4dd   : > { %v2312_v24 = vadd.f32 %v2306_v58, %v2237_v25 }
 0x4de   : > { %v2057_v6 = vpop.f32.mrf.mxu2 }
 0x4df   : > { %v2087_v39 = vadd.f32 %v2086_v37, %v2057_v6  ;;  %v619_v37 = vld [vmem:[%s14205_s8] sm:$0xff]  ;;  %v8501_v6 = vpack.i.bf16 %v2610_v55, %v10450_v22  ;;  %v7613_v55 = vld [vmem:[%s14206_s9 + $0xd8] sm:$0x1f] }
 0x4e0   : > { %v2234_v52 = vpop.f32.mrf.mxu1  ;;  %2347 = vmatpush.msrb.mxu0 %v619_v37  ;;  %v7640_v37 = vld [vmem:[%s14206_s9 + $0x1b0] sm:$0xff] }
 0x4e1   : > { %v2163_v42 = vadd.f32 %v2159_v36, %v2087_v39  ;;  %v2203_v62 = vpop.f32.mrf.mxu0  ;;  %v10634_v36 = vld [vmem:[%s9641_s24 + $0xa8] sm:$0xff] }
 0x4e2   : > { %7791 = vmatpush.msk.msra.mxu0 %vm2362_vm9, %v7641_v18 }
 0x4e3   : > { %v2238_v63 = vadd.f32 %v2234_v52, %v2163_v42  ;;  %v7606_v52 = vld [vmem:[%s14206_s9 + $0xa0] sm:$0x1f] }
 0x4e4   : > { %v2309_v47 = vpop.f32.mrf.mxu3  ;;  %7781 = vmatpush.msk.msrb.mxu3 %vm2362_vm9, %v7606_v52  ;;  %2562 = vmatpush.msra.mxu0 %v7640_v37 }
 0x4e5   : > { %v2313_v7 = vadd.f32 %v2309_v47, %v2238_v63  ;;  %v7605_v47 = vld [vmem:[%s14206_s9 + $0x98] sm:$0xff] }
 0x4e6   : > { %v2125_v9 = vpop.f32.mrf.mxu2  ;;  %2427 = vmatpush.msrb.mxu3 %v7605_v47  ;;  %v7597_v63 = vld [vmem:[%s14206_s9 + $0x58] sm:$0xff] }
 0x4e7   : > { %v2131_v23 = vadd.f32 %v2125_v9, %v2026_v11  ;;  %v8490_v9 = vunpack.i.h.bf16 %v8488_v15  ;;  %v7593_v15 = vld [vmem:[%s14206_s9 + $0x38] sm:$0xff] }
 0x4e8   : > { %2428 = vmatpush.msrb.mxu3 %v7604_v45 }
 0x4e9   : > { %v2206_v13 = vadd.f32 %v2200_v35, %v2131_v23  ;;  %v2609_v53 = vsel %vm711_vm0, %v8490_v9, %v10634_v36  ;;  %v7627_v9 = vld [vmem:[%s14206_s9 + $0x148] sm:$0x1f] }
 0x4ea   : > { %v8506_v8 = vpack.i.bf16 %v2609_v53, %v10447_v49  ;;  %v7639_v53 = vld [vmem:[%s14206_s9 + $0x1a8] sm:$0xff] }
 0x4eb   : > { %2563 = vmatpush.msra.mxu0 %v7639_v53 }
 0x4ec   : > { %8507 = vrot.lane.b32.xlu2 %v8506_v8, %s14221_s26 }
 0x4ee   : > { %v2128_v59 = vpop.f32.mrf.mxu2 }
 0x4ef   : > { %v2132_v17 = vadd.f32 %v2128_v59, %v2029_v19 }
 0x4f1   : > { %v2207_v16 = vadd.f32 %v2203_v62, %v2132_v17  ;;  %v641_v17 = vld [vmem:[%s14206_s9 + $0x30] sm:$0x1f]  ;;  %v7598_v62 = vld [vmem:[%s14206_s9 + $0x60] sm:$0xff] }
 0x4f2   : > { %7779 = vmatpush.msk.msrb.mxu2 %vm2362_vm9, %v641_v17  ;;  %v7607_v17 = vld [vmem:[%s14206_s9 + $0xa8] sm:$0xff] }
 0x4f4   : > { %2401 = vmatpush.msrb.mxu2 %v640_v28  ;;  %v10846_v28 = vpop.permute.xlu2 %2324 }
 0x4f5   : > { %14280 = vst [vmem:[#allocation15_spill] sm:$0xff] %v10846_v28 }
 0x4f6   : > { %v2275_v0 = vpop.f32.mrf.mxu2  ;;  %2402 = vmatpush.msrb.mxu2 %v639_v56 }
 0x4f7   : > { %v2281_v29 = vadd.f32 %v2275_v0, %v2206_v13  ;;  %v10655_v13 = vld [vmem:[%s9641_s24 + $0x78] sm:$0xff] }
 0x4f9   : > { %v2314_v10 = vmax.f32 %v2281_v29, %v2312_v24 }
 0x4fb   : > { %2316 = vrot.lane.b32.xlu0 %v2314_v10, %s14221_s26 }
 0x4fe   : > { %v2278_v20 = vpop.f32.mrf.mxu2 }
 0x4ff   : > { %v2282_v60 = vadd.f32 %v2278_v20, %v2207_v16  ;;  %v638_v16 = vld [vmem:[%s14206_s9 + $0x18] sm:$0xff]  ;;  %v7596_v20 = vld [vmem:[%s14206_s9 + $0x50] sm:$0xff] }
 0x500   : > { %2403 = vmatpush.msrb.mxu2 %v638_v16 }
 0x501   : > { %v2315_v50 = vmax.f32 %v2282_v60, %v2313_v7  ;;  %v637_v7 = vld [vmem:[%s14206_s9 + $0x10] sm:$0xff]  ;;  %v7603_v60 = vld [vmem:[%s14206_s9 + $0x88] sm:$0xff] }
 0x502   : > { %2404 = vmatpush.msrb.mxu2 %v637_v7  ;;  %2429 = vmatpush.msrb.mxu3 %v7603_v60 }
 0x503   : > { %2318 = vrot.lane.b32.xlu1 %v2315_v50, %s14221_s26  ;;  %8492 = vrot.lane.b32.xlu0 %v8491_v43, %s14277_s20  ;;  %v7595_v43 = vld [vmem:[%s14206_s9 + $0x48] sm:$0xff] }
 0x504   : > { %2405 = vmatpush.msrb.mxu2 %v636_v61 }
 0x506   : > { %2406 = vmatpush.msrb.mxu2 %v635_v48 }
 0x50b   : > { %8497 = vrot.lane.b32.xlu1 %v8496_v5, %s14277_s20  ;;  %2329 = vperm.xlu0 %8443, %v590_v46   ;;  %v7601_v5 = vld [vmem:[%s14206_s9 + $0x78] sm:$0xff]  ;;  %v7620_v46 = vld [vmem:[%s14206_s9 + $0x110] sm:$0x1f] }
 0x50c   : > { %7785 = vmatpush.msk.msra.mxu2 %vm2362_vm9, %v7620_v46 }
 0x513   : > { %8502 = vrot.lane.b32.xlu1 %v8501_v6, %s14221_s26 }
 0x546   : > { %v8508_v56 = vpop.permute.xlu2 %8507 }
 0x547   : > { %v10853_v7 = vunpack.i.h.bf16 %v8508_v56  ;;  %v8509_v60 = vunpack.i.l.bf16 %v8508_v56 }
 0x549   : > { %v2651_v37 = vsel %vm766_vm2, %v8509_v60, %v10853_v7 }
 0x56d   : > { %v2317_v12 = vpop.permute.xlu0 %2316 }
 0x56e   : > { %v2320_v31 = vmax.f32 %v2314_v10, %v2317_v12  ;;  %v7599_v10 = vld [vmem:[%s14206_s9 + $0x68] sm:$0x1f]  ;;  %v7618_v12 = vld [vmem:[%s14206_s9 + $0x100] sm:$0xff] }
 0x56f   : > { %7777 = vmatpush.msk.msrb.mxu1 %vm2362_vm9, %v7599_v10  ;;  %v7621_v10 = vld [vmem:[%s14206_s9 + $0x118] sm:$0xff] }
 0x570   : > { %2348 = vmatmul.f32.vlgmr.msrb.gmra.mxu0 %v2320_v31  ;;  %v7626_v31 = vld [vmem:[%s14206_s9 + $0x140] sm:$0xff] }
 0x571   : > { %2376 = vmatpush.msrb.mxu1 %v7598_v62 }
 0x573   : > { %2377 = vmatpush.msrb.mxu1 %v7597_v63 }
 0x575   : > { %v2319_v59 = vpop.permute.xlu1 %2318  ;;  %v8493_v11 = vpop.permute.xlu0 %8492  ;;  %2378 = vmatpush.msrb.mxu1 %v7596_v20 }
 0x576   : > { %v2321_v35 = vmax.f32 %v2315_v50, %v2319_v59  ;;  %v8495_v21 = vunpack.i.h.bf16 %v8493_v11  ;;  %v8494_v23 = vunpack.i.l.bf16 %v8493_v11  ;;  %v7602_v50 = vld [vmem:[%s14206_s9 + $0x80] sm:$0xff]  ;;  %v7611_v11 = vld [vmem:[%s14206_s9 + $0xc8] sm:$0xff] }
 0x577   : > { %2379 = vmatpush.msrb.mxu1 %v7595_v43  ;;  %2430 = vmatpush.msrb.mxu3 %v7602_v50  ;;  %v7638_v59 = vld [vmem:[%s14206_s9 + $0x1a0] sm:$0xff] }
 0x578   : > { %2351 = vmatmul.f32.gmra.mxu0 %v2321_v35  ;;  %v2607_v40 = vsel %vm711_vm0, %v8495_v21, %v10641_v30  ;;  %v2608_v58 = vsel %vm711_vm0, %v8494_v23, %v10644_v33  ;;  %v7617_v35 = vld [vmem:[%s14206_s9 + $0xf8] sm:$0xff] }
 0x579   : > { %v8516_v38 = vpack.i.bf16 %v2607_v40, %v10587_v4  ;;  %v8511_v25 = vpack.i.bf16 %v2608_v58, %v10590_v51  ;;  %2380 = vmatpush.msrb.mxu1 %v7594_v34  ;;  %2431 = vmatpush.msrb.mxu3 %v7601_v5  ;;  %v7625_v21 = vld [vmem:[%s14206_s9 + $0x138] sm:$0xff]  ;;  %v7610_v40 = vld [vmem:[%s14206_s9 + $0xc0] sm:$0xff]  ;;  %v7616_v58 = vld [vmem:[%s14206_s9 + $0xf0] sm:$0xff] }
 0x57a   : > { %v7637_v23 = vld [vmem:[%s14206_s9 + $0x198] sm:$0xff]  ;;  %2564 = vmatpush.msra.mxu0 %v7638_v59 }
 0x57b   : > { %8517 = vrot.lane.b32.xlu1 %v8516_v38, %s14221_s26  ;;  %8512 = vrot.lane.b32.xlu0 %v8511_v25, %s14221_s26 }
 0x57c   : > { %2381 = vmatpush.msrb.mxu1 %v7593_v15  ;;  %2432 = vmatpush.msrb.mxu3 %v7600_v26  ;;  %v7634_v26 = vld [vmem:[%s14206_s9 + $0x180] sm:$0x1f] }
 0x57d   : > { %v8498_v39 = vpop.permute.xlu1 %8497  ;;  %2565 = vmatpush.msra.mxu0 %v7637_v23  ;;  %v10848_v52 = vpop.permute.xlu0 %2329 }
 0x57e   : > { %v8500_v0 = vunpack.i.h.bf16 %v8498_v39  ;;  %v8499_v19 = vunpack.i.l.bf16 %v8498_v39  ;;  %7783 = vmatpush.msk.msra.mxu1 %vm2362_vm9, %v7613_v55  ;;  %7787 = vmatpush.msk.msra.mxu3 %vm2362_vm9, %v7627_v9  ;;  %v7609_v39 = vld [vmem:[%s14206_s9 + $0xb8] sm:$0xff]  ;;  %14281 = vst [vmem:[#allocation11_spill] sm:$0xff] %v10848_v52 }
 0x57f   : > { %v7633_v55 = vld [vmem:[%s14206_s9 + $0x178] sm:$0xff] }
 0x580   : > { %v2606_v24 = vsel %vm711_vm0, %v8499_v19, %v10655_v13  ;;  %v2605_v29 = vsel %vm711_vm0, %v8500_v0, %v10658_v14  ;;  %2508 = vmatpush.msra.mxu3 %v7626_v31  ;;  %v7615_v0 = vld [vmem:[%s14206_s9 + $0xe8] sm:$0xff] }
 0x581   : > { %v8521_v3 = vpack.i.bf16 %v2606_v24, %v10612_v2  ;;  %v8526_v42 = vpack.i.bf16 %v2605_v29, %v10609_v54  ;;  %v7623_v19 = vld [vmem:[%s14206_s9 + $0x128] sm:$0xff]  ;;  %v7608_v29 = vld [vmem:[%s14206_s9 + $0xb0] sm:$0xff] }
 0x582   : > { %2509 = vmatpush.msra.mxu3 %v7625_v21  ;;  %v7635_v24 = vld [vmem:[%s14206_s9 + $0x188] sm:$0xff] }
 0x583   : > { %8522 = vrot.lane.b32.xlu2 %v8521_v3, %s14221_s26  ;;  %8532 = vrot.lane.b32.xlu1 %v8501_v6, %s14279_s28 }
 0x584   : > { %8527 = vrot.lane.b32.xlu0 %v8526_v42, %s14221_s26 }
 0x585   : > { %v8503_v62 = vpop.permute.xlu1 %8502 }
 0x586   : > { %v10850_v47 = vunpack.i.h.bf16 %v8503_v62  ;;  %v8504_v63 = vunpack.i.l.bf16 %v8503_v62  ;;  %v9019_v62 = vld [vmem:[%s14198_s1] sm:$0xff] }
 0x588   : > { %v2652_v34 = vsel %vm766_vm2, %v8504_v63, %v10850_v47 }
 0x58b   : > { %8537 = vrot.lane.b32.xlu2 %v8506_v8, %s14279_s28  ;;  %8547 = vrot.lane.b32.xlu1 %v8516_v38, %s14279_s28 }
 0x58c   : > { %8542 = vrot.lane.b32.xlu0 %v8511_v25, %s14279_s28 }
 0x593   : > { %8552 = vrot.lane.b32.xlu2 %v8521_v3, %s14279_s28  ;;  %8562 = vrot.lane.b32.xlu1 %v8501_v6, %s14275_s16 }
 0x594   : > { %8557 = vrot.lane.b32.xlu0 %v8526_v42, %s14279_s28 }
 0x59b   : > { %8567 = vrot.lane.b32.xlu2 %v8506_v8, %s14275_s16  ;;  %8577 = vrot.lane.b32.xlu1 %v8516_v38, %s14275_s16 }
 0x59c   : > { %8572 = vrot.lane.b32.xlu0 %v8511_v25, %s14275_s16 }
 0x5a3   : > { %8582 = vrot.lane.b32.xlu2 %v8521_v3, %s14275_s16  ;;  %8592 = vrot.lane.b32.xlu1 %v8501_v6, %s14276_s17  ;;  %v7619_v6 = vld [vmem:[%s14206_s9 + $0x108] sm:$0xff] }
 0x5a4   : > { %8587 = vrot.lane.b32.xlu0 %v8526_v42, %s14275_s16  ;;  %2481 = vmatpush.msra.mxu2 %v7619_v6 }
 0x5a6   : > { %2482 = vmatpush.msra.mxu2 %v7618_v12 }
 0x5a8   : > { %2483 = vmatpush.msra.mxu2 %v7617_v35 }
 0x5aa   : > { %2484 = vmatpush.msra.mxu2 %v7616_v58  ;;  %v7631_v58 = vld [vmem:[%s14206_s9 + $0x168] sm:$0xff] }
 0x5ab   : > { %8597 = vrot.lane.b32.xlu2 %v8506_v8, %s14276_s17  ;;  %8607 = vrot.lane.b32.xlu1 %v8516_v38, %s14276_s17  ;;  %v7612_v8 = vld [vmem:[%s14206_s9 + $0xd0] sm:$0xff] }
 0x5ac   : > { %8602 = vrot.lane.b32.xlu0 %v8511_v25, %s14276_s17  ;;  %2454 = vmatpush.msra.mxu1 %v7612_v8  ;;  %v7624_v38 = vld [vmem:[%s14206_s9 + $0x130] sm:$0xff] }
 0x5ad   : > { %v7636_v25 = vld [vmem:[%s14206_s9 + $0x190] sm:$0xff]  ;;  %2510 = vmatpush.msra.mxu3 %v7624_v38  ;;  %2485 = vmatpush.msra.mxu2 %v7615_v0 }
 0x5ae   : > { %2455 = vmatpush.msra.mxu1 %v7611_v11  ;;  %2566 = vmatpush.msra.mxu0 %v7636_v25  ;;  %v7632_v11 = vld [vmem:[%s14206_s9 + $0x170] sm:$0xff] }
 0x5af   : > { %2511 = vmatpush.msra.mxu3 %v7623_v19  ;;  %v7630_v19 = vld [vmem:[%s14206_s9 + $0x160] sm:$0xff] }
 0x5b0   : > { %2456 = vmatpush.msra.mxu1 %v7610_v40  ;;  %2567 = vmatpush.msra.mxu0 %v7635_v24 }
 0x5b2   : > { %2457 = vmatpush.msra.mxu1 %v7609_v39  ;;  %2771 = vmatpush.msrb.mxu0 %v10627_v32 }
 0x5b3   : > { %8612 = vrot.lane.b32.xlu2 %v8521_v3, %s14276_s17  ;;  %v7614_v3 = vld [vmem:[%s14206_s9 + $0xe0] sm:$0xff] }
 0x5b4   : > { %8617 = vrot.lane.b32.xlu0 %v8526_v42, %s14276_s17  ;;  %v7622_v42 = vld [vmem:[%s14206_s9 + $0x120] sm:$0xff]  ;;  %2458 = vmatpush.msra.mxu1 %v7608_v29  ;;  %v7629_v29 = vld [vmem:[%s14206_s9 + $0x158] sm:$0xff] }
 0x5b5   : > { %2486 = vmatpush.msra.mxu2 %v7614_v3  ;;  %2512 = vmatpush.msra.mxu3 %v7622_v42  ;;  %v7628_v3 = vld [vmem:[%s14206_s9 + $0x150] sm:$0xff] }
 0x5b6   : > { %2459 = vmatpush.msra.mxu1 %v7607_v17  ;;  %2772 = vmatpush.msrb.mxu0 %v10634_v36 }
 0x5b7   : > { %2513 = vmatpush.msra.mxu3 %v7621_v10 }
 0x5b8   : > { %2773 = vmatpush.msrb.mxu0 %v10644_v33 }
 0x5ba   : > { %2774 = vmatpush.msrb.mxu0 %v10641_v30 }
 0x5bc   : > { %2775 = vmatpush.msrb.mxu0 %v10655_v13 }
 0x5be   : > { %2776 = vmatpush.msrb.mxu0 %v10658_v14 }
 0x5dd   : > { %v8523_v9 = vpop.permute.xlu2 %8522 }
 0x5de   : > { %v10875_v8 = vunpack.i.h.bf16 %v8523_v9  ;;  %v8524_v12 = vunpack.i.l.bf16 %v8523_v9  ;;  %v9028_v9 = vld [vmem:[%s14198_s1 + $0x48] sm:$0xf] }
 0x5e0   : > { %v2648_v0 = vsel %vm766_vm2, %v8524_v12, %v10875_v8 }
 0x5e5   : > { %v8538_v17 = vpop.permute.xlu2 %8537 }
 0x5ed   : > { %v2349_v16 = vpop.f32.mrf.mxu0  ;;  %v8513_v20 = vpop.permute.xlu0 %8512 }
 0x5ee   : > { %v2350_v45 = vadd.f32 %v2349_v16, %v10846_v28  ;;  %v10855_v61 = vunpack.i.h.bf16 %v8513_v20  ;;  %v8514_v50 = vunpack.i.l.bf16 %v8513_v20  ;;  %v8518_v48 = vpop.permute.xlu1 %8517  ;;  %v8553_v16 = vpop.permute.xlu2 %8552 }
 0x5ef   : > { %v10859_v46 = vunpack.i.h.bf16 %v8518_v48  ;;  %v8519_v15 = vunpack.i.l.bf16 %v8518_v48  ;;  %v8555_v60 = vunpack.i.h.bf16 %v8553_v16  ;;  %v9022_v48 = vld [vmem:[%s9641_s24 + $0xb0] sm:$0xff] }
 0x5f0   : > { %v2355_v43 = vmax.f32 %v2350_v45, 0.0  ;;  %v2650_v6 = vsel %vm766_vm2, %v8514_v50, %v10855_v61  ;;  %v9021_v50 = vld [vmem:[%s14198_s1 + $0x8] sm:$0xff] }
 0x5f1   : > { %v2649_v35 = vsel %vm766_vm2, %v8519_v15, %v10859_v46  ;;  %v9023_v15 = vld [vmem:[%s9641_s24 + $0xa0] sm:$0xff] }
 0x5f2   : > { %v2358_v18 = vrot.slane %v2355_v43, 2  ;;  %v2411_v5 = vrot.slane %v2355_v43, 4  ;;  %7780 = vmatmul.msk.f32.vlgmr.msrb.gmra.mxu2 %vm2359_vm10, %v2355_v43  ;;  %v2438_v38 = vrot.slane %v2355_v43, 6  ;;  %v8554_v43 = vunpack.i.l.bf16 %v8553_v16  ;;  %v9038_v16 = vld [vmem:[%s14199_s2 + $0x48] sm:$0xf] }
 0x5f3   : > { %2675 = vmatpush.msrb.mxu2 %v2652_v34 }
 0x5f4   : > { %7778 = vmatmul.msk.f32.vlgmr.msrb.gmra.mxu1 %vm2359_vm10, %v2358_v18  ;;  %7782 = vmatmul.msk.f32.vlgmr.msrb.gmra.mxu3 %vm2359_vm10, %v2411_v5 }
 0x5f5   : > { %7789 = vmatpush.msk.msrb.mxu1 %vm2362_vm9, %v7634_v26  ;;  %2676 = vmatpush.msrb.mxu2 %v2651_v37  ;;  %v2352_v53 = vpop.f32.mrf.mxu0  ;;  %v2946_v26 = vsel %vm1126_vm3, %v8554_v43, %v8555_v60 }
 0x5f6   : > { %2707 = vmatpush.msrb.mxu3 %v10850_v47  ;;  %v2353_v31 = vadd.f32 %v2352_v53, %v10848_v52  ;;  %v8528_v59 = vpop.permute.xlu0 %8527  ;;  %v8533_v42 = vpop.permute.xlu1 %8532 }
 0x5f7   : > { %v10884_v21 = vunpack.i.h.bf16 %v8528_v59  ;;  %v8529_v23 = vunpack.i.l.bf16 %v8528_v59  ;;  %2535 = vmatpush.msrb.mxu1 %v7633_v55  ;;  %2677 = vmatpush.msrb.mxu2 %v2650_v6 }
 0x5f8   : > { %v2356_v40 = vmax.f32 %v2353_v31, 0.0  ;;  %2708 = vmatpush.msrb.mxu3 %v10853_v7 }
 0x5f9   : > { %2536 = vmatpush.msrb.mxu1 %v7632_v11  ;;  %2678 = vmatpush.msrb.mxu2 %v2649_v35  ;;  %v2647_v24 = vsel %vm766_vm2, %v8529_v23, %v10884_v21 }
 0x5fa   : > { %v2492_v25 = vrot.slane %v2356_v40, 2  ;;  %v2546_v39 = vrot.slane %v2356_v40, 6  ;;  %2709 = vmatpush.msrb.mxu3 %v10855_v61  ;;  %7786 = vmatmul.msk.f32.vlgmr.msra.gmra.mxu2 %vm2359_vm10, %v2356_v40 }
 0x5fb   : > { %2537 = vmatpush.msrb.mxu1 %v7631_v58  ;;  %2679 = vmatpush.msrb.mxu2 %v2648_v0 }
 0x5fc   : > { %2710 = vmatpush.msrb.mxu3 %v10859_v46  ;;  %7784 = vmatmul.msk.f32.vlgmr.msra.gmra.mxu1 %vm2359_vm10, %v2438_v38 }
 0x5fd   : > { %7788 = vmatmul.msk.f32.vlgmr.msra.gmra.mxu3 %vm2359_vm10, %v2492_v25  ;;  %2538 = vmatpush.msrb.mxu1 %v7630_v19 }
 0x5fe   : > { %7792 = vmatmul.msk.f32.vlgmr.msra.gmra.mxu0 %vm2359_vm10, %v2546_v39  ;;  %2680 = vmatpush.msrb.mxu2 %v2647_v24  ;;  %v8543_v10 = vpop.permute.xlu0 %8542 }
 0x5ff   : > { %2711 = vmatpush.msrb.mxu3 %v10875_v8  ;;  %2899 = vmatpush.msra.mxu0 %v10627_v32  ;;  %v9018_v32 = vld [vmem:[%s14198_s1 + $0x28] sm:$0xff]  ;;  %v8544_v63 = vunpack.i.l.bf16 %v8543_v10 }
 0x600   : > { %2803 = vmatpush.msra.mxu2 %v2652_v34  ;;  %2539 = vmatpush.msrb.mxu1 %v7629_v29 }
 0x601   : > { %2712 = vmatpush.msrb.mxu3 %v10884_v21  ;;  %2900 = vmatpush.msra.mxu0 %v10634_v36  ;;  %v2519_v36 = vrot.slane %v2356_v40, 4 }
 0x602   : > { %2804 = vmatpush.msra.mxu2 %v2651_v37  ;;  %2540 = vmatpush.msrb.mxu1 %v7628_v3  ;;  %v9024_v37 = vld [vmem:[%s14198_s1 + $0x38] sm:$0xff] }
 0x603   : > { %2835 = vmatpush.msra.mxu3 %v10850_v47  ;;  %2901 = vmatpush.msra.mxu0 %v10644_v33  ;;  %v8534_v33 = vunpack.i.l.bf16 %v8533_v42  ;;  %v8548_v47 = vpop.permute.xlu1 %8547 }
 0x604   : > { %2739 = vmatpush.msra.mxu1 %v10450_v22  ;;  %2805 = vmatpush.msra.mxu2 %v2650_v6  ;;  %v8535_v22 = vunpack.i.h.bf16 %v8533_v42  ;;  %v8550_v20 = vunpack.i.h.bf16 %v8548_v47  ;;  %v8568_v6 = vpop.permute.xlu2 %8567 }
 0x605   : > { %2836 = vmatpush.msra.mxu3 %v10853_v7  ;;  %7805 = vmatmul.msk.f32.vlgmr.msrb.gmra.mxu2 %vm785_vm1, %v9018_v32  ;;  %v8549_v7 = vunpack.i.l.bf16 %v8548_v47  ;;  %v8570_v59 = vunpack.i.h.bf16 %v8568_v6  ;;  %v8569_v11 = vunpack.i.l.bf16 %v8568_v6  ;;  %v9037_v47 = vld [vmem:[%s14199_s2 + $0x18] sm:$0xff] }
 0x606   : > { %2902 = vmatpush.msra.mxu0 %v10641_v30  ;;  %2740 = vmatpush.msra.mxu1 %v10447_v49  ;;  %v8540_v49 = vunpack.i.h.bf16 %v8538_v17  ;;  %v8539_v30 = vunpack.i.l.bf16 %v8538_v17  ;;  %v2950_v56 = vsel %vm1126_vm3, %v8534_v33, %v8535_v22 }
 0x607   : > { %2806 = vmatpush.msra.mxu2 %v2649_v35  ;;  %2837 = vmatpush.msra.mxu3 %v10855_v61  ;;  %v8558_v61 = vpop.permute.xlu0 %8557  ;;  %v2947_v18 = vsel %vm1126_vm3, %v8549_v7, %v8550_v20  ;;  %v3139_v19 = vsel %vm1347_vm4, %v8569_v11, %v8570_v59 }
 0x608   : > { %7790 = vmatmul.msk.f32.vlgmr.msrb.gmra.mxu1 %vm2359_vm10, %v2519_v36  ;;  %7810 = vmatmul.msk.f32.vlgmr.msrb.gmra.mxu3 %vm785_vm1, %v9018_v32  ;;  %v2949_v45 = vsel %vm1126_vm3, %v8539_v30, %v8540_v49  ;;  %v8560_v5 = vunpack.i.h.bf16 %v8558_v61  ;;  %v9035_v30 = vld [vmem:[%s14199_s2 + $0x10] sm:$0xff] }
 0x609   : > { %7820 = vmatmul.msk.f32.vlgmr.msrb.gmra.mxu0 %vm785_vm1, %v9019_v62  ;;  %2741 = vmatpush.msra.mxu1 %v10590_v51 }
 0x60a   : > { %2903 = vmatpush.msra.mxu0 %v10655_v13  ;;  %2807 = vmatpush.msra.mxu2 %v2648_v0  ;;  %v8545_v13 = vunpack.i.h.bf16 %v8543_v10  ;;  %v9031_v0 = vld [vmem:[%s14199_s2] sm:$0xff]  ;;  %v9033_v10 = vld [vmem:[%s14199_s2 + $0x8] sm:$0xff] }
 0x60b   : > { %2838 = vmatpush.msra.mxu3 %v10859_v46  ;;  %2742 = vmatpush.msra.mxu1 %v10587_v4  ;;  %v8559_v46 = vunpack.i.l.bf16 %v8558_v61 }
 0x60c   : > { %2904 = vmatpush.msra.mxu0 %v10658_v14  ;;  %2808 = vmatpush.msra.mxu2 %v2647_v24  ;;  %v9020_v14 = vld [vmem:[%s14198_s1 + $0x30] sm:$0xff]  ;;  %v2948_v34 = vsel %vm1126_vm3, %v8544_v63, %v8545_v13  ;;  %v8583_v38 = vpop.permute.xlu2 %8582 }
 0x60d   : > { %2839 = vmatpush.msra.mxu3 %v10875_v8  ;;  %2743 = vmatpush.msra.mxu1 %v10612_v2  ;;  %v2945_v55 = vsel %vm1126_vm3, %v8559_v46, %v8560_v5  ;;  %v9029_v8 = vld [vmem:[%s14198_s1 + $0x20] sm:$0xf]  ;;  %v8585_v24 = vunpack.i.h.bf16 %v8583_v38  ;;  %v8584_v29 = vunpack.i.l.bf16 %v8583_v38 }
 0x60e   : > { %3079 = vmatpush.msrb.mxu0 %v8535_v22  ;;  %2973 = vmatpush.msrb.mxu2 %v2950_v56 }
 0x60f   : > { %2840 = vmatpush.msra.mxu3 %v10884_v21  ;;  %7806 = vmatmul.msk.f32.gmra.mxu2 %vm785_vm1, %v9020_v14  ;;  %v8573_v53 = vpop.permute.xlu0 %8572  ;;  %v9030_v21 = vld [vmem:[%s14199_s2 + $0x28] sm:$0xff]  ;;  %v3136_v33 = vsel %vm1347_vm4, %v8584_v29, %v8585_v24 }
 0x610   : > { %3080 = vmatpush.msrb.mxu0 %v8540_v49  ;;  %2974 = vmatpush.msrb.mxu2 %v2949_v45  ;;  %v8575_v40 = vunpack.i.h.bf16 %v8573_v53  ;;  %v8574_v58 = vunpack.i.l.bf16 %v8573_v53  ;;  %v9042_v53 = vld [vmem:[%s14198_s1 + $0x58] sm:$0xff] }
 0x611   : > { %3005 = vmatpush.msrb.mxu3 %v8535_v22  ;;  %2744 = vmatpush.msra.mxu1 %v10609_v54  ;;  %v9032_v22 = vld [vmem:[%s14199_s2 + $0x30] sm:$0xff] }
 0x612   : > { %3081 = vmatpush.msrb.mxu0 %v8545_v13  ;;  %7811 = vmatmul.msk.f32.gmra.mxu3 %vm785_vm1, %v9020_v14  ;;  %v3138_v42 = vsel %vm1347_vm4, %v8574_v58, %v8575_v40 }
 0x613   : > { %7815 = vmatmul.msk.f32.vlgmr.msra.gmra.mxu1 %vm785_vm1, %v9019_v62  ;;  %7821 = vmatmul.msk.f32.gmra.mxu0 %vm785_vm1, %v9021_v50 }
 0x614   : > { %2867 = vmatpush.msrb.mxu1 %v9022_v48  ;;  %2975 = vmatpush.msrb.mxu2 %v2948_v34  ;;  %v8598_v63 = vpop.permute.xlu2 %8597  ;;  %v9040_v48 = vld [vmem:[%s14198_s1 + $0x50] sm:$0xff] }
 0x615   : > { %3006 = vmatpush.msrb.mxu3 %v8540_v49  ;;  %3082 = vmatpush.msrb.mxu0 %v8550_v20  ;;  %v9034_v49 = vld [vmem:[%s14199_s2 + $0x38] sm:$0xff]  ;;  %v8599_v43 = vunpack.i.l.bf16 %v8598_v63 }
 0x616   : > { %2868 = vmatpush.msrb.mxu1 %v9023_v15  ;;  %2976 = vmatpush.msrb.mxu2 %v2947_v18 }
 0x617   : > { %3007 = vmatpush.msrb.mxu3 %v8545_v13  ;;  %3083 = vmatpush.msrb.mxu0 %v8555_v60  ;;  %v8588_v3 = vpop.permute.xlu0 %8587 }
 0x618   : > { %2869 = vmatpush.msrb.mxu1 %v10590_v51  ;;  %2977 = vmatpush.msrb.mxu2 %v2946_v26  ;;  %v9025_v51 = vld [vmem:[%s14198_s1 + $0x10] sm:$0xff]  ;;  %v8590_v17 = vunpack.i.h.bf16 %v8588_v3  ;;  %v8589_v36 = vunpack.i.l.bf16 %v8588_v3 }
 0x619   : > { %3008 = vmatpush.msrb.mxu3 %v8550_v20  ;;  %3084 = vmatpush.msrb.mxu0 %v8560_v5 }
 0x61a   : > { %7807 = vmatmul.msk.f32.gmra.mxu2 %vm785_vm1, %v9024_v37  ;;  %2870 = vmatpush.msrb.mxu1 %v10587_v4  ;;  %v9026_v4 = vld [vmem:[%s14198_s1 + $0x40] sm:$0xff]  ;;  %v3135_v62 = vsel %vm1347_vm4, %v8589_v36, %v8590_v17  ;;  %v9051_v36 = vld [vmem:[%s14204_s7 + $0x78] sm:$0xff] }
 0x61b   : > { %2978 = vmatpush.msrb.mxu2 %v2945_v55  ;;  %3009 = vmatpush.msrb.mxu3 %v8555_v60  ;;  %v8600_v60 = vunpack.i.h.bf16 %v8598_v63  ;;  %v9055_v63 = vld [vmem:[%s14204_s7 + $0xd0] sm:$0xff] }
 0x61c   : > { %7812 = vmatmul.msk.f32.gmra.mxu3 %vm785_vm1, %v9024_v37  ;;  %7816 = vmatmul.msk.f32.gmra.mxu1 %vm785_vm1, %v9021_v50  ;;  %v9041_v37 = vld [vmem:[%s14199_s2 + $0x50] sm:$0xff] }
 0x61d   : > { %7822 = vmatmul.msk.f32.gmra.mxu0 %vm785_vm1, %v9025_v51  ;;  %2871 = vmatpush.msrb.mxu1 %v10612_v2  ;;  %v9027_v2 = vld [vmem:[%s14198_s1 + $0x18] sm:$0xff] }
 0x61e   : > { %3010 = vmatpush.msrb.mxu3 %v8560_v5  ;;  %v8613_v5 = vpop.permute.xlu2 %8612 }
 0x61f   : > { %2872 = vmatpush.msrb.mxu1 %v10609_v54  ;;  %v8563_v54 = vpop.permute.xlu1 %8562  ;;  %v8603_v14 = vpop.permute.xlu0 %8602 }
 0x620   : > { %v8565_v12 = vunpack.i.h.bf16 %v8563_v54  ;;  %v8564_v31 = vunpack.i.l.bf16 %v8563_v54  ;;  %v8605_v50 = vunpack.i.h.bf16 %v8603_v14 }
 0x621   : > { %3047 = vmatpush.msra.mxu1 %v2950_v56  ;;  %v9036_v56 = vld [vmem:[%s14199_s2 + $0x40] sm:$0xff] }
 0x622   : > { %7808 = vmatmul.msk.f32.gmra.mxu2 %vm785_vm1, %v9026_v4  ;;  %v3140_v23 = vsel %vm1347_vm4, %v8564_v31, %v8565_v12  ;;  %v9043_v31 = vld [vmem:[%s14198_s1 + $0x60] sm:$0xff] }
 0x623   : > { %3048 = vmatpush.msra.mxu1 %v2949_v45  ;;  %v9039_v45 = vld [vmem:[%s14199_s2 + $0x20] sm:$0xf] }
 0x624   : > { %7813 = vmatmul.msk.f32.gmra.mxu3 %vm785_vm1, %v9026_v4  ;;  %7817 = vmatmul.msk.f32.gmra.mxu1 %vm785_vm1, %v9025_v51  ;;  %v8614_v51 = vunpack.i.l.bf16 %v8613_v5 }
 0x625   : > { %3049 = vmatpush.msra.mxu1 %v2948_v34  ;;  %7823 = vmatmul.msk.f32.gmra.mxu0 %vm785_vm1, %v9027_v2  ;;  %v8604_v34 = vunpack.i.l.bf16 %v8603_v14  ;;  %v9056_v14 = vld [vmem:[%s14204_s7 + $0x60] sm:$0xff] }
 0x627   : > { %3050 = vmatpush.msra.mxu1 %v2947_v18  ;;  %v8578_v35 = vpop.permute.xlu1 %8577  ;;  %v8618_v4 = vpop.permute.xlu0 %8617 }
 0x628   : > { %v8580_v25 = vunpack.i.h.bf16 %v8578_v35  ;;  %v8579_v39 = vunpack.i.l.bf16 %v8578_v35  ;;  %v8620_v6 = vunpack.i.h.bf16 %v8618_v4  ;;  %v9045_v35 = vld [vmem:[%s14198_s1 + $0x68] sm:$0xff] }
 0x629   : > { %3051 = vmatpush.msra.mxu1 %v2946_v26  ;;  %v3329_v26 = vsel %vm1568_vm5, %v8599_v43, %v8600_v60  ;;  %v9060_v43 = vld [vmem:[%s14204_s7 + $0x58] sm:$0xff] }
 0x62a   : > { %7809 = vmatmul.msk.f32.gmra.mxu2 %vm785_vm1, %v9028_v9  ;;  %v3137_v32 = vsel %vm1347_vm4, %v8579_v39, %v8580_v25  ;;  %v9047_v39 = vld [vmem:[%s14198_s1 + $0x70] sm:$0xf] }
 0x62b   : > { %3052 = vmatpush.msra.mxu1 %v2945_v55  ;;  %v8615_v55 = vunpack.i.h.bf16 %v8613_v5  ;;  %v9065_v5 = vld [vmem:[%s14204_s7 + $0xb0] sm:$0xff] }
 0x62c   : > { %7814 = vmatmul.msk.f32.gmra.mxu3 %vm785_vm1, %v9028_v9  ;;  %7818 = vmatmul.msk.f32.gmra.mxu1 %vm785_vm1, %v9027_v2  ;;  %v3328_v2 = vsel %vm1568_vm5, %v8604_v34, %v8605_v50  ;;  %v8619_v9 = vunpack.i.l.bf16 %v8618_v4  ;;  %v9063_v34 = vld [vmem:[%s14204_s7 + $0xb8] sm:$0xff]  ;;  %v9071_v4 = vld [vmem:[%s14204_s7 + $0xa0] sm:$0xff] }
 0x62d   : > { %7824 = vmatmul.msk.f32.gmra.mxu0 %vm785_vm1, %v9029_v8 }
 0x62f   : > { %v8593_v13 = vpop.permute.xlu1 %8592 }
 0x630   : > { %v8595_v20 = vunpack.i.h.bf16 %v8593_v13  ;;  %v8594_v7 = vunpack.i.l.bf16 %v8593_v13 }
 0x632   : > { %7825 = vmatmul.msk.f32.vlgmr.msra.gmra.mxu2 %vm785_vm1, %v9030_v21  ;;  %v3330_v18 = vsel %vm1568_vm5, %v8594_v7, %v8595_v20 }
 0x633   : > { %3163 = vmatpush.msra.mxu2 %v3140_v23 }
 0x634   : > { %7830 = vmatmul.msk.f32.vlgmr.msra.gmra.mxu3 %vm785_vm1, %v9030_v21  ;;  %7819 = vmatmul.msk.f32.gmra.mxu1 %vm785_vm1, %v9029_v8  ;;  %v3326_v8 = vsel %vm1568_vm5, %v8614_v51, %v8615_v55  ;;  %v9046_v21 = vld [vmem:[%s14199_s2 + $0x60] sm:$0xff]  ;;  %v9070_v51 = vld [vmem:[%s14204_s7 + $0x38] sm:$0xff] }
 0x635   : > { %7840 = vmatmul.msk.f32.vlgmr.msra.gmra.mxu0 %vm785_vm1, %v9031_v0  ;;  %3164 = vmatpush.msra.mxu2 %v3139_v19 }
 0x636   : > { %3195 = vmatpush.msra.mxu3 %v8565_v12  ;;  %3269 = vmatpush.msra.mxu0 %v8565_v12  ;;  %v3325_v12 = vsel %vm1568_vm5, %v8619_v9, %v8620_v6 }
 0x637   : > { %3165 = vmatpush.msra.mxu2 %v3138_v42  ;;  %v8608_v61 = vpop.permute.xlu1 %8607 }
 0x638   : > { %3196 = vmatpush.msra.mxu3 %v8570_v59  ;;  %3270 = vmatpush.msra.mxu0 %v8570_v59  ;;  %v8610_v46 = vunpack.i.h.bf16 %v8608_v61  ;;  %v8609_v15 = vunpack.i.l.bf16 %v8608_v61  ;;  %v9044_v59 = vld [vmem:[%s14199_s2 + $0x58] sm:$0xff]  ;;  %v9061_v61 = vld [vmem:[%s14204_s7 + $0xc0] sm:$0xff] }
 0x639   : > { %3166 = vmatpush.msra.mxu2 %v3137_v32 }
 0x63a   : > { %3197 = vmatpush.msra.mxu3 %v8575_v40  ;;  %3271 = vmatpush.msra.mxu0 %v8575_v40  ;;  %v3327_v54 = vsel %vm1568_vm5, %v8609_v15, %v8610_v46  ;;  %v9067_v15 = vld [vmem:[%s14198_s1 + $0x88] sm:$0xff] }
 0x63b   : > { %7826 = vmatmul.msk.f32.gmra.mxu2 %vm785_vm1, %v9032_v22 }
 0x63c   : > { %3167 = vmatpush.msra.mxu2 %v3136_v33  ;;  %3198 = vmatpush.msra.mxu3 %v8580_v25 }
 0x63d   : > { %3272 = vmatpush.msra.mxu0 %v8580_v25  ;;  %7831 = vmatmul.msk.f32.gmra.mxu3 %vm785_vm1, %v9032_v22 }
 0x63e   : > { %7835 = vmatmul.msk.f32.vlgmr.msrb.gmra.mxu1 %vm785_vm1, %v9031_v0  ;;  %7841 = vmatmul.msk.f32.gmra.mxu0 %vm785_vm1, %v9033_v10  ;;  %v9048_v0 = vld [vmem:[%s14199_s2 + $0x68] sm:$0xff] }
 0x63f   : > { %3168 = vmatpush.msra.mxu2 %v3135_v62  ;;  %3199 = vmatpush.msra.mxu3 %v8585_v24 }
 0x640   : > { %3237 = vmatpush.msrb.mxu1 %v3140_v23  ;;  %3273 = vmatpush.msra.mxu0 %v8585_v24 }
 0x641   : > { %3200 = vmatpush.msra.mxu3 %v8590_v17 }
 0x642   : > { %3238 = vmatpush.msrb.mxu1 %v3139_v19  ;;  %3274 = vmatpush.msra.mxu0 %v8590_v17  ;;  %v9050_v17 = vld [vmem:[%s14199_s2 + $0x70] sm:$0xf] }
 0x643   : > { %7827 = vmatmul.msk.f32.gmra.mxu2 %vm785_vm1, %v9034_v49 }
 0x644   : > { %3239 = vmatpush.msrb.mxu1 %v3138_v42 }
 0x645   : > { %7832 = vmatmul.msk.f32.gmra.mxu3 %vm785_vm1, %v9034_v49 }
 0x646   : > { %3240 = vmatpush.msrb.mxu1 %v3137_v32  ;;  %7842 = vmatmul.msk.f32.gmra.mxu0 %vm785_vm1, %v9035_v30  ;;  %v9049_v32 = vld [vmem:[%s14198_s1 + $0x78] sm:$0xff] }
 0x647   : > { %7836 = vmatmul.msk.f32.gmra.mxu1 %vm785_vm1, %v9033_v10  ;;  %v9011_v10 = vld [vmem:[%s14207_s10] ss:$0 sm:$0xff] }
 0x648   : > { %3241 = vmatpush.msrb.mxu1 %v3136_v33 }
 0x64a   : > { %3242 = vmatpush.msrb.mxu1 %v3135_v62  ;;  %v9052_v62 = vld [vmem:[%s14204_s7 + $0x70] sm:$0xff] }
 0x64b   : > { %7828 = vmatmul.msk.f32.gmra.mxu2 %vm785_vm1, %v9036_v56 }
 0x64d   : > { %7833 = vmatmul.msk.f32.gmra.mxu3 %vm785_vm1, %v9036_v56 }
 0x64e   : > { %7843 = vmatmul.msk.f32.gmra.mxu0 %vm785_vm1, %v9037_v47 }
 0x64f   : > { %7837 = vmatmul.msk.f32.gmra.mxu1 %vm785_vm1, %v9035_v30  ;;  %v9053_v30 = vld [vmem:[%s14204_s7 + $0xd8] sm:$0xff] }
 0x653   : > { %7829 = vmatmul.msk.f32.gmra.mxu2 %vm785_vm1, %v9038_v16 }
 0x655   : > { %7834 = vmatmul.msk.f32.gmra.mxu3 %vm785_vm1, %v9038_v16 }
 0x656   : > { %7844 = vmatmul.msk.f32.gmra.mxu0 %vm785_vm1, %v9039_v45 }
 0x657   : > { %7838 = vmatmul.msk.f32.gmra.mxu1 %vm785_vm1, %v9037_v47  ;;  %v9054_v47 = vld [vmem:[%s14204_s7 + $0x68] sm:$0xff] }
 0x65b   : > { %7845 = vmatmul.msk.f32.vlgmr.msrb.gmra.mxu2 %vm785_vm1, %v9040_v48 }
 0x65c   : > { %3353 = vmatpush.msrb.mxu2 %v3330_v18 }
 0x65d   : > { %7850 = vmatmul.msk.f32.vlgmr.msrb.gmra.mxu3 %vm785_vm1, %v9040_v48 }
 0x65e   : > { %7860 = vmatmul.msk.f32.vlgmr.msrb.gmra.mxu0 %vm785_vm1, %v9041_v37  ;;  %3354 = vmatpush.msrb.mxu2 %v3329_v26 }
 0x65f   : > { %7839 = vmatmul.msk.f32.gmra.mxu1 %vm785_vm1, %v9039_v45  ;;  %3385 = vmatpush.msrb.mxu3 %v8595_v20  ;;  %v9057_v45 = vld [vmem:[%s14198_s1 + $0x80] sm:$0xff] }
 0x660   : > { %3459 = vmatpush.msrb.mxu0 %v8595_v20  ;;  %3355 = vmatpush.msrb.mxu2 %v3328_v2  ;;  %v9058_v20 = vld [vmem:[%s14204_s7 + $0xc8] sm:$0xff] }
 0x661   : > { %3386 = vmatpush.msrb.mxu3 %v8600_v60 }
 0x662   : > { %3460 = vmatpush.msrb.mxu0 %v8600_v60  ;;  %3356 = vmatpush.msrb.mxu2 %v3327_v54  ;;  %v9059_v60 = vld [vmem:[%s14199_s2 + $0x78] sm:$0xff] }
 0x663   : > { %3387 = vmatpush.msrb.mxu3 %v8605_v50  ;;  %7846 = vmatmul.msk.f32.gmra.mxu2 %vm785_vm1, %v9042_v53 }
 0x664   : > { %3461 = vmatpush.msrb.mxu0 %v8605_v50  ;;  %3357 = vmatpush.msrb.mxu2 %v3326_v8  ;;  %v9062_v50 = vld [vmem:[%s14204_s7 + $0x50] sm:$0xff] }
 0x665   : > { %3388 = vmatpush.msrb.mxu3 %v8610_v46 }
 0x666   : > { %3462 = vmatpush.msrb.mxu0 %v8610_v46  ;;  %7851 = vmatmul.msk.f32.gmra.mxu3 %vm785_vm1, %v9042_v53  ;;  %v9066_v46 = vld [vmem:[%s14204_s7 + $0x40] sm:$0xff]  ;;  %v9075_v53 = vld [vmem:[%s14204_s7 + $0x90] sm:$0xff] }
 0x667   : > { %7855 = vmatmul.msk.f32.vlgmr.msra.gmra.mxu1 %vm785_vm1, %v9041_v37  ;;  %3358 = vmatpush.msrb.mxu2 %v3325_v12  ;;  %v9068_v37 = vld [vmem:[%s14204_s7 + $0xa8] sm:$0xff] }
 0x668   : > { %3389 = vmatpush.msrb.mxu3 %v8615_v55  ;;  %3427 = vmatpush.msra.mxu1 %v3330_v18  ;;  %v9064_v18 = vld [vmem:[%s14204_s7 + $0x48] sm:$0xff] }
 0x669   : > { %3463 = vmatpush.msrb.mxu0 %v8615_v55  ;;  %v9069_v55 = vld [vmem:[%s14199_s2 + $0x80] sm:$0xff] }
 0x66a   : > { %3390 = vmatpush.msrb.mxu3 %v8620_v6  ;;  %3428 = vmatpush.msra.mxu1 %v3329_v26 }
 0x66b   : > { %3464 = vmatpush.msrb.mxu0 %v8620_v6  ;;  %7847 = vmatmul.msk.f32.gmra.mxu2 %vm785_vm1, %v9043_v31  ;;  %v9074_v6 = vld [vmem:[%s14204_s7 + $0x28] sm:$0xff] }
 0x66c   : > { %3429 = vmatpush.msra.mxu1 %v3328_v2  ;;  %7861 = vmatmul.msk.f32.gmra.mxu0 %vm785_vm1, %v9044_v59  ;;  %v9072_v2 = vld [vmem:[%s14204_s7 + $0x30] sm:$0xff] }
 0x66e   : > { %3430 = vmatpush.msra.mxu1 %v3327_v54  ;;  %7852 = vmatmul.msk.f32.gmra.mxu3 %vm785_vm1, %v9043_v31  ;;  %v9073_v54 = vld [vmem:[%s14204_s7 + $0x98] sm:$0xff]  ;;  %v9078_v31 = vld [vmem:[%s14204_s7 + $0x88] sm:$0xff] }
 0x66f   : > { %7856 = vmatmul.msk.f32.gmra.mxu1 %vm785_vm1, %v9044_v59  ;;  %v9079_v59 = vld [vmem:[%s14199_s2 + $0x88] sm:$0xff] }
 0x670   : > { %3431 = vmatpush.msra.mxu1 %v3326_v8  ;;  %v9076_v8 = vld [vmem:[%s14204_s7 + $0x20] sm:$0xff] }
 0x671   : > { %v2383_v11 = vpop.f32.mrf.mxu1 }
 0x672   : > { %3432 = vmatpush.msra.mxu1 %v3325_v12  ;;  %v9077_v12 = vld [vmem:[%s14198_s1 + $0x90] sm:$0xff] }
 0x673   : > { %7848 = vmatmul.msk.f32.gmra.mxu2 %vm785_vm1, %v9045_v35 }
 0x674   : > { %7862 = vmatmul.msk.f32.gmra.mxu0 %vm785_vm1, %v9046_v21 }
 0x675   : > { %v2408_v23 = vpop.f32.mrf.mxu2 }
 0x676   : > { %7853 = vmatmul.msk.f32.gmra.mxu3 %vm785_vm1, %v9045_v35  ;;  %v2409_v40 = vadd.f32 %v2408_v23, %v2383_v11  ;;  %v9080_v11 = vld [vmem:[%s14204_s7 + $0x18] sm:$0xff]  ;;  %v9082_v23 = vld [vmem:[%s14204_s7 + $0x10] sm:$0xff] }
 0x677   : > { %7857 = vmatmul.msk.f32.gmra.mxu1 %vm785_vm1, %v9046_v21  ;;  %v2434_v58 = vpop.f32.mrf.mxu3  ;;  %v9081_v21 = vld [vmem:[%s14204_s7 + $0x80] sm:$0xff] }
 0x678   : > { %v2437_v38 = vadd.f32 %v2434_v58, %v2409_v40  ;;  %v9083_v40 = vld [vmem:[%s14204_s7 + $0x8] sm:$0xff] }
 0x679   : > { %v2461_v25 = vpop.f32.mrf.mxu1 }
 0x67a   : > { %v2464_v19 = vadd.f32 %v2461_v25, %v2437_v38  ;;  %v9084_v38 = vld [vmem:[%s14204_s7] sm:$0xff]  ;;  %v9085_v25 = vld [vmem:[%s14198_s1 + $0x98] sm:$0xf] }
 0x67b   : > { %7849 = vmatmul.msk.f32.gmra.mxu2 %vm785_vm1, %v9047_v39  ;;  %v2569_v49 = vpop.f32.mrf.mxu0 }
 0x67c   : > { %7863 = vmatmul.msk.f32.gmra.mxu0 %vm785_vm1, %v9048_v0 }
 0x67d   : > { %v2488_v24 = vpop.f32.mrf.mxu2 }
 0x67e   : > { %7854 = vmatmul.msk.f32.gmra.mxu3 %vm785_vm1, %v9047_v39  ;;  %v2491_v29 = vadd.f32 %v2488_v24, %v2464_v19  ;;  %v9086_v39 = vld [vmem:[%s14199_s2 + $0x90] sm:$0xff]  ;;  %v9087_v24 = vld [vmem:[%s14198_s1 + $0xa0] sm:$0xff] }
 0x67f   : > { %7858 = vmatmul.msk.f32.gmra.mxu1 %vm785_vm1, %v9048_v0 }
 0x680   : > { %v2515_v3 = vpop.f32.mrf.mxu3 }
 0x681   : > { %v2518_v42 = vadd.f32 %v2515_v3, %v2491_v29  ;;  %v9088_v29 = vld [vmem:[%s14199_s2 + $0x98] sm:$0xf] }
 0x683   : > { %7865 = vmatmul.msk.f32.vlgmr.msra.gmra.mxu2 %vm785_vm1, %v9049_v32 }
 0x684   : > { %7864 = vmatmul.msk.f32.gmra.mxu0 %vm785_vm1, %v9050_v17  ;;  %3586 = vmatpush.msra.mxu2 %v9051_v36 }
 0x685   : > { %v2542_v22 = vpop.f32.mrf.mxu1 }
 0x686   : > { %7870 = vmatmul.msk.f32.vlgmr.msra.gmra.mxu3 %vm785_vm1, %v9049_v32  ;;  %v2545_v33 = vadd.f32 %v2542_v22, %v2518_v42  ;;  %3587 = vmatpush.msra.mxu2 %v9052_v62  ;;  %v9089_v32 = vld [vmem:[%s14198_s1 + $0xa8] sm:$0xff]  ;;  %v9091_v62 = vld [vmem:[%s14198_s1 + $0xb0] sm:$0xff] }
 0x687   : > { %7859 = vmatmul.msk.f32.gmra.mxu1 %vm785_vm1, %v9050_v17  ;;  %3622 = vmatpush.msra.mxu3 %v9053_v30  ;;  %v9090_v17 = vld [vmem:[%s14199_s2 + $0xa0] sm:$0xff] }
 0x688   : > { %v2572_v56 = vadd.f32 %v2569_v49, %v2545_v33  ;;  %3588 = vmatpush.msra.mxu2 %v9054_v47  ;;  %v11124_v13 = vpop.f32.mrf.mxu2  ;;  %v11281_v33 = vpop.f32.mrf.mxu0  ;;  %v9092_v49 = vld [vmem:[%s14199_s2 + $0xa8] sm:$0xff] }
 0x689   : > { %3623 = vmatpush.msra.mxu3 %v9055_v63 }
 0x68a   : > { %v2576_v16 = vadd.f32 %v9011_v10, %v2572_v56  ;;  %3589 = vmatpush.msra.mxu2 %v9056_v14  ;;  %v9093_v56 = vld [vmem:[%s14198_s1 + $0xb8] sm:$0xff] }
 0x68b   : > { %7866 = vmatmul.msk.f32.gmra.mxu2 %vm785_vm1, %v9057_v45  ;;  %3624 = vmatpush.msra.mxu3 %v9058_v20  ;;  %v11279_v22 = vpop.f32.mrf.mxu3  ;;  %v9095_v20 = vld [vmem:[%s14198_s1 + $0xc0] sm:$0xf] }
 0x68c   : > { %v2577_v7 = vmax.f32 %v2576_v16, 0.0  ;;  %7880 = vmatmul.msk.f32.vlgmr.msra.gmra.mxu0 %vm785_vm1, %v9059_v60  ;;  %3590 = vmatpush.msra.mxu2 %v9060_v43  ;;  %v9094_v16 = vld [vmem:[%s14199_s2 + $0xb0] sm:$0xff] }
 0x68d   : > { %3625 = vmatpush.msra.mxu3 %v9061_v61 }
 0x68e   : > { %2579 = vst.msk [vmem:[#allocation2] sm:$0x3] %vm2578_vm11, %v2577_v7  ;;  %7871 = vmatmul.msk.f32.gmra.mxu3 %vm785_vm1, %v9057_v45  ;;  %3591 = vmatpush.msra.mxu2 %v9062_v50 }
 0x68f   : > { %7875 = vmatmul.msk.f32.vlgmr.msrb.gmra.mxu1 %vm785_vm1, %v9059_v60  ;;  %3626 = vmatpush.msra.mxu3 %v9063_v34  ;;  %v9096_v60 = vld [vmem:[%s14199_s2 + $0xb8] sm:$0xff] }
 0x690   : > { %v11158_v48 = vpop.f32.mrf.mxu1  ;;  %3592 = vmatpush.msra.mxu2 %v9064_v18  ;;  %v11309_v14 = vpop.f32.mrf.mxu0  ;;  %v9097_v18 = vld [vmem:[%s14199_s2 + $0xc0] sm:$0xf] }
 0x691   : > { %3627 = vmatpush.msra.mxu3 %v9065_v5 }
 0x692   : > { %3593 = vmatpush.msra.mxu2 %v9066_v46  ;;  %v11173_v26 = vpop.f32.mrf.mxu2 }
 0x693   : > { %7867 = vmatmul.msk.f32.gmra.mxu2 %vm785_vm1, %v9067_v15  ;;  %3628 = vmatpush.msra.mxu3 %v9068_v37 }
 0x694   : > { %7881 = vmatmul.msk.f32.gmra.mxu0 %vm785_vm1, %v9069_v55  ;;  %3594 = vmatpush.msra.mxu2 %v9070_v51 }
 0x695   : > { %3629 = vmatpush.msra.mxu3 %v9071_v4  ;;  %v11301_v47 = vpop.f32.mrf.mxu3 }
 0x696   : > { %7872 = vmatmul.msk.f32.gmra.mxu3 %vm785_vm1, %v9067_v15  ;;  %3595 = vmatpush.msra.mxu2 %v9072_v2 }
 0x697   : > { %7876 = vmatmul.msk.f32.gmra.mxu1 %vm785_vm1, %v9069_v55  ;;  %3630 = vmatpush.msra.mxu3 %v9073_v54 }
 0x698   : > { %3596 = vmatpush.msra.mxu2 %v9074_v6 }
 0x699   : > { %v11199_v9 = vpop.f32.mrf.mxu1  ;;  %3631 = vmatpush.msra.mxu3 %v9075_v53 }
 0x69a   : > { %3597 = vmatpush.msra.mxu2 %v9076_v8  ;;  %v11330_v50 = vpop.f32.mrf.mxu0 }
 0x69b   : > { %7868 = vmatmul.msk.f32.gmra.mxu2 %vm785_vm1, %v9077_v12  ;;  %3632 = vmatpush.msra.mxu3 %v9078_v31  ;;  %14283 = vst [vmem:[#allocation5_spill] sm:$0xff] %v11330_v50 }
 0x69c   : > { %7882 = vmatmul.msk.f32.gmra.mxu0 %vm785_vm1, %v9079_v59  ;;  %3598 = vmatpush.msra.mxu2 %v9080_v11 }
 0x69d   : > { %v11221_v35 = vpop.f32.mrf.mxu2  ;;  %3633 = vmatpush.msra.mxu3 %v9081_v21 }
 0x69e   : > { %7873 = vmatmul.msk.f32.gmra.mxu3 %vm785_vm1, %v9077_v12  ;;  %3599 = vmatpush.msra.mxu2 %v9082_v23 }
 0x69f   : > { %7877 = vmatmul.msk.f32.gmra.mxu1 %vm785_vm1, %v9079_v59  ;;  %v11325_v43 = vpop.f32.mrf.mxu3 }
 0x6a0   : > { %3600 = vmatpush.msra.mxu2 %v9083_v40  ;;  %14282 = vst [vmem:[#allocation12_spill] sm:$0xff] %v11325_v43 }
 0x6a1   : > { %v11234_v58 = vpop.f32.mrf.mxu1 }
 0x6a2   : > { %3601 = vmatpush.msra.mxu2 %v9084_v38  ;;  %v11344_v15 = vpop.f32.mrf.mxu0 }
 0x6a3   : > { %7869 = vmatmul.msk.f32.gmra.mxu2 %vm785_vm1, %v9085_v25  ;;  %14285 = vst [vmem:[#allocation13_spill] sm:$0xff] %v11344_v15 }
 0x6a4   : > { %7883 = vmatmul.msk.f32.gmra.mxu0 %vm785_vm1, %v9086_v39 }
 0x6a5   : > { %v11247_v0 = vpop.f32.mrf.mxu2 }
 0x6a6   : > { %7874 = vmatmul.msk.f32.gmra.mxu3 %vm785_vm1, %v9085_v25 }
 0x6a7   : > { %7878 = vmatmul.msk.f32.gmra.mxu1 %vm785_vm1, %v9086_v39  ;;  %v11342_v46 = vpop.f32.mrf.mxu3 }
 0x6a8   : > { %14284 = vst [vmem:[#allocation6_spill] sm:$0xff] %v11342_v46  ;;  %v2747_v46 = vadd.f32 %v11158_v48, %v11124_v13 }
 0x6a9   : > { %v11251_v19 = vpop.f32.mrf.mxu1 }
 0x6aa   : > { %v11350_v4 = vpop.f32.mrf.mxu0 }
 0x6ab   : > { %7885 = vmatmul.msk.f32.vlgmr.msrb.gmra.mxu2 %vm785_vm1, %v9087_v24  ;;  %14287 = vst [vmem:[#allocation7_spill] sm:$0xff] %v11350_v4 }
 0x6ac   : > { %7884 = vmatmul.msk.f32.gmra.mxu0 %vm785_vm1, %v9088_v29 }
 0x6ad   : > { %v11261_v3 = vpop.f32.mrf.mxu2 }
 0x6ae   : > { %7890 = vmatmul.msk.f32.vlgmr.msrb.gmra.mxu3 %vm785_vm1, %v9087_v24 }
 0x6af   : > { %7879 = vmatmul.msk.f32.gmra.mxu1 %vm785_vm1, %v9088_v29  ;;  %v11348_v51 = vpop.f32.mrf.mxu3 }
 0x6b0   : > { %14286 = vst [vmem:[#allocation14_spill] sm:$0xff] %v11348_v51 }
 0x6b1   : > { %v11265_v42 = vpop.f32.mrf.mxu1 }
 0x6b2   : > { %v11354_v8 = vpop.f32.mrf.mxu0 }
 0x6b3   : > { %7886 = vmatmul.msk.f32.gmra.mxu2 %vm785_vm1, %v9089_v32 }
 0x6b4   : > { %7900 = vmatmul.msk.f32.vlgmr.msrb.gmra.mxu0 %vm785_vm1, %v9090_v17 }
 0x6b5   : > { %v11275_v36 = vpop.f32.mrf.mxu2 }
 0x6b6   : > { %7891 = vmatmul.msk.f32.gmra.mxu3 %vm785_vm1, %v9089_v32 }
 0x6b7   : > { %7895 = vmatmul.msk.f32.vlgmr.msra.gmra.mxu1 %vm785_vm1, %v9090_v17  ;;  %v11352_v6 = vpop.f32.mrf.mxu3 }
 0x6bb   : > { %v11283_v10 = vpop.f32.mrf.mxu1  ;;  %7887 = vmatmul.msk.f32.gmra.mxu2 %vm785_vm1, %v9091_v62  ;;  %v11360_v21 = vpop.f32.mrf.mxu0 }
 0x6bc   : > { %7901 = vmatmul.msk.f32.gmra.mxu0 %vm785_vm1, %v9092_v49 }
 0x6be   : > { %7892 = vmatmul.msk.f32.gmra.mxu3 %vm785_vm1, %v9091_v62  ;;  %v11294_v30 = vpop.f32.mrf.mxu2 }
 0x6bf   : > { %7896 = vmatmul.msk.f32.gmra.mxu1 %vm785_vm1, %v9092_v49 }
 0x6c0   : > { %v11356_v59 = vpop.f32.mrf.mxu3 }
 0x6c3   : > { %7888 = vmatmul.msk.f32.gmra.mxu2 %vm785_vm1, %v9093_v56  ;;  %v11368_v25 = vpop.f32.mrf.mxu0 }
 0x6c4   : > { %v11303_v63 = vpop.f32.mrf.mxu1  ;;  %7902 = vmatmul.msk.f32.gmra.mxu0 %vm785_vm1, %v9094_v16  ;;  %14289 = vst [vmem:[#allocation17_spill] sm:$0xff] %v11368_v25 }
 0x6c5   : > { %v2878_v13 = vadd.f32 %v11303_v63, %v11294_v30 }
 0x6c6   : > { %7893 = vmatmul.msk.f32.gmra.mxu3 %vm785_vm1, %v9093_v56  ;;  %v11312_v45 = vpop.f32.mrf.mxu2 }
 0x6c7   : > { %7897 = vmatmul.msk.f32.gmra.mxu1 %vm785_vm1, %v9094_v16 }
 0x6c8   : > { %v11366_v38 = vpop.f32.mrf.mxu3 }
 0x6c9   : > { %14288 = vst [vmem:[#allocation8_spill] sm:$0xff] %v11366_v38 }
 0x6cb   : > { %7889 = vmatmul.msk.f32.gmra.mxu2 %vm785_vm1, %v9095_v20  ;;  %v11374_v32 = vpop.f32.mrf.mxu0 }
 0x6cc   : > { %v11319_v7 = vpop.f32.mrf.mxu1  ;;  %7903 = vmatmul.msk.f32.gmra.mxu0 %vm785_vm1, %v9096_v60  ;;  %14291 = vst [vmem:[#allocation19_spill] sm:$0xff] %v11374_v32  ;;  %v2875_v32 = vadd.f32 %v11283_v10, %v11275_v36 }
 0x6ce   : > { %7894 = vmatmul.msk.f32.gmra.mxu3 %vm785_vm1, %v9095_v20  ;;  %v11328_v61 = vpop.f32.mrf.mxu2 }
 0x6cf   : > { %7898 = vmatmul.msk.f32.gmra.mxu1 %vm785_vm1, %v9096_v60 }
 0x6d0   : > { %v11372_v29 = vpop.f32.mrf.mxu3 }
 0x6d1   : > { %14290 = vst [vmem:[#allocation18_spill] sm:$0xff] %v11372_v29 }
 0x6d3   : > { %v11378_v16 = vpop.f32.mrf.mxu0 }
 0x6d4   : > { %v11333_v34 = vpop.f32.mrf.mxu1  ;;  %7904 = vmatmul.msk.f32.gmra.mxu0 %vm785_vm1, %v9097_v18  ;;  %14293 = vst [vmem:[#allocation21_spill] sm:$0xff] %v11378_v16 }
 0x6d6   : > { %v11339_v5 = vpop.f32.mrf.mxu2 }
 0x6d7   : > { %7899 = vmatmul.msk.f32.gmra.mxu1 %vm785_vm1, %v9097_v18 }
 0x6d8   : > { %v11376_v49 = vpop.f32.mrf.mxu3 }
 0x6d9   : > { %14292 = vst [vmem:[#allocation20_spill] sm:$0xff] %v11376_v49 }
 0x6db   : > { %v11382_v28 = vpop.f32.mrf.mxu0 }
 0x6dc   : > { %v11346_v37 = vpop.f32.mrf.mxu1  ;;  %14295 = vst [vmem:[#allocation23_spill] sm:$0xff] %v11382_v28  ;;  %v2750_v28 = vadd.f32 %v11199_v9, %v11173_v26  ;;  %v2753_v9 = vadd.f32 %v11234_v58, %v11221_v35  ;;  %v2756_v35 = vadd.f32 %v11251_v19, %v11247_v0  ;;  %v2884_v58 = vadd.f32 %v11333_v34, %v11328_v61 }
 0x6dd   : > { %v2759_v19 = vadd.f32 %v11265_v42, %v11261_v3  ;;  %v2887_v61 = vadd.f32 %v11346_v37, %v11339_v5 }
 0x6de   : > { %v2980_v55 = vpop.f32.mrf.mxu2 }
 0x6df   : > { %v3027_v29 = vadd.f32 %v2980_v55, %v2747_v46 }
 0x6e0   : > { %v11380_v18 = vpop.f32.mrf.mxu3 }
 0x6e1   : > { %14294 = vst [vmem:[#allocation22_spill] sm:$0xff] %v11380_v18 }
 0x6e4   : > { %v3054_v2 = vpop.f32.mrf.mxu1 }
 0x6e5   : > { %v3101_v50 = vadd.f32 %v3054_v2, %v2875_v32 }
 0x6e6   : > { %v2983_v54 = vpop.f32.mrf.mxu2 }
 0x6e7   : > { %v3029_v36 = vadd.f32 %v2983_v54, %v2750_v28  ;;  %v2881_v28 = vadd.f32 %v11319_v7, %v11312_v45 }
 0x6e9   : > { %v11386_v27 = vpop.f32.mrf.mxu3  ;;  %v11388_v57 = vpop.f32.mrf.mxu0 }
 0x6ec   : > { %v3057_v53 = vpop.f32.mrf.mxu1 }
 0x6ed   : > { %v3103_v10 = vadd.f32 %v3057_v53, %v2878_v13 }
 0x6ee   : > { %v2986_v12 = vpop.f32.mrf.mxu2 }
 0x6ef   : > { %v3031_v63 = vadd.f32 %v2986_v12, %v2753_v9 }
 0x6f1   : > { %v11396_v43 = vpop.f32.mrf.mxu3  ;;  %v11398_v25 = vpop.f32.mrf.mxu0 }
 0x6f4   : > { %v3060_v31 = vpop.f32.mrf.mxu1 }
 0x6f5   : > { %v3105_v54 = vadd.f32 %v3060_v31, %v2881_v28 }
 0x6f6   : > { %v11358_v11 = vpop.f32.mrf.mxu2 }
 0x6f7   : > { %v3033_v31 = vadd.f32 %v11358_v11, %v2756_v35 }
 0x6fc   : > { %v11362_v23 = vpop.f32.mrf.mxu1 }
 0x6fe   : > { %v11364_v40 = vpop.f32.mrf.mxu2 }
 0x6ff   : > { %v3035_v11 = vadd.f32 %v11364_v40, %v2759_v19 }
 0x704   : > { %v11370_v39 = vpop.f32.mrf.mxu1 }
 0x706   : > { %v3170_v24 = vpop.f32.mrf.mxu2 }
 0x707   : > { %v3217_v38 = vadd.f32 %v3170_v24, %v3027_v29 }
 0x70c   : > { %v3244_v17 = vpop.f32.mrf.mxu1 }
 0x70d   : > { %v3291_v4 = vadd.f32 %v3244_v17, %v3101_v50  ;;  %v11408_v50 = vpop.f32.mrf.mxu3 }
 0x70e   : > { %v3173_v62 = vpop.f32.mrf.mxu2 }
 0x70f   : > { %v3219_v46 = vadd.f32 %v3173_v62, %v3029_v36  ;;  %v3107_v62 = vadd.f32 %v11362_v23, %v2884_v58  ;;  %v3109_v23 = vadd.f32 %v11370_v39, %v2887_v61  ;;  %v2907_v58 = vadd.f32 %v11354_v8, %v11352_v6 }
 0x714   : > { %v3247_v56 = vpop.f32.mrf.mxu1 }
 0x715   : > { %v3293_v55 = vadd.f32 %v3247_v56, %v3103_v10  ;;  %v11420_v17 = vpop.f32.mrf.mxu3 }
 0x716   : > { %v3176_v20 = vpop.f32.mrf.mxu2 }
 0x717   : > { %v3221_v53 = vadd.f32 %v3176_v20, %v3031_v63 }
 0x71c   : > { %v3250_v60 = vpop.f32.mrf.mxu1 }
 0x71e   : > { %v3179_v52 = vpop.f32.mrf.mxu2 }
 0x724   : > { %v3253_v1 = vpop.f32.mrf.mxu1 }
 0x725   : > { %v3297_v56 = vadd.f32 %v3253_v1, %v3107_v62 }
 0x726   : > { %v11384_v44 = vpop.f32.mrf.mxu2 }
 0x72c   : > { %v11390_v41 = vpop.f32.mrf.mxu1 }
 0x72d   : > { %v3299_v3 = vadd.f32 %v11390_v41, %v3109_v23 }
 0x72e   : > { %v3360_v15 = vpop.f32.mrf.mxu2 }
 0x72f   : > { %v3407_v16 = vadd.f32 %v3360_v15, %v3217_v38  ;;  %v3295_v38 = vadd.f32 %v3250_v60, %v3105_v54  ;;  %v3202_v60 = vpop.f32.mrf.mxu3 }
 0x734   : > { %v3434_v51 = vpop.f32.mrf.mxu1 }
 0x735   : > { %v3481_v49 = vadd.f32 %v3434_v51, %v3291_v4  ;;  %v11410_v51 = vpop.f32.mrf.mxu0 }
 0x736   : > { %v3363_v18 = vpop.f32.mrf.mxu2 }
 0x737   : > { %v11404_v48 = vmax.f32 %v3407_v16, %v3481_v49  ;;  %v3409_v4 = vadd.f32 %v3363_v18, %v3219_v46  ;;  %v3223_v49 = vadd.f32 %v3179_v52, %v3033_v31  ;;  %v3225_v52 = vadd.f32 %v11384_v44, %v3035_v11  ;;  %v3205_v40 = vpop.f32.mrf.mxu3 }
 0x739   : > { %3501 = vrot.lane.b32.xlu1 %v11404_v48, %s14277_s20 }
 0x73c   : > { %v3437_v15 = vpop.f32.mrf.mxu1 }
 0x73d   : > { %v3483_v2 = vadd.f32 %v3437_v15, %v3293_v55  ;;  %v11426_v45 = vpop.f32.mrf.mxu0 }
 0x73e   : > { %v3366_v26 = vpop.f32.mrf.mxu2 }
 0x73f   : > { %v11416_v30 = vmax.f32 %v3409_v4, %v3483_v2  ;;  %v3411_v29 = vadd.f32 %v3366_v26, %v3221_v53  ;;  %v3208_v36 = vpop.f32.mrf.mxu3  ;;  %v2910_v2 = vadd.f32 %v11360_v21, %v11356_v59  ;;  %v2782_v26 = vadd.f32 %v11309_v14, %v11301_v47  ;;  %v14298_v21 = vld [vmem:[#allocation22_spill] sm:$0xff] }
 0x740   : > { %v2779_v47 = vadd.f32 %v11281_v33, %v11279_v22 }
 0x741   : > { %3503 = vrot.lane.b32.xlu2 %v11416_v30, %s14277_s20  ;;  %v3104_v63 = vadd.f32 %v11388_v57, %v2910_v2  ;;  %v3030_v54 = vadd.f32 %v11386_v27, %v2782_v26  ;;  %v14297_v27 = vld [vmem:[#allocation23_spill] sm:$0xff]  ;;  %v14306_v2 = vld [vmem:[#allocation5_spill] sm:$0xff] }
 0x742   : > { %v3102_v14 = vadd.f32 %v14297_v27, %v2907_v58  ;;  %v3028_v31 = vadd.f32 %v14298_v21, %v2779_v47 }
 0x744   : > { %v3440_v24 = vpop.f32.mrf.mxu1  ;;  %v3218_v61 = vadd.f32 %v3202_v60, %v3028_v31 }
 0x745   : > { %v3485_v32 = vadd.f32 %v3440_v24, %v3295_v38  ;;  %v3276_v18 = vpop.f32.mrf.mxu0  ;;  %v3220_v38 = vadd.f32 %v3205_v40, %v3030_v54 }
 0x746   : > { %v3369_v12 = vpop.f32.mrf.mxu2  ;;  %v3292_v8 = vadd.f32 %v3276_v18, %v3102_v14 }
 0x747   : > { %v11428_v7 = vmax.f32 %v3411_v29, %v3485_v32  ;;  %v3413_v20 = vadd.f32 %v3369_v12, %v3223_v49  ;;  %v11454_v46 = vpop.f32.mrf.mxu3 }
 0x749   : > { %3505 = vrot.lane.b32.xlu0 %v11428_v7, %s14277_s20 }
 0x74c   : > { %v3443_v16 = vpop.f32.mrf.mxu1 }
 0x74d   : > { %v3487_v0 = vadd.f32 %v3443_v16, %v3297_v56  ;;  %v3279_v39 = vpop.f32.mrf.mxu0  ;;  %v14299_v56 = vld [vmem:[#allocation20_spill] sm:$0xff]  ;;  %v14300_v16 = vld [vmem:[#allocation21_spill] sm:$0xff] }
 0x74e   : > { %v3372_v1 = vpop.f32.mrf.mxu2  ;;  %v3294_v53 = vadd.f32 %v3279_v39, %v3104_v63  ;;  %v2919_v6 = vadd.f32 %v14300_v16, %v14299_v56  ;;  %v14305_v39 = vld [vmem:[#allocation12_spill] sm:$0xff] }
 0x74f   : > { %v11438_v34 = vmax.f32 %v3413_v20, %v3487_v0  ;;  %v3415_v5 = vadd.f32 %v3372_v1, %v3225_v52  ;;  %v3214_v41 = vpop.f32.mrf.mxu3  ;;  %v14301_v20 = vld [vmem:[#allocation14_spill] sm:$0xff]  ;;  %v14302_v0 = vld [vmem:[#allocation7_spill] sm:$0xff]  ;;  %v14303_v1 = vld [vmem:[#allocation8_spill] sm:$0xff]  ;;  %v2785_v60 = vadd.f32 %v14306_v2, %v14305_v39 }
 0x750   : > { %v2791_v19 = vadd.f32 %v14302_v0, %v14301_v20  ;;  %v3110_v22 = vadd.f32 %v11426_v45, %v2919_v6  ;;  %v14304_v52 = vld [vmem:[#allocation17_spill] sm:$0xff] }
 0x751   : > { %3526 = vrot.lane.b32.xlu0 %v11404_v48, %s14296_s23  ;;  %3507 = vrot.lane.b32.xlu1 %v11438_v34, %s14277_s20 }
 0x752   : > { %v3036_v23 = vadd.f32 %v11420_v17, %v2791_v19 }
 0x754   : > { %v3446_v42 = vpop.f32.mrf.mxu1  ;;  %v3226_v26 = vadd.f32 %v3214_v41, %v3036_v23 }
 0x755   : > { %v3489_v37 = vadd.f32 %v3446_v42, %v3299_v3  ;;  %v3282_v10 = vpop.f32.mrf.mxu0  ;;  %v2913_v3 = vadd.f32 %v14304_v52, %v14303_v1 }
 0x757   : > { %v11448_v13 = vmax.f32 %v3415_v5, %v3489_v37  ;;  %v3392_v15 = vpop.f32.mrf.mxu3  ;;  %v3106_v45 = vadd.f32 %v11398_v25, %v2913_v3 }
 0x758   : > { %v3408_v33 = vadd.f32 %v3392_v15, %v3218_v61 }
 0x759   : > { %3509 = vrot.lane.b32.xlu2 %v11448_v13, %s14277_s20  ;;  %v3296_v54 = vadd.f32 %v3282_v10, %v3106_v45 }
 0x75d   : > { %v11456_v44 = vpop.f32.mrf.mxu0 }
 0x75f   : > { %v3395_v9 = vpop.f32.mrf.mxu3 }
 0x760   : > { %v3410_v24 = vadd.f32 %v3395_v9, %v3220_v38 }
 0x761   : > { %3530 = vrot.lane.b32.xlu2 %v11416_v30, %s14296_s23 }
 0x765   : > { %v3288_v55 = vpop.f32.mrf.mxu0 }
 0x766   : > { %v3300_v42 = vadd.f32 %v3288_v55, %v3110_v22  ;;  %v14308_v55 = vld [vmem:[#allocation19_spill] sm:$0xff] }
 0x767   : > { %v3398_v32 = vpop.f32.mrf.mxu3 }
 0x76d   : > { %v3466_v4 = vpop.f32.mrf.mxu0 }
 0x76e   : > { %v3482_v11 = vadd.f32 %v3466_v4, %v3292_v8  ;;  %v3032_v4 = vadd.f32 %v11396_v43, %v2785_v60 }
 0x76f   : > { %v3401_v62 = vpop.f32.mrf.mxu3 }
 0x770   : > { %v3492_v5 = vmax.f32 %v3408_v33, %v3482_v11  ;;  %v3222_v41 = vadd.f32 %v3208_v36, %v3032_v4 }
 0x772   : > { %v3412_v43 = vadd.f32 %v3398_v32, %v3222_v41 }
 0x775   : > { %v3469_v28 = vpop.f32.mrf.mxu0 }
 0x776   : > { %v3484_v29 = vadd.f32 %v3469_v28, %v3294_v53  ;;  %v14307_v28 = vld [vmem:[#allocation18_spill] sm:$0xff] }
 0x777   : > { %v3404_v37 = vpop.f32.mrf.mxu3  ;;  %v2916_v63 = vadd.f32 %v14308_v55, %v14307_v28 }
 0x778   : > { %v11466_v12 = vmax.f32 %v3410_v24, %v3484_v29  ;;  %v3416_v15 = vadd.f32 %v3404_v37, %v3226_v26  ;;  %v14309_v24 = vld [vmem:[#allocation6_spill] sm:$0xff]  ;;  %v14310_v29 = vld [vmem:[#allocation13_spill] sm:$0xff]  ;;  %v14312_v26 = vld [vmem:[#allocation4_spill] sm:$0xff] }
 0x779   : > { %v2788_v58 = vadd.f32 %v14310_v29, %v14309_v24  ;;  %v3108_v25 = vadd.f32 %v11410_v51, %v2916_v63  ;;  %v14314_v24 = vld [vmem:[#allocation10_spill] sm:$0xff] }
 0x77b   : > { %v3298_v10 = vadd.f32 %v11456_v44, %v3108_v25 }
 0x77d   : > { %v3472_v35 = vpop.f32.mrf.mxu0 }
 0x77e   : > { %v3486_v47 = vadd.f32 %v3472_v35, %v3296_v54 }
 0x780   : > { %v3496_v27 = vmax.f32 %v3412_v43, %v3486_v47  ;;  %v14315_v47 = vld [vmem:[#allocation16_spill] sm:$0xff] }
 0x785   : > { %v3475_v49 = vpop.f32.mrf.mxu0 }
 0x786   : > { %v3488_v56 = vadd.f32 %v3475_v49, %v3298_v10 }
 0x78d   : > { %v3478_v18 = vpop.f32.mrf.mxu0 }
 0x78e   : > { %v3490_v17 = vadd.f32 %v3478_v18, %v3300_v42 }
 0x790   : > { %v3500_v53 = vmax.f32 %v3416_v15, %v3490_v17 }
 0x79b   : > { %v3504_v59 = vpop.permute.xlu2 %3503 }
 0x79c   : > { %v3512_v57 = vsel %vm711_vm0, %v3504_v59, %v11466_v12 }
 0x79d   : > { %3532 = vrot.lane.b32.xlu0 %v3512_v57, %s14296_s23  ;;  %v3034_v57 = vadd.f32 %v11408_v50, %v2788_v58 }
 0x79f   : > { %v3224_v21 = vadd.f32 %v11454_v46, %v3034_v57 }
 0x7a1   : > { %v3414_v31 = vadd.f32 %v3401_v62, %v3224_v21  ;;  %v9098_v21 = vld [vmem:[%s14201_s4] sm:$0xff] }
 0x7a3   : > { %v3498_v16 = vmax.f32 %v3414_v31, %v3488_v56  ;;  %v9100_v31 = vld [vmem:[%s14202_s5] sm:$0xff]  ;;  %v9101_v56 = vld [vmem:[%s14202_s5 + $0x8] sm:$0xff] }
 0x7a5   : > { %3538 = vrot.lane.b32.xlu0 %v11438_v34, %s14296_s23 }
 0x7ab   : > { %v3502_v40 = vpop.permute.xlu1 %3501 }
 0x7ac   : > { %v3511_v9 = vsel %vm711_vm0, %v3502_v40, %v3492_v5  ;;  %v14311_v40 = vld [vmem:[#allocation3_spill] sm:$0xff] }
 0x7ad   : > { %3528 = vrot.lane.b32.xlu1 %v3511_v9, %s14296_s23 }
 0x7b3   : > { %v3510_v38 = vpop.permute.xlu2 %3509 }
 0x7b4   : > { %v3515_v59 = vsel %vm711_vm0, %v3510_v38, %v3500_v53 }
 0x7b5   : > { %3534 = vrot.lane.b32.xlu1 %v11428_v7, %s14296_s23  ;;  %3544 = vrot.lane.b32.xlu0 %v3515_v59, %s14296_s23 }
 0x7bb   : > { %v3506_v14 = vpop.permute.xlu0 %3505  ;;  %v3531_v49 = vpop.permute.xlu2 %3530 }
 0x7bc   : > { %v3513_v36 = vsel %vm711_vm0, %v3506_v14, %v3496_v27 }
 0x7bd   : > { %3536 = vrot.lane.b32.xlu2 %v3513_v36, %s14296_s23  ;;  %v9099_v36 = vld [vmem:[%s14201_s4 + $0x8] sm:$0xff] }
 0x7c3   : > { %v3508_v6 = vpop.permute.xlu1 %3507  ;;  %v3527_v50 = vpop.permute.xlu0 %3526 }
 0x7c4   : > { %v3514_v51 = vsel %vm711_vm0, %v3508_v6, %v3498_v16 }
 0x7c5   : > { %3540 = vrot.lane.b32.xlu1 %v3514_v51, %s14296_s23  ;;  %3542 = vrot.lane.b32.xlu2 %v11448_v13, %s14296_s23 }
 0x80f   : > { %v3533_v62 = vpop.permute.xlu0 %3532 }
 0x810   : > { %v3547_v8 = vsel %vm766_vm2, %v3531_v49, %v3533_v62  ;;  %v3564_v20 = vmax.f32 %v11466_v12, %v3533_v62 }
 0x811   : > { %v3563_v0 = vmax.f32 %v11416_v30, %v3547_v8 }
 0x817   : > { %v3537_v61 = vpop.permute.xlu2 %3536  ;;  %v3539_v11 = vpop.permute.xlu0 %3538 }
 0x818   : > { %v3566_v33 = vmax.f32 %v3496_v27, %v3537_v61 }
 0x81f   : > { %v3529_v44 = vpop.permute.xlu1 %3528  ;;  %v3543_v3 = vpop.permute.xlu2 %3542 }
 0x820   : > { %v3546_v32 = vsel %vm766_vm2, %v3527_v50, %v3529_v44  ;;  %v3562_v46 = vmax.f32 %v3492_v5, %v3529_v44 }
 0x821   : > { %v3561_v35 = vmax.f32 %v11404_v48, %v3546_v32 }
 0x822   : > { %7905 = vmatmul.msk.f32.vlgmr.msra.gmra.mxu3 %vm1870_vm6, %v3562_v46 }
 0x823   : > { %3602 = vmatmul.f32.vlgmr.msra.gmra.mxu2 %v3561_v35 }
 0x827   : > { %v3535_v19 = vpop.permute.xlu1 %3534  ;;  %v3545_v52 = vpop.permute.xlu0 %3544 }
 0x828   : > { %v3548_v22 = vsel %vm766_vm2, %v3535_v19, %v3537_v61  ;;  %v3550_v42 = vsel %vm766_vm2, %v3543_v3, %v3545_v52  ;;  %v3570_v5 = vmax.f32 %v3500_v53, %v3545_v52 }
 0x829   : > { %v3565_v48 = vmax.f32 %v11428_v7, %v3548_v22  ;;  %v3569_v7 = vmax.f32 %v11448_v13, %v3550_v42  ;;  %v14313_v13 = vld [vmem:[#allocation9_spill] sm:$0xff] }
 0x82a   : > { %7906 = vmatmul.msk.f32.gmra.mxu3 %vm1870_vm6, %v3564_v20 }
 0x82b   : > { %3605 = vmatmul.f32.gmra.mxu2 %v3563_v0  ;;  %v9102_v0 = vld [vmem:[%s14201_s4 + $0x10] sm:$0xff] }
 0x832   : > { %7907 = vmatmul.msk.f32.gmra.mxu3 %vm1870_vm6, %v3566_v33 }
 0x833   : > { %3608 = vmatmul.f32.gmra.mxu2 %v3565_v48 }
 0x837   : > { %v3541_v23 = vpop.permute.xlu1 %3540 }
 0x838   : > { %v3549_v1 = vsel %vm766_vm2, %v3539_v11, %v3541_v23  ;;  %v3568_v12 = vmax.f32 %v3498_v16, %v3541_v23  ;;  %v9103_v23 = vld [vmem:[%s14201_s4 + $0x18] sm:$0xff] }
 0x839   : > { %v3567_v30 = vmax.f32 %v11438_v34, %v3549_v1  ;;  %v9104_v1 = vld [vmem:[%s14202_s5 + $0x20] sm:$0xff] }
 0x83a   : > { %7908 = vmatmul.msk.f32.gmra.mxu3 %vm1870_vm6, %v3568_v12 }
 0x83b   : > { %3611 = vmatmul.f32.gmra.mxu2 %v3567_v30 }
 0x842   : > { %7909 = vmatmul.msk.f32.gmra.mxu3 %vm1870_vm6, %v3570_v5 }
 0x843   : > { %3614 = vmatmul.f32.gmra.mxu2 %v3569_v7  ;;  %v9105_v7 = vld [vmem:[%s14202_s5 + $0x10] sm:$0xff] }
 0x8a5   : > { %v3635_v37 = vpop.f32.mrf.mxu3 }
 0x8a6   : > { %v3603_v18 = vpop.f32.mrf.mxu2 }
 0x8a7   : > { %v3604_v39 = vadd.f32 %v3603_v18, %v14311_v40  ;;  %v9106_v18 = vld [vmem:[%s14202_s5 + $0x28] sm:$0xff] }
 0x8a9   : > { %v3636_v34 = vadd.f32 %v3635_v37, %v3604_v39 }
 0x8ab   : > { %v3650_v15 = vmax.f32 %v3636_v34, 0.0 }
 0x8ad   : > { %v3638_v2 = vpop.f32.mrf.mxu3 }
 0x8ae   : > { %v3606_v60 = vpop.f32.mrf.mxu2 }
 0x8af   : > { %v3607_v9 = vadd.f32 %v3606_v60, %v14312_v26  ;;  %v9108_v60 = vld [vmem:[%s14201_s4 + $0x30] sm:$0xff] }
 0x8b1   : > { %v3639_v45 = vadd.f32 %v3638_v2, %v3607_v9  ;;  %v9107_v2 = vld [vmem:[%s14202_s5 + $0x30] sm:$0xff]  ;;  %v9109_v9 = vld [vmem:[%s14205_s8 + $0x78] sm:$0xff] }
 0x8b3   : > { %v3651_v17 = vmax.f32 %v3639_v45, 0.0  ;;  %v9110_v45 = vld [vmem:[%s14206_s9 + $0xa0] sm:$0x1f] }
 0x8b5   : > { %v3641_v4 = vpop.f32.mrf.mxu3  ;;  %v8626_v28 = vpack.i.bf16 %v3650_v15, %v3651_v17 }
 0x8b6   : > { %v3609_v55 = vpop.f32.mrf.mxu2 }
 0x8b7   : > { %8627 = vrot.lane.b32.xlu0 %v8626_v28, %s14296_s23  ;;  %v3610_v63 = vadd.f32 %v3609_v55, %v14313_v13  ;;  %v9114_v55 = vld [vmem:[%s14202_s5 + $0x40] sm:$0xff] }
 0x8b9   : > { %v3642_v38 = vadd.f32 %v3641_v4, %v3610_v63  ;;  %v9112_v4 = vld [vmem:[%s14206_s9 + $0x98] sm:$0xff]  ;;  %v9115_v63 = vld [vmem:[%s14205_s8 + $0x68] sm:$0xff] }
 0x8bb   : > { %v3652_v41 = vmax.f32 %v3642_v38, 0.0  ;;  %v9118_v38 = vld [vmem:[%s14201_s4 + $0x38] sm:$0xff] }
 0x8bd   : > { %v3644_v54 = vpop.f32.mrf.mxu3 }
 0x8be   : > { %v3612_v53 = vpop.f32.mrf.mxu2 }
 0x8bf   : > { %v3613_v29 = vadd.f32 %v3612_v53, %v14314_v24  ;;  %8637 = vrot.lane.b32.xlu0 %v8626_v28, %s14279_s28  ;;  %v9117_v53 = vld [vmem:[%s14202_s5 + $0x38] sm:$0xff] }
 0x8c1   : > { %v3645_v58 = vadd.f32 %v3644_v54, %v3613_v29  ;;  %v9116_v54 = vld [vmem:[%s14206_s9 + $0xd8] sm:$0x1f]  ;;  %v9119_v29 = vld [vmem:[%s14206_s9 + $0xd0] sm:$0xff] }
 0x8c3   : > { %v3653_v59 = vmax.f32 %v3645_v58, 0.0  ;;  %v9120_v58 = vld [vmem:[%s14205_s8 + $0x60] sm:$0xff] }
 0x8c5   : > { %v8621_v25 = vpack.i.bf16 %v3652_v41, %v3653_v59  ;;  %v3647_v10 = vpop.f32.mrf.mxu3 }
 0x8c6   : > { %v3615_v43 = vpop.f32.mrf.mxu2 }
 0x8c7   : > { %v3616_v57 = vadd.f32 %v3615_v43, %v14315_v47  ;;  %8622 = vrot.lane.b32.xlu2 %v8621_v25, %s14296_s23  ;;  %v9124_v43 = vld [vmem:[%s14206_s9 + $0x88] sm:$0xff] }
 0x8c9   : > { %v3648_v27 = vadd.f32 %v3647_v10, %v3616_v57  ;;  %v9125_v57 = vld [vmem:[%s14201_s4 + $0x20] sm:$0xff] }
 0x8ca   : > { %v9126_v10 = vld [vmem:[%s14206_s9 + $0xc0] sm:$0xff] }
 0x8cb   : > { %v3654_v14 = vmax.f32 %v3648_v27, 0.0  ;;  %v9127_v27 = vld [vmem:[%s14202_s5 + $0x48] sm:$0xff] }
 0x8cd   : > { %3897 = vrot.lane.b32.xlu0 %v3654_v14, %s14276_s17  ;;  %3663 = vrot.lane.b32.xlu1 %v3654_v14, %s14296_s23 }
 0x8ce   : > { %7913 = vmatpush.msk.msra.mxu0 %vm1972_vm7, %v3654_v14 }
 0x8cf   : > { %8632 = vrot.lane.b32.xlu2 %v8621_v25, %s14279_s28 }
 0x8d0   : > { %3706 = vmatpush.msra.mxu0 %v3653_v59 }
 0x8d2   : > { %3707 = vmatpush.msra.mxu0 %v3652_v41 }
 0x8d4   : > { %3708 = vmatpush.msra.mxu0 %v3651_v17 }
 0x8d5   : > { %8657 = vrot.lane.b32.xlu0 %v8626_v28, %s14276_s17  ;;  %3771 = vrot.lane.b32.xlu1 %v3654_v14, %s14279_s28 }
 0x8d6   : > { %3709 = vmatpush.msra.mxu0 %v3650_v15 }
 0x8d7   : > { %8642 = vrot.lane.b32.xlu2 %v8621_v25, %s14275_s16  ;;  %7914 = vmatmul.msk.f32.vlgmr.msra.gmra.mxu0 %vm1965_vm8, %v9098_v21  ;;  %v9129_v21 = vld [vmem:[%s14206_s9 + $0x30] sm:$0x1f] }
 0x8d8   : > { %7919 = vmatpush.msk.msrb.mxu0 %vm1972_vm7, %v3654_v14 }
 0x8da   : > { %3752 = vmatpush.msrb.mxu0 %v3653_v59  ;;  %v9122_v59 = vld [vmem:[%s14206_s9 + $0xc8] sm:$0xff] }
 0x8dc   : > { %3753 = vmatpush.msrb.mxu0 %v3652_v41  ;;  %v9121_v41 = vld [vmem:[%s14206_s9 + $0x90] sm:$0xff] }
 0x8dd   : > { %3834 = vrot.lane.b32.xlu1 %v3654_v14, %s14275_s16  ;;  %v9128_v14 = vld [vmem:[%s14205_s8 + $0x50] sm:$0xff] }
 0x8de   : > { %3754 = vmatpush.msrb.mxu0 %v3651_v17  ;;  %v9111_v17 = vld [vmem:[%s14205_s8 + $0x70] sm:$0xff] }
 0x8df   : > { %8652 = vrot.lane.b32.xlu2 %v8626_v28, %s14275_s16  ;;  %7915 = vmatmul.msk.f32.gmra.mxu0 %vm1965_vm8, %v9099_v36  ;;  %v9113_v28 = vld [vmem:[%s14202_s5 + $0x18] sm:$0xff]  ;;  %v9130_v36 = vld [vmem:[%s14206_s9 + $0x80] sm:$0xff] }
 0x8e0   : > { %3755 = vmatpush.msrb.mxu0 %v3650_v15 }
 0x8e5   : > { %8647 = vrot.lane.b32.xlu1 %v8621_v25, %s14276_s17  ;;  %v9123_v25 = vld [vmem:[%s14205_s8 + $0x58] sm:$0xff] }
 0x8e7   : > { %7920 = vmatmul.msk.f32.vlgmr.msrb.gmra.mxu0 %vm1965_vm8, %v9100_v31  ;;  %v9131_v31 = vld [vmem:[%s14205_s8 + $0x48] sm:$0xff] }
 0x8ef   : > { %7921 = vmatmul.msk.f32.gmra.mxu0 %vm1965_vm8, %v9101_v56  ;;  %v9132_v56 = vld [vmem:[%s14206_s9 + $0xb8] sm:$0xff] }
 0x921   : > { %v8623_v16 = vpop.permute.xlu2 %8622 }
 0x922   : > { %v8624_v44 = vunpack.i.l.bf16 %v8623_v16  ;;  %v8625_v32 = vunpack.i.h.bf16 %v8623_v16  ;;  %v9133_v16 = vld [vmem:[%s14206_s9 + $0x28] sm:$0xff] }
 0x929   : > { %v8628_v6 = vpop.permute.xlu0 %8627  ;;  %v8633_v51 = vpop.permute.xlu2 %8632 }
 0x92a   : > { %v8629_v46 = vunpack.i.l.bf16 %v8628_v6  ;;  %v8630_v35 = vunpack.i.h.bf16 %v8628_v6  ;;  %v8634_v49 = vunpack.i.l.bf16 %v8633_v51  ;;  %v8635_v19 = vunpack.i.h.bf16 %v8633_v51  ;;  %v9134_v6 = vld [vmem:[%s14206_s9 + $0x78] sm:$0xff]  ;;  %v9135_v51 = vld [vmem:[%s14205_s8 + $0x40] sm:$0xff] }
 0x931   : > { %v8638_v8 = vpop.permute.xlu0 %8637  ;;  %v8643_v20 = vpop.permute.xlu2 %8642 }
 0x932   : > { %v8639_v61 = vunpack.i.l.bf16 %v8638_v8  ;;  %v8640_v22 = vunpack.i.h.bf16 %v8638_v8  ;;  %v8644_v48 = vunpack.i.l.bf16 %v8643_v20  ;;  %v8645_v30 = vunpack.i.h.bf16 %v8643_v20  ;;  %v9143_v8 = vld [vmem:[%s14205_s8 + $0x30] sm:$0xff]  ;;  %v9144_v20 = vld [vmem:[%s14206_s9 + $0x18] sm:$0xff] }
 0x939   : > { %v8653_v12 = vpop.permute.xlu2 %8652 }
 0x93a   : > { %v8654_v52 = vunpack.i.l.bf16 %v8653_v12  ;;  %v8655_v42 = vunpack.i.h.bf16 %v8653_v12  ;;  %v9154_v12 = vld [vmem:[%s14206_s9 + $0x130] sm:$0xff] }
 0x93f   : > { %v3664_v50 = vpop.permute.xlu1 %3663  ;;  %v3898_v11 = vpop.permute.xlu0 %3897 }
 0x940   : > { %7910 = vmatpush.msk.msrb.mxu1 %vm1972_vm7, %v3664_v50 }
 0x942   : > { %3680 = vmatpush.msrb.mxu1 %v8624_v44 }
 0x944   : > { %3681 = vmatpush.msrb.mxu1 %v8625_v32 }
 0x946   : > { %3682 = vmatpush.msrb.mxu1 %v8629_v46 }
 0x947   : > { %v3772_v62 = vpop.permute.xlu1 %3771  ;;  %v8658_v37 = vpop.permute.xlu0 %8657 }
 0x948   : > { %3683 = vmatpush.msrb.mxu1 %v8630_v35  ;;  %7925 = vmatpush.msk.msrb.mxu2 %vm1972_vm7, %v3772_v62  ;;  %v8659_v34 = vunpack.i.l.bf16 %v8658_v37  ;;  %v8660_v15 = vunpack.i.h.bf16 %v8658_v37  ;;  %v9161_v37 = vld [vmem:[%s14206_s9 + $0x128] sm:$0xff] }
 0x949   : > { %7911 = vmatmul.msk.f32.vlgmr.msrb.gmra.mxu1 %vm1965_vm8, %v9102_v0  ;;  %v9145_v0 = vld [vmem:[%s14206_s9 + $0x180] sm:$0x1f] }
 0x94a   : > { %7916 = vmatpush.msk.msra.mxu1 %vm1972_vm7, %v3664_v50  ;;  %3813 = vmatpush.msrb.mxu2 %v8634_v49  ;;  %v9136_v50 = vld [vmem:[%s14206_s9 + $0xb0] sm:$0xff] }
 0x94c   : > { %3729 = vmatpush.msra.mxu1 %v8624_v44  ;;  %3814 = vmatpush.msrb.mxu2 %v8635_v19  ;;  %v9137_v44 = vld [vmem:[%s14206_s9 + $0x20] sm:$0xff] }
 0x94e   : > { %3730 = vmatpush.msra.mxu1 %v8625_v32  ;;  %3815 = vmatpush.msrb.mxu2 %v8639_v61  ;;  %v9138_v32 = vld [vmem:[%s14206_s9 + $0x70] sm:$0xff] }
 0x94f   : > { %v3835_v33 = vpop.permute.xlu1 %3834 }
 0x950   : > { %3731 = vmatpush.msra.mxu1 %v8629_v46  ;;  %3816 = vmatpush.msrb.mxu2 %v8640_v22  ;;  %v9139_v46 = vld [vmem:[%s14205_s8 + $0x38] sm:$0xff] }
 0x951   : > { %7928 = vmatpush.msk.msrb.mxu3 %vm1972_vm7, %v3835_v33  ;;  %7931 = vmatpush.msk.msra.mxu0 %vm1972_vm7, %v3835_v33  ;;  %v9149_v33 = vld [vmem:[%s14206_s9 + $0x178] sm:$0xff] }
 0x952   : > { %7912 = vmatmul.msk.f32.gmra.mxu1 %vm1965_vm8, %v9103_v23  ;;  %7926 = vmatmul.msk.f32.vlgmr.msrb.gmra.mxu2 %vm1965_vm8, %v9104_v1  ;;  %v9152_v23 = vld [vmem:[%s14206_s9 + $0x8] sm:$0xff]  ;;  %v9153_v1 = vld [vmem:[%s14206_s9 + $0x170] sm:$0xff] }
 0x953   : > { %3732 = vmatpush.msra.mxu1 %v8630_v35  ;;  %7937 = vmatpush.msk.msra.mxu2 %vm1972_vm7, %v3898_v11  ;;  %v9140_v35 = vld [vmem:[%s14206_s9 + $0xa8] sm:$0xff] }
 0x954   : > { %3851 = vmatpush.msrb.mxu3 %v8644_v48  ;;  %3876 = vmatpush.msra.mxu0 %v8644_v48  ;;  %v9150_v48 = vld [vmem:[%s14206_s9 + $0x138] sm:$0xff] }
 0x955   : > { %7922 = vmatpush.msk.msrb.mxu1 %vm1972_vm7, %v3772_v62  ;;  %v9141_v62 = vld [vmem:[%s14201_s4 + $0x28] sm:$0xff] }
 0x956   : > { %3852 = vmatpush.msrb.mxu3 %v8645_v30  ;;  %3877 = vmatpush.msra.mxu0 %v8645_v30  ;;  %v9155_v30 = vld [vmem:[%s14205_s8 + $0x18] sm:$0xff] }
 0x957   : > { %3788 = vmatpush.msrb.mxu1 %v8634_v49  ;;  %v8648_v3 = vpop.permute.xlu1 %8647  ;;  %v9142_v49 = vld [vmem:[%s14206_s9 + $0x148] sm:$0x1f] }
 0x958   : > { %3853 = vmatpush.msrb.mxu3 %v8654_v52  ;;  %3878 = vmatpush.msra.mxu0 %v8654_v52  ;;  %v8649_v5 = vunpack.i.l.bf16 %v8648_v3  ;;  %v8650_v39 = vunpack.i.h.bf16 %v8648_v3  ;;  %v9156_v52 = vld [vmem:[%s14206_s9] sm:$0xff] }
 0x959   : > { %3789 = vmatpush.msrb.mxu1 %v8635_v19  ;;  %v9146_v19 = vld [vmem:[%s14206_s9 + $0x140] sm:$0xff] }
 0x95a   : > { %3854 = vmatpush.msrb.mxu3 %v8655_v42  ;;  %3879 = vmatpush.msra.mxu0 %v8655_v42  ;;  %v9157_v3 = vld [vmem:[%s14201_s4 + $0x40] sm:$0xff]  ;;  %v9158_v42 = vld [vmem:[%s14206_s9 + $0x168] sm:$0xff] }
 0x95b   : > { %3790 = vmatpush.msrb.mxu1 %v8639_v61  ;;  %7927 = vmatmul.msk.f32.gmra.mxu2 %vm1965_vm8, %v9106_v18  ;;  %v9147_v61 = vld [vmem:[%s14205_s8 + $0x28] sm:$0xff]  ;;  %v9162_v18 = vld [vmem:[%s14206_s9 + $0x160] sm:$0xff] }
 0x95c   : > { %7917 = vmatmul.msk.f32.vlgmr.msra.gmra.mxu1 %vm1965_vm8, %v9105_v7  ;;  %3939 = vmatpush.msra.mxu2 %v8649_v5  ;;  %v9160_v7 = vld [vmem:[%s14206_s9 + $0x110] sm:$0x1f] }
 0x95d   : > { %3791 = vmatpush.msrb.mxu1 %v8640_v22  ;;  %7932 = vmatmul.msk.f32.vlgmr.msra.gmra.mxu0 %vm1965_vm8, %v9107_v2  ;;  %v9148_v22 = vld [vmem:[%s14206_s9 + $0x10] sm:$0xff]  ;;  %v9164_v2 = vld [vmem:[%s14206_s9 + $0x108] sm:$0xff] }
 0x95e   : > { %7929 = vmatmul.msk.f32.vlgmr.msrb.gmra.mxu3 %vm1965_vm8, %v9108_v60  ;;  %3940 = vmatpush.msra.mxu2 %v8650_v39  ;;  %v9165_v60 = vld [vmem:[%s14206_s9 + $0x120] sm:$0xff] }
 0x95f   : > { %7934 = vmatpush.msk.msra.mxu1 %vm1972_vm7, %v3898_v11  ;;  %3960 = vmatpush.msra.mxu3 %v9109_v9  ;;  %v9151_v11 = vld [vmem:[%s14205_s8 + $0x20] sm:$0xff] }
 0x960   : > { %7944 = vmatpush.msk.msrb.mxu0 %vm2362_vm9, %v9110_v45  ;;  %3941 = vmatpush.msra.mxu2 %v8659_v34  ;;  %v9167_v9 = vld [vmem:[%s14205_s8] sm:$0xff] }
 0x961   : > { %3914 = vmatpush.msra.mxu1 %v8649_v5  ;;  %3961 = vmatpush.msra.mxu3 %v9111_v17  ;;  %v9159_v5 = vld [vmem:[%s14205_s8 + $0x10] sm:$0xff]  ;;  %v9168_v45 = vld [vmem:[%s14206_s9 + $0x100] sm:$0xff]  ;;  %v9170_v17 = vld [vmem:[%s14206_s9 + $0x118] sm:$0xff] }
 0x962   : > { %4044 = vmatpush.msrb.mxu0 %v9112_v4  ;;  %3942 = vmatpush.msra.mxu2 %v8660_v15  ;;  %v9171_v4 = vld [vmem:[%s14206_s9 + $0xf8] sm:$0xff] }
 0x963   : > { %3915 = vmatpush.msra.mxu1 %v8650_v39  ;;  %7938 = vmatmul.msk.f32.vlgmr.msra.gmra.mxu2 %vm1965_vm8, %v9114_v55  ;;  %v9163_v39 = vld [vmem:[%s14205_s8 + $0x8] sm:$0xff] }
 0x964   : > { %7918 = vmatmul.msk.f32.gmra.mxu1 %vm1965_vm8, %v9113_v28  ;;  %3962 = vmatpush.msra.mxu3 %v9115_v63  ;;  %v9172_v28 = vld [vmem:[%s14206_s9 + $0x150] sm:$0xff]  ;;  %v9173_v55 = vld [vmem:[%s14201_s4 + $0x48] sm:$0xff]  ;;  %v9174_v63 = vld [vmem:[%s14206_s9 + $0x60] sm:$0xff] }
 0x965   : > { %3916 = vmatpush.msra.mxu1 %v8659_v34  ;;  %7946 = vmatpush.msk.msrb.mxu2 %vm2362_vm9, %v9116_v54  ;;  %v9166_v34 = vld [vmem:[%s14206_s9 + $0x158] sm:$0xff]  ;;  %v9175_v54 = vld [vmem:[%s14206_s9 + $0xf0] sm:$0xff] }
 0x966   : > { %7933 = vmatmul.msk.f32.gmra.mxu0 %vm1965_vm8, %v9117_v53  ;;  %7930 = vmatmul.msk.f32.gmra.mxu3 %vm1965_vm8, %v9118_v38  ;;  %v9176_v53 = vld [vmem:[%s14206_s9 + $0x58] sm:$0xff]  ;;  %v9177_v38 = vld [vmem:[%s14206_s9 + $0xe8] sm:$0xff] }
 0x967   : > { %3917 = vmatpush.msra.mxu1 %v8660_v15  ;;  %4068 = vmatpush.msrb.mxu2 %v9119_v29  ;;  %v9169_v15 = vld [vmem:[%s14206_s9 + $0x68] sm:$0x1f]  ;;  %v9178_v29 = vld [vmem:[%s14206_s9 + $0x50] sm:$0xff] }
 0x968   : > { %3963 = vmatpush.msra.mxu3 %v9120_v58  ;;  %4045 = vmatpush.msrb.mxu0 %v9121_v41  ;;  %v9179_v58 = vld [vmem:[%s14206_s9 + $0xe0] sm:$0xff]  ;;  %v9180_v41 = vld [vmem:[%s14206_s9 + $0x48] sm:$0xff] }
 0x969   : > { %4069 = vmatpush.msrb.mxu2 %v9122_v59  ;;  %v9181_v59 = vld [vmem:[%s14206_s9 + $0x40] sm:$0xff] }
 0x96a   : > { %3964 = vmatpush.msra.mxu3 %v9123_v25  ;;  %4046 = vmatpush.msrb.mxu0 %v9124_v43  ;;  %v9182_v25 = vld [vmem:[%s14206_s9 + $0x38] sm:$0xff] }
 0x96b   : > { %4070 = vmatpush.msrb.mxu2 %v9126_v10  ;;  %v11835_v10 = vld [vmem:[%s9641_s24 + $0x100] sm:$0xff] }
 0x96c   : > { %7923 = vmatmul.msk.f32.vlgmr.msrb.gmra.mxu1 %vm1965_vm8, %v9125_v57  ;;  %7939 = vmatmul.msk.f32.gmra.mxu2 %vm1965_vm8, %v9127_v27  ;;  %v3711_v57 = vpop.f32.mrf.mxu0  ;;  %v11838_v27 = vld [vmem:[%s9641_s24 + $0x110] sm:$0xff] }
 0x96d   : > { %3965 = vmatpush.msra.mxu3 %v9128_v14  ;;  %7942 = vmatpush.msk.msrb.mxu1 %vm2362_vm9, %v9129_v21  ;;  %v8661_v14 = vpack.i.bf16 %v11835_v10, %v11838_v27 }
 0x96e   : > { %4047 = vmatpush.msrb.mxu0 %v9130_v36  ;;  %4071 = vmatpush.msrb.mxu2 %v9132_v56 }
 0x96f   : > { %3966 = vmatpush.msra.mxu3 %v9131_v31  ;;  %4021 = vmatpush.msrb.mxu1 %v9133_v16 }
 0x970   : > { %4048 = vmatpush.msrb.mxu0 %v9134_v6  ;;  %4072 = vmatpush.msrb.mxu2 %v9136_v50 }
 0x971   : > { %3967 = vmatpush.msra.mxu3 %v9135_v51  ;;  %4022 = vmatpush.msrb.mxu1 %v9137_v44 }
 0x972   : > { %4049 = vmatpush.msrb.mxu0 %v9138_v32  ;;  %4073 = vmatpush.msrb.mxu2 %v9140_v35 }
 0x973   : > { %3968 = vmatpush.msra.mxu3 %v9139_v46  ;;  %4023 = vmatpush.msrb.mxu1 %v9144_v20 }
 0x974   : > { %7924 = vmatmul.msk.f32.gmra.mxu1 %vm1965_vm8, %v9141_v62  ;;  %7950 = vmatpush.msk.msra.mxu0 %vm2362_vm9, %v9142_v49  ;;  %v3714_v36 = vpop.f32.mrf.mxu0 }
 0x975   : > { %3969 = vmatpush.msra.mxu3 %v9143_v8  ;;  %7952 = vmatpush.msk.msra.mxu2 %vm2362_vm9, %v9145_v0 }
 0x976   : > { %4116 = vmatpush.msra.mxu0 %v9146_v19  ;;  %4024 = vmatpush.msrb.mxu1 %v9148_v22 }
 0x977   : > { %3970 = vmatpush.msra.mxu3 %v9147_v61  ;;  %4140 = vmatpush.msra.mxu2 %v9149_v33 }
 0x978   : > { %4117 = vmatpush.msra.mxu0 %v9150_v48  ;;  %4025 = vmatpush.msrb.mxu1 %v9152_v23 }
 0x979   : > { %3971 = vmatpush.msra.mxu3 %v9151_v11  ;;  %4141 = vmatpush.msra.mxu2 %v9153_v1 }
 0x97a   : > { %4118 = vmatpush.msra.mxu0 %v9154_v12  ;;  %4026 = vmatpush.msrb.mxu1 %v9156_v52 }
 0x97b   : > { %3972 = vmatpush.msra.mxu3 %v9155_v30  ;;  %4142 = vmatpush.msra.mxu2 %v9158_v42 }
 0x97c   : > { %7935 = vmatmul.msk.f32.vlgmr.msra.gmra.mxu1 %vm1965_vm8, %v9157_v3  ;;  %4119 = vmatpush.msra.mxu0 %v9161_v37  ;;  %v3757_v56 = vpop.f32.mrf.mxu0 }
 0x97d   : > { %3973 = vmatpush.msra.mxu3 %v9159_v5  ;;  %7948 = vmatpush.msk.msra.mxu1 %vm2362_vm9, %v9160_v7  ;;  %v11845_v5 = vld [vmem:[%s9641_s24 + $0xe0] sm:$0xff]  ;;  %v11848_v7 = vld [vmem:[%s9641_s24 + $0xf0] sm:$0xff] }
 0x97e   : > { %4143 = vmatpush.msra.mxu2 %v9162_v18  ;;  %4120 = vmatpush.msra.mxu0 %v9165_v60 }
 0x97f   : > { %3974 = vmatpush.msra.mxu3 %v9163_v39  ;;  %4092 = vmatpush.msra.mxu1 %v9164_v2 }
 0x980   : > { %4144 = vmatpush.msra.mxu2 %v9166_v34  ;;  %4121 = vmatpush.msra.mxu0 %v9170_v17  ;;  %v8666_v34 = vpack.i.bf16 %v11845_v5, %v11848_v7 }
 0x981   : > { %3975 = vmatpush.msra.mxu3 %v9167_v9  ;;  %4093 = vmatpush.msra.mxu1 %v9168_v45  ;;  %v11855_v45 = vld [vmem:[%s9641_s24 + $0xc0] sm:$0xff] }
 0x982   : > { %4145 = vmatpush.msra.mxu2 %v9172_v28  ;;  %8662 = vrot.lane.b32.xlu0 %v8661_v14, %s14277_s20 }
 0x983   : > { %7940 = vmatpush.msk.msrb.mxu3 %vm2362_vm9, %v9169_v15  ;;  %4094 = vmatpush.msra.mxu1 %v9171_v4  ;;  %v11858_v15 = vld [vmem:[%s9641_s24 + $0xd0] sm:$0xff]  ;;  %v11864_v4 = vld [vmem:[%s9641_s24 + $0x108] sm:$0xff] }
 0x984   : > { %7936 = vmatmul.msk.f32.gmra.mxu1 %vm1965_vm8, %v9173_v55  ;;  %v3760_v51 = vpop.f32.mrf.mxu0  ;;  %v8671_v17 = vpack.i.bf16 %v11855_v45, %v11858_v15 }
 0x985   : > { %3999 = vmatpush.msrb.mxu3 %v9174_v63  ;;  %4095 = vmatpush.msra.mxu1 %v9175_v54 }
 0x987   : > { %4000 = vmatpush.msrb.mxu3 %v9176_v53  ;;  %4096 = vmatpush.msra.mxu1 %v9177_v38  ;;  %v11871_v38 = vld [vmem:[%s9641_s24 + $0x118] sm:$0xff] }
 0x989   : > { %4001 = vmatpush.msrb.mxu3 %v9178_v29  ;;  %4097 = vmatpush.msra.mxu1 %v9179_v58 }
 0x98b   : > { %4002 = vmatpush.msrb.mxu3 %v9180_v41 }
 0x98d   : > { %4003 = vmatpush.msrb.mxu3 %v9181_v59  ;;  %v11878_v59 = vld [vmem:[%s9641_s24 + $0xd8] sm:$0xff] }
 0x98f   : > { %4004 = vmatpush.msrb.mxu3 %v9182_v25 }
 0x9c6   : > { %v3685_v43 = vpop.f32.mrf.mxu1 }
 0x9c7   : > { %v3712_v35 = vadd.f32 %v3711_v57, %v3685_v43 }
 0x9cf   : > { %v3688_v21 = vpop.f32.mrf.mxu1 }
 0x9d0   : > { %v3715_v48 = vadd.f32 %v3714_v36, %v3688_v21 }
 0x9d5   : > { %v3818_v16 = vpop.f32.mrf.mxu2 }
 0x9d9   : > { %v3734_v31 = vpop.f32.mrf.mxu1 }
 0x9da   : > { %v3758_v32 = vadd.f32 %v3757_v56, %v3734_v31  ;;  %v3881_v62 = vpop.f32.mrf.mxu0  ;;  %v9183_v31 = vld [vmem:[%s14206_s9 + $0x1b8] sm:$0x1f]  ;;  %v9184_v56 = vld [vmem:[%s14206_s9 + $0x1b0] sm:$0xff] }
 0x9dc   : > { %v3824_v8 = vadd.f32 %v3818_v16, %v3758_v32  ;;  %v11893_v16 = vld [vmem:[%s9641_s24 + $0xe8] sm:$0xff] }
 0x9de   : > { %v3821_v44 = vpop.f32.mrf.mxu2  ;;  %v3887_v19 = vadd.f32 %v3881_v62, %v3824_v8 }
 0x9e1   : > { %v3737_v6 = vpop.f32.mrf.mxu1  ;;  %v3856_v49 = vpop.f32.mrf.mxu3 }
 0x9e2   : > { %v3761_v61 = vadd.f32 %v3760_v51, %v3737_v6  ;;  %v11896_v6 = vld [vmem:[%s9641_s24 + $0xf8] sm:$0xff] }
 0x9e3   : > { %v3884_v52 = vpop.f32.mrf.mxu0 }
 0x9e4   : > { %v3825_v1 = vadd.f32 %v3821_v44, %v3761_v61  ;;  %v9187_v61 = vld [vmem:[%s14206_s9 + $0x198] sm:$0xff] }
 0x9e6   : > { %v3944_v0 = vpop.f32.mrf.mxu2  ;;  %v3888_v37 = vadd.f32 %v3884_v52, %v3825_v1 }
 0x9e7   : > { %v3950_v11 = vadd.f32 %v3944_v0, %v3887_v19 }
 0x9e9   : > { %v3793_v50 = vpop.f32.mrf.mxu1  ;;  %v3859_v3 = vpop.f32.mrf.mxu3 }
 0x9ea   : > { %v3799_v20 = vadd.f32 %v3793_v50, %v3712_v35  ;;  %v9185_v50 = vld [vmem:[%s14206_s9 + $0x1a8] sm:$0xff]  ;;  %v9186_v35 = vld [vmem:[%s14206_s9 + $0x1a0] sm:$0xff] }
 0x9ec   : > { %v3862_v22 = vadd.f32 %v3856_v49, %v3799_v20  ;;  %v11909_v20 = vld [vmem:[%s9641_s24 + $0xc8] sm:$0xff] }
 0x9ef   : > { %v3947_v42 = vpop.f32.mrf.mxu2 }
 0x9f0   : > { %v3951_v2 = vadd.f32 %v3947_v42, %v3888_v37  ;;  %v14316_v37 = vld [vmem:[#allocation15_spill] sm:$0xff] }
 0x9f1   : > { %v3796_v46 = vpop.f32.mrf.mxu1 }
 0x9f2   : > { %v3800_v12 = vadd.f32 %v3796_v46, %v3715_v48  ;;  %v9189_v48 = vld [vmem:[%s14206_s9 + $0x188] sm:$0xff] }
 0x9f4   : > { %v3863_v18 = vadd.f32 %v3859_v3, %v3800_v12  ;;  %v8663_v28 = vpop.permute.xlu0 %8662 }
 0x9f5   : > { %v8665_v55 = vunpack.i.h.bf16 %v8663_v28  ;;  %v8664_v53 = vunpack.i.l.bf16 %v8663_v28 }
 0x9f7   : > { %v4207_v63 = vsel %vm711_vm0, %v8665_v55, %v11864_v4  ;;  %v4208_v29 = vsel %vm711_vm0, %v8664_v53, %v11871_v38 }
 0x9f8   : > { %v8681_v54 = vpack.i.bf16 %v4207_v63, %v11835_v10  ;;  %v8676_v58 = vpack.i.bf16 %v4208_v29, %v11838_v27 }
 0x9f9   : > { %v3919_v33 = vpop.f32.mrf.mxu1 }
 0x9fa   : > { %v3925_v23 = vadd.f32 %v3919_v33, %v3862_v22  ;;  %8677 = vrot.lane.b32.xlu0 %v8676_v58, %s14296_s23  ;;  %v9188_v33 = vld [vmem:[%s14206_s9 + $0x190] sm:$0xff] }
 0x9fc   : > { %v3952_v30 = vmax.f32 %v3925_v23, %v3950_v11 }
 0x9fe   : > { %3954 = vrot.lane.b32.xlu1 %v3952_v30, %s14296_s23 }
 0xa01   : > { %v3922_v39 = vpop.f32.mrf.mxu1 }
 0xa02   : > { %v3926_v60 = vadd.f32 %v3922_v39, %v3863_v18 }
 0xa04   : > { %v3953_v9 = vmax.f32 %v3926_v60, %v3951_v2 }
 0xa06   : > { %8667 = vrot.lane.b32.xlu1 %v8666_v34, %s14277_s20  ;;  %3956 = vrot.lane.b32.xlu2 %v3953_v9, %s14296_s23 }
 0xa0e   : > { %8672 = vrot.lane.b32.xlu2 %v8671_v17, %s14277_s20  ;;  %8682 = vrot.lane.b32.xlu1 %v8681_v54, %s14296_s23 }
 0xa60   : > { %v3957_v41 = vpop.permute.xlu2 %3956 }
 0xa61   : > { %v3959_v44 = vmax.f32 %v3953_v9, %v3957_v41 }
 0xa68   : > { %v8673_v25 = vpop.permute.xlu2 %8672 }
 0xa69   : > { %v8674_v43 = vunpack.i.l.bf16 %v8673_v25  ;;  %v8675_v62 = vunpack.i.h.bf16 %v8673_v25 }
 0xa6b   : > { %v4204_v57 = vsel %vm711_vm0, %v8674_v43, %v11878_v59  ;;  %v4203_v22 = vsel %vm711_vm0, %v8675_v62, %v11909_v20 }
 0xa6c   : > { %v8696_v14 = vpack.i.bf16 %v4204_v57, %v11858_v15  ;;  %v8701_v11 = vpack.i.bf16 %v4203_v22, %v11855_v45  ;;  %v8678_v23 = vpop.permute.xlu0 %8677 }
 0xa6d   : > { %v11945_v12 = vunpack.i.h.bf16 %v8678_v23 }
 0xa6e   : > { %8697 = vrot.lane.b32.xlu1 %v8696_v14, %s14296_s23 }
 0xa70   : > { %v3955_v21 = vpop.permute.xlu1 %3954 }
 0xa71   : > { %v3958_v36 = vmax.f32 %v3952_v30, %v3955_v21  ;;  %v8679_v30 = vunpack.i.l.bf16 %v8678_v23 }
 0xa73   : > { %3976 = vmatmul.f32.vlgmr.msra.gmra.mxu3 %v3958_v36  ;;  %v4250_v17 = vsel %vm766_vm2, %v8679_v30, %v11945_v12 }
 0xa74   : > { %7954 = vmatpush.msk.msra.mxu3 %vm2362_vm9, %v9183_v31 }
 0xa76   : > { %8712 = vrot.lane.b32.xlu1 %v8681_v54, %s14279_s28  ;;  %4164 = vmatpush.msra.mxu3 %v9184_v56 }
 0xa78   : > { %v8668_v51 = vpop.permute.xlu1 %8667  ;;  %4165 = vmatpush.msra.mxu3 %v9185_v50 }
 0xa79   : > { %v8670_v32 = vunpack.i.h.bf16 %v8668_v51  ;;  %v8669_v46 = vunpack.i.l.bf16 %v8668_v51 }
 0xa7a   : > { %4166 = vmatpush.msra.mxu3 %v9186_v35 }
 0xa7b   : > { %v4205_v49 = vsel %vm711_vm0, %v8670_v32, %v11893_v16  ;;  %v4206_v8 = vsel %vm711_vm0, %v8669_v46, %v11896_v6  ;;  %3979 = vmatmul.f32.gmra.mxu3 %v3959_v44 }
 0xa7c   : > { %v8691_v0 = vpack.i.bf16 %v4205_v49, %v11845_v5  ;;  %v8686_v19 = vpack.i.bf16 %v4206_v8, %v11848_v7  ;;  %4167 = vmatpush.msra.mxu3 %v9187_v61 }
 0xa7e   : > { %8692 = vrot.lane.b32.xlu0 %v8691_v0, %s14296_s23  ;;  %8687 = vrot.lane.b32.xlu2 %v8686_v19, %s14296_s23 }
 0xa7f   : > { %8727 = vrot.lane.b32.xlu1 %v8696_v14, %s14279_s28  ;;  %4168 = vmatpush.msra.mxu3 %v9188_v33 }
 0xa80   : > { %v8683_v1 = vpop.permute.xlu1 %8682 }
 0xa81   : > { %4169 = vmatpush.msra.mxu3 %v9189_v48  ;;  %v11947_v52 = vunpack.i.h.bf16 %v8683_v1  ;;  %v8684_v3 = vunpack.i.l.bf16 %v8683_v1 }
 0xa83   : > { %v4249_v55 = vsel %vm766_vm2, %v8684_v3, %v11947_v52 }
 0xa86   : > { %8707 = vrot.lane.b32.xlu0 %v8676_v58, %s14279_s28  ;;  %8702 = vrot.lane.b32.xlu2 %v8701_v11, %s14296_s23 }
 0xa87   : > { %8742 = vrot.lane.b32.xlu1 %v8681_v54, %s14275_s16 }
 0xa8e   : > { %8722 = vrot.lane.b32.xlu0 %v8691_v0, %s14279_s28  ;;  %8717 = vrot.lane.b32.xlu2 %v8686_v19, %s14279_s28 }
 0xa8f   : > { %8757 = vrot.lane.b32.xlu1 %v8696_v14, %s14275_s16 }
 0xa96   : > { %8737 = vrot.lane.b32.xlu0 %v8676_v58, %s14275_s16  ;;  %8732 = vrot.lane.b32.xlu2 %v8701_v11, %s14279_s28 }
 0xa97   : > { %8772 = vrot.lane.b32.xlu1 %v8681_v54, %s14276_s17 }
 0xa9e   : > { %8752 = vrot.lane.b32.xlu0 %v8691_v0, %s14275_s16  ;;  %8747 = vrot.lane.b32.xlu2 %v8686_v19, %s14275_s16 }
 0xa9f   : > { %8787 = vrot.lane.b32.xlu1 %v8696_v14, %s14276_s17  ;;  %v14317_v14 = vld [vmem:[#allocation11_spill] sm:$0xff] }
 0xaa6   : > { %8767 = vrot.lane.b32.xlu0 %v8676_v58, %s14276_s17  ;;  %8762 = vrot.lane.b32.xlu2 %v8701_v11, %s14275_s16 }
 0xaae   : > { %8782 = vrot.lane.b32.xlu0 %v8691_v0, %s14276_s17  ;;  %8777 = vrot.lane.b32.xlu2 %v8686_v19, %s14276_s17  ;;  %v9190_v0 = vld [vmem:[%s14198_s1 + $0x28] sm:$0xff] }
 0xab6   : > { %8792 = vrot.lane.b32.xlu2 %v8701_v11, %s14276_s17 }
 0xad8   : > { %v8688_v39 = vpop.permute.xlu2 %8687 }
 0xad9   : > { %v11950_v2 = vunpack.i.h.bf16 %v8688_v39  ;;  %v8689_v60 = vunpack.i.l.bf16 %v8688_v39  ;;  %v9195_v39 = vld [vmem:[%s14198_s1 + $0x10] sm:$0xff] }
 0xadb   : > { %v4248_v41 = vsel %vm766_vm2, %v8689_v60, %v11950_v2  ;;  %v9197_v60 = vld [vmem:[%s14198_s1 + $0x18] sm:$0xff] }
 0xae0   : > { %v8698_v58 = vpop.permute.xlu1 %8697  ;;  %v8703_v56 = vpop.permute.xlu2 %8702 }
 0xae1   : > { %v11963_v25 = vunpack.i.h.bf16 %v8698_v58  ;;  %v8699_v43 = vunpack.i.l.bf16 %v8698_v58  ;;  %v11977_v50 = vunpack.i.h.bf16 %v8703_v56  ;;  %v8704_v44 = vunpack.i.l.bf16 %v8703_v56  ;;  %v9200_v58 = vld [vmem:[%s14199_s2 + $0x28] sm:$0xff] }
 0xae3   : > { %v4246_v51 = vsel %vm766_vm2, %v8699_v43, %v11963_v25  ;;  %v4245_v62 = vsel %vm766_vm2, %v8704_v44, %v11977_v50 }
 0xae8   : > { %v8713_v8 = vpop.permute.xlu1 %8712 }
 0xaf0   : > { %v8693_v34 = vpop.permute.xlu0 %8692 }
 0xaf1   : > { %v11954_v28 = vunpack.i.h.bf16 %v8693_v34  ;;  %v8694_v63 = vunpack.i.l.bf16 %v8693_v34 }
 0xaf3   : > { %v4247_v36 = vsel %vm766_vm2, %v8694_v63, %v11954_v28 }
 0xaf6   : > { %v3977_v42 = vpop.f32.mrf.mxu3 }
 0xaf7   : > { %v3978_v18 = vadd.f32 %v3977_v42, %v14316_v37  ;;  %v9194_v42 = vld [vmem:[%s14198_s1 + $0x38] sm:$0xff] }
 0xaf8   : > { %v8708_v49 = vpop.permute.xlu0 %8707 }
 0xaf9   : > { %v3983_v9 = vmax.f32 %v3978_v18, 0.0 }
 0xafb   : > { %v3986_v54 = vrot.slane %v3983_v9, 2  ;;  %v4031_v53 = vrot.slane %v3983_v9, 4  ;;  %v4055_v29 = vrot.slane %v3983_v9, 6  ;;  %7943 = vmatmul.msk.f32.vlgmr.msrb.gmra.mxu1 %vm2359_vm10, %v3983_v9  ;;  %v9198_v9 = vld [vmem:[%s14198_s1 + $0x48] sm:$0xf] }
 0xafc   : > { %4273 = vmatpush.msrb.mxu1 %v4250_v17 }
 0xafd   : > { %7941 = vmatmul.msk.f32.vlgmr.msrb.gmra.mxu3 %vm2359_vm10, %v3986_v54  ;;  %7945 = vmatmul.msk.f32.vlgmr.msrb.gmra.mxu0 %vm2359_vm10, %v4031_v53 }
 0xafe   : > { %7947 = vmatmul.msk.f32.vlgmr.msrb.gmra.mxu2 %vm2359_vm10, %v4055_v29  ;;  %4274 = vmatpush.msrb.mxu1 %v4249_v55  ;;  %v3980_v57 = vpop.f32.mrf.mxu3 }
 0xaff   : > { %4305 = vmatpush.msrb.mxu0 %v11945_v12  ;;  %4337 = vmatpush.msrb.mxu2 %v11838_v27  ;;  %v3981_v21 = vadd.f32 %v3980_v57, %v14317_v14 }
 0xb00   : > { %4369 = vmatpush.msrb.mxu3 %v11871_v38  ;;  %4275 = vmatpush.msrb.mxu1 %v4248_v41  ;;  %v8723_v61 = vpop.permute.xlu0 %8722 }
 0xb01   : > { %v3984_v31 = vmax.f32 %v3981_v21, 0.0  ;;  %4306 = vmatpush.msrb.mxu0 %v11947_v52  ;;  %4338 = vmatpush.msrb.mxu2 %v11835_v10  ;;  %v8725_v48 = vunpack.i.h.bf16 %v8723_v61  ;;  %v8724_v11 = vunpack.i.l.bf16 %v8723_v61  ;;  %v9208_v61 = vld [vmem:[%s14199_s2 + $0x48] sm:$0xf] }
 0xb02   : > { %4370 = vmatpush.msrb.mxu3 %v11864_v4  ;;  %4276 = vmatpush.msrb.mxu1 %v4247_v36 }
 0xb03   : > { %v4103_v32 = vrot.slane %v3984_v31, 2  ;;  %v4127_v46 = vrot.slane %v3984_v31, 4  ;;  %4307 = vmatpush.msrb.mxu0 %v11950_v2  ;;  %4339 = vmatpush.msrb.mxu2 %v11848_v7  ;;  %v4151_v35 = vrot.slane %v3984_v31, 6  ;;  %v4545_v1 = vsel %vm1126_vm3, %v8724_v11, %v8725_v48 }
 0xb04   : > { %4371 = vmatpush.msrb.mxu3 %v11896_v6  ;;  %7949 = vmatmul.msk.f32.vlgmr.msra.gmra.mxu1 %vm2359_vm10, %v3984_v31  ;;  %v9201_v31 = vld [vmem:[%s14199_s2] sm:$0xff] }
 0xb05   : > { %4277 = vmatpush.msrb.mxu1 %v4246_v51  ;;  %4308 = vmatpush.msrb.mxu0 %v11954_v28 }
 0xb06   : > { %4340 = vmatpush.msrb.mxu2 %v11845_v5  ;;  %4372 = vmatpush.msrb.mxu3 %v11893_v16 }
 0xb07   : > { %7951 = vmatmul.msk.f32.vlgmr.msra.gmra.mxu0 %vm2359_vm10, %v4103_v32  ;;  %7953 = vmatmul.msk.f32.vlgmr.msra.gmra.mxu2 %vm2359_vm10, %v4127_v46 }
 0xb08   : > { %7955 = vmatmul.msk.f32.vlgmr.msra.gmra.mxu3 %vm2359_vm10, %v4151_v35  ;;  %4278 = vmatpush.msrb.mxu1 %v4245_v62  ;;  %v8738_v34 = vpop.permute.xlu0 %8737 }
 0xb09   : > { %4309 = vmatpush.msrb.mxu0 %v11963_v25  ;;  %4341 = vmatpush.msrb.mxu2 %v11858_v15  ;;  %v8740_v63 = vunpack.i.h.bf16 %v8738_v34  ;;  %v8739_v54 = vunpack.i.l.bf16 %v8738_v34 }
 0xb0a   : > { %4373 = vmatpush.msrb.mxu3 %v11878_v59  ;;  %4401 = vmatpush.msra.mxu1 %v4250_v17 }
 0xb0b   : > { %4310 = vmatpush.msrb.mxu0 %v11977_v50  ;;  %4342 = vmatpush.msrb.mxu2 %v11855_v45 }
 0xb0c   : > { %4374 = vmatpush.msrb.mxu3 %v11909_v20  ;;  %4402 = vmatpush.msra.mxu1 %v4249_v55 }
 0xb0d   : > { %4465 = vmatpush.msra.mxu2 %v11838_v27  ;;  %4433 = vmatpush.msra.mxu0 %v11945_v12  ;;  %v8709_v27 = vunpack.i.l.bf16 %v8708_v49 }
 0xb0e   : > { %4497 = vmatpush.msra.mxu3 %v11871_v38  ;;  %4403 = vmatpush.msra.mxu1 %v4248_v41  ;;  %v8718_v38 = vpop.permute.xlu2 %8717  ;;  %v4738_v41 = vsel %vm1347_vm4, %v8739_v54, %v8740_v63 }
 0xb0f   : > { %4466 = vmatpush.msra.mxu2 %v11835_v10  ;;  %4434 = vmatpush.msra.mxu0 %v11947_v52  ;;  %v8710_v10 = vunpack.i.h.bf16 %v8708_v49  ;;  %v8720_v22 = vunpack.i.h.bf16 %v8718_v38  ;;  %v8719_v33 = vunpack.i.l.bf16 %v8718_v38  ;;  %v9205_v38 = vld [vmem:[%s14199_s2 + $0x10] sm:$0xff] }
 0xb10   : > { %4498 = vmatpush.msra.mxu3 %v11864_v4  ;;  %7968 = vmatmul.msk.f32.vlgmr.msrb.gmra.mxu1 %vm785_vm1, %v9190_v0  ;;  %v9191_v4 = vld [vmem:[%s14198_s1] sm:$0xff]  ;;  %v8753_v57 = vpop.permute.xlu0 %8752 }
 0xb11   : > { %4404 = vmatpush.msra.mxu1 %v4247_v36  ;;  %4467 = vmatpush.msra.mxu2 %v11848_v7  ;;  %v8715_v7 = vunpack.i.h.bf16 %v8713_v8  ;;  %v4548_v19 = vsel %vm1126_vm3, %v8709_v27, %v8710_v10  ;;  %v8755_v21 = vunpack.i.h.bf16 %v8753_v57  ;;  %v8754_v36 = vunpack.i.l.bf16 %v8753_v57 }
 0xb12   : > { %4435 = vmatpush.msra.mxu0 %v11950_v2  ;;  %4499 = vmatpush.msra.mxu3 %v11896_v6  ;;  %v8714_v6 = vunpack.i.l.bf16 %v8713_v8  ;;  %v9196_v2 = vld [vmem:[%s14198_s1 + $0x40] sm:$0xff]  ;;  %v9202_v8 = vld [vmem:[%s14199_s2 + $0x30] sm:$0xff] }
 0xb13   : > { %7973 = vmatmul.msk.f32.vlgmr.msrb.gmra.mxu0 %vm785_vm1, %v9190_v0  ;;  %7978 = vmatmul.msk.f32.vlgmr.msrb.gmra.mxu2 %vm785_vm1, %v9191_v4  ;;  %v4735_v35 = vsel %vm1347_vm4, %v8754_v36, %v8755_v21  ;;  %v9217_v36 = vld [vmem:[%s14199_s2 + $0x68] sm:$0xff] }
 0xb14   : > { %7983 = vmatmul.msk.f32.vlgmr.msrb.gmra.mxu3 %vm785_vm1, %v9191_v4  ;;  %4405 = vmatpush.msra.mxu1 %v4246_v51  ;;  %v9204_v4 = vld [vmem:[%s14199_s2 + $0x38] sm:$0xff] }
 0xb15   : > { %4436 = vmatpush.msra.mxu0 %v11954_v28  ;;  %4468 = vmatpush.msra.mxu2 %v11845_v5  ;;  %v8728_v5 = vpop.permute.xlu1 %8727  ;;  %v9199_v28 = vld [vmem:[%s14198_s1 + $0x20] sm:$0xf] }
 0xb16   : > { %4500 = vmatpush.msra.mxu3 %v11893_v16  ;;  %4406 = vmatpush.msra.mxu1 %v4245_v62  ;;  %v8730_v16 = vunpack.i.h.bf16 %v8728_v5  ;;  %v8729_v23 = vunpack.i.l.bf16 %v8728_v5  ;;  %v8733_v12 = vpop.permute.xlu2 %8732 }
 0xb17   : > { %4469 = vmatpush.msra.mxu2 %v11858_v15  ;;  %4437 = vmatpush.msra.mxu0 %v11963_v25  ;;  %v9192_v15 = vld [vmem:[%s14198_s1 + $0x30] sm:$0xff]  ;;  %v8735_v52 = vunpack.i.h.bf16 %v8733_v12  ;;  %v8734_v3 = vunpack.i.l.bf16 %v8733_v12 }
 0xb18   : > { %4501 = vmatpush.msra.mxu3 %v11878_v59  ;;  %4571 = vmatpush.msrb.mxu1 %v4548_v19  ;;  %v4547_v59 = vsel %vm1126_vm3, %v8714_v6, %v8715_v7  ;;  %v4544_v30 = vsel %vm1126_vm3, %v8729_v23, %v8730_v16  ;;  %v9207_v6 = vld [vmem:[%s14199_s2 + $0x18] sm:$0xff] }
 0xb19   : > { %4438 = vmatpush.msra.mxu0 %v11977_v50  ;;  %4470 = vmatpush.msra.mxu2 %v11855_v45  ;;  %v9193_v45 = vld [vmem:[%s14198_s1 + $0x8] sm:$0xff]  ;;  %v4543_v18 = vsel %vm1126_vm3, %v8734_v3, %v8735_v52 }
 0xb1a   : > { %4502 = vmatpush.msra.mxu3 %v11909_v20  ;;  %7969 = vmatmul.msk.f32.gmra.mxu1 %vm785_vm1, %v9192_v15  ;;  %v4546_v20 = vsel %vm1126_vm3, %v8719_v33, %v8720_v22  ;;  %v9209_v33 = vld [vmem:[%s14199_s2 + $0x20] sm:$0xf] }
 0xb1b   : > { %4572 = vmatpush.msrb.mxu1 %v4547_v59  ;;  %4603 = vmatpush.msrb.mxu0 %v8710_v10 }
 0xb1c   : > { %4645 = vmatpush.msrb.mxu2 %v4548_v19  ;;  %4677 = vmatpush.msrb.mxu3 %v8710_v10  ;;  %v9203_v10 = vld [vmem:[%s14199_s2 + $0x8] sm:$0xff]  ;;  %v8768_v19 = vpop.permute.xlu0 %8767 }
 0xb1d   : > { %7974 = vmatmul.msk.f32.gmra.mxu0 %vm785_vm1, %v9192_v15  ;;  %7979 = vmatmul.msk.f32.gmra.mxu2 %vm785_vm1, %v9193_v45  ;;  %v8743_v17 = vpop.permute.xlu1 %8742  ;;  %v8769_v11 = vunpack.i.l.bf16 %v8768_v19 }
 0xb1e   : > { %7984 = vmatmul.msk.f32.gmra.mxu3 %vm785_vm1, %v9193_v45  ;;  %4573 = vmatpush.msrb.mxu1 %v4546_v20  ;;  %v8748_v55 = vpop.permute.xlu2 %8747  ;;  %v8745_v53 = vunpack.i.h.bf16 %v8743_v17  ;;  %v8744_v29 = vunpack.i.l.bf16 %v8743_v17 }
 0xb1f   : > { %4604 = vmatpush.msrb.mxu0 %v8715_v7  ;;  %4646 = vmatpush.msrb.mxu2 %v4547_v59  ;;  %v8750_v25 = vunpack.i.h.bf16 %v8748_v55  ;;  %v8749_v43 = vunpack.i.l.bf16 %v8748_v55 }
 0xb20   : > { %4678 = vmatpush.msrb.mxu3 %v8715_v7  ;;  %4574 = vmatpush.msrb.mxu1 %v4545_v1  ;;  %v4737_v56 = vsel %vm1347_vm4, %v8744_v29, %v8745_v53  ;;  %v9206_v7 = vld [vmem:[%s14199_s2 + $0x40] sm:$0xff] }
 0xb21   : > { %4605 = vmatpush.msrb.mxu0 %v8720_v22  ;;  %4647 = vmatpush.msrb.mxu2 %v4546_v20  ;;  %v4736_v50 = vsel %vm1347_vm4, %v8749_v43, %v8750_v25 }
 0xb22   : > { %4679 = vmatpush.msrb.mxu3 %v8720_v22  ;;  %4575 = vmatpush.msrb.mxu1 %v4544_v30 }
 0xb23   : > { %4606 = vmatpush.msrb.mxu0 %v8725_v48  ;;  %4648 = vmatpush.msrb.mxu2 %v4545_v1 }
 0xb24   : > { %4680 = vmatpush.msrb.mxu3 %v8725_v48  ;;  %7970 = vmatmul.msk.f32.gmra.mxu1 %vm785_vm1, %v9194_v42  ;;  %v8770_v48 = vunpack.i.h.bf16 %v8768_v19  ;;  %v8783_v45 = vpop.permute.xlu0 %8782  ;;  %v9223_v19 = vld [vmem:[%s14199_s2 + $0x78] sm:$0xff] }
 0xb25   : > { %4576 = vmatpush.msrb.mxu1 %v4543_v18  ;;  %4607 = vmatpush.msrb.mxu0 %v8730_v16  ;;  %v8758_v51 = vpop.permute.xlu1 %8757  ;;  %v8784_v3 = vunpack.i.l.bf16 %v8783_v45 }
 0xb26   : > { %4649 = vmatpush.msrb.mxu2 %v4544_v30  ;;  %4681 = vmatpush.msrb.mxu3 %v8730_v16  ;;  %v8763_v44 = vpop.permute.xlu2 %8762  ;;  %v8760_v32 = vunpack.i.h.bf16 %v8758_v51  ;;  %v8759_v46 = vunpack.i.l.bf16 %v8758_v51  ;;  %v9210_v16 = vld [vmem:[%s14198_s1 + $0x50] sm:$0xff]  ;;  %v12132_v23 = vsel %vm1568_vm5, %v8769_v11, %v8770_v48  ;;  %v9226_v11 = vld [vmem:[%s14204_s7 + $0x68] sm:$0xff] }
 0xb27   : > { %7975 = vmatmul.msk.f32.gmra.mxu0 %vm785_vm1, %v9194_v42  ;;  %7980 = vmatmul.msk.f32.gmra.mxu2 %vm785_vm1, %v9195_v39  ;;  %v8765_v62 = vunpack.i.h.bf16 %v8763_v44  ;;  %v8764_v49 = vunpack.i.l.bf16 %v8763_v44  ;;  %v9211_v30 = vld [vmem:[%s14199_s2 + $0x50] sm:$0xff] }
 0xb28   : > { %7985 = vmatmul.msk.f32.gmra.mxu3 %vm785_vm1, %v9195_v39  ;;  %4608 = vmatpush.msrb.mxu0 %v8735_v52  ;;  %v4734_v0 = vsel %vm1347_vm4, %v8759_v46, %v8760_v32  ;;  %v9218_v44 = vld [vmem:[%s14198_s1 + $0x70] sm:$0xf] }
 0xb29   : > { %4650 = vmatpush.msrb.mxu2 %v4543_v18  ;;  %4682 = vmatpush.msrb.mxu3 %v8735_v52  ;;  %v4733_v27 = vsel %vm1347_vm4, %v8764_v49, %v8765_v62  ;;  %v8785_v52 = vunpack.i.h.bf16 %v8783_v45  ;;  %v9232_v45 = vld [vmem:[%s14204_s7 + $0x58] sm:$0xff] }
 0xb2b   : > { %v12153_v34 = vsel %vm1568_vm5, %v8784_v3, %v8785_v52 }
 0xb2c   : > { %7971 = vmatmul.msk.f32.gmra.mxu1 %vm785_vm1, %v9196_v2 }
 0xb2d   : > { %v8773_v22 = vpop.permute.xlu1 %8772 }
 0xb2e   : > { %v8778_v5 = vpop.permute.xlu2 %8777  ;;  %v8775_v15 = vunpack.i.h.bf16 %v8773_v22  ;;  %v8774_v59 = vunpack.i.l.bf16 %v8773_v22  ;;  %v9225_v22 = vld [vmem:[%s14204_s7 + $0xd8] sm:$0xff] }
 0xb2f   : > { %7976 = vmatmul.msk.f32.gmra.mxu0 %vm785_vm1, %v9196_v2  ;;  %7981 = vmatmul.msk.f32.gmra.mxu2 %vm785_vm1, %v9197_v60  ;;  %v8780_v20 = vunpack.i.h.bf16 %v8778_v5  ;;  %v8779_v1 = vunpack.i.l.bf16 %v8778_v5  ;;  %v9227_v5 = vld [vmem:[%s14204_s7 + $0xd0] sm:$0xff] }
 0xb30   : > { %7986 = vmatmul.msk.f32.gmra.mxu3 %vm785_vm1, %v9197_v60  ;;  %v12143_v42 = vsel %vm1568_vm5, %v8774_v59, %v8775_v15  ;;  %v9229_v59 = vld [vmem:[%s14204_s7 + $0x60] sm:$0xff] }
 0xb31   : > { %v12148_v2 = vsel %vm1568_vm5, %v8779_v1, %v8780_v20  ;;  %v9234_v1 = vld [vmem:[%s14204_s7 + $0x50] sm:$0xff] }
 0xb34   : > { %7972 = vmatmul.msk.f32.gmra.mxu1 %vm785_vm1, %v9198_v9 }
 0xb35   : > { %v8788_v12 = vpop.permute.xlu1 %8787 }
 0xb36   : > { %v8790_v18 = vunpack.i.h.bf16 %v8788_v12  ;;  %v8789_v39 = vunpack.i.l.bf16 %v8788_v12  ;;  %v8793_v60 = vpop.permute.xlu2 %8792  ;;  %v9235_v12 = vld [vmem:[%s14204_s7 + $0xb8] sm:$0xff] }
 0xb37   : > { %7977 = vmatmul.msk.f32.gmra.mxu0 %vm785_vm1, %v9198_v9  ;;  %7982 = vmatmul.msk.f32.gmra.mxu2 %vm785_vm1, %v9199_v28  ;;  %v8795_v9 = vunpack.i.h.bf16 %v8793_v60  ;;  %v8794_v17 = vunpack.i.l.bf16 %v8793_v60  ;;  %v9241_v60 = vld [vmem:[%s14204_s7 + $0xa8] sm:$0xff] }
 0xb38   : > { %7987 = vmatmul.msk.f32.gmra.mxu3 %vm785_vm1, %v9199_v28  ;;  %v9212_v28 = vld [vmem:[%s14198_s1 + $0x58] sm:$0xff]  ;;  %v12161_v55 = vsel %vm1568_vm5, %v8789_v39, %v8790_v18  ;;  %v9239_v39 = vld [vmem:[%s14199_s2 + $0x88] sm:$0xff] }
 0xb39   : > { %v12173_v54 = vsel %vm1568_vm5, %v8794_v17, %v8795_v9  ;;  %v9244_v17 = vld [vmem:[%s14198_s1 + $0x90] sm:$0xff] }
 0xb3c   : > { %7988 = vmatmul.msk.f32.vlgmr.msra.gmra.mxu1 %vm785_vm1, %v9200_v58 }
 0xb3d   : > { %4761 = vmatpush.msra.mxu1 %v4738_v41 }
 0xb3f   : > { %7993 = vmatmul.msk.f32.vlgmr.msra.gmra.mxu0 %vm785_vm1, %v9200_v58  ;;  %7998 = vmatmul.msk.f32.vlgmr.msra.gmra.mxu2 %vm785_vm1, %v9201_v31  ;;  %v9215_v58 = vld [vmem:[%s14199_s2 + $0x60] sm:$0xff] }
 0xb40   : > { %8003 = vmatmul.msk.f32.vlgmr.msra.gmra.mxu3 %vm785_vm1, %v9201_v31  ;;  %4762 = vmatpush.msra.mxu1 %v4737_v56 }
 0xb41   : > { %4793 = vmatpush.msra.mxu0 %v8740_v63  ;;  %4835 = vmatpush.msra.mxu2 %v4738_v41 }
 0xb42   : > { %4867 = vmatpush.msra.mxu3 %v8740_v63  ;;  %4763 = vmatpush.msra.mxu1 %v4736_v50  ;;  %v9213_v63 = vld [vmem:[%s14199_s2 + $0x58] sm:$0xff] }
 0xb43   : > { %4794 = vmatpush.msra.mxu0 %v8745_v53  ;;  %4836 = vmatpush.msra.mxu2 %v4737_v56 }
 0xb44   : > { %4868 = vmatpush.msra.mxu3 %v8745_v53  ;;  %4764 = vmatpush.msra.mxu1 %v4735_v35  ;;  %v9214_v53 = vld [vmem:[%s14198_s1 + $0x60] sm:$0xff] }
 0xb45   : > { %4795 = vmatpush.msra.mxu0 %v8750_v25  ;;  %4837 = vmatpush.msra.mxu2 %v4736_v50 }
 0xb46   : > { %4869 = vmatpush.msra.mxu3 %v8750_v25  ;;  %7989 = vmatmul.msk.f32.gmra.mxu1 %vm785_vm1, %v9202_v8  ;;  %v9216_v25 = vld [vmem:[%s14198_s1 + $0x68] sm:$0xff] }
 0xb47   : > { %4765 = vmatpush.msra.mxu1 %v4734_v0  ;;  %4796 = vmatpush.msra.mxu0 %v8755_v21 }
 0xb48   : > { %4838 = vmatpush.msra.mxu2 %v4735_v35  ;;  %4870 = vmatpush.msra.mxu3 %v8755_v21 }
 0xb49   : > { %7994 = vmatmul.msk.f32.gmra.mxu0 %vm785_vm1, %v9202_v8  ;;  %7999 = vmatmul.msk.f32.gmra.mxu2 %vm785_vm1, %v9203_v10 }
 0xb4a   : > { %8004 = vmatmul.msk.f32.gmra.mxu3 %vm785_vm1, %v9203_v10  ;;  %4766 = vmatpush.msra.mxu1 %v4733_v27 }
 0xb4b   : > { %4797 = vmatpush.msra.mxu0 %v8760_v32  ;;  %4839 = vmatpush.msra.mxu2 %v4734_v0 }
 0xb4c   : > { %4871 = vmatpush.msra.mxu3 %v8760_v32 }
 0xb4d   : > { %4798 = vmatpush.msra.mxu0 %v8765_v62  ;;  %4840 = vmatpush.msra.mxu2 %v4733_v27  ;;  %v9220_v27 = vld [vmem:[%s14207_s10] ss:$0 sm:$0xff] }
 0xb4e   : > { %4872 = vmatpush.msra.mxu3 %v8765_v62  ;;  %7990 = vmatmul.msk.f32.gmra.mxu1 %vm785_vm1, %v9204_v4  ;;  %v9219_v62 = vld [vmem:[%s14199_s2 + $0x70] sm:$0xf] }
 0xb51   : > { %7995 = vmatmul.msk.f32.gmra.mxu0 %vm785_vm1, %v9204_v4  ;;  %8000 = vmatmul.msk.f32.gmra.mxu2 %vm785_vm1, %v9205_v38 }
 0xb52   : > { %8005 = vmatmul.msk.f32.gmra.mxu3 %vm785_vm1, %v9205_v38  ;;  %v9221_v38 = vld [vmem:[%s14198_s1 + $0x78] sm:$0xff] }
 0xb56   : > { %7991 = vmatmul.msk.f32.gmra.mxu1 %vm785_vm1, %v9206_v7 }
 0xb59   : > { %7996 = vmatmul.msk.f32.gmra.mxu0 %vm785_vm1, %v9206_v7  ;;  %8001 = vmatmul.msk.f32.gmra.mxu2 %vm785_vm1, %v9207_v6 }
 0xb5a   : > { %8006 = vmatmul.msk.f32.gmra.mxu3 %vm785_vm1, %v9207_v6  ;;  %v9222_v6 = vld [vmem:[%s14204_s7 + $0x78] sm:$0xff] }
 0xb5e   : > { %7992 = vmatmul.msk.f32.gmra.mxu1 %vm785_vm1, %v9208_v61 }
 0xb61   : > { %7997 = vmatmul.msk.f32.gmra.mxu0 %vm785_vm1, %v9208_v61  ;;  %8002 = vmatmul.msk.f32.gmra.mxu2 %vm785_vm1, %v9209_v33  ;;  %v9224_v61 = vld [vmem:[%s14204_s7 + $0x70] sm:$0xff] }
 0xb62   : > { %8007 = vmatmul.msk.f32.gmra.mxu3 %vm785_vm1, %v9209_v33 }
 0xb66   : > { %8008 = vmatmul.msk.f32.vlgmr.msrb.gmra.mxu1 %vm785_vm1, %v9210_v16 }
 0xb67   : > { %4951 = vmatpush.msrb.mxu1 %v12132_v23 }
 0xb69   : > { %8013 = vmatmul.msk.f32.vlgmr.msrb.gmra.mxu0 %vm785_vm1, %v9210_v16  ;;  %8018 = vmatmul.msk.f32.vlgmr.msrb.gmra.mxu2 %vm785_vm1, %v9211_v30  ;;  %v9230_v16 = vld [vmem:[%s14204_s7 + $0xc8] sm:$0xff] }
 0xb6a   : > { %8023 = vmatmul.msk.f32.vlgmr.msrb.gmra.mxu3 %vm785_vm1, %v9211_v30  ;;  %8287 = vmatpush.msrb.mxu2 %v12132_v23  ;;  %v9236_v30 = vld [vmem:[%s14198_s1 + $0x88] sm:$0xff] }
 0xb6b   : > { %4952 = vmatpush.msrb.mxu1 %v12143_v42  ;;  %4983 = vmatpush.msrb.mxu0 %v8770_v48 }
 0xb6c   : > { %5057 = vmatpush.msrb.mxu3 %v8770_v48  ;;  %8288 = vmatpush.msrb.mxu2 %v12143_v42 }
 0xb6d   : > { %4953 = vmatpush.msrb.mxu1 %v12148_v2  ;;  %4984 = vmatpush.msrb.mxu0 %v8775_v15 }
 0xb6e   : > { %5058 = vmatpush.msrb.mxu3 %v8775_v15  ;;  %8289 = vmatpush.msrb.mxu2 %v12148_v2  ;;  %v9228_v15 = vld [vmem:[%s14198_s1 + $0x80] sm:$0xff] }
 0xb6f   : > { %4954 = vmatpush.msrb.mxu1 %v12153_v34  ;;  %4985 = vmatpush.msrb.mxu0 %v8780_v20 }
 0xb70   : > { %5059 = vmatpush.msrb.mxu3 %v8780_v20  ;;  %8009 = vmatmul.msk.f32.gmra.mxu1 %vm785_vm1, %v9212_v28  ;;  %v9233_v20 = vld [vmem:[%s14204_s7 + $0xc0] sm:$0xff] }
 0xb71   : > { %8290 = vmatpush.msrb.mxu2 %v12153_v34  ;;  %4955 = vmatpush.msrb.mxu1 %v12161_v55 }
 0xb72   : > { %4986 = vmatpush.msrb.mxu0 %v8785_v52  ;;  %5060 = vmatpush.msrb.mxu3 %v8785_v52 }
 0xb73   : > { %8014 = vmatmul.msk.f32.gmra.mxu0 %vm785_vm1, %v9212_v28  ;;  %8019 = vmatmul.msk.f32.gmra.mxu2 %vm785_vm1, %v9213_v63 }
 0xb74   : > { %8024 = vmatmul.msk.f32.gmra.mxu3 %vm785_vm1, %v9213_v63  ;;  %8291 = vmatpush.msrb.mxu2 %v12161_v55  ;;  %v9246_v63 = vld [vmem:[%s14204_s7 + $0x98] sm:$0xff] }
 0xb75   : > { %4956 = vmatpush.msrb.mxu1 %v12173_v54  ;;  %4987 = vmatpush.msrb.mxu0 %v8790_v18 }
 0xb76   : > { %5061 = vmatpush.msrb.mxu3 %v8790_v18  ;;  %8292 = vmatpush.msrb.mxu2 %v12173_v54  ;;  %v9238_v18 = vld [vmem:[%s14204_s7 + $0xb0] sm:$0xff] }
 0xb77   : > { %4988 = vmatpush.msrb.mxu0 %v8795_v9 }
 0xb78   : > { %5062 = vmatpush.msrb.mxu3 %v8795_v9  ;;  %8010 = vmatmul.msk.f32.gmra.mxu1 %vm785_vm1, %v9214_v53  ;;  %v4028_v29 = vpop.f32.mrf.mxu1  ;;  %v9243_v9 = vld [vmem:[%s14204_s7 + $0xa0] sm:$0xff] }
 0xb7a   : > { %v4051_v41 = vpop.f32.mrf.mxu0 }
 0xb7b   : > { %8015 = vmatmul.msk.f32.gmra.mxu0 %vm785_vm1, %v9214_v53  ;;  %8020 = vmatmul.msk.f32.gmra.mxu2 %vm785_vm1, %v9215_v58  ;;  %v9247_v53 = vld [vmem:[%s14199_s2 + $0x90] sm:$0xff] }
 0xb7c   : > { %8025 = vmatmul.msk.f32.gmra.mxu3 %vm785_vm1, %v9215_v58  ;;  %v9249_v58 = vld [vmem:[%s14204_s7 + $0x90] sm:$0xff] }
 0xb80   : > { %8011 = vmatmul.msk.f32.gmra.mxu1 %vm785_vm1, %v9216_v25  ;;  %v4006_v43 = vpop.f32.mrf.mxu3 }
 0xb81   : > { %v4029_v57 = vadd.f32 %v4028_v29, %v4006_v43  ;;  %v4075_v21 = vpop.f32.mrf.mxu2  ;;  %v4099_v56 = vpop.f32.mrf.mxu1  ;;  %v9248_v29 = vld [vmem:[%s14204_s7 + $0x28] sm:$0xff]  ;;  %v9252_v43 = vld [vmem:[%s14198_s1 + $0x98] sm:$0xf] }
 0xb83   : > { %8016 = vmatmul.msk.f32.gmra.mxu0 %vm785_vm1, %v9216_v25  ;;  %8021 = vmatmul.msk.f32.gmra.mxu2 %vm785_vm1, %v9217_v36  ;;  %v4054_v31 = vadd.f32 %v4051_v41, %v4029_v57  ;;  %v9250_v41 = vld [vmem:[%s14204_s7 + $0x20] sm:$0xff]  ;;  %v9251_v25 = vld [vmem:[%s14204_s7 + $0x88] sm:$0xff] }
 0xb84   : > { %8026 = vmatmul.msk.f32.gmra.mxu3 %vm785_vm1, %v9217_v36  ;;  %v4123_v32 = vpop.f32.mrf.mxu0  ;;  %v9254_v36 = vld [vmem:[%s14204_s7 + $0x80] sm:$0xff] }
 0xb85   : > { %v4078_v51 = vadd.f32 %v4075_v21, %v4054_v31  ;;  %v9253_v21 = vld [vmem:[%s14204_s7 + $0x18] sm:$0xff] }
 0xb87   : > { %v4102_v50 = vadd.f32 %v4099_v56, %v4078_v51  ;;  %v9255_v56 = vld [vmem:[%s14199_s2 + $0x98] sm:$0xf]  ;;  %v9256_v51 = vld [vmem:[%s14204_s7 + $0x10] sm:$0xff] }
 0xb88   : > { %8012 = vmatmul.msk.f32.gmra.mxu1 %vm785_vm1, %v9218_v44 }
 0xb89   : > { %v4126_v46 = vadd.f32 %v4123_v32, %v4102_v50  ;;  %v9257_v50 = vld [vmem:[%s14204_s7 + $0x8] sm:$0xff] }
 0xb8a   : > { %v4147_v35 = vpop.f32.mrf.mxu2 }
 0xb8b   : > { %8017 = vmatmul.msk.f32.gmra.mxu0 %vm785_vm1, %v9218_v44  ;;  %8022 = vmatmul.msk.f32.gmra.mxu2 %vm785_vm1, %v9219_v62  ;;  %v4150_v49 = vadd.f32 %v4147_v35, %v4126_v46  ;;  %v4171_v8 = vpop.f32.mrf.mxu3  ;;  %v9258_v44 = vld [vmem:[%s14198_s1 + $0xa0] sm:$0xff] }
 0xb8c   : > { %8027 = vmatmul.msk.f32.gmra.mxu3 %vm785_vm1, %v9219_v62  ;;  %v9259_v46 = vld [vmem:[%s14204_s7] sm:$0xff] }
 0xb8d   : > { %v4174_v0 = vadd.f32 %v4171_v8, %v4150_v49  ;;  %v12207_v10 = vpop.f32.mrf.mxu1  ;;  %v9260_v62 = vld [vmem:[%s14198_s1 + $0xc0] sm:$0xf]  ;;  %v9262_v8 = vld [vmem:[%s14198_s1 + $0xa8] sm:$0xff] }
 0xb8e   : > { %v9261_v49 = vld [vmem:[%s14199_s2 + $0xa0] sm:$0xff] }
 0xb8f   : > { %v4175_v4 = vadd.f32 %v9220_v27, %v4174_v0 }
 0xb90   : > { %8028 = vmatmul.msk.f32.vlgmr.msra.gmra.mxu1 %vm785_vm1, %v9221_v38 }
 0xb91   : > { %v4176_v7 = vmax.f32 %v4175_v4, 0.0  ;;  %5184 = vmatpush.msra.mxu1 %v9222_v6  ;;  %v9263_v4 = vld [vmem:[%s14199_s2 + $0xa8] sm:$0xff]  ;;  %v9265_v6 = vld [vmem:[%s14199_s2 + $0xb0] sm:$0xff] }
 0xb93   : > { %8033 = vmatmul.msk.f32.vlgmr.msra.gmra.mxu0 %vm785_vm1, %v9221_v38  ;;  %8038 = vmatmul.msk.f32.vlgmr.msra.gmra.mxu2 %vm785_vm1, %v9223_v19  ;;  %4177 = vst.msk [vmem:[#allocation2 + $0x2] sm:$0x3] %vm2578_vm11, %v4176_v7  ;;  %v9264_v38 = vld [vmem:[%s14198_s1 + $0xb0] sm:$0xff] }
 0xb94   : > { %8043 = vmatmul.msk.f32.vlgmr.msra.gmra.mxu3 %vm785_vm1, %v9223_v19  ;;  %5025 = vmatpush.msra.mxu2 %v12132_v23  ;;  %v9231_v23 = vld [vmem:[%s14199_s2 + $0x80] sm:$0xff] }
 0xb95   : > { %5185 = vmatpush.msra.mxu1 %v9224_v61  ;;  %5220 = vmatpush.msra.mxu0 %v9225_v22  ;;  %v9266_v61 = vld [vmem:[%s14198_s1 + $0xb8] sm:$0xff] }
 0xb96   : > { %5026 = vmatpush.msra.mxu2 %v12143_v42  ;;  %v12234_v33 = vpop.f32.mrf.mxu2  ;;  %v9237_v42 = vld [vmem:[%s14204_s7 + $0x48] sm:$0xff] }
 0xb97   : > { %v12236_v48 = vpop.f32.mrf.mxu1  ;;  %5186 = vmatpush.msra.mxu1 %v9226_v11  ;;  %5221 = vmatpush.msra.mxu0 %v9227_v5  ;;  %v12418_v22 = vpop.f32.mrf.mxu3 }
 0xb98   : > { %5027 = vmatpush.msra.mxu2 %v12148_v2  ;;  %8029 = vmatmul.msk.f32.gmra.mxu1 %vm785_vm1, %v9228_v15  ;;  %v9240_v2 = vld [vmem:[%s14204_s7 + $0x40] sm:$0xff]  ;;  %v12420_v11 = vpop.f32.mrf.mxu0 }
 0xb99   : > { %5187 = vmatpush.msra.mxu1 %v9229_v59  ;;  %5222 = vmatpush.msra.mxu0 %v9230_v16 }
 0xb9a   : > { %5028 = vmatpush.msra.mxu2 %v12153_v34  ;;  %v9242_v34 = vld [vmem:[%s14204_s7 + $0x38] sm:$0xff] }
 0xb9b   : > { %8034 = vmatmul.msk.f32.gmra.mxu0 %vm785_vm1, %v9228_v15  ;;  %8039 = vmatmul.msk.f32.gmra.mxu2 %vm785_vm1, %v9231_v23  ;;  %v9267_v15 = vld [vmem:[%s14199_s2 + $0xb8] sm:$0xff] }
 0xb9c   : > { %8044 = vmatmul.msk.f32.gmra.mxu3 %vm785_vm1, %v9231_v23  ;;  %5029 = vmatpush.msra.mxu2 %v12161_v55  ;;  %v9245_v55 = vld [vmem:[%s14204_s7 + $0x30] sm:$0xff] }
 0xb9d   : > { %5188 = vmatpush.msra.mxu1 %v9232_v45  ;;  %5223 = vmatpush.msra.mxu0 %v9233_v20  ;;  %v9268_v45 = vld [vmem:[%s14199_s2 + $0xc0] sm:$0xf] }
 0xb9e   : > { %5030 = vmatpush.msra.mxu2 %v12173_v54 }
 0xb9f   : > { %5189 = vmatpush.msra.mxu1 %v9234_v1  ;;  %5224 = vmatpush.msra.mxu0 %v9235_v12 }
 0xba0   : > { %8030 = vmatmul.msk.f32.gmra.mxu1 %vm785_vm1, %v9236_v30  ;;  %v12280_v52 = vpop.f32.mrf.mxu2  ;;  %v12444_v1 = vpop.f32.mrf.mxu0 }
 0xba1   : > { %v12282_v3 = vpop.f32.mrf.mxu1  ;;  %5190 = vmatpush.msra.mxu1 %v9237_v42  ;;  %5225 = vmatpush.msra.mxu0 %v9238_v18  ;;  %v12432_v16 = vpop.f32.mrf.mxu3  ;;  %14319 = vst [vmem:[#allocation22_spill] sm:$0xff] %v12444_v1 }
 0xba2   : > { %14318 = vst [vmem:[#allocation23_spill] sm:$0xff] %v12432_v16 }
 0xba3   : > { %8035 = vmatmul.msk.f32.gmra.mxu0 %vm785_vm1, %v9236_v30  ;;  %8040 = vmatmul.msk.f32.gmra.mxu2 %vm785_vm1, %v9239_v39 }
 0xba4   : > { %8045 = vmatmul.msk.f32.gmra.mxu3 %vm785_vm1, %v9239_v39  ;;  %5191 = vmatpush.msra.mxu1 %v9240_v2 }
 0xba5   : > { %5226 = vmatpush.msra.mxu0 %v9241_v60 }
 0xba6   : > { %5192 = vmatpush.msra.mxu1 %v9242_v34 }
 0xba7   : > { %5227 = vmatpush.msra.mxu0 %v9243_v9 }
 0xba8   : > { %8031 = vmatmul.msk.f32.gmra.mxu1 %vm785_vm1, %v9244_v17  ;;  %v12451_v18 = vpop.f32.mrf.mxu0 }
 0xba9   : > { %v12312_v28 = vpop.f32.mrf.mxu1  ;;  %5193 = vmatpush.msra.mxu1 %v9245_v55  ;;  %5228 = vmatpush.msra.mxu0 %v9246_v63 }
 0xbaa   : > { %v12320_v54 = vpop.f32.mrf.mxu2 }
 0xbab   : > { %8036 = vmatmul.msk.f32.gmra.mxu0 %vm785_vm1, %v9244_v17  ;;  %8041 = vmatmul.msk.f32.gmra.mxu2 %vm785_vm1, %v9247_v53  ;;  %v12449_v42 = vpop.f32.mrf.mxu3 }
 0xbac   : > { %8046 = vmatmul.msk.f32.gmra.mxu3 %vm785_vm1, %v9247_v53  ;;  %5194 = vmatpush.msra.mxu1 %v9248_v29 }
 0xbad   : > { %5229 = vmatpush.msra.mxu0 %v9249_v58 }
 0xbae   : > { %5195 = vmatpush.msra.mxu1 %v9250_v41 }
 0xbaf   : > { %5230 = vmatpush.msra.mxu0 %v9251_v25 }
 0xbb0   : > { %8032 = vmatmul.msk.f32.gmra.mxu1 %vm785_vm1, %v9252_v43  ;;  %v12455_v34 = vpop.f32.mrf.mxu0 }
 0xbb1   : > { %v12344_v57 = vpop.f32.mrf.mxu1  ;;  %5196 = vmatpush.msra.mxu1 %v9253_v21  ;;  %5231 = vmatpush.msra.mxu0 %v9254_v36  ;;  %14321 = vst [vmem:[#allocation21_spill] sm:$0xff] %v12455_v34 }
 0xbb2   : > { %v12352_v31 = vpop.f32.mrf.mxu2 }
 0xbb3   : > { %8037 = vmatmul.msk.f32.gmra.mxu0 %vm785_vm1, %v9252_v43  ;;  %8042 = vmatmul.msk.f32.gmra.mxu2 %vm785_vm1, %v9255_v56  ;;  %v12453_v60 = vpop.f32.mrf.mxu3 }
 0xbb4   : > { %8047 = vmatmul.msk.f32.gmra.mxu3 %vm785_vm1, %v9255_v56  ;;  %5197 = vmatpush.msra.mxu1 %v9256_v51  ;;  %14320 = vst [vmem:[#allocation20_spill] sm:$0xff] %v12453_v60 }
 0xbb6   : > { %5198 = vmatpush.msra.mxu1 %v9257_v50 }
 0xbb8   : > { %8048 = vmatmul.msk.f32.vlgmr.msrb.gmra.mxu1 %vm785_vm1, %v9258_v44  ;;  %v12459_v63 = vpop.f32.mrf.mxu0 }
 0xbb9   : > { %v12370_v32 = vpop.f32.mrf.mxu1  ;;  %5199 = vmatpush.msra.mxu1 %v9259_v46  ;;  %14323 = vst [vmem:[#allocation7_spill] sm:$0xff] %v12459_v63  ;;  %v4345_v63 = vadd.f32 %v12234_v33, %v12207_v10 }
 0xbba   : > { %v12375_v35 = vpop.f32.mrf.mxu2 }
 0xbbb   : > { %8052 = vmatmul.msk.f32.vlgmr.msrb.gmra.mxu2 %vm785_vm1, %v9260_v62  ;;  %8053 = vmatmul.msk.f32.vlgmr.msrb.gmra.mxu0 %vm785_vm1, %v9258_v44  ;;  %v12457_v55 = vpop.f32.mrf.mxu3 }
 0xbbc   : > { %8063 = vmatmul.msk.f32.vlgmr.msrb.gmra.mxu3 %vm785_vm1, %v9261_v49  ;;  %14322 = vst [vmem:[#allocation14_spill] sm:$0xff] %v12457_v55 }
 0xbc0   : > { %8049 = vmatmul.msk.f32.gmra.mxu1 %vm785_vm1, %v9262_v8  ;;  %v12465_v41 = vpop.f32.mrf.mxu0 }
 0xbc2   : > { %v12390_v0 = vpop.f32.mrf.mxu2 }
 0xbc3   : > { %8054 = vmatmul.msk.f32.gmra.mxu0 %vm785_vm1, %v9262_v8  ;;  %8058 = vmatmul.msk.f32.vlgmr.msra.gmra.mxu2 %vm785_vm1, %v9261_v49  ;;  %v12394_v27 = vpop.f32.mrf.mxu1  ;;  %v12463_v58 = vpop.f32.mrf.mxu3 }
 0xbc4   : > { %8064 = vmatmul.msk.f32.gmra.mxu3 %vm785_vm1, %v9263_v4 }
 0xbc8   : > { %8050 = vmatmul.msk.f32.gmra.mxu1 %vm785_vm1, %v9264_v38  ;;  %v12475_v51 = vpop.f32.mrf.mxu0 }
 0xbc9   : > { %14325 = vst [vmem:[#allocation17_spill] sm:$0xff] %v12475_v51  ;;  %v4348_v51 = vadd.f32 %v12280_v52, %v12236_v48  ;;  %v4351_v48 = vadd.f32 %v12320_v54, %v12282_v3  ;;  %v4354_v54 = vadd.f32 %v12352_v31, %v12312_v28 }
 0xbcb   : > { %8055 = vmatmul.msk.f32.gmra.mxu0 %vm785_vm1, %v9264_v38  ;;  %8059 = vmatmul.msk.f32.gmra.mxu2 %vm785_vm1, %v9263_v4  ;;  %v12406_v7 = vpop.f32.mrf.mxu1 }
 0xbcc   : > { %8065 = vmatmul.msk.f32.gmra.mxu3 %vm785_vm1, %v9265_v6  ;;  %v12412_v19 = vpop.f32.mrf.mxu2 }
 0xbcd   : > { %v12471_v21 = vpop.f32.mrf.mxu3 }
 0xbce   : > { %14324 = vst [vmem:[#allocation8_spill] sm:$0xff] %v12471_v21 }
 0xbd0   : > { %8051 = vmatmul.msk.f32.gmra.mxu1 %vm785_vm1, %v9266_v61 }
 0xbd3   : > { %8056 = vmatmul.msk.f32.gmra.mxu0 %vm785_vm1, %v9266_v61  ;;  %8060 = vmatmul.msk.f32.gmra.mxu2 %vm785_vm1, %v9265_v6  ;;  %v12424_v5 = vpop.f32.mrf.mxu1 }
 0xbd4   : > { %8066 = vmatmul.msk.f32.gmra.mxu3 %vm785_vm1, %v9267_v15  ;;  %v12430_v59 = vpop.f32.mrf.mxu2 }
 0xbd5   : > { %v12477_v46 = vpop.f32.mrf.mxu3  ;;  %v4479_v52 = vadd.f32 %v12430_v59, %v12406_v7 }
 0xbdb   : > { %8057 = vmatmul.msk.f32.gmra.mxu0 %vm785_vm1, %v9260_v62  ;;  %8061 = vmatmul.msk.f32.gmra.mxu2 %vm785_vm1, %v9267_v15  ;;  %v12436_v23 = vpop.f32.mrf.mxu1  ;;  %v12479_v62 = vpop.f32.mrf.mxu0 }
 0xbdc   : > { %8067 = vmatmul.msk.f32.gmra.mxu3 %vm785_vm1, %v9268_v45  ;;  %v12442_v20 = vpop.f32.mrf.mxu2 }
 0xbdd   : > { %v12481_v4 = vpop.f32.mrf.mxu3  ;;  %v4482_v7 = vadd.f32 %v12442_v20, %v12424_v5  ;;  %v4357_v5 = vadd.f32 %v12375_v35, %v12344_v57 }
 0xbde   : > { %14326 = vst [vmem:[#allocation12_spill] sm:$0xff] %v12481_v4 }
 0xbe3   : > { %8062 = vmatmul.msk.f32.gmra.mxu2 %vm785_vm1, %v9268_v45  ;;  %v4578_v12 = vpop.f32.mrf.mxu1  ;;  %v12483_v38 = vpop.f32.mrf.mxu0 }
 0xbe4   : > { %v12447_v30 = vpop.f32.mrf.mxu2  ;;  %14327 = vst [vmem:[#allocation5_spill] sm:$0xff] %v12483_v38  ;;  %v4625_v60 = vadd.f32 %v4578_v12, %v4345_v63 }
 0xbe5   : > { %v12485_v15 = vpop.f32.mrf.mxu3  ;;  %v4485_v20 = vadd.f32 %v12447_v30, %v12436_v23 }
 0xbe6   : > { %14328 = vst [vmem:[#allocation18_spill] sm:$0xff] %v12485_v15  ;;  %v4473_v15 = vadd.f32 %v12390_v0, %v12370_v32 }
 0xbeb   : > { %v12487_v45 = vpop.f32.mrf.mxu0 }
 0xbec   : > { %v4652_v39 = vpop.f32.mrf.mxu2  ;;  %14329 = vst [vmem:[#allocation19_spill] sm:$0xff] %v12487_v45 }
 0xbed   : > { %v4581_v2 = vpop.f32.mrf.mxu1  ;;  %v12491_v47 = vpop.f32.mrf.mxu3  ;;  %v4699_v34 = vadd.f32 %v4652_v39, %v4473_v15 }
 0xbee   : > { %v4627_v32 = vadd.f32 %v4581_v2, %v4348_v51 }
 0xbf3   : > { %v12495_v13 = vpop.f32.mrf.mxu0 }
 0xbf4   : > { %14330 = vst [vmem:[#allocation6_spill] sm:$0xff] %v12495_v13 }
 0xbf5   : > { %v4584_v9 = vpop.f32.mrf.mxu1 }
 0xbf6   : > { %v4655_v17 = vpop.f32.mrf.mxu2 }
 0xbf7   : > { %v12499_v55 = vpop.f32.mrf.mxu3 }
 0xbf8   : > { %14331 = vst [vmem:[#allocation13_spill] sm:$0xff] %v12499_v55  ;;  %v4476_v55 = vadd.f32 %v12412_v19, %v12394_v27  ;;  %v4629_v19 = vadd.f32 %v4584_v9, %v4351_v48 }
 0xbfa   : > { %v4701_v0 = vadd.f32 %v4655_v17, %v4476_v55 }
 0xbfb   : > { %v12505_v45 = vpop.f32.mrf.mxu0 }
 0xbfd   : > { %v12461_v53 = vpop.f32.mrf.mxu1 }
 0xbfe   : > { %v4658_v29 = vpop.f32.mrf.mxu2  ;;  %v4631_v9 = vadd.f32 %v12461_v53, %v4354_v54 }
 0xbff   : > { %v12511_v10 = vpop.f32.mrf.mxu3 }
 0xc03   : > { %v12515_v12 = vpop.f32.mrf.mxu0 }
 0xc05   : > { %v12467_v25 = vpop.f32.mrf.mxu1 }
 0xc06   : > { %v12469_v43 = vpop.f32.mrf.mxu2 }
 0xc07   : > { %v12525_v2 = vpop.f32.mrf.mxu3 }
 0xc0b   : > { %v12529_v17 = vpop.f32.mrf.mxu0 }
 0xc0d   : > { %v4768_v36 = vpop.f32.mrf.mxu1 }
 0xc0e   : > { %v12473_v56 = vpop.f32.mrf.mxu2  ;;  %v4815_v4 = vadd.f32 %v4768_v36, %v4625_v60 }
 0xc15   : > { %v4771_v50 = vpop.f32.mrf.mxu1 }
 0xc16   : > { %v4842_v44 = vpop.f32.mrf.mxu2 }
 0xc17   : > { %v4889_v38 = vadd.f32 %v4842_v44, %v4699_v34 }
 0xc1d   : > { %v4774_v8 = vpop.f32.mrf.mxu1 }
 0xc1e   : > { %v4845_v49 = vpop.f32.mrf.mxu2  ;;  %v4819_v55 = vadd.f32 %v4774_v8, %v4629_v19  ;;  %v4505_v19 = vadd.f32 %v12463_v58, %v12465_v41 }
 0xc25   : > { %v4777_v61 = vpop.f32.mrf.mxu1 }
 0xc26   : > { %v4848_v6 = vpop.f32.mrf.mxu2  ;;  %v4821_v44 = vadd.f32 %v4777_v61, %v4631_v9 }
 0xc2d   : > { %v12489_v37 = vpop.f32.mrf.mxu1 }
 0xc2e   : > { %v4851_v14 = vpop.f32.mrf.mxu2 }
 0xc35   : > { %v4958_v26 = vpop.f32.mrf.mxu1 }
 0xc36   : > { %v12493_v24 = vpop.f32.mrf.mxu2  ;;  %v5005_v1 = vadd.f32 %v4958_v26, %v4815_v4  ;;  %v4817_v26 = vadd.f32 %v4771_v50, %v4627_v32  ;;  %v12541_v50 = vpop.f32.mrf.mxu3 }
 0xc37   : > { %v12543_v4 = vpop.f32.mrf.mxu0 }
 0xc3d   : > { %v4961_v21 = vpop.f32.mrf.mxu1 }
 0xc3e   : > { %v12497_v40 = vpop.f32.mrf.mxu2  ;;  %v5007_v60 = vadd.f32 %v4961_v21, %v4817_v26  ;;  %v4874_v35 = vpop.f32.mrf.mxu3 }
 0xc3f   : > { %v4800_v61 = vpop.f32.mrf.mxu0 }
 0xc45   : > { %v4964_v27 = vpop.f32.mrf.mxu1 }
 0xc46   : > { %v5032_v16 = vpop.f32.mrf.mxu2  ;;  %v5009_v36 = vadd.f32 %v4964_v27, %v4819_v55 }
 0xc47   : > { %v5079_v13 = vadd.f32 %v5032_v16, %v4889_v38  ;;  %v4891_v16 = vadd.f32 %v4845_v49, %v4701_v0  ;;  %v4707_v38 = vadd.f32 %v12473_v56, %v4485_v20  ;;  %v4803_v56 = vpop.f32.mrf.mxu0 }
 0xc49   : > { %v12513_v33 = vmax.f32 %v5005_v1, %v5079_v13  ;;  %v4703_v1 = vadd.f32 %v4658_v29, %v4479_v52  ;;  %v4705_v29 = vadd.f32 %v12469_v43, %v4482_v7  ;;  %v4633_v43 = vadd.f32 %v12467_v25, %v4357_v5  ;;  %v4877_v25 = vpop.f32.mrf.mxu3  ;;  %v14332_v7 = vld [vmem:[#allocation17_spill] sm:$0xff] }
 0xc4a   : > { %v4383_v52 = vadd.f32 %v12449_v42, %v12451_v18  ;;  %v14333_v42 = vld [vmem:[#allocation8_spill] sm:$0xff] }
 0xc4b   : > { %5099 = vrot.lane.b32.xlu0 %v12513_v33, %s14277_s20  ;;  %v4893_v63 = vadd.f32 %v4848_v6, %v4703_v1  ;;  %v4895_v49 = vadd.f32 %v4851_v14, %v4705_v29  ;;  %v4823_v14 = vadd.f32 %v12489_v37, %v4633_v43  ;;  %v4897_v6 = vadd.f32 %v12493_v24, %v4707_v38 }
 0xc4c   : > { %v4630_v1 = vadd.f32 %v12515_v12, %v4383_v52  ;;  %v4508_v18 = vadd.f32 %v14333_v42, %v14332_v7 }
 0xc4d   : > { %v4967_v51 = vpop.f32.mrf.mxu1  ;;  %v5013_v23 = vadd.f32 %v12497_v40, %v4823_v14 }
 0xc4e   : > { %v5035_v39 = vpop.f32.mrf.mxu2  ;;  %v5011_v28 = vadd.f32 %v4967_v51, %v4821_v44  ;;  %v14337_v51 = vld [vmem:[#allocation13_spill] sm:$0xff] }
 0xc4f   : > { %v5081_v34 = vadd.f32 %v5035_v39, %v4891_v16  ;;  %v4806_v37 = vpop.f32.mrf.mxu0  ;;  %v4702_v44 = vadd.f32 %v14337_v51, %v4508_v18 }
 0xc51   : > { %v12523_v13 = vmax.f32 %v5007_v60, %v5081_v34  ;;  %v4880_v32 = vpop.f32.mrf.mxu3  ;;  %v4511_v34 = vadd.f32 %v12477_v46, %v12479_v62  ;;  %v4820_v46 = vadd.f32 %v4806_v37, %v4630_v1  ;;  %v4892_v5 = vadd.f32 %v4877_v25, %v4702_v44  ;;  %v14340_v25 = vld [vmem:[#allocation21_spill] sm:$0xff]  ;;  %v14341_v37 = vld [vmem:[#allocation20_spill] sm:$0xff]  ;;  %v14344_v1 = vld [vmem:[#allocation7_spill] sm:$0xff] }
 0xc53   : > { %5101 = vrot.lane.b32.xlu1 %v12523_v13, %s14277_s20  ;;  %v4704_v27 = vadd.f32 %v12511_v10, %v4511_v34  ;;  %v14334_v10 = vld [vmem:[#allocation6_spill] sm:$0xff] }
 0xc54   : > { %v14343_v34 = vld [vmem:[#allocation18_spill] sm:$0xff] }
 0xc55   : > { %v4894_v55 = vadd.f32 %v4880_v32, %v4704_v27 }
 0xc56   : > { %v5038_v21 = vpop.f32.mrf.mxu2 }
 0xc57   : > { %v5083_v3 = vadd.f32 %v5038_v21, %v4893_v63  ;;  %v4809_v24 = vpop.f32.mrf.mxu0 }
 0xc59   : > { %v12535_v59 = vmax.f32 %v5009_v36, %v5083_v3  ;;  %v4883_v0 = vpop.f32.mrf.mxu3  ;;  %v4377_v36 = vadd.f32 %v12418_v22, %v12420_v11  ;;  %v4700_v3 = vadd.f32 %v12491_v47, %v4505_v19  ;;  %v14335_v22 = vld [vmem:[#allocation22_spill] sm:$0xff]  ;;  %v14336_v11 = vld [vmem:[#allocation23_spill] sm:$0xff] }
 0xc5a   : > { %v4380_v47 = vadd.f32 %v14336_v11, %v14335_v22 }
 0xc5b   : > { %5103 = vrot.lane.b32.xlu2 %v12535_v59, %s14277_s20  ;;  %v4626_v9 = vadd.f32 %v14334_v10, %v4377_v36  ;;  %v4890_v29 = vadd.f32 %v4874_v35, %v4700_v3  ;;  %v14338_v35 = vld [vmem:[#allocation5_spill] sm:$0xff] }
 0xc5e   : > { %v5041_v8 = vpop.f32.mrf.mxu2 }
 0xc5f   : > { %v5085_v31 = vadd.f32 %v5041_v8, %v4895_v49  ;;  %v12566_v16 = vpop.f32.mrf.mxu0  ;;  %v4816_v49 = vadd.f32 %v4800_v61, %v4626_v9 }
 0xc61   : > { %v12549_v53 = vmax.f32 %v5011_v28, %v5085_v31  ;;  %v4886_v26 = vpop.f32.mrf.mxu3  ;;  %v4628_v31 = vadd.f32 %v12505_v45, %v4380_v47 }
 0xc63   : > { %5124 = vrot.lane.b32.xlu2 %v12513_v33, %s14296_s23  ;;  %5105 = vrot.lane.b32.xlu0 %v12549_v53, %s14277_s20  ;;  %v4818_v14 = vadd.f32 %v4803_v56, %v4628_v31 }
 0xc66   : > { %v5044_v57 = vpop.f32.mrf.mxu2 }
 0xc67   : > { %v5087_v30 = vadd.f32 %v5044_v57, %v4897_v6  ;;  %v4990_v39 = vpop.f32.mrf.mxu0 }
 0xc68   : > { %v5006_v28 = vadd.f32 %v4990_v39, %v4816_v49 }
 0xc69   : > { %v12560_v15 = vmax.f32 %v5013_v23, %v5087_v30  ;;  %v5064_v40 = vpop.f32.mrf.mxu3  ;;  %v14339_v23 = vld [vmem:[#allocation12_spill] sm:$0xff] }
 0xc6a   : > { %v5080_v8 = vadd.f32 %v5064_v40, %v4890_v29  ;;  %v4514_v30 = vadd.f32 %v14339_v23, %v14338_v35  ;;  %v4386_v40 = vadd.f32 %v14341_v37, %v14340_v25  ;;  %v14347_v25 = vld [vmem:[#allocation4_spill] sm:$0xff] }
 0xc6b   : > { %5107 = vrot.lane.b32.xlu1 %v12560_v15, %s14277_s20 }
 0xc6c   : > { %v5090_v20 = vmax.f32 %v5006_v28, %v5080_v8  ;;  %v4706_v39 = vadd.f32 %v12525_v2, %v4514_v30  ;;  %v4632_v52 = vadd.f32 %v12529_v17, %v4386_v40  ;;  %v14346_v30 = vld [vmem:[#allocation3_spill] sm:$0xff] }
 0xc6e   : > { %v4896_v27 = vadd.f32 %v4883_v0, %v4706_v39  ;;  %v4822_v36 = vadd.f32 %v4809_v24, %v4632_v52 }
 0xc6f   : > { %v4993_v48 = vpop.f32.mrf.mxu0 }
 0xc70   : > { %v5008_v57 = vadd.f32 %v4993_v48, %v4818_v14 }
 0xc71   : > { %v5067_v60 = vpop.f32.mrf.mxu3 }
 0xc72   : > { %v5082_v6 = vadd.f32 %v5067_v60, %v4892_v5  ;;  %v14342_v60 = vld [vmem:[#allocation19_spill] sm:$0xff] }
 0xc73   : > { %5128 = vrot.lane.b32.xlu1 %v12523_v13, %s14296_s23  ;;  %v4517_v48 = vadd.f32 %v14343_v34, %v14342_v60 }
 0xc74   : > { %v5092_v61 = vmax.f32 %v5008_v57, %v5082_v6 }
 0xc77   : > { %v4996_v21 = vpop.f32.mrf.mxu0 }
 0xc78   : > { %v5010_v54 = vadd.f32 %v4996_v21, %v4820_v46  ;;  %v4708_v21 = vadd.f32 %v12541_v50, %v4517_v48 }
 0xc79   : > { %v5070_v63 = vpop.f32.mrf.mxu3 }
 0xc7a   : > { %v5084_v62 = vadd.f32 %v5070_v63, %v4894_v55  ;;  %v14345_v55 = vld [vmem:[#allocation14_spill] sm:$0xff] }
 0xc7b   : > { %v4389_v63 = vadd.f32 %v14345_v55, %v14344_v1  ;;  %v14349_v55 = vld [vmem:[#allocation10_spill] sm:$0xff] }
 0xc7c   : > { %v12582_v58 = vmax.f32 %v5010_v54, %v5084_v62  ;;  %v4898_v62 = vadd.f32 %v4886_v26, %v4708_v21 }
 0xc7d   : > { %v4634_v2 = vadd.f32 %v12543_v4, %v4389_v63 }
 0xc7f   : > { %v4999_v19 = vpop.f32.mrf.mxu0  ;;  %v4824_v18 = vadd.f32 %v12566_v16, %v4634_v2 }
 0xc80   : > { %v5012_v46 = vadd.f32 %v4999_v19, %v4822_v36 }
 0xc81   : > { %v5073_v56 = vpop.f32.mrf.mxu3 }
 0xc82   : > { %v5086_v3 = vadd.f32 %v5073_v56, %v4896_v27 }
 0xc84   : > { %v5096_v54 = vmax.f32 %v5012_v46, %v5086_v3 }
 0xc87   : > { %v5002_v0 = vpop.f32.mrf.mxu0 }
 0xc88   : > { %v5014_v9 = vadd.f32 %v5002_v0, %v4824_v18  ;;  %v9269_v0 = vld [vmem:[%s14201_s4] sm:$0xff]  ;;  %v9270_v18 = vld [vmem:[%s14201_s4 + $0x8] sm:$0xff] }
 0xc89   : > { %v5076_v7 = vpop.f32.mrf.mxu3 }
 0xc8a   : > { %v5088_v10 = vadd.f32 %v5076_v7, %v4898_v62  ;;  %v14350_v62 = vld [vmem:[#allocation16_spill] sm:$0xff] }
 0xc8c   : > { %v5098_v29 = vmax.f32 %v5014_v9, %v5088_v10  ;;  %v9271_v10 = vld [vmem:[%s14202_s5] sm:$0xff]  ;;  %v9272_v9 = vld [vmem:[%s14202_s5 + $0x8] sm:$0xff] }
 0xcb5   : > { %v5104_v41 = vpop.permute.xlu2 %5103 }
 0xcb6   : > { %v5111_v12 = vsel %vm711_vm0, %v5104_v41, %v12582_v58 }
 0xcb7   : > { %5134 = vrot.lane.b32.xlu1 %v5111_v12, %s14296_s23 }
 0xcbd   : > { %v5100_v43 = vpop.permute.xlu0 %5099  ;;  %v5125_v4 = vpop.permute.xlu2 %5124 }
 0xcbe   : > { %v5109_v38 = vsel %vm711_vm0, %v5100_v43, %v5090_v20 }
 0xcbf   : > { %5126 = vrot.lane.b32.xlu0 %v5109_v38, %s14296_s23  ;;  %5140 = vrot.lane.b32.xlu1 %v12560_v15, %s14296_s23 }
 0xcc5   : > { %v5102_v32 = vpop.permute.xlu1 %5101 }
 0xcc6   : > { %v5110_v45 = vsel %vm711_vm0, %v5102_v32, %v5092_v61 }
 0xcc7   : > { %5130 = vrot.lane.b32.xlu2 %v5110_v45, %s14296_s23  ;;  %5132 = vrot.lane.b32.xlu0 %v12535_v59, %s14296_s23 }
 0xccf   : > { %5136 = vrot.lane.b32.xlu2 %v12549_v53, %s14296_s23 }
 0xcd5   : > { %v5106_v42 = vpop.permute.xlu0 %5105 }
 0xcd6   : > { %v5112_v17 = vsel %vm711_vm0, %v5106_v42, %v5096_v54 }
 0xcd7   : > { %5138 = vrot.lane.b32.xlu0 %v5112_v17, %s14296_s23 }
 0xcdd   : > { %v5108_v50 = vpop.permute.xlu1 %5107 }
 0xcde   : > { %v5113_v24 = vsel %vm711_vm0, %v5108_v50, %v5098_v29 }
 0xcdf   : > { %5142 = vrot.lane.b32.xlu2 %v5113_v24, %s14296_s23 }
 0xce5   : > { %v5129_v16 = vpop.permute.xlu1 %5128 }
 0xd21   : > { %v5131_v11 = vpop.permute.xlu2 %5130 }
 0xd22   : > { %v5145_v47 = vsel %vm766_vm2, %v5129_v16, %v5131_v11  ;;  %v5162_v51 = vmax.f32 %v5092_v61, %v5131_v11 }
 0xd23   : > { %v5161_v44 = vmax.f32 %v12523_v13, %v5145_v47 }
 0xd29   : > { %v5135_v8 = vpop.permute.xlu1 %5134  ;;  %v5137_v5 = vpop.permute.xlu2 %5136 }
 0xd2a   : > { %v5164_v31 = vmax.f32 %v12582_v58, %v5135_v8 }
 0xd31   : > { %v5127_v26 = vpop.permute.xlu0 %5126  ;;  %v5141_v6 = vpop.permute.xlu1 %5140 }
 0xd32   : > { %v5144_v41 = vsel %vm766_vm2, %v5125_v4, %v5127_v26  ;;  %v5160_v12 = vmax.f32 %v5090_v20, %v5127_v26 }
 0xd33   : > { %v5159_v22 = vmax.f32 %v12513_v33, %v5144_v41 }
 0xd34   : > { %8068 = vmatmul.msk.f32.vlgmr.msra.gmra.mxu0 %vm1870_vm6, %v5160_v12 }
 0xd35   : > { %5200 = vmatmul.f32.vlgmr.msra.gmra.mxu1 %v5159_v22 }
 0xd39   : > { %v5133_v49 = vpop.permute.xlu0 %5132  ;;  %v5143_v14 = vpop.permute.xlu2 %5142 }
 0xd3a   : > { %v5146_v28 = vsel %vm766_vm2, %v5133_v49, %v5135_v8  ;;  %v5148_v57 = vsel %vm766_vm2, %v5141_v6, %v5143_v14  ;;  %v5168_v58 = vmax.f32 %v5098_v29, %v5143_v14  ;;  %v9273_v49 = vld [vmem:[%s14201_s4 + $0x10] sm:$0xff] }
 0xd3b   : > { %v5163_v33 = vmax.f32 %v12535_v59, %v5146_v28  ;;  %v5167_v59 = vmax.f32 %v12560_v15, %v5148_v57  ;;  %v14348_v15 = vld [vmem:[#allocation9_spill] sm:$0xff] }
 0xd3c   : > { %8069 = vmatmul.msk.f32.gmra.mxu0 %vm1870_vm6, %v5162_v51 }
 0xd3d   : > { %5203 = vmatmul.f32.gmra.mxu1 %v5161_v44 }
 0xd44   : > { %8070 = vmatmul.msk.f32.gmra.mxu0 %vm1870_vm6, %v5164_v31 }
 0xd45   : > { %5206 = vmatmul.f32.gmra.mxu1 %v5163_v33 }
 0xd49   : > { %v5139_v20 = vpop.permute.xlu0 %5138 }
 0xd4a   : > { %v5147_v43 = vsel %vm766_vm2, %v5137_v5, %v5139_v20  ;;  %v5166_v38 = vmax.f32 %v5096_v54, %v5139_v20  ;;  %v9274_v20 = vld [vmem:[%s14201_s4 + $0x18] sm:$0xff] }
 0xd4b   : > { %v5165_v13 = vmax.f32 %v12549_v53, %v5147_v43 }
 0xd4c   : > { %8071 = vmatmul.msk.f32.gmra.mxu0 %vm1870_vm6, %v5166_v38  ;;  %v9275_v38 = vld [vmem:[%s14202_s5 + $0x20] sm:$0xff] }
 0xd4d   : > { %5209 = vmatmul.f32.gmra.mxu1 %v5165_v13 }
 0xd54   : > { %8072 = vmatmul.msk.f32.gmra.mxu0 %vm1870_vm6, %v5168_v58 }
 0xd55   : > { %5212 = vmatmul.f32.gmra.mxu1 %v5167_v59 }
 0xdb1   : > { %v5233_v35 = vpop.f32.mrf.mxu0 }
 0xdb2   : > { %v5201_v23 = vpop.f32.mrf.mxu1 }
 0xdb3   : > { %v5202_v61 = vadd.f32 %v5201_v23, %v14346_v30  ;;  %v9276_v23 = vld [vmem:[%s14202_s5 + $0x10] sm:$0xff] }
 0xdb5   : > { %v5234_v53 = vadd.f32 %v5233_v35, %v5202_v61 }
 0xdb7   : > { %v5248_v39 = vmax.f32 %v5234_v53, 0.0  ;;  %v9278_v53 = vld [vmem:[%s14206_s9 + $0xa0] sm:$0x1f] }
 0xdb9   : > { %v5236_v32 = vpop.f32.mrf.mxu0 }
 0xdba   : > { %v5204_v45 = vpop.f32.mrf.mxu1 }
 0xdbb   : > { %v5205_v37 = vadd.f32 %v5204_v45, %v14347_v25 }
 0xdbd   : > { %v5237_v40 = vadd.f32 %v5236_v32, %v5205_v37  ;;  %v9277_v32 = vld [vmem:[%s14202_s5 + $0x28] sm:$0xff]  ;;  %v9279_v37 = vld [vmem:[%s14201_s4 + $0x30] sm:$0xff] }
 0xdbf   : > { %v5249_v56 = vmax.f32 %v5237_v40, 0.0  ;;  %v9280_v40 = vld [vmem:[%s14202_s5 + $0x18] sm:$0xff] }
 0xdc1   : > { %v5239_v60 = vpop.f32.mrf.mxu0  ;;  %v8801_v34 = vpack.i.bf16 %v5248_v39, %v5249_v56 }
 0xdc2   : > { %v5207_v48 = vpop.f32.mrf.mxu1 }
 0xdc3   : > { %8802 = vrot.lane.b32.xlu2 %v8801_v34, %s14296_s23  ;;  %v5208_v52 = vadd.f32 %v5207_v48, %v14348_v15  ;;  %v9285_v48 = vld [vmem:[%s14202_s5 + $0x40] sm:$0xff] }
 0xdc5   : > { %v5240_v1 = vadd.f32 %v5239_v60, %v5208_v52  ;;  %v9283_v60 = vld [vmem:[%s14206_s9 + $0x68] sm:$0x1f]  ;;  %v9286_v52 = vld [vmem:[%s14205_s8 + $0x70] sm:$0xff] }
 0xdc7   : > { %v5250_v36 = vmax.f32 %v5240_v1, 0.0  ;;  %v9289_v1 = vld [vmem:[%s14205_s8 + $0x68] sm:$0xff] }
 0xdc9   : > { %v5242_v27 = vpop.f32.mrf.mxu0 }
 0xdca   : > { %v5210_v19 = vpop.f32.mrf.mxu1 }
 0xdcb   : > { %v5211_v63 = vadd.f32 %v5210_v19, %v14349_v55  ;;  %8812 = vrot.lane.b32.xlu2 %v8801_v34, %s14279_s28  ;;  %v9288_v19 = vld [vmem:[%s14206_s9 + $0x90] sm:$0xff] }
 0xdcd   : > { %v5243_v21 = vadd.f32 %v5242_v27, %v5211_v63  ;;  %v9287_v27 = vld [vmem:[%s14206_s9 + $0x60] sm:$0xff]  ;;  %v9290_v63 = vld [vmem:[%s14206_s9 + $0x58] sm:$0xff] }
 0xdcf   : > { %v5251_v3 = vmax.f32 %v5243_v21, 0.0  ;;  %v9291_v21 = vld [vmem:[%s14201_s4 + $0x38] sm:$0xff] }
 0xdd1   : > { %v8796_v46 = vpack.i.bf16 %v5250_v36, %v5251_v3  ;;  %v5245_v7 = vpop.f32.mrf.mxu0 }
 0xdd2   : > { %v5213_v2 = vpop.f32.mrf.mxu1 }
 0xdd3   : > { %v5214_v54 = vadd.f32 %v5213_v2, %v14350_v62  ;;  %8797 = vrot.lane.b32.xlu1 %v8796_v46, %s14296_s23  ;;  %v9295_v2 = vld [vmem:[%s14205_s8 + $0x60] sm:$0xff] }
 0xdd5   : > { %v5246_v42 = vadd.f32 %v5245_v7, %v5214_v54  ;;  %v9296_v54 = vld [vmem:[%s14206_s9 + $0x30] sm:$0x1f] }
 0xdd6   : > { %v9297_v7 = vld [vmem:[%s14206_s9 + $0x50] sm:$0xff] }
 0xdd7   : > { %v5252_v17 = vmax.f32 %v5246_v42, 0.0  ;;  %v9298_v42 = vld [vmem:[%s14206_s9 + $0x80] sm:$0xff] }
 0xdd9   : > { %5432 = vrot.lane.b32.xlu2 %v5252_v17, %s14275_s16  ;;  %5261 = vrot.lane.b32.xlu0 %v5252_v17, %s14296_s23 }
 0xdda   : > { %8076 = vmatpush.msk.msra.mxu3 %vm1972_vm7, %v5252_v17 }
 0xddb   : > { %8807 = vrot.lane.b32.xlu1 %v8796_v46, %s14279_s28 }
 0xddc   : > { %5304 = vmatpush.msra.mxu3 %v5251_v3 }
 0xdde   : > { %5305 = vmatpush.msra.mxu3 %v5250_v36 }
 0xde0   : > { %5306 = vmatpush.msra.mxu3 %v5249_v56 }
 0xde1   : > { %8832 = vrot.lane.b32.xlu2 %v8801_v34, %s14275_s16  ;;  %5369 = vrot.lane.b32.xlu0 %v5252_v17, %s14279_s28 }
 0xde2   : > { %5307 = vmatpush.msra.mxu3 %v5248_v39 }
 0xde3   : > { %8817 = vrot.lane.b32.xlu1 %v8796_v46, %s14276_s17  ;;  %8077 = vmatmul.msk.f32.vlgmr.msra.gmra.mxu3 %vm1965_vm8, %v9269_v0  ;;  %v9300_v0 = vld [vmem:[%s14205_s8 + $0x58] sm:$0xff] }
 0xde4   : > { %8082 = vmatpush.msk.msrb.mxu3 %vm1972_vm7, %v5252_v17 }
 0xde6   : > { %5350 = vmatpush.msrb.mxu3 %v5251_v3  ;;  %v9293_v3 = vld [vmem:[%s14201_s4 + $0x20] sm:$0xff] }
 0xde8   : > { %5351 = vmatpush.msrb.mxu3 %v5250_v36  ;;  %v9292_v36 = vld [vmem:[%s14206_s9 + $0x88] sm:$0xff] }
 0xde9   : > { %5495 = vrot.lane.b32.xlu0 %v5252_v17, %s14276_s17  ;;  %v9299_v17 = vld [vmem:[%s14202_s5 + $0x48] sm:$0xff] }
 0xdea   : > { %5352 = vmatpush.msrb.mxu3 %v5249_v56  ;;  %v9282_v56 = vld [vmem:[%s14205_s8 + $0x78] sm:$0xff] }
 0xdeb   : > { %8827 = vrot.lane.b32.xlu1 %v8801_v34, %s14276_s17  ;;  %8078 = vmatmul.msk.f32.gmra.mxu3 %vm1965_vm8, %v9270_v18  ;;  %v9284_v34 = vld [vmem:[%s14206_s9 + $0x98] sm:$0xff]  ;;  %v9301_v18 = vld [vmem:[%s14206_s9 + $0x28] sm:$0xff] }
 0xdec   : > { %5353 = vmatpush.msrb.mxu3 %v5248_v39  ;;  %v9281_v39 = vld [vmem:[%s14202_s5 + $0x30] sm:$0xff] }
 0xdf1   : > { %8822 = vrot.lane.b32.xlu0 %v8796_v46, %s14275_s16  ;;  %v9294_v46 = vld [vmem:[%s14202_s5 + $0x38] sm:$0xff] }
 0xdf3   : > { %8083 = vmatmul.msk.f32.vlgmr.msrb.gmra.mxu3 %vm1965_vm8, %v9271_v10  ;;  %v9302_v10 = vld [vmem:[%s14206_s9 + $0x48] sm:$0xff] }
 0xdfb   : > { %8084 = vmatmul.msk.f32.gmra.mxu3 %vm1965_vm8, %v9272_v9  ;;  %v9303_v9 = vld [vmem:[%s14205_s8 + $0x50] sm:$0xff] }
 0xe1d   : > { %v8803_v29 = vpop.permute.xlu2 %8802 }
 0xe1e   : > { %v8804_v11 = vunpack.i.l.bf16 %v8803_v29  ;;  %v8805_v16 = vunpack.i.h.bf16 %v8803_v29  ;;  %v9304_v29 = vld [vmem:[%s14206_s9 + $0x78] sm:$0xff] }
 0xe25   : > { %v8813_v50 = vpop.permute.xlu2 %8812 }
 0xe26   : > { %v8814_v28 = vunpack.i.l.bf16 %v8813_v50  ;;  %v8815_v31 = vunpack.i.h.bf16 %v8813_v50  ;;  %v9305_v50 = vld [vmem:[%s14206_s9 + $0x20] sm:$0xff] }
 0xe33   : > { %v5433_v24 = vpop.permute.xlu2 %5432 }
 0xe34   : > { %8091 = vmatpush.msk.msrb.mxu1 %vm1972_vm7, %v5433_v24  ;;  %8094 = vmatpush.msk.msrb.mxu0 %vm1972_vm7, %v5433_v24  ;;  %v9306_v24 = vld [vmem:[%s14206_s9 + $0x40] sm:$0xff] }
 0xe3b   : > { %v8833_v59 = vpop.permute.xlu2 %8832 }
 0xe3c   : > { %v8834_v61 = vunpack.i.l.bf16 %v8833_v59  ;;  %v8835_v45 = vunpack.i.h.bf16 %v8833_v59  ;;  %v9331_v59 = vld [vmem:[%s14205_s8 + $0x18] sm:$0xff] }
 0xe45   : > { %v8798_v4 = vpop.permute.xlu1 %8797 }
 0xe46   : > { %v8799_v41 = vunpack.i.l.bf16 %v8798_v4  ;;  %v8800_v22 = vunpack.i.h.bf16 %v8798_v4  ;;  %v9307_v4 = vld [vmem:[%s14205_s8 + $0x48] sm:$0xff] }
 0xe4b   : > { %v5262_v26 = vpop.permute.xlu0 %5261 }
 0xe4c   : > { %8073 = vmatpush.msk.msrb.mxu2 %vm1972_vm7, %v5262_v26 }
 0xe4d   : > { %v8808_v12 = vpop.permute.xlu1 %8807 }
 0xe4e   : > { %5278 = vmatpush.msrb.mxu2 %v8799_v41  ;;  %v8809_v51 = vunpack.i.l.bf16 %v8808_v12  ;;  %v8810_v8 = vunpack.i.h.bf16 %v8808_v12  ;;  %v9310_v12 = vld [vmem:[%s14206_s9 + $0x38] sm:$0xff] }
 0xe50   : > { %5279 = vmatpush.msrb.mxu2 %v8800_v22 }
 0xe52   : > { %5280 = vmatpush.msrb.mxu2 %v8804_v11 }
 0xe53   : > { %v5370_v47 = vpop.permute.xlu0 %5369 }
 0xe54   : > { %5281 = vmatpush.msrb.mxu2 %v8805_v16  ;;  %8088 = vmatpush.msk.msra.mxu3 %vm1972_vm7, %v5370_v47 }
 0xe55   : > { %v8818_v44 = vpop.permute.xlu1 %8817  ;;  %8074 = vmatmul.msk.f32.vlgmr.msrb.gmra.mxu2 %vm1965_vm8, %v9273_v49  ;;  %v9317_v49 = vld [vmem:[%s14206_s9 + $0xd0] sm:$0xff] }
 0xe56   : > { %8079 = vmatpush.msk.msra.mxu2 %vm1972_vm7, %v5262_v26  ;;  %5411 = vmatpush.msra.mxu3 %v8809_v51  ;;  %v8819_v5 = vunpack.i.l.bf16 %v8818_v44  ;;  %v8820_v13 = vunpack.i.h.bf16 %v8818_v44  ;;  %v9308_v26 = vld [vmem:[%s14206_s9 + $0x70] sm:$0xff] }
 0xe57   : > { %v9316_v44 = vld [vmem:[%s14206_s9 + $0x10] sm:$0xff] }
 0xe58   : > { %5327 = vmatpush.msra.mxu2 %v8799_v41  ;;  %5412 = vmatpush.msra.mxu3 %v8810_v8  ;;  %v9309_v41 = vld [vmem:[%s14201_s4 + $0x28] sm:$0xff] }
 0xe5a   : > { %5328 = vmatpush.msra.mxu2 %v8800_v22  ;;  %5413 = vmatpush.msra.mxu3 %v8814_v28  ;;  %v9311_v22 = vld [vmem:[%s14205_s8 + $0x40] sm:$0xff] }
 0xe5b   : > { %v5496_v33 = vpop.permute.xlu0 %5495 }
 0xe5c   : > { %5329 = vmatpush.msra.mxu2 %v8804_v11  ;;  %5414 = vmatpush.msra.mxu3 %v8815_v31  ;;  %v9312_v11 = vld [vmem:[%s14206_s9 + $0x18] sm:$0xff] }
 0xe5d   : > { %8075 = vmatmul.msk.f32.gmra.mxu2 %vm1965_vm8, %v9274_v20  ;;  %v8828_v43 = vpop.permute.xlu1 %8827  ;;  %8089 = vmatmul.msk.f32.vlgmr.msra.gmra.mxu3 %vm1965_vm8, %v9275_v38  ;;  %v9323_v20 = vld [vmem:[%s14205_s8 + $0x28] sm:$0xff]  ;;  %v9325_v38 = vld [vmem:[%s14201_s4 + $0x40] sm:$0xff] }
 0xe5e   : > { %8100 = vmatpush.msk.msrb.mxu3 %vm1972_vm7, %v5496_v33  ;;  %5330 = vmatpush.msra.mxu2 %v8805_v16  ;;  %v8829_v14 = vunpack.i.l.bf16 %v8828_v43  ;;  %v8830_v6 = vunpack.i.h.bf16 %v8828_v43  ;;  %v9313_v16 = vld [vmem:[%s14206_s9 + $0xd8] sm:$0x1f]  ;;  %v9324_v43 = vld [vmem:[%s14206_s9] sm:$0xff] }
 0xe60   : > { %8085 = vmatpush.msk.msrb.mxu2 %vm1972_vm7, %v5370_v47  ;;  %5537 = vmatpush.msrb.mxu3 %v8819_v5  ;;  %v9314_v47 = vld [vmem:[%s14206_s9 + $0x148] sm:$0x1f] }
 0xe62   : > { %5386 = vmatpush.msrb.mxu2 %v8809_v51  ;;  %5538 = vmatpush.msrb.mxu3 %v8820_v13  ;;  %v9315_v51 = vld [vmem:[%s14205_s8 + $0x38] sm:$0xff] }
 0xe63   : > { %v8823_v57 = vpop.permute.xlu0 %8822 }
 0xe64   : > { %5387 = vmatpush.msrb.mxu2 %v8810_v8  ;;  %5539 = vmatpush.msrb.mxu3 %v8829_v14  ;;  %v8824_v58 = vunpack.i.l.bf16 %v8823_v57  ;;  %v8825_v35 = vunpack.i.h.bf16 %v8823_v57  ;;  %v9318_v8 = vld [vmem:[%s14206_s9 + $0x140] sm:$0xff]  ;;  %v9329_v57 = vld [vmem:[%s14206_s9 + $0x130] sm:$0xff] }
 0xe65   : > { %8080 = vmatmul.msk.f32.vlgmr.msra.gmra.mxu2 %vm1965_vm8, %v9276_v23  ;;  %8090 = vmatmul.msk.f32.gmra.mxu3 %vm1965_vm8, %v9277_v32  ;;  %v9333_v23 = vld [vmem:[%s14206_s9 + $0x128] sm:$0xff]  ;;  %v9335_v32 = vld [vmem:[%s14205_s8 + $0x10] sm:$0xff] }
 0xe66   : > { %5388 = vmatpush.msrb.mxu2 %v8814_v28  ;;  %5540 = vmatpush.msrb.mxu3 %v8830_v6  ;;  %v9319_v28 = vld [vmem:[%s14205_s8 + $0x30] sm:$0xff] }
 0xe67   : > { %5449 = vmatpush.msrb.mxu1 %v8824_v58  ;;  %5474 = vmatpush.msrb.mxu0 %v8824_v58  ;;  %v9330_v58 = vld [vmem:[%s14206_s9 + $0xb8] sm:$0xff] }
 0xe68   : > { %5389 = vmatpush.msrb.mxu2 %v8815_v31  ;;  %8107 = vmatpush.msk.msra.mxu3 %vm2362_vm9, %v9278_v53  ;;  %v9320_v31 = vld [vmem:[%s14206_s9 + $0x8] sm:$0xff]  ;;  %v9337_v53 = vld [vmem:[%s14206_s9 + $0x120] sm:$0xff] }
 0xe69   : > { %5450 = vmatpush.msrb.mxu1 %v8825_v35  ;;  %5475 = vmatpush.msrb.mxu0 %v8825_v35  ;;  %v9332_v35 = vld [vmem:[%s14206_s9 + $0x108] sm:$0xff] }
 0xe6a   : > { %8097 = vmatpush.msk.msra.mxu2 %vm1972_vm7, %v5496_v33  ;;  %5642 = vmatpush.msra.mxu3 %v9284_v34  ;;  %v9321_v33 = vld [vmem:[%s14206_s9 + $0xc8] sm:$0xff]  ;;  %v9343_v34 = vld [vmem:[%s14205_s8] sm:$0xff] }
 0xe6b   : > { %5451 = vmatpush.msrb.mxu1 %v8834_v61  ;;  %5476 = vmatpush.msrb.mxu0 %v8834_v61  ;;  %v9334_v61 = vld [vmem:[%s14206_s9 + $0xb0] sm:$0xff] }
 0xe6c   : > { %5512 = vmatpush.msra.mxu2 %v8819_v5  ;;  %5643 = vmatpush.msra.mxu3 %v9288_v19  ;;  %v9322_v5 = vld [vmem:[%s14206_s9 + $0x138] sm:$0xff]  ;;  %v9347_v19 = vld [vmem:[%s14206_s9 + $0x1b0] sm:$0xff] }
 0xe6d   : > { %5452 = vmatpush.msrb.mxu1 %v8835_v45  ;;  %5477 = vmatpush.msrb.mxu0 %v8835_v45  ;;  %v9336_v45 = vld [vmem:[%s14206_s9 + $0x100] sm:$0xff] }
 0xe6e   : > { %5513 = vmatpush.msra.mxu2 %v8820_v13  ;;  %8092 = vmatmul.msk.f32.vlgmr.msrb.gmra.mxu1 %vm1965_vm8, %v9279_v37  ;;  %v9326_v13 = vld [vmem:[%s14206_s9 + $0xc0] sm:$0xff]  ;;  %v9338_v37 = vld [vmem:[%s14206_s9 + $0xa8] sm:$0xff] }
 0xe6f   : > { %8081 = vmatmul.msk.f32.gmra.mxu2 %vm1965_vm8, %v9280_v40  ;;  %8095 = vmatmul.msk.f32.vlgmr.msrb.gmra.mxu0 %vm1965_vm8, %v9281_v39  ;;  %v9339_v40 = vld [vmem:[%s14205_s8 + $0x8] sm:$0xff]  ;;  %v9340_v39 = vld [vmem:[%s14206_s9 + $0xf8] sm:$0xff] }
 0xe70   : > { %5514 = vmatpush.msra.mxu2 %v8829_v14  ;;  %5558 = vmatpush.msra.mxu1 %v9282_v56  ;;  %v9327_v14 = vld [vmem:[%s14205_s8 + $0x20] sm:$0xff]  ;;  %v9341_v56 = vld [vmem:[%s14201_s4 + $0x48] sm:$0xff] }
 0xe71   : > { %8103 = vmatpush.msk.msra.mxu0 %vm2362_vm9, %v9283_v60  ;;  %8101 = vmatmul.msk.f32.vlgmr.msrb.gmra.mxu3 %vm1965_vm8, %v9285_v48  ;;  %v9342_v60 = vld [vmem:[%s14206_s9 + $0x118] sm:$0xff]  ;;  %v9344_v48 = vld [vmem:[%s14206_s9 + $0xf0] sm:$0xff] }
 0xe72   : > { %5515 = vmatpush.msra.mxu2 %v8830_v6  ;;  %5559 = vmatpush.msra.mxu1 %v9286_v52  ;;  %v9328_v6 = vld [vmem:[%s14206_s9 + $0x110] sm:$0x1f]  ;;  %v9345_v52 = vld [vmem:[%s14206_s9 + $0x1b8] sm:$0x1f] }
 0xe73   : > { %5597 = vmatpush.msra.mxu0 %v9287_v27  ;;  %5644 = vmatpush.msra.mxu3 %v9292_v36  ;;  %v9346_v27 = vld [vmem:[%s14206_s9 + $0xe8] sm:$0xff]  ;;  %v9351_v36 = vld [vmem:[%s14206_s9 + $0x198] sm:$0xff] }
 0xe74   : > { %5560 = vmatpush.msra.mxu1 %v9289_v1  ;;  %v9348_v1 = vld [vmem:[%s14206_s9 + $0xe0] sm:$0xff] }
 0xe75   : > { %5598 = vmatpush.msra.mxu0 %v9290_v63  ;;  %5645 = vmatpush.msra.mxu3 %v9298_v42  ;;  %v9349_v63 = vld [vmem:[%s14206_s9 + $0x1a8] sm:$0xff] }
 0xe76   : > { %8093 = vmatmul.msk.f32.gmra.mxu1 %vm1965_vm8, %v9291_v21  ;;  %v9350_v21 = vld [vmem:[%s14206_s9 + $0x1a0] sm:$0xff] }
 0xe77   : > { %8086 = vmatmul.msk.f32.vlgmr.msrb.gmra.mxu2 %vm1965_vm8, %v9293_v3  ;;  %8096 = vmatmul.msk.f32.gmra.mxu0 %vm1965_vm8, %v9294_v46  ;;  %v9352_v3 = vld [vmem:[%s14206_s9 + $0x190] sm:$0xff]  ;;  %v9353_v46 = vld [vmem:[%s14206_s9 + $0x188] sm:$0xff] }
 0xe78   : > { %5561 = vmatpush.msra.mxu1 %v9295_v2  ;;  %8105 = vmatpush.msk.msrb.mxu2 %vm2362_vm9, %v9296_v54  ;;  %v5309_v2 = vpop.f32.mrf.mxu3 }
 0xe79   : > { %5599 = vmatpush.msra.mxu0 %v9297_v7  ;;  %8102 = vmatmul.msk.f32.gmra.mxu3 %vm1965_vm8, %v9299_v17 }
 0xe7a   : > { %5562 = vmatpush.msra.mxu1 %v9300_v0  ;;  %5619 = vmatpush.msrb.mxu2 %v9301_v18 }
 0xe7b   : > { %5600 = vmatpush.msra.mxu0 %v9302_v10  ;;  %5646 = vmatpush.msra.mxu3 %v9304_v29 }
 0xe7c   : > { %5563 = vmatpush.msra.mxu1 %v9303_v9  ;;  %5620 = vmatpush.msrb.mxu2 %v9305_v50 }
 0xe7d   : > { %5601 = vmatpush.msra.mxu0 %v9306_v24  ;;  %5647 = vmatpush.msra.mxu3 %v9308_v26  ;;  %v12944_v24 = vld [vmem:[%s9641_s24 + $0x160] sm:$0xff] }
 0xe7e   : > { %5564 = vmatpush.msra.mxu1 %v9307_v4  ;;  %5621 = vmatpush.msrb.mxu2 %v9312_v11  ;;  %v12947_v4 = vld [vmem:[%s9641_s24 + $0x170] sm:$0xff] }
 0xe7f   : > { %8087 = vmatmul.msk.f32.gmra.mxu2 %vm1965_vm8, %v9309_v41  ;;  %5602 = vmatpush.msra.mxu0 %v9310_v12  ;;  %v8836_v26 = vpack.i.bf16 %v12944_v24, %v12947_v4 }
 0xe80   : > { %5565 = vmatpush.msra.mxu1 %v9311_v22  ;;  %8113 = vmatpush.msk.msrb.mxu3 %vm2362_vm9, %v9314_v47  ;;  %v5312_v54 = vpop.f32.mrf.mxu3 }
 0xe81   : > { %8109 = vmatpush.msk.msrb.mxu0 %vm2362_vm9, %v9313_v16  ;;  %5622 = vmatpush.msrb.mxu2 %v9316_v44 }
 0xe82   : > { %5566 = vmatpush.msra.mxu1 %v9315_v51  ;;  %5714 = vmatpush.msrb.mxu3 %v9318_v8 }
 0xe83   : > { %5666 = vmatpush.msrb.mxu0 %v9317_v49  ;;  %5623 = vmatpush.msrb.mxu2 %v9320_v31 }
 0xe84   : > { %5567 = vmatpush.msra.mxu1 %v9319_v28  ;;  %5715 = vmatpush.msrb.mxu3 %v9322_v5 }
 0xe85   : > { %5667 = vmatpush.msrb.mxu0 %v9321_v33  ;;  %5624 = vmatpush.msrb.mxu2 %v9324_v43 }
 0xe86   : > { %5568 = vmatpush.msra.mxu1 %v9323_v20  ;;  %5716 = vmatpush.msrb.mxu3 %v9329_v57 }
 0xe87   : > { %8098 = vmatmul.msk.f32.vlgmr.msra.gmra.mxu2 %vm1965_vm8, %v9325_v38  ;;  %5668 = vmatpush.msrb.mxu0 %v9326_v13 }
 0xe88   : > { %5569 = vmatpush.msra.mxu1 %v9327_v14  ;;  %8111 = vmatpush.msk.msra.mxu2 %vm2362_vm9, %v9328_v6  ;;  %v5355_v42 = vpop.f32.mrf.mxu3 }
 0xe89   : > { %5669 = vmatpush.msrb.mxu0 %v9330_v58  ;;  %5717 = vmatpush.msrb.mxu3 %v9333_v23  ;;  %v12954_v58 = vld [vmem:[%s9641_s24 + $0x140] sm:$0xff] }
 0xe8a   : > { %5570 = vmatpush.msra.mxu1 %v9331_v59  ;;  %5690 = vmatpush.msra.mxu2 %v9332_v35  ;;  %v12957_v59 = vld [vmem:[%s9641_s24 + $0x150] sm:$0xff] }
 0xe8b   : > { %5670 = vmatpush.msrb.mxu0 %v9334_v61  ;;  %5718 = vmatpush.msrb.mxu3 %v9337_v53  ;;  %v8841_v53 = vpack.i.bf16 %v12954_v58, %v12957_v59 }
 0xe8c   : > { %5571 = vmatpush.msra.mxu1 %v9335_v32  ;;  %5691 = vmatpush.msra.mxu2 %v9336_v45 }
 0xe8d   : > { %5671 = vmatpush.msrb.mxu0 %v9338_v37  ;;  %5719 = vmatpush.msrb.mxu3 %v9342_v60 }
 0xe8e   : > { %5572 = vmatpush.msra.mxu1 %v9339_v40  ;;  %5692 = vmatpush.msra.mxu2 %v9340_v39  ;;  %v12964_v40 = vld [vmem:[%s9641_s24 + $0x120] sm:$0xff]  ;;  %v12967_v39 = vld [vmem:[%s9641_s24 + $0x130] sm:$0xff] }
 0xe8f   : > { %8099 = vmatmul.msk.f32.gmra.mxu2 %vm1965_vm8, %v9341_v56  ;;  %8837 = vrot.lane.b32.xlu2 %v8836_v26, %s14277_s20  ;;  %v8846_v56 = vpack.i.bf16 %v12964_v40, %v12967_v39  ;;  %v13009_v26 = vld [vmem:[%s9641_s24 + $0x128] sm:$0xff] }
 0xe90   : > { %5573 = vmatpush.msra.mxu1 %v9343_v34  ;;  %5693 = vmatpush.msra.mxu2 %v9344_v48  ;;  %v5358_v0 = vpop.f32.mrf.mxu3  ;;  %v12973_v48 = vld [vmem:[%s9641_s24 + $0x178] sm:$0xff] }
 0xe92   : > { %8117 = vmatpush.msk.msrb.mxu1 %vm2362_vm9, %v9345_v52  ;;  %5694 = vmatpush.msra.mxu2 %v9346_v27 }
 0xe94   : > { %5762 = vmatpush.msrb.mxu1 %v9347_v19  ;;  %5695 = vmatpush.msra.mxu2 %v9348_v1  ;;  %v12979_v1 = vld [vmem:[%s9641_s24 + $0x168] sm:$0xff] }
 0xe96   : > { %5763 = vmatpush.msrb.mxu1 %v9349_v63 }
 0xe98   : > { %5764 = vmatpush.msrb.mxu1 %v9350_v21 }
 0xe9a   : > { %5765 = vmatpush.msrb.mxu1 %v9351_v36 }
 0xe9c   : > { %5766 = vmatpush.msrb.mxu1 %v9352_v3 }
 0xe9e   : > { %5767 = vmatpush.msrb.mxu1 %v9353_v46  ;;  %v12989_v46 = vld [vmem:[%s9641_s24 + $0x158] sm:$0xff] }
 0xed8   : > { %v5283_v7 = vpop.f32.mrf.mxu2 }
 0xed9   : > { %v5310_v22 = vadd.f32 %v5309_v2, %v5283_v7  ;;  %v12992_v2 = vld [vmem:[%s9641_s24 + $0x148] sm:$0xff] }
 0xee0   : > { %v5286_v17 = vpop.f32.mrf.mxu2  ;;  %v5416_v10 = vpop.f32.mrf.mxu3 }
 0xee1   : > { %v5313_v33 = vadd.f32 %v5312_v54, %v5286_v17 }
 0xee8   : > { %v5332_v18 = vpop.f32.mrf.mxu2  ;;  %v5419_v50 = vpop.f32.mrf.mxu3 }
 0xee9   : > { %v5356_v41 = vadd.f32 %v5355_v42, %v5332_v18  ;;  %v8838_v60 = vpop.permute.xlu2 %8837 }
 0xeea   : > { %v8839_v34 = vunpack.i.l.bf16 %v8838_v60  ;;  %v8840_v19 = vunpack.i.h.bf16 %v8838_v60 }
 0xeeb   : > { %v5454_v16 = vpop.f32.mrf.mxu1  ;;  %v5422_v47 = vadd.f32 %v5416_v10, %v5356_v41 }
 0xeec   : > { %v5479_v11 = vpop.f32.mrf.mxu0  ;;  %v5806_v52 = vsel %vm711_vm0, %v8839_v34, %v12973_v48  ;;  %v5805_v63 = vsel %vm711_vm0, %v8840_v19, %v12979_v1  ;;  %v14352_v34 = vld [vmem:[#allocation11_spill] sm:$0xff] }
 0xeed   : > { %v5485_v8 = vadd.f32 %v5479_v11, %v5422_v47  ;;  %v8851_v27 = vpack.i.bf16 %v5806_v52, %v12947_v4  ;;  %v8856_v21 = vpack.i.bf16 %v5805_v63, %v12944_v24 }
 0xeef   : > { %8852 = vrot.lane.b32.xlu2 %v8851_v27, %s14296_s23 }
 0xef2   : > { %v5335_v9 = vpop.f32.mrf.mxu2 }
 0xef3   : > { %v5359_v49 = vadd.f32 %v5358_v0, %v5335_v9  ;;  %v5457_v6 = vpop.f32.mrf.mxu1  ;;  %v13001_v9 = vld [vmem:[%s9641_s24 + $0x138] sm:$0xff] }
 0xef4   : > { %v5542_v44 = vpop.f32.mrf.mxu3  ;;  %v5482_v14 = vpop.f32.mrf.mxu0 }
 0xef5   : > { %v5548_v5 = vadd.f32 %v5542_v44, %v5485_v8  ;;  %v5423_v43 = vadd.f32 %v5419_v50, %v5359_v49 }
 0xef7   : > { %v5486_v35 = vadd.f32 %v5482_v14, %v5423_v43 }
 0xefa   : > { %v5391_v29 = vpop.f32.mrf.mxu2 }
 0xefb   : > { %v5397_v51 = vadd.f32 %v5391_v29, %v5310_v22 }
 0xefc   : > { %v5545_v57 = vpop.f32.mrf.mxu3 }
 0xefd   : > { %v5460_v28 = vadd.f32 %v5454_v16, %v5397_v51  ;;  %v5549_v32 = vadd.f32 %v5545_v57, %v5486_v35 }
 0xf02   : > { %v5394_v12 = vpop.f32.mrf.mxu2 }
 0xf03   : > { %v5398_v38 = vadd.f32 %v5394_v12, %v5313_v33  ;;  %v14351_v33 = vld [vmem:[#allocation15_spill] sm:$0xff] }
 0xf05   : > { %v5461_v23 = vadd.f32 %v5457_v6, %v5398_v38 }
 0xf0a   : > { %v5517_v31 = vpop.f32.mrf.mxu2 }
 0xf0b   : > { %v5523_v20 = vadd.f32 %v5517_v31, %v5460_v28 }
 0xf0d   : > { %v5550_v13 = vmax.f32 %v5523_v20, %v5548_v5 }
 0xf0f   : > { %5552 = vrot.lane.b32.xlu0 %v5550_v13, %s14296_s23 }
 0xf12   : > { %v5520_v61 = vpop.f32.mrf.mxu2 }
 0xf13   : > { %v5524_v45 = vadd.f32 %v5520_v61, %v5461_v23 }
 0xf15   : > { %v5551_v37 = vmax.f32 %v5524_v45, %v5549_v32 }
 0xf17   : > { %8842 = vrot.lane.b32.xlu0 %v8841_v53, %s14277_s20  ;;  %5554 = vrot.lane.b32.xlu1 %v5551_v37, %s14296_s23 }
 0xf1f   : > { %8847 = vrot.lane.b32.xlu1 %v8846_v56, %s14277_s20  ;;  %8857 = vrot.lane.b32.xlu0 %v8856_v21, %s14296_s23  ;;  %v9354_v56 = vld [vmem:[%s14206_s9 + $0x180] sm:$0x1f] }
 0xf49   : > { %v8853_v44 = vpop.permute.xlu2 %8852 }
 0xf4a   : > { %v13038_v8 = vunpack.i.h.bf16 %v8853_v44  ;;  %v8854_v31 = vunpack.i.l.bf16 %v8853_v44 }
 0xf4c   : > { %v5848_v23 = vsel %vm766_vm2, %v8854_v31, %v13038_v8 }
 0xf81   : > { %v5553_v36 = vpop.permute.xlu0 %5552 }
 0xf82   : > { %v5556_v3 = vmax.f32 %v5550_v13, %v5553_v36 }
 0xf84   : > { %5574 = vmatmul.f32.vlgmr.msra.gmra.mxu1 %v5556_v3 }
 0xf85   : > { %5967 = vmatpush.msra.mxu1 %v12973_v48 }
 0xf87   : > { %5968 = vmatpush.msra.mxu1 %v12979_v1 }
 0xf89   : > { %v8843_v54 = vpop.permute.xlu0 %8842  ;;  %v5555_v7 = vpop.permute.xlu1 %5554  ;;  %5969 = vmatpush.msra.mxu1 %v12989_v46 }
 0xf8a   : > { %v8845_v42 = vunpack.i.h.bf16 %v8843_v54  ;;  %v8844_v17 = vunpack.i.l.bf16 %v8843_v54  ;;  %v5557_v0 = vmax.f32 %v5551_v37, %v5555_v7  ;;  %v9355_v54 = vld [vmem:[%s14206_s9 + $0x178] sm:$0xff] }
 0xf8b   : > { %5970 = vmatpush.msra.mxu1 %v12992_v2 }
 0xf8c   : > { %v5803_v18 = vsel %vm711_vm0, %v8845_v42, %v12992_v2  ;;  %v5804_v10 = vsel %vm711_vm0, %v8844_v17, %v12989_v46  ;;  %5577 = vmatmul.f32.gmra.mxu1 %v5557_v0  ;;  %v9356_v17 = vld [vmem:[%s14206_s9 + $0x170] sm:$0xff] }
 0xf8d   : > { %v8866_v29 = vpack.i.bf16 %v5803_v18, %v12954_v58  ;;  %v8861_v50 = vpack.i.bf16 %v5804_v10, %v12957_v59  ;;  %5971 = vmatpush.msra.mxu1 %v13001_v9 }
 0xf8f   : > { %8867 = vrot.lane.b32.xlu2 %v8866_v29, %s14296_s23  ;;  %8862 = vrot.lane.b32.xlu1 %v8861_v50, %s14296_s23 }
 0xf90   : > { %5972 = vmatpush.msra.mxu1 %v13009_v26 }
 0xf91   : > { %v8848_v41 = vpop.permute.xlu1 %8847  ;;  %v8858_v49 = vpop.permute.xlu0 %8857 }
 0xf92   : > { %v8850_v12 = vunpack.i.h.bf16 %v8848_v41  ;;  %v8849_v22 = vunpack.i.l.bf16 %v8848_v41  ;;  %v13041_v20 = vunpack.i.h.bf16 %v8858_v49  ;;  %v8859_v43 = vunpack.i.l.bf16 %v8858_v49  ;;  %v9362_v49 = vld [vmem:[%s14198_s1] sm:$0xff] }
 0xf94   : > { %v5801_v11 = vsel %vm711_vm0, %v8850_v12, %v13009_v26  ;;  %v5802_v16 = vsel %vm711_vm0, %v8849_v22, %v13001_v9  ;;  %v5847_v61 = vsel %vm766_vm2, %v8859_v43, %v13041_v20  ;;  %v9358_v12 = vld [vmem:[%s14206_s9 + $0x160] sm:$0xff]  ;;  %v9359_v22 = vld [vmem:[%s14206_s9 + $0x158] sm:$0xff] }
 0xf95   : > { %v8876_v47 = vpack.i.bf16 %v5801_v11, %v12964_v40  ;;  %v8871_v51 = vpack.i.bf16 %v5802_v16, %v12967_v39  ;;  %v9360_v11 = vld [vmem:[%s14206_s9 + $0x150] sm:$0xff] }
 0xf97   : > { %8882 = vrot.lane.b32.xlu2 %v8851_v27, %s14279_s28  ;;  %8877 = vrot.lane.b32.xlu1 %v8876_v47, %s14296_s23 }
 0xf98   : > { %8872 = vrot.lane.b32.xlu0 %v8871_v51, %s14296_s23 }
 0xf9f   : > { %8897 = vrot.lane.b32.xlu2 %v8866_v29, %s14279_s28  ;;  %8892 = vrot.lane.b32.xlu1 %v8861_v50, %s14279_s28 }
 0xfa0   : > { %8887 = vrot.lane.b32.xlu0 %v8856_v21, %s14279_s28 }
 0xfa7   : > { %8912 = vrot.lane.b32.xlu2 %v8851_v27, %s14275_s16  ;;  %8907 = vrot.lane.b32.xlu1 %v8876_v47, %s14279_s28 }
 0xfa8   : > { %8902 = vrot.lane.b32.xlu0 %v8871_v51, %s14279_s28 }
 0xfaf   : > { %8927 = vrot.lane.b32.xlu2 %v8866_v29, %s14275_s16  ;;  %8922 = vrot.lane.b32.xlu1 %v8861_v50, %s14275_s16 }
 0xfb0   : > { %8917 = vrot.lane.b32.xlu0 %v8856_v21, %s14275_s16 }
 0xfb7   : > { %8942 = vrot.lane.b32.xlu2 %v8851_v27, %s14276_s17  ;;  %8937 = vrot.lane.b32.xlu1 %v8876_v47, %s14275_s16 }
 0xfb8   : > { %8932 = vrot.lane.b32.xlu0 %v8871_v51, %s14275_s16 }
 0xfbf   : > { %8957 = vrot.lane.b32.xlu2 %v8866_v29, %s14276_s17  ;;  %8952 = vrot.lane.b32.xlu1 %v8861_v50, %s14276_s17  ;;  %v9357_v50 = vld [vmem:[%s14206_s9 + $0x168] sm:$0xff] }
 0xfc0   : > { %8947 = vrot.lane.b32.xlu0 %v8856_v21, %s14276_s17 }
 0xfc7   : > { %8967 = vrot.lane.b32.xlu1 %v8876_v47, %s14276_s17 }
 0xfc8   : > { %8962 = vrot.lane.b32.xlu0 %v8871_v51, %s14276_s17 }
 0xfe9   : > { %v8868_v32 = vpop.permute.xlu2 %8867 }
 0xfea   : > { %v13050_v45 = vunpack.i.h.bf16 %v8868_v32  ;;  %v8869_v53 = vunpack.i.l.bf16 %v8868_v32 }
 0xfec   : > { %v5845_v42 = vsel %vm766_vm2, %v8869_v53, %v13050_v45 }
0x1001   : > { %v5575_v28 = vpop.f32.mrf.mxu1  ;;  %v8863_v38 = vpop.permute.xlu1 %8862 }
0x1002   : > { %v5576_v5 = vadd.f32 %v5575_v28, %v14351_v33  ;;  %v13043_v14 = vunpack.i.h.bf16 %v8863_v38  ;;  %v8864_v6 = vunpack.i.l.bf16 %v8863_v38 }
0x1004   : > { %v5581_v13 = vmax.f32 %v5576_v5, 0.0  ;;  %v5846_v37 = vsel %vm766_vm2, %v8864_v6, %v13043_v14 }
0x1006   : > { %v5584_v57 = vrot.slane %v5581_v13, 2  ;;  %v5629_v35 = vrot.slane %v5581_v13, 4  ;;  %8106 = vmatmul.msk.f32.vlgmr.msrb.gmra.mxu2 %vm2359_vm10, %v5581_v13  ;;  %v5653_v18 = vrot.slane %v5581_v13, 6 }
0x1007   : > { %5871 = vmatpush.msrb.mxu2 %v5848_v23 }
0x1008   : > { %8104 = vmatmul.msk.f32.vlgmr.msra.gmra.mxu0 %vm2359_vm10, %v5584_v57  ;;  %8108 = vmatmul.msk.f32.vlgmr.msra.gmra.mxu3 %vm2359_vm10, %v5629_v35  ;;  %v9364_v35 = vld [vmem:[%s14198_s1 + $0x8] sm:$0xff] }
0x1009   : > { %8115 = vmatpush.msk.msra.mxu0 %vm2362_vm9, %v9354_v56  ;;  %5872 = vmatpush.msrb.mxu2 %v5847_v61  ;;  %v5578_v60 = vpop.f32.mrf.mxu1  ;;  %v8878_v27 = vpop.permute.xlu1 %8877  ;;  %v9369_v56 = vld [vmem:[%s14198_s1 + $0x48] sm:$0xf] }
0x100a   : > { %5903 = vmatpush.msra.mxu3 %v13038_v8  ;;  %v5579_v52 = vadd.f32 %v5578_v60, %v14352_v34  ;;  %v8873_v19 = vpop.permute.xlu0 %8872  ;;  %v13062_v63 = vunpack.i.h.bf16 %v8878_v27  ;;  %v8879_v21 = vunpack.i.l.bf16 %v8878_v27 }
0x100b   : > { %v13064_v36 = vunpack.i.h.bf16 %v8873_v19  ;;  %v8874_v3 = vunpack.i.l.bf16 %v8873_v19  ;;  %5738 = vmatpush.msra.mxu0 %v9355_v54  ;;  %5873 = vmatpush.msrb.mxu2 %v5846_v37 }
0x100c   : > { %v5582_v7 = vmax.f32 %v5579_v52, 0.0  ;;  %5904 = vmatpush.msra.mxu3 %v13041_v20  ;;  %v5843_v41 = vsel %vm766_vm2, %v8879_v21, %v13062_v63  ;;  %v9370_v52 = vld [vmem:[%s14198_s1 + $0x20] sm:$0xf] }
0x100d   : > { %5739 = vmatpush.msra.mxu0 %v9356_v17  ;;  %5874 = vmatpush.msrb.mxu2 %v5845_v42  ;;  %v5844_v0 = vsel %vm766_vm2, %v8874_v3, %v13064_v36  ;;  %v9371_v3 = vld [vmem:[%s14199_s2 + $0x28] sm:$0xff] }
0x100e   : > { %v5701_v10 = vrot.slane %v5582_v7, 2  ;;  %v5749_v29 = vrot.slane %v5582_v7, 6  ;;  %5905 = vmatpush.msra.mxu3 %v13043_v14  ;;  %8112 = vmatmul.msk.f32.vlgmr.msra.gmra.mxu2 %vm2359_vm10, %v5582_v7  ;;  %v5725_v16 = vrot.slane %v5582_v7, 4 }
0x100f   : > { %5740 = vmatpush.msra.mxu0 %v9357_v50  ;;  %5875 = vmatpush.msrb.mxu2 %v5844_v0 }
0x1010   : > { %5906 = vmatpush.msra.mxu3 %v13050_v45  ;;  %8110 = vmatmul.msk.f32.vlgmr.msrb.gmra.mxu0 %vm2359_vm10, %v5653_v18 }
0x1011   : > { %8114 = vmatmul.msk.f32.vlgmr.msrb.gmra.mxu3 %vm2359_vm10, %v5701_v10  ;;  %5741 = vmatpush.msra.mxu0 %v9358_v12  ;;  %v8893_v44 = vpop.permute.xlu1 %8892  ;;  %v9372_v10 = vld [vmem:[%s14199_s2] sm:$0xff] }
0x1012   : > { %8118 = vmatmul.msk.f32.vlgmr.msrb.gmra.mxu1 %vm2359_vm10, %v5749_v29  ;;  %5876 = vmatpush.msrb.mxu2 %v5843_v41  ;;  %v8888_v47 = vpop.permute.xlu0 %8887  ;;  %v8894_v5 = vunpack.i.l.bf16 %v8893_v44 }
0x1013   : > { %5907 = vmatpush.msra.mxu3 %v13064_v36  ;;  %6095 = vmatpush.msrb.mxu1 %v12973_v48  ;;  %v8883_v48 = vpop.permute.xlu2 %8882 }
0x1014   : > { %5999 = vmatpush.msra.mxu2 %v5848_v23  ;;  %5742 = vmatpush.msra.mxu0 %v9359_v22  ;;  %v8884_v51 = vunpack.i.l.bf16 %v8883_v48 }
0x1015   : > { %5908 = vmatpush.msra.mxu3 %v13062_v63  ;;  %6096 = vmatpush.msrb.mxu1 %v12979_v1  ;;  %v9361_v1 = vld [vmem:[%s14198_s1 + $0x28] sm:$0xff] }
0x1016   : > { %6000 = vmatpush.msra.mxu2 %v5847_v61  ;;  %5743 = vmatpush.msra.mxu0 %v9360_v11 }
0x1017   : > { %6031 = vmatpush.msrb.mxu3 %v13038_v8  ;;  %6097 = vmatpush.msrb.mxu1 %v12989_v46  ;;  %v8885_v46 = vunpack.i.h.bf16 %v8883_v48  ;;  %v8889_v8 = vunpack.i.l.bf16 %v8888_v47 }
0x1018   : > { %5935 = vmatpush.msrb.mxu0 %v12947_v4  ;;  %6001 = vmatpush.msra.mxu2 %v5846_v37 }
0x1019   : > { %6032 = vmatpush.msrb.mxu3 %v13041_v20  ;;  %8131 = vmatmul.msk.f32.vlgmr.msrb.gmra.mxu2 %vm785_vm1, %v9361_v1  ;;  %v6146_v28 = vsel %vm1126_vm3, %v8884_v51, %v8885_v46 }
0x101a   : > { %6098 = vmatpush.msrb.mxu1 %v12992_v2  ;;  %5936 = vmatpush.msrb.mxu0 %v12944_v24  ;;  %v8890_v2 = vunpack.i.h.bf16 %v8888_v47  ;;  %v8903_v20 = vpop.permute.xlu0 %8902 }
0x101b   : > { %6002 = vmatpush.msra.mxu2 %v5845_v42  ;;  %6033 = vmatpush.msrb.mxu3 %v13043_v14  ;;  %v8898_v31 = vpop.permute.xlu2 %8897  ;;  %v8908_v14 = vpop.permute.xlu1 %8907  ;;  %v8905_v6 = vunpack.i.h.bf16 %v8903_v20  ;;  %v8904_v57 = vunpack.i.l.bf16 %v8903_v20  ;;  %v9380_v20 = vld [vmem:[%s14199_s2 + $0x20] sm:$0xf] }
0x101c   : > { %8116 = vmatmul.msk.f32.vlgmr.msra.gmra.mxu0 %vm2359_vm10, %v5725_v16  ;;  %8136 = vmatmul.msk.f32.vlgmr.msra.gmra.mxu3 %vm785_vm1, %v9361_v1  ;;  %v6145_v43 = vsel %vm1126_vm3, %v8889_v8, %v8890_v2  ;;  %v8900_v38 = vunpack.i.h.bf16 %v8898_v31  ;;  %v8899_v13 = vunpack.i.l.bf16 %v8898_v31  ;;  %v8910_v32 = vunpack.i.h.bf16 %v8908_v14  ;;  %v9373_v16 = vld [vmem:[%s14199_s2 + $0x30] sm:$0xff]  ;;  %v9378_v8 = vld [vmem:[%s14199_s2 + $0x18] sm:$0xff] }
0x101d   : > { %8146 = vmatmul.msk.f32.vlgmr.msra.gmra.mxu1 %vm785_vm1, %v9362_v49  ;;  %5937 = vmatpush.msrb.mxu0 %v12957_v59  ;;  %v6142_v53 = vsel %vm1126_vm3, %v8904_v57, %v8905_v6 }
0x101e   : > { %6099 = vmatpush.msrb.mxu1 %v13001_v9  ;;  %6003 = vmatpush.msra.mxu2 %v5844_v0  ;;  %v8895_v9 = vunpack.i.h.bf16 %v8893_v44  ;;  %v6143_v61 = vsel %vm1126_vm3, %v8899_v13, %v8900_v38  ;;  %v9375_v44 = vld [vmem:[%s14199_s2 + $0x38] sm:$0xff] }
0x101f   : > { %6034 = vmatpush.msrb.mxu3 %v13050_v45  ;;  %5938 = vmatpush.msrb.mxu0 %v12954_v58  ;;  %v8909_v45 = vunpack.i.l.bf16 %v8908_v14 }
0x1020   : > { %6100 = vmatpush.msrb.mxu1 %v13009_v26  ;;  %6004 = vmatpush.msra.mxu2 %v5843_v41  ;;  %v9363_v26 = vld [vmem:[%s14198_s1 + $0x30] sm:$0xff]  ;;  %v6144_v23 = vsel %vm1126_vm3, %v8894_v5, %v8895_v9 }
0x1021   : > { %6035 = vmatpush.msrb.mxu3 %v13064_v36  ;;  %5939 = vmatpush.msrb.mxu0 %v12967_v39 }
0x1022   : > { %6275 = vmatpush.msra.mxu1 %v8885_v46  ;;  %6169 = vmatpush.msrb.mxu2 %v6146_v28  ;;  %v8918_v37 = vpop.permute.xlu0 %8917 }
0x1023   : > { %6036 = vmatpush.msrb.mxu3 %v13062_v63  ;;  %8132 = vmatmul.msk.f32.gmra.mxu2 %vm785_vm1, %v9363_v26  ;;  %v8923_v60 = vpop.permute.xlu1 %8922  ;;  %v8920_v63 = vunpack.i.h.bf16 %v8918_v37  ;;  %v8919_v21 = vunpack.i.l.bf16 %v8918_v37 }
0x1024   : > { %6276 = vmatpush.msra.mxu1 %v8890_v2  ;;  %6170 = vmatpush.msrb.mxu2 %v6145_v43  ;;  %v8925_v7 = vunpack.i.h.bf16 %v8923_v60  ;;  %v8924_v42 = vunpack.i.l.bf16 %v8923_v60  ;;  %v9383_v60 = vld [vmem:[%s14198_s1 + $0x58] sm:$0xff] }
0x1025   : > { %6201 = vmatpush.msra.mxu3 %v8885_v46  ;;  %5940 = vmatpush.msrb.mxu0 %v12964_v40  ;;  %v6335_v29 = vsel %vm1347_vm4, %v8919_v21, %v8920_v63  ;;  %v9374_v46 = vld [vmem:[%s14199_s2 + $0x8] sm:$0xff] }
0x1026   : > { %6277 = vmatpush.msra.mxu1 %v8895_v9  ;;  %8137 = vmatmul.msk.f32.gmra.mxu3 %vm785_vm1, %v9363_v26  ;;  %v6334_v22 = vsel %vm1347_vm4, %v8924_v42, %v8925_v7 }
0x1027   : > { %8141 = vmatmul.msk.f32.vlgmr.msrb.gmra.mxu0 %vm785_vm1, %v9362_v49  ;;  %8147 = vmatmul.msk.f32.gmra.mxu1 %vm785_vm1, %v9364_v35  ;;  %v9376_v49 = vld [vmem:[%s14199_s2 + $0x10] sm:$0xff] }
0x1028   : > { %6063 = vmatpush.msra.mxu0 %v12947_v4  ;;  %6171 = vmatpush.msrb.mxu2 %v6144_v23  ;;  %v9365_v4 = vld [vmem:[%s14198_s1 + $0x38] sm:$0xff] }
0x1029   : > { %6202 = vmatpush.msra.mxu3 %v8890_v2  ;;  %6278 = vmatpush.msra.mxu1 %v8900_v38  ;;  %v9377_v2 = vld [vmem:[%s14199_s2 + $0x40] sm:$0xff] }
0x102a   : > { %6064 = vmatpush.msra.mxu0 %v12944_v24  ;;  %6172 = vmatpush.msrb.mxu2 %v6143_v61  ;;  %v6141_v24 = vsel %vm1126_vm3, %v8909_v45, %v8910_v32  ;;  %v8933_v17 = vpop.permute.xlu0 %8932 }
0x102b   : > { %6203 = vmatpush.msra.mxu3 %v8895_v9  ;;  %6279 = vmatpush.msra.mxu1 %v8905_v6  ;;  %v8938_v50 = vpop.permute.xlu1 %8937  ;;  %v8935_v41 = vunpack.i.h.bf16 %v8933_v17  ;;  %v8934_v12 = vunpack.i.l.bf16 %v8933_v17  ;;  %v9379_v9 = vld [vmem:[%s14199_s2 + $0x48] sm:$0xf] }
0x102c   : > { %6065 = vmatpush.msra.mxu0 %v12957_v59  ;;  %6173 = vmatpush.msrb.mxu2 %v6142_v53  ;;  %v9366_v59 = vld [vmem:[%s14198_s1 + $0x10] sm:$0xff]  ;;  %v8940_v48 = vunpack.i.h.bf16 %v8938_v50  ;;  %v8939_v1 = vunpack.i.l.bf16 %v8938_v50 }
0x102d   : > { %6204 = vmatpush.msra.mxu3 %v8900_v38  ;;  %6280 = vmatpush.msra.mxu1 %v8910_v32  ;;  %v6332_v47 = vsel %vm1347_vm4, %v8934_v12, %v8935_v41 }
0x102e   : > { %8133 = vmatmul.msk.f32.gmra.mxu2 %vm785_vm1, %v9365_v4  ;;  %6066 = vmatpush.msra.mxu0 %v12954_v58  ;;  %v9367_v58 = vld [vmem:[%s14198_s1 + $0x40] sm:$0xff]  ;;  %v6331_v51 = vsel %vm1347_vm4, %v8939_v1, %v8940_v48  ;;  %v9391_v1 = vld [vmem:[%s14199_s2 + $0x70] sm:$0xf] }
0x102f   : > { %6174 = vmatpush.msrb.mxu2 %v6141_v24  ;;  %6205 = vmatpush.msra.mxu3 %v8905_v6 }
0x1030   : > { %8138 = vmatmul.msk.f32.gmra.mxu3 %vm785_vm1, %v9365_v4  ;;  %8142 = vmatmul.msk.f32.gmra.mxu0 %vm785_vm1, %v9364_v35  ;;  %v9381_v35 = vld [vmem:[%s14198_s1 + $0x50] sm:$0xff] }
0x1031   : > { %8148 = vmatmul.msk.f32.gmra.mxu1 %vm785_vm1, %v9366_v59  ;;  %6067 = vmatpush.msra.mxu0 %v12967_v39  ;;  %v9368_v39 = vld [vmem:[%s14198_s1 + $0x18] sm:$0xff]  ;;  %v9382_v4 = vld [vmem:[%s14199_s2 + $0x50] sm:$0xff] }
0x1032   : > { %6206 = vmatpush.msra.mxu3 %v8910_v32  ;;  %v8948_v31 = vpop.permute.xlu0 %8947 }
0x1033   : > { %6068 = vmatpush.msra.mxu0 %v12964_v40  ;;  %v8913_v40 = vpop.permute.xlu2 %8912  ;;  %v8953_v5 = vpop.permute.xlu1 %8952  ;;  %v8950_v38 = vunpack.i.h.bf16 %v8948_v31  ;;  %v8949_v13 = vunpack.i.l.bf16 %v8948_v31  ;;  %v9396_v31 = vld [vmem:[%s14204_s7 + $0xd0] sm:$0xff] }
0x1034   : > { %v8915_v27 = vunpack.i.h.bf16 %v8913_v40  ;;  %v8914_v19 = vunpack.i.l.bf16 %v8913_v40  ;;  %v8955_v6 = vunpack.i.h.bf16 %v8953_v5  ;;  %v8954_v57 = vunpack.i.l.bf16 %v8953_v5 }
0x1035   : > { %6243 = vmatpush.msrb.mxu0 %v6146_v28 }
0x1036   : > { %8134 = vmatmul.msk.f32.gmra.mxu2 %vm785_vm1, %v9367_v58  ;;  %v6336_v54 = vsel %vm1347_vm4, %v8914_v19, %v8915_v27  ;;  %v9384_v19 = vld [vmem:[%s14198_s1 + $0x60] sm:$0xff] }
0x1037   : > { %6244 = vmatpush.msrb.mxu0 %v6145_v43 }
0x1038   : > { %8139 = vmatmul.msk.f32.gmra.mxu3 %vm785_vm1, %v9367_v58  ;;  %8143 = vmatmul.msk.f32.gmra.mxu0 %vm785_vm1, %v9366_v59 }
0x1039   : > { %6245 = vmatpush.msrb.mxu0 %v6144_v23  ;;  %8149 = vmatmul.msk.f32.gmra.mxu1 %vm785_vm1, %v9368_v39 }
0x103b   : > { %6246 = vmatpush.msrb.mxu0 %v6143_v61  ;;  %v8928_v36 = vpop.permute.xlu2 %8927  ;;  %v8963_v61 = vpop.permute.xlu0 %8962 }
0x103c   : > { %v8930_v0 = vunpack.i.h.bf16 %v8928_v36  ;;  %v8929_v18 = vunpack.i.l.bf16 %v8928_v36  ;;  %v8965_v59 = vunpack.i.h.bf16 %v8963_v61  ;;  %v8964_v58 = vunpack.i.l.bf16 %v8963_v61  ;;  %v9386_v36 = vld [vmem:[%s14198_s1 + $0x68] sm:$0xff] }
0x103d   : > { %6247 = vmatpush.msrb.mxu0 %v6142_v53  ;;  %v6525_v53 = vsel %vm1568_vm5, %v8949_v13, %v8950_v38 }
0x103e   : > { %8135 = vmatmul.msk.f32.gmra.mxu2 %vm785_vm1, %v9369_v56  ;;  %v6333_v11 = vsel %vm1347_vm4, %v8929_v18, %v8930_v0  ;;  %v9388_v18 = vld [vmem:[%s14198_s1 + $0x70] sm:$0xf] }
0x103f   : > { %6248 = vmatpush.msrb.mxu0 %v6141_v24  ;;  %v8968_v24 = vpop.permute.xlu1 %8967 }
0x1040   : > { %8140 = vmatmul.msk.f32.gmra.mxu3 %vm785_vm1, %v9369_v56  ;;  %8144 = vmatmul.msk.f32.gmra.mxu0 %vm785_vm1, %v9368_v39  ;;  %v6524_v39 = vsel %vm1568_vm5, %v8954_v57, %v8955_v6  ;;  %v8970_v37 = vunpack.i.h.bf16 %v8968_v24  ;;  %v8969_v56 = vunpack.i.l.bf16 %v8968_v24  ;;  %v9403_v57 = vld [vmem:[%s14204_s7 + $0xc0] sm:$0xff]  ;;  %v9409_v24 = vld [vmem:[%s14198_s1 + $0x88] sm:$0xff] }
0x1041   : > { %8150 = vmatmul.msk.f32.gmra.mxu1 %vm785_vm1, %v9370_v52 }
0x1043   : > { %v8943_v28 = vpop.permute.xlu2 %8942 }
0x1044   : > { %v8945_v26 = vunpack.i.h.bf16 %v8943_v28  ;;  %v8944_v43 = vunpack.i.l.bf16 %v8943_v28 }
0x1046   : > { %8151 = vmatmul.msk.f32.vlgmr.msra.gmra.mxu2 %vm785_vm1, %v9371_v3  ;;  %v6526_v23 = vsel %vm1568_vm5, %v8944_v43, %v8945_v26 }
0x1047   : > { %6359 = vmatpush.msra.mxu2 %v6336_v54 }
0x1048   : > { %8156 = vmatmul.msk.f32.vlgmr.msrb.gmra.mxu3 %vm785_vm1, %v9371_v3  ;;  %8145 = vmatmul.msk.f32.gmra.mxu0 %vm785_vm1, %v9370_v52  ;;  %v6522_v52 = vsel %vm1568_vm5, %v8964_v58, %v8965_v59  ;;  %v9387_v3 = vld [vmem:[%s14199_s2 + $0x60] sm:$0xff]  ;;  %v9410_v58 = vld [vmem:[%s14204_s7 + $0xa8] sm:$0xff] }
0x1049   : > { %8166 = vmatmul.msk.f32.vlgmr.msrb.gmra.mxu1 %vm785_vm1, %v9372_v10  ;;  %6360 = vmatpush.msra.mxu2 %v6335_v29 }
0x104a   : > { %6391 = vmatpush.msrb.mxu3 %v8915_v27  ;;  %6465 = vmatpush.msrb.mxu1 %v8915_v27  ;;  %v6521_v27 = vsel %vm1568_vm5, %v8969_v56, %v8970_v37  ;;  %v9413_v56 = vld [vmem:[%s14204_s7 + $0xa0] sm:$0xff] }
0x104b   : > { %6361 = vmatpush.msra.mxu2 %v6334_v22  ;;  %v8958_v14 = vpop.permute.xlu2 %8957 }
0x104c   : > { %6392 = vmatpush.msrb.mxu3 %v8920_v63  ;;  %6466 = vmatpush.msrb.mxu1 %v8920_v63  ;;  %v8960_v32 = vunpack.i.h.bf16 %v8958_v14  ;;  %v8959_v45 = vunpack.i.l.bf16 %v8958_v14  ;;  %v9385_v63 = vld [vmem:[%s14199_s2 + $0x58] sm:$0xff] }
0x104d   : > { %6362 = vmatpush.msra.mxu2 %v6333_v11  ;;  %v9401_v14 = vld [vmem:[%s14199_s2 + $0x78] sm:$0xff] }
0x104e   : > { %6393 = vmatpush.msrb.mxu3 %v8925_v7  ;;  %6467 = vmatpush.msrb.mxu1 %v8925_v7  ;;  %v6523_v40 = vsel %vm1568_vm5, %v8959_v45, %v8960_v32  ;;  %v9406_v45 = vld [vmem:[%s14204_s7 + $0x48] sm:$0xff] }
0x104f   : > { %8152 = vmatmul.msk.f32.gmra.mxu2 %vm785_vm1, %v9373_v16 }
0x1050   : > { %6363 = vmatpush.msra.mxu2 %v6332_v47  ;;  %6394 = vmatpush.msrb.mxu3 %v8930_v0 }
0x1051   : > { %6468 = vmatpush.msrb.mxu1 %v8930_v0  ;;  %8157 = vmatmul.msk.f32.gmra.mxu3 %vm785_vm1, %v9373_v16  ;;  %v9392_v16 = vld [vmem:[%s14204_s7 + $0x78] sm:$0xff] }
0x1052   : > { %8161 = vmatmul.msk.f32.vlgmr.msra.gmra.mxu0 %vm785_vm1, %v9372_v10  ;;  %8167 = vmatmul.msk.f32.gmra.mxu1 %vm785_vm1, %v9374_v46  ;;  %v9389_v10 = vld [vmem:[%s14199_s2 + $0x68] sm:$0xff] }
0x1053   : > { %6364 = vmatpush.msra.mxu2 %v6331_v51  ;;  %6395 = vmatpush.msrb.mxu3 %v8935_v41 }
0x1054   : > { %6433 = vmatpush.msra.mxu0 %v6336_v54  ;;  %6469 = vmatpush.msrb.mxu1 %v8935_v41 }
0x1055   : > { %6396 = vmatpush.msrb.mxu3 %v8940_v48 }
0x1056   : > { %6434 = vmatpush.msra.mxu0 %v6335_v29  ;;  %6470 = vmatpush.msrb.mxu1 %v8940_v48  ;;  %v9390_v48 = vld [vmem:[%s14198_s1 + $0x78] sm:$0xff] }
0x1057   : > { %8153 = vmatmul.msk.f32.gmra.mxu2 %vm785_vm1, %v9375_v44 }
0x1058   : > { %6435 = vmatpush.msra.mxu0 %v6334_v22 }
0x1059   : > { %8158 = vmatmul.msk.f32.gmra.mxu3 %vm785_vm1, %v9375_v44  ;;  %v9393_v44 = vld [vmem:[%s14204_s7 + $0x70] sm:$0xff] }
0x105a   : > { %6436 = vmatpush.msra.mxu0 %v6333_v11  ;;  %8168 = vmatmul.msk.f32.gmra.mxu1 %vm785_vm1, %v9376_v49 }
0x105b   : > { %8162 = vmatmul.msk.f32.gmra.mxu0 %vm785_vm1, %v9374_v46 }
0x105c   : > { %6437 = vmatpush.msra.mxu0 %v6332_v47 }
0x105e   : > { %6438 = vmatpush.msra.mxu0 %v6331_v51 }
0x105f   : > { %8154 = vmatmul.msk.f32.gmra.mxu2 %vm785_vm1, %v9377_v2 }
0x1061   : > { %8159 = vmatmul.msk.f32.gmra.mxu3 %vm785_vm1, %v9377_v2 }
0x1062   : > { %8169 = vmatmul.msk.f32.gmra.mxu1 %vm785_vm1, %v9378_v8 }
0x1063   : > { %8163 = vmatmul.msk.f32.gmra.mxu0 %vm785_vm1, %v9376_v49  ;;  %v9394_v49 = vld [vmem:[%s14204_s7 + $0xd8] sm:$0xff] }
0x1067   : > { %8155 = vmatmul.msk.f32.gmra.mxu2 %vm785_vm1, %v9379_v9 }
0x1069   : > { %8160 = vmatmul.msk.f32.gmra.mxu3 %vm785_vm1, %v9379_v9  ;;  %v9397_v9 = vld [vmem:[%s14207_s10] ss:$0 sm:$0xff] }
0x106a   : > { %8170 = vmatmul.msk.f32.gmra.mxu1 %vm785_vm1, %v9380_v20 }
0x106b   : > { %8164 = vmatmul.msk.f32.gmra.mxu0 %vm785_vm1, %v9378_v8  ;;  %v9395_v8 = vld [vmem:[%s14204_s7 + $0x68] sm:$0xff] }
0x106f   : > { %8171 = vmatmul.msk.f32.vlgmr.msrb.gmra.mxu2 %vm785_vm1, %v9381_v35 }
0x1070   : > { %6549 = vmatpush.msrb.mxu2 %v6526_v23 }
0x1071   : > { %8176 = vmatmul.msk.f32.vlgmr.msra.gmra.mxu3 %vm785_vm1, %v9381_v35  ;;  %v9404_v35 = vld [vmem:[%s14204_s7 + $0x50] sm:$0xff] }
0x1072   : > { %8186 = vmatmul.msk.f32.vlgmr.msra.gmra.mxu1 %vm785_vm1, %v9382_v4  ;;  %6550 = vmatpush.msrb.mxu2 %v6525_v53 }
0x1073   : > { %8165 = vmatmul.msk.f32.gmra.mxu0 %vm785_vm1, %v9380_v20  ;;  %6581 = vmatpush.msra.mxu3 %v8945_v26  ;;  %v9398_v20 = vld [vmem:[%s14204_s7 + $0x60] sm:$0xff] }
0x1074   : > { %6655 = vmatpush.msra.mxu1 %v8945_v26  ;;  %6551 = vmatpush.msrb.mxu2 %v6524_v39  ;;  %v9399_v26 = vld [vmem:[%s14198_s1 + $0x80] sm:$0xff] }
0x1075   : > { %6582 = vmatpush.msra.mxu3 %v8950_v38 }
0x1076   : > { %6656 = vmatpush.msra.mxu1 %v8950_v38  ;;  %6552 = vmatpush.msrb.mxu2 %v6523_v40  ;;  %v9400_v38 = vld [vmem:[%s14204_s7 + $0xc8] sm:$0xff] }
0x1077   : > { %6583 = vmatpush.msra.mxu3 %v8955_v6  ;;  %8172 = vmatmul.msk.f32.gmra.mxu2 %vm785_vm1, %v9383_v60 }
0x1078   : > { %6657 = vmatpush.msra.mxu1 %v8955_v6  ;;  %6553 = vmatpush.msrb.mxu2 %v6522_v52  ;;  %v9402_v6 = vld [vmem:[%s14204_s7 + $0x58] sm:$0xff] }
0x1079   : > { %6584 = vmatpush.msra.mxu3 %v8960_v32 }
0x107a   : > { %6658 = vmatpush.msra.mxu1 %v8960_v32  ;;  %8177 = vmatmul.msk.f32.gmra.mxu3 %vm785_vm1, %v9383_v60  ;;  %v9414_v60 = vld [vmem:[%s14204_s7 + $0x30] sm:$0xff] }
0x107b   : > { %8181 = vmatmul.msk.f32.vlgmr.msrb.gmra.mxu0 %vm785_vm1, %v9382_v4  ;;  %6554 = vmatpush.msrb.mxu2 %v6521_v27  ;;  %v9408_v4 = vld [vmem:[%s14204_s7 + $0x40] sm:$0xff] }
0x107c   : > { %6585 = vmatpush.msra.mxu3 %v8965_v59  ;;  %6623 = vmatpush.msrb.mxu0 %v6526_v23  ;;  %v9405_v23 = vld [vmem:[%s14204_s7 + $0xb8] sm:$0xff] }
0x107d   : > { %6659 = vmatpush.msra.mxu1 %v8965_v59 }
0x107e   : > { %6586 = vmatpush.msra.mxu3 %v8970_v37  ;;  %6624 = vmatpush.msrb.mxu0 %v6525_v53  ;;  %v9407_v53 = vld [vmem:[%s14204_s7 + $0xb0] sm:$0xff] }
0x107f   : > { %6660 = vmatpush.msra.mxu1 %v8970_v37  ;;  %8173 = vmatmul.msk.f32.gmra.mxu2 %vm785_vm1, %v9384_v19 }
0x1080   : > { %6625 = vmatpush.msrb.mxu0 %v6524_v39  ;;  %8187 = vmatmul.msk.f32.gmra.mxu1 %vm785_vm1, %v9385_v63  ;;  %v9411_v39 = vld [vmem:[%s14199_s2 + $0x80] sm:$0xff] }
0x1082   : > { %6626 = vmatpush.msrb.mxu0 %v6523_v40  ;;  %8178 = vmatmul.msk.f32.gmra.mxu3 %vm785_vm1, %v9384_v19  ;;  %v9412_v40 = vld [vmem:[%s14204_s7 + $0x38] sm:$0xff] }
0x1083   : > { %8182 = vmatmul.msk.f32.gmra.mxu0 %vm785_vm1, %v9385_v63  ;;  %v9417_v63 = vld [vmem:[%s14204_s7 + $0x90] sm:$0xff] }
0x1084   : > { %6627 = vmatpush.msrb.mxu0 %v6522_v52  ;;  %v9415_v52 = vld [vmem:[%s14204_s7 + $0x98] sm:$0xff] }
0x1085   : > { %v5604_v21 = vpop.f32.mrf.mxu0 }
0x1086   : > { %6628 = vmatpush.msrb.mxu0 %v6521_v27  ;;  %v9416_v27 = vld [vmem:[%s14204_s7 + $0x28] sm:$0xff] }
0x1087   : > { %8174 = vmatmul.msk.f32.gmra.mxu2 %vm785_vm1, %v9386_v36 }
0x1088   : > { %8188 = vmatmul.msk.f32.gmra.mxu1 %vm785_vm1, %v9387_v3 }
0x1089   : > { %v5626_v54 = vpop.f32.mrf.mxu2 }
0x108a   : > { %8179 = vmatmul.msk.f32.gmra.mxu3 %vm785_vm1, %v9386_v36  ;;  %v5627_v7 = vadd.f32 %v5626_v54, %v5604_v21  ;;  %v9418_v36 = vld [vmem:[%s14204_s7 + $0x20] sm:$0xff]  ;;  %v9420_v54 = vld [vmem:[%s14204_s7 + $0x88] sm:$0xff] }
0x108b   : > { %8183 = vmatmul.msk.f32.gmra.mxu0 %vm785_vm1, %v9387_v3  ;;  %v5649_v42 = vpop.f32.mrf.mxu3  ;;  %v9419_v3 = vld [vmem:[%s14198_s1 + $0x90] sm:$0xff] }
0x108c   : > { %v5652_v17 = vadd.f32 %v5649_v42, %v5627_v7  ;;  %v9421_v7 = vld [vmem:[%s14199_s2 + $0x88] sm:$0xff]  ;;  %v9422_v42 = vld [vmem:[%s14204_s7 + $0x18] sm:$0xff] }
0x108d   : > { %v5673_v0 = vpop.f32.mrf.mxu0 }
0x108e   : > { %v5676_v29 = vadd.f32 %v5673_v0, %v5652_v17  ;;  %v9423_v0 = vld [vmem:[%s14204_s7 + $0x80] sm:$0xff] }
0x108f   : > { %8175 = vmatmul.msk.f32.gmra.mxu2 %vm785_vm1, %v9388_v18  ;;  %v5769_v41 = vpop.f32.mrf.mxu1 }
0x1090   : > { %8189 = vmatmul.msk.f32.gmra.mxu1 %vm785_vm1, %v9389_v10 }
0x1091   : > { %v5697_v50 = vpop.f32.mrf.mxu2 }
0x1092   : > { %8180 = vmatmul.msk.f32.gmra.mxu3 %vm785_vm1, %v9388_v18  ;;  %v5700_v12 = vadd.f32 %v5697_v50, %v5676_v29  ;;  %v9424_v18 = vld [vmem:[%s14204_s7 + $0x10] sm:$0xff]  ;;  %v9425_v29 = vld [vmem:[%s14204_s7 + $0x8] sm:$0xff] }
0x1093   : > { %8184 = vmatmul.msk.f32.gmra.mxu0 %vm785_vm1, %v9389_v10 }
0x1094   : > { %v5721_v22 = vpop.f32.mrf.mxu3 }
0x1095   : > { %v5724_v11 = vadd.f32 %v5721_v22, %v5700_v12  ;;  %v9426_v12 = vld [vmem:[%s14204_s7] sm:$0xff]  ;;  %v9427_v22 = vld [vmem:[%s14198_s1 + $0x98] sm:$0xf] }
0x1097   : > { %8191 = vmatmul.msk.f32.vlgmr.msra.gmra.mxu2 %vm785_vm1, %v9390_v48 }
0x1098   : > { %8190 = vmatmul.msk.f32.gmra.mxu1 %vm785_vm1, %v9391_v1  ;;  %6782 = vmatpush.msra.mxu2 %v9392_v16 }
0x1099   : > { %v5745_v47 = vpop.f32.mrf.mxu0 }
0x109a   : > { %8196 = vmatmul.msk.f32.vlgmr.msrb.gmra.mxu3 %vm785_vm1, %v9390_v48  ;;  %v5748_v46 = vadd.f32 %v5745_v47, %v5724_v11  ;;  %v13299_v51 = vpop.f32.mrf.mxu1  ;;  %6783 = vmatpush.msra.mxu2 %v9393_v44  ;;  %v9428_v11 = vld [vmem:[%s14199_s2 + $0x90] sm:$0xff]  ;;  %v9430_v44 = vld [vmem:[%s14199_s2 + $0x98] sm:$0xf] }
0x109b   : > { %14353 = vst [vmem:[#allocation17_spill] sm:$0xff] %v13299_v51  ;;  %8185 = vmatmul.msk.f32.gmra.mxu0 %vm785_vm1, %v9391_v1  ;;  %6818 = vmatpush.msrb.mxu3 %v9394_v49 }
0x109c   : > { %v5772_v2 = vadd.f32 %v5769_v41, %v5748_v46  ;;  %6784 = vmatpush.msra.mxu2 %v9395_v8  ;;  %v13311_v28 = vpop.f32.mrf.mxu2  ;;  %v9429_v46 = vld [vmem:[%s14198_s1 + $0xa0] sm:$0xff] }
0x109d   : > { %6819 = vmatpush.msrb.mxu3 %v9396_v31 }
0x109e   : > { %v5773_v5 = vadd.f32 %v9397_v9, %v5772_v2  ;;  %6785 = vmatpush.msra.mxu2 %v9398_v20  ;;  %v9431_v9 = vld [vmem:[%s14198_s1 + $0xa8] sm:$0xff] }
0x109f   : > { %8192 = vmatmul.msk.f32.gmra.mxu2 %vm785_vm1, %v9399_v26  ;;  %v13326_v43 = vpop.f32.mrf.mxu3  ;;  %6820 = vmatpush.msrb.mxu3 %v9400_v38 }
0x10a0   : > { %14354 = vst [vmem:[#allocation8_spill] sm:$0xff] %v13326_v43  ;;  %v5774_v13 = vmax.f32 %v5773_v5, 0.0  ;;  %8206 = vmatmul.msk.f32.vlgmr.msrb.gmra.mxu1 %vm785_vm1, %v9401_v14  ;;  %6786 = vmatpush.msra.mxu2 %v9402_v6  ;;  %v9432_v5 = vld [vmem:[%s14199_s2 + $0xa0] sm:$0xff]  ;;  %v9434_v6 = vld [vmem:[%s14199_s2 + $0xa8] sm:$0xff] }
0x10a1   : > { %6821 = vmatpush.msrb.mxu3 %v9403_v57 }
0x10a2   : > { %5775 = vst.msk [vmem:[#allocation2 + $0x4] sm:$0x3] %vm2578_vm11, %v5774_v13  ;;  %8197 = vmatmul.msk.f32.gmra.mxu3 %vm785_vm1, %v9399_v26  ;;  %6787 = vmatpush.msra.mxu2 %v9404_v35  ;;  %v9433_v13 = vld [vmem:[%s14198_s1 + $0xb0] sm:$0xff] }
0x10a3   : > { %8201 = vmatmul.msk.f32.vlgmr.msra.gmra.mxu0 %vm785_vm1, %v9401_v14  ;;  %6822 = vmatpush.msrb.mxu3 %v9405_v23  ;;  %v9435_v23 = vld [vmem:[%s14198_s1 + $0xb8] sm:$0xff] }
0x10a4   : > { %v13350_v61 = vpop.f32.mrf.mxu0  ;;  %v13352_v32 = vpop.f32.mrf.mxu1  ;;  %6788 = vmatpush.msra.mxu2 %v9406_v45 }
0x10a5   : > { %14355 = vst [vmem:[#allocation6_spill] sm:$0xff] %v13352_v32  ;;  %6823 = vmatpush.msrb.mxu3 %v9407_v53 }
0x10a6   : > { %6789 = vmatpush.msra.mxu2 %v9408_v4  ;;  %v13367_v59 = vpop.f32.mrf.mxu2  ;;  %v9436_v4 = vld [vmem:[%s14199_s2 + $0xb0] sm:$0xff] }
0x10a7   : > { %8193 = vmatmul.msk.f32.gmra.mxu2 %vm785_vm1, %v9409_v24  ;;  %6824 = vmatpush.msrb.mxu3 %v9410_v58 }
0x10a8   : > { %8207 = vmatmul.msk.f32.gmra.mxu1 %vm785_vm1, %v9411_v39  ;;  %6790 = vmatpush.msra.mxu2 %v9412_v40 }
0x10a9   : > { %v13379_v37 = vpop.f32.mrf.mxu3  ;;  %6825 = vmatpush.msrb.mxu3 %v9413_v56 }
0x10aa   : > { %14356 = vst [vmem:[#allocation22_spill] sm:$0xff] %v13379_v37  ;;  %8198 = vmatmul.msk.f32.gmra.mxu3 %vm785_vm1, %v9409_v24  ;;  %6791 = vmatpush.msra.mxu2 %v9414_v60  ;;  %v9438_v60 = vld [vmem:[%s14199_s2 + $0xb8] sm:$0xff] }
0x10ab   : > { %8202 = vmatmul.msk.f32.gmra.mxu0 %vm785_vm1, %v9411_v39  ;;  %6826 = vmatpush.msrb.mxu3 %v9415_v52  ;;  %v9437_v39 = vld [vmem:[%s14198_s1 + $0xc0] sm:$0xf] }
0x10ac   : > { %6792 = vmatpush.msra.mxu2 %v9416_v27 }
0x10ad   : > { %v13395_v19 = vpop.f32.mrf.mxu0  ;;  %6827 = vmatpush.msrb.mxu3 %v9417_v63 }
0x10ae   : > { %v13400_v21 = vpop.f32.mrf.mxu1  ;;  %6793 = vmatpush.msra.mxu2 %v9418_v36  ;;  %v9439_v36 = vld [vmem:[%s14199_s2 + $0xc0] sm:$0xf] }
0x10af   : > { %8194 = vmatmul.msk.f32.gmra.mxu2 %vm785_vm1, %v9419_v3  ;;  %6828 = vmatpush.msrb.mxu3 %v9420_v54 }
0x10b0   : > { %8208 = vmatmul.msk.f32.gmra.mxu1 %vm785_vm1, %v9421_v7  ;;  %6794 = vmatpush.msra.mxu2 %v9422_v42 }
0x10b1   : > { %v13419_v17 = vpop.f32.mrf.mxu2  ;;  %6829 = vmatpush.msrb.mxu3 %v9423_v0 }
0x10b2   : > { %8199 = vmatmul.msk.f32.gmra.mxu3 %vm785_vm1, %v9419_v3  ;;  %6795 = vmatpush.msra.mxu2 %v9424_v18 }
0x10b3   : > { %8203 = vmatmul.msk.f32.gmra.mxu0 %vm785_vm1, %v9421_v7  ;;  %v13429_v10 = vpop.f32.mrf.mxu3 }
0x10b4   : > { %6796 = vmatpush.msra.mxu2 %v9425_v29 }
0x10b5   : > { %v13434_v50 = vpop.f32.mrf.mxu0 }
0x10b6   : > { %v13436_v41 = vpop.f32.mrf.mxu1  ;;  %6797 = vmatpush.msra.mxu2 %v9426_v12 }
0x10b7   : > { %8195 = vmatmul.msk.f32.gmra.mxu2 %vm785_vm1, %v9427_v22 }
0x10b8   : > { %8209 = vmatmul.msk.f32.gmra.mxu1 %vm785_vm1, %v9428_v11 }
0x10b9   : > { %v13449_v48 = vpop.f32.mrf.mxu2 }
0x10ba   : > { %8200 = vmatmul.msk.f32.gmra.mxu3 %vm785_vm1, %v9427_v22 }
0x10bb   : > { %8204 = vmatmul.msk.f32.gmra.mxu0 %vm785_vm1, %v9428_v11  ;;  %v13453_v1 = vpop.f32.mrf.mxu3 }
0x10bd   : > { %v13455_v16 = vpop.f32.mrf.mxu0 }
0x10be   : > { %v13457_v47 = vpop.f32.mrf.mxu1 }
0x10bf   : > { %8211 = vmatmul.msk.f32.vlgmr.msrb.gmra.mxu2 %vm785_vm1, %v9429_v46 }
0x10c0   : > { %8210 = vmatmul.msk.f32.gmra.mxu1 %vm785_vm1, %v9430_v44 }
0x10c1   : > { %v13467_v49 = vpop.f32.mrf.mxu2 }
0x10c2   : > { %14357 = vst [vmem:[#allocation23_spill] sm:$0xff] %v13467_v49  ;;  %8216 = vmatmul.msk.f32.vlgmr.msra.gmra.mxu3 %vm785_vm1, %v9429_v46 }
0x10c3   : > { %8205 = vmatmul.msk.f32.gmra.mxu0 %vm785_vm1, %v9430_v44  ;;  %v13471_v2 = vpop.f32.mrf.mxu3 }
0x10c5   : > { %v13473_v8 = vpop.f32.mrf.mxu0 }
0x10c6   : > { %14358 = vst [vmem:[#allocation13_spill] sm:$0xff] %v13473_v8  ;;  %v13475_v31 = vpop.f32.mrf.mxu1 }
0x10c7   : > { %14359 = vst [vmem:[#allocation5_spill] sm:$0xff] %v13475_v31  ;;  %8212 = vmatmul.msk.f32.gmra.mxu2 %vm785_vm1, %v9431_v9 }
0x10c8   : > { %8226 = vmatmul.msk.f32.vlgmr.msra.gmra.mxu1 %vm785_vm1, %v9432_v5 }
0x10c9   : > { %v13485_v20 = vpop.f32.mrf.mxu2 }
0x10ca   : > { %8217 = vmatmul.msk.f32.gmra.mxu3 %vm785_vm1, %v9431_v9 }
0x10cb   : > { %8221 = vmatmul.msk.f32.vlgmr.msrb.gmra.mxu0 %vm785_vm1, %v9432_v5  ;;  %v13489_v26 = vpop.f32.mrf.mxu3 }
0x10cc   : > { %14360 = vst [vmem:[#allocation12_spill] sm:$0xff] %v13489_v26 }
0x10cf   : > { %v13491_v38 = vpop.f32.mrf.mxu0  ;;  %8213 = vmatmul.msk.f32.gmra.mxu2 %vm785_vm1, %v9433_v13  ;;  %v13497_v14 = vpop.f32.mrf.mxu1 }
0x10d0   : > { %14361 = vst [vmem:[#allocation21_spill] sm:$0xff] %v13497_v14  ;;  %8227 = vmatmul.msk.f32.gmra.mxu1 %vm785_vm1, %v9434_v6 }
0x10d2   : > { %8218 = vmatmul.msk.f32.gmra.mxu3 %vm785_vm1, %v9433_v13  ;;  %v13504_v57 = vpop.f32.mrf.mxu2 }
0x10d3   : > { %8222 = vmatmul.msk.f32.gmra.mxu0 %vm785_vm1, %v9434_v6 }
0x10d4   : > { %v13507_v35 = vpop.f32.mrf.mxu3 }
0x10d5   : > { %14362 = vst [vmem:[#allocation20_spill] sm:$0xff] %v13507_v35 }
0x10d7   : > { %8214 = vmatmul.msk.f32.gmra.mxu2 %vm785_vm1, %v9435_v23  ;;  %v13513_v45 = vpop.f32.mrf.mxu1 }
0x10d8   : > { %v13515_v53 = vpop.f32.mrf.mxu0  ;;  %8228 = vmatmul.msk.f32.gmra.mxu1 %vm785_vm1, %v9436_v4 }
0x10da   : > { %8219 = vmatmul.msk.f32.gmra.mxu3 %vm785_vm1, %v9435_v23  ;;  %v13522_v24 = vpop.f32.mrf.mxu2 }
0x10db   : > { %8223 = vmatmul.msk.f32.gmra.mxu0 %vm785_vm1, %v9436_v4 }
0x10dc   : > { %v13525_v58 = vpop.f32.mrf.mxu3 }
0x10df   : > { %8215 = vmatmul.msk.f32.gmra.mxu2 %vm785_vm1, %v9437_v39  ;;  %v13531_v40 = vpop.f32.mrf.mxu1 }
0x10e0   : > { %v13533_v56 = vpop.f32.mrf.mxu0  ;;  %8229 = vmatmul.msk.f32.gmra.mxu1 %vm785_vm1, %v9438_v60 }
0x10e2   : > { %8220 = vmatmul.msk.f32.gmra.mxu3 %vm785_vm1, %v9437_v39  ;;  %v13540_v52 = vpop.f32.mrf.mxu2 }
0x10e3   : > { %8224 = vmatmul.msk.f32.gmra.mxu0 %vm785_vm1, %v9438_v60 }
0x10e4   : > { %v13543_v27 = vpop.f32.mrf.mxu3 }
0x10e7   : > { %v13551_v3 = vpop.f32.mrf.mxu1 }
0x10e8   : > { %v13545_v63 = vpop.f32.mrf.mxu0  ;;  %8230 = vmatmul.msk.f32.gmra.mxu1 %vm785_vm1, %v9439_v36 }
0x10ea   : > { %v13553_v54 = vpop.f32.mrf.mxu2 }
0x10eb   : > { %14363 = vst [vmem:[#allocation19_spill] sm:$0xff] %v13553_v54  ;;  %8225 = vmatmul.msk.f32.gmra.mxu0 %vm785_vm1, %v9439_v36 }
0x10ec   : > { %v13556_v7 = vpop.f32.mrf.mxu3 }
0x10ef   : > { %v13560_v18 = vpop.f32.mrf.mxu1 }
0x10f0   : > { %v13558_v42 = vpop.f32.mrf.mxu0  ;;  %14365 = vst [vmem:[#allocation7_spill] sm:$0xff] %v13560_v18 }
0x10f1   : > { %14364 = vst [vmem:[#allocation18_spill] sm:$0xff] %v13558_v42  ;;  %v6071_v42 = vadd.f32 %v13491_v38, %v13485_v20  ;;  %v5981_v38 = vadd.f32 %v13400_v21, %v13429_v10 }
0x10f2   : > { %v6176_v0 = vpop.f32.mrf.mxu2 }
0x10f4   : > { %v13562_v29 = vpop.f32.mrf.mxu3 }
0x10f5   : > { %14366 = vst [vmem:[#allocation14_spill] sm:$0xff] %v13562_v29 }
0x10f8   : > { %v6250_v12 = vpop.f32.mrf.mxu0 }
0x10f9   : > { %v6297_v8 = vadd.f32 %v6250_v12, %v6071_v42 }
0x10fa   : > { %v6179_v22 = vpop.f32.mrf.mxu2 }
0x10fd   : > { %v13564_v11 = vpop.f32.mrf.mxu3  ;;  %v13566_v46 = vpop.f32.mrf.mxu1 }
0x10fe   : > { %14367 = vst [vmem:[#allocation24_spill] sm:$0xff] %v13564_v11 }
0x10ff   : > { %14368 = vst [vmem:[#allocation25_spill] sm:$0xff] %v13566_v46 }
0x1100   : > { %v6253_v44 = vpop.f32.mrf.mxu0 }
0x1102   : > { %v13568_v9 = vpop.f32.mrf.mxu2 }
0x1105   : > { %v6214_v5 = vpop.f32.mrf.mxu3  ;;  %v6288_v13 = vpop.f32.mrf.mxu1 }
0x1108   : > { %v13570_v6 = vpop.f32.mrf.mxu0 }
0x110a   : > { %v13572_v23 = vpop.f32.mrf.mxu2 }
0x110d   : > { %v13574_v4 = vpop.f32.mrf.mxu3  ;;  %v13576_v39 = vpop.f32.mrf.mxu1 }
0x1110   : > { %v13578_v60 = vpop.f32.mrf.mxu0 }
0x1112   : > { %v13580_v36 = vpop.f32.mrf.mxu2 }
0x1113   : > { %14369 = vst [vmem:[#allocation26_spill] sm:$0xff] %v13580_v36  ;;  %v5943_v36 = vadd.f32 %v13350_v61, %v13311_v28  ;;  %v5946_v28 = vadd.f32 %v13395_v19, %v13367_v59  ;;  %v6074_v61 = vadd.f32 %v13515_v53, %v13504_v57  ;;  %v6228_v19 = vadd.f32 %v6214_v5, %v5981_v38 }
0x1114   : > { %v6077_v53 = vadd.f32 %v13533_v56, %v13522_v24 }
0x1115   : > { %v13582_v34 = vpop.f32.mrf.mxu3  ;;  %v13584_v33 = vpop.f32.mrf.mxu1  ;;  %v6223_v54 = vadd.f32 %v6176_v0, %v5943_v36 }
0x1116   : > { %14370 = vst [vmem:[#allocation27_spill] sm:$0xff] %v13582_v34  ;;  %v6301_v42 = vadd.f32 %v13570_v6, %v6077_v53 }
0x1117   : > { %14371 = vst [vmem:[#allocation28_spill] sm:$0xff] %v13584_v33 }
0x1118   : > { %v13586_v62 = vpop.f32.mrf.mxu0 }
0x1119   : > { %14372 = vst [vmem:[#allocation29_spill] sm:$0xff] %v13586_v62 }
0x111a   : > { %v6366_v55 = vpop.f32.mrf.mxu2 }
0x111d   : > { %v13588_v15 = vpop.f32.mrf.mxu3  ;;  %v13590_v25 = vpop.f32.mrf.mxu1 }
0x111e   : > { %14373 = vst [vmem:[#allocation30_spill] sm:$0xff] %v13588_v15 }
0x111f   : > { %14374 = vst [vmem:[#allocation31_spill] sm:$0xff] %v13590_v25 }
0x1120   : > { %v6440_v30 = vpop.f32.mrf.mxu0 }
0x1122   : > { %v6369_v11 = vpop.f32.mrf.mxu2 }
0x1125   : > { %v13592_v46 = vpop.f32.mrf.mxu3  ;;  %v13594_v32 = vpop.f32.mrf.mxu1 }
0x1126   : > { %14375 = vst [vmem:[#allocation32_spill] sm:$0xff] %v13592_v46 }
0x1127   : > { %14376 = vst [vmem:[#allocation33_spill] sm:$0xff] %v13594_v32 }
0x1128   : > { %v6443_v37 = vpop.f32.mrf.mxu0 }
0x112a   : > { %v6372_v14 = vpop.f32.mrf.mxu2 }
0x112d   : > { %v6404_v35 = vpop.f32.mrf.mxu3  ;;  %v6478_v29 = vpop.f32.mrf.mxu1 }
0x1130   : > { %v6446_v18 = vpop.f32.mrf.mxu0 }
0x1131   : > { %v6491_v56 = vadd.f32 %v6446_v18, %v6301_v42 }
0x1132   : > { %v13596_v51 = vpop.f32.mrf.mxu2 }
0x1133   : > { %14377 = vst [vmem:[#allocation34_spill] sm:$0xff] %v13596_v51 }
0x1135   : > { %v13598_v43 = vpop.f32.mrf.mxu3  ;;  %v6481_v31 = vpop.f32.mrf.mxu1 }
0x1138   : > { %v13600_v26 = vpop.f32.mrf.mxu0 }
0x1139   : > { %14378 = vst [vmem:[#allocation35_spill] sm:$0xff] %v13600_v26  ;;  %v6487_v26 = vadd.f32 %v6440_v30, %v6297_v8  ;;  %v6299_v30 = vadd.f32 %v6253_v44, %v6074_v61  ;;  %v6080_v44 = vadd.f32 %v13545_v63, %v13540_v52 }
0x113a   : > { %v13602_v15 = vpop.f32.mrf.mxu2 }
0x113b   : > { %14379 = vst [vmem:[#allocation36_spill] sm:$0xff] %v13602_v15  ;;  %v6413_v15 = vadd.f32 %v6366_v55, %v6223_v54  ;;  %v6225_v55 = vadd.f32 %v6179_v22, %v5946_v28  ;;  %v6489_v59 = vadd.f32 %v6443_v37, %v6299_v30  ;;  %v5984_v37 = vadd.f32 %v13436_v41, %v13453_v1  ;;  %v14389_v30 = vld [vmem:[#allocation13_spill] sm:$0xff] }
0x113c   : > { %v6418_v54 = vadd.f32 %v6404_v35, %v6228_v19  ;;  %v6115_v22 = vadd.f32 %v13551_v3, %v13556_v7  ;;  %v6303_v6 = vadd.f32 %v13578_v60, %v6080_v44  ;;  %v14384_v7 = vld [vmem:[#allocation34_spill] sm:$0xff] }
0x113d   : > { %v13604_v25 = vpop.f32.mrf.mxu3  ;;  %v13606_v62 = vpop.f32.mrf.mxu1  ;;  %v6415_v8 = vadd.f32 %v6369_v11, %v6225_v55  ;;  %v14388_v55 = vld [vmem:[#allocation23_spill] sm:$0xff] }
0x113e   : > { %14380 = vst [vmem:[#allocation37_spill] sm:$0xff] %v13604_v25 }
0x113f   : > { %14381 = vst [vmem:[#allocation38_spill] sm:$0xff] %v13606_v62 }
0x1140   : > { %v13608_v46 = vpop.f32.mrf.mxu0 }
0x1141   : > { %14382 = vst [vmem:[#allocation39_spill] sm:$0xff] %v13608_v46  ;;  %v6109_v46 = vadd.f32 %v13513_v45, %v13525_v58  ;;  %v5949_v45 = vadd.f32 %v13434_v50, %v13419_v17 }
0x1142   : > { %v6556_v32 = vpop.f32.mrf.mxu2 }
0x1143   : > { %v6603_v51 = vadd.f32 %v6556_v32, %v6413_v15  ;;  %v6302_v32 = vadd.f32 %v6288_v13, %v6109_v46  ;;  %v5952_v46 = vadd.f32 %v13455_v16, %v13449_v48  ;;  %v14383_v16 = vld [vmem:[#allocation28_spill] sm:$0xff] }
0x1144   : > { %v6306_v3 = vadd.f32 %v14383_v16, %v6115_v22 }
0x1145   : > { %v13614_v49 = vpop.f32.mrf.mxu3  ;;  %v13616_v34 = vpop.f32.mrf.mxu1  ;;  %v6492_v21 = vadd.f32 %v6478_v29, %v6302_v32  ;;  %v6230_v29 = vadd.f32 %v13574_v4, %v5984_v37  ;;  %v6229_v13 = vadd.f32 %v13572_v23, %v5952_v46  ;;  %v5955_v32 = vadd.f32 %v14389_v30, %v14388_v55  ;;  %v14400_v46 = vld [vmem:[#allocation17_spill] sm:$0xff] }
0x1146   : > { %v14387_v61 = vld [vmem:[#allocation38_spill] sm:$0xff] }
0x1147   : > { %v6420_v18 = vadd.f32 %v13598_v43, %v6230_v29  ;;  %v6419_v4 = vadd.f32 %v14384_v7, %v6229_v13  ;;  %v6496_v38 = vadd.f32 %v14387_v61, %v6306_v3 }
0x1148   : > { %v6630_v25 = vpop.f32.mrf.mxu0 }
0x1149   : > { %v6677_v62 = vadd.f32 %v6630_v25, %v6487_v26 }
0x114a   : > { %v6559_v33 = vpop.f32.mrf.mxu2 }
0x114b   : > { %v13624_v20 = vmax.f32 %v6603_v51, %v6677_v62  ;;  %v6605_v57 = vadd.f32 %v6559_v33, %v6415_v8  ;;  %v6112_v51 = vadd.f32 %v13531_v40, %v13543_v27  ;;  %v6227_v33 = vadd.f32 %v13568_v9, %v5949_v45  ;;  %v14390_v8 = vld [vmem:[#allocation19_spill] sm:$0xff] }
0x114d   : > { %6697 = vrot.lane.b32.xlu2 %v13624_v20, %s14277_s20  ;;  %v13630_v25 = vpop.f32.mrf.mxu3  ;;  %v13632_v15 = vpop.f32.mrf.mxu1  ;;  %v6304_v17 = vadd.f32 %v13576_v39, %v6112_v51  ;;  %v6417_v24 = vadd.f32 %v6372_v14, %v6227_v33  ;;  %v5987_v14 = vadd.f32 %v13457_v47, %v13471_v2  ;;  %v14385_v39 = vld [vmem:[#allocation35_spill] sm:$0xff]  ;;  %v14393_v51 = vld [vmem:[#allocation26_spill] sm:$0xff] }
0x114e   : > { %v6493_v47 = vadd.f32 %v14385_v39, %v6303_v6  ;;  %v14386_v2 = vld [vmem:[#allocation27_spill] sm:$0xff]  ;;  %v14405_v39 = vld [vmem:[#allocation20_spill] sm:$0xff] }
0x114f   : > { %v6494_v11 = vadd.f32 %v6481_v31, %v6304_v17  ;;  %v6232_v43 = vadd.f32 %v14386_v2, %v5987_v14  ;;  %v14396_v17 = vld [vmem:[#allocation39_spill] sm:$0xff] }
0x1150   : > { %v6633_v26 = vpop.f32.mrf.mxu0  ;;  %v14401_v14 = vld [vmem:[#allocation7_spill] sm:$0xff] }
0x1151   : > { %v6679_v62 = vadd.f32 %v6633_v26, %v6489_v59  ;;  %v14391_v59 = vld [vmem:[#allocation18_spill] sm:$0xff]  ;;  %v14403_v6 = vld [vmem:[#allocation31_spill] sm:$0xff] }
0x1152   : > { %v6562_v10 = vpop.f32.mrf.mxu2  ;;  %v6083_v19 = vadd.f32 %v14391_v59, %v14390_v8 }
0x1153   : > { %v13640_v58 = vmax.f32 %v6605_v57, %v6679_v62  ;;  %v6607_v1 = vadd.f32 %v6562_v10, %v6417_v24  ;;  %v14392_v57 = vld [vmem:[#allocation37_spill] sm:$0xff] }
0x1154   : > { %v6422_v62 = vadd.f32 %v14392_v57, %v6232_v43  ;;  %v14394_v10 = vld [vmem:[#allocation29_spill] sm:$0xff]  ;;  %v14407_v43 = vld [vmem:[#allocation22_spill] sm:$0xff] }
0x1155   : > { %6699 = vrot.lane.b32.xlu0 %v13640_v58, %s14277_s20  ;;  %v6594_v40 = vpop.f32.mrf.mxu3  ;;  %v6668_v27 = vpop.f32.mrf.mxu1  ;;  %v6305_v45 = vadd.f32 %v14394_v10, %v6083_v19 }
0x1156   : > { %v6608_v50 = vadd.f32 %v6594_v40, %v6418_v54  ;;  %v6682_v0 = vadd.f32 %v6668_v27, %v6492_v21  ;;  %v6231_v21 = vadd.f32 %v14393_v51, %v5955_v32  ;;  %v14395_v40 = vld [vmem:[#allocation36_spill] sm:$0xff] }
0x1157   : > { %v14412_v32 = vld [vmem:[#allocation32_spill] sm:$0xff] }
0x1158   : > { %v13650_v12 = vmax.f32 %v6608_v50, %v6682_v0  ;;  %v6636_v41 = vpop.f32.mrf.mxu0  ;;  %v6421_v27 = vadd.f32 %v14395_v40, %v6231_v21  ;;  %v6495_v50 = vadd.f32 %v14396_v17, %v6305_v45 }
0x1159   : > { %v6681_v35 = vadd.f32 %v6636_v41, %v6491_v56 }
0x115a   : > { %v6565_v5 = vpop.f32.mrf.mxu2 }
0x115b   : > { %v13658_v9 = vmax.f32 %v6607_v1, %v6681_v35  ;;  %v6609_v28 = vadd.f32 %v6565_v5, %v6419_v4  ;;  %v14397_v1 = vld [vmem:[#allocation12_spill] sm:$0xff]  ;;  %v14398_v35 = vld [vmem:[#allocation5_spill] sm:$0xff]  ;;  %v14402_v5 = vld [vmem:[#allocation14_spill] sm:$0xff] }
0x115c   : > { %v6103_v22 = vadd.f32 %v14398_v35, %v14397_v1 }
0x115d   : > { %6701 = vrot.lane.b32.xlu1 %v13658_v9, %s14277_s20  ;;  %v6597_v31 = vpop.f32.mrf.mxu3  ;;  %v6671_v48 = vpop.f32.mrf.mxu1 }
0x115e   : > { %v6610_v52 = vadd.f32 %v6597_v31, %v6420_v18  ;;  %v6684_v63 = vadd.f32 %v6671_v48, %v6494_v11  ;;  %v14399_v11 = vld [vmem:[#allocation8_spill] sm:$0xff]  ;;  %v6298_v18 = vadd.f32 %v14401_v14, %v6103_v22  ;;  %v14404_v48 = vld [vmem:[#allocation30_spill] sm:$0xff] }
0x115f   : > { %v5975_v44 = vadd.f32 %v14400_v46, %v14399_v11 }
0x1160   : > { %v13671_v36 = vmax.f32 %v6610_v52, %v6684_v63  ;;  %v6639_v23 = vpop.f32.mrf.mxu0  ;;  %v6488_v31 = vadd.f32 %v14403_v6, %v6298_v18 }
0x1161   : > { %v6683_v60 = vadd.f32 %v6639_v23, %v6493_v47  ;;  %v6224_v13 = vadd.f32 %v14402_v5, %v5975_v44  ;;  %v14406_v47 = vld [vmem:[#allocation21_spill] sm:$0xff]  ;;  %v14408_v23 = vld [vmem:[#allocation6_spill] sm:$0xff] }
0x1162   : > { %v6568_v54 = vpop.f32.mrf.mxu2  ;;  %v6678_v52 = vadd.f32 %v13616_v34, %v6488_v31  ;;  %v6106_v2 = vadd.f32 %v14406_v47, %v14405_v39  ;;  %v14411_v34 = vld [vmem:[#allocation33_spill] sm:$0xff]  ;;  %v14413_v31 = vld [vmem:[#allocation3_spill] sm:$0xff] }
0x1163   : > { %v13678_v26 = vmax.f32 %v6609_v28, %v6683_v60  ;;  %v6611_v56 = vadd.f32 %v6568_v54, %v6421_v27  ;;  %v6414_v16 = vadd.f32 %v14404_v48, %v6224_v13  ;;  %v5978_v28 = vadd.f32 %v14408_v23, %v14407_v43  ;;  %v14409_v60 = vld [vmem:[#allocation25_spill] sm:$0xff] }
0x1164   : > { %v6300_v61 = vadd.f32 %v14409_v60, %v6106_v2  ;;  %v14416_v60 = vld [vmem:[#allocation10_spill] sm:$0xff] }
0x1165   : > { %6722 = vrot.lane.b32.xlu1 %v13624_v20, %s14296_s23  ;;  %6703 = vrot.lane.b32.xlu2 %v13678_v26, %s14277_s20  ;;  %v6600_v53 = vpop.f32.mrf.mxu3  ;;  %v6674_v37 = vpop.f32.mrf.mxu1  ;;  %v6604_v3 = vadd.f32 %v13614_v49, %v6414_v16  ;;  %v14410_v49 = vld [vmem:[#allocation24_spill] sm:$0xff] }
0x1166   : > { %v6612_v33 = vadd.f32 %v6600_v53, %v6422_v62  ;;  %v6686_v42 = vadd.f32 %v6674_v37, %v6496_v38  ;;  %v6226_v38 = vadd.f32 %v14410_v49, %v5978_v28  ;;  %v6490_v55 = vadd.f32 %v14411_v34, %v6300_v61 }
0x1167   : > { %v6688_v63 = vmax.f32 %v6604_v3, %v6678_v52  ;;  %v14414_v3 = vld [vmem:[#allocation4_spill] sm:$0xff] }
0x1168   : > { %v13689_v0 = vmax.f32 %v6612_v33, %v6686_v42  ;;  %v6642_v24 = vpop.f32.mrf.mxu0  ;;  %v6416_v8 = vadd.f32 %v14412_v32, %v6226_v38  ;;  %v6680_v57 = vadd.f32 %v13632_v15, %v6490_v55  ;;  %v14417_v32 = vld [vmem:[#allocation16_spill] sm:$0xff] }
0x1169   : > { %v6685_v29 = vadd.f32 %v6642_v24, %v6495_v50 }
0x116a   : > { %v6606_v19 = vadd.f32 %v13630_v25, %v6416_v8 }
0x116b   : > { %v13691_v41 = vmax.f32 %v6611_v56, %v6685_v29 }
0x116c   : > { %v6690_v62 = vmax.f32 %v6606_v19, %v6680_v57 }
0x116d   : > { %6705 = vrot.lane.b32.xlu0 %v13691_v41, %s14277_s20  ;;  %s497_s20 = scalar_lea.vmem %s14212_s15, %s7536_s29 }
0x1175   : > { %6726 = vrot.lane.b32.xlu0 %v13640_v58, %s14296_s23 }
0x11a7   : > { %v6698_v7 = vpop.permute.xlu2 %6697 }
0x11a8   : > { %v6707_v4 = vsel %vm711_vm0, %v6698_v7, %v6688_v63 }
0x11a9   : > { %6724 = vrot.lane.b32.xlu2 %v6707_v4, %s14296_s23 }
0x11b1   : > { %6730 = vrot.lane.b32.xlu2 %v13658_v9, %s14296_s23 }
0x11bf   : > { %v6704_v30 = vpop.permute.xlu2 %6703 }
0x11c0   : > { %v6710_v59 = vsel %vm711_vm0, %v6704_v30, %v13671_v36 }
0x11c1   : > { %6736 = vrot.lane.b32.xlu2 %v6710_v59, %s14296_s23 }
0x11c7   : > { %v6700_v51 = vpop.permute.xlu0 %6699 }
0x11c8   : > { %v6708_v21 = vsel %vm711_vm0, %v6700_v51, %v6690_v62  ;;  %v9441_v51 = vld [vmem:[%s14201_s4 + $0x8] sm:$0xff] }
0x11c9   : > { %6728 = vrot.lane.b32.xlu1 %v6708_v21, %s14296_s23  ;;  %v9442_v21 = vld [vmem:[%s14202_s5] sm:$0xff] }
0x11cf   : > { %v6702_v10 = vpop.permute.xlu1 %6701 }
0x11d0   : > { %v6709_v45 = vsel %vm711_vm0, %v6702_v10, %v13650_v12  ;;  %v9443_v10 = vld [vmem:[%s14202_s5 + $0x8] sm:$0xff] }
0x11d1   : > { %6734 = vrot.lane.b32.xlu1 %v13678_v26, %s14296_s23  ;;  %6732 = vrot.lane.b32.xlu0 %v6709_v45, %s14296_s23 }
0x11d7   : > { %v6723_v53 = vpop.permute.xlu1 %6722 }
0x11d9   : > { %6738 = vrot.lane.b32.xlu0 %v13691_v41, %s14296_s23 }
0x11df   : > { %v6706_v25 = vpop.permute.xlu0 %6705 }
0x11e0   : > { %v6711_v15 = vsel %vm711_vm0, %v6706_v25, %v13689_v0 }
0x11e1   : > { %6740 = vrot.lane.b32.xlu1 %v6711_v15, %s14296_s23 }
0x11e7   : > { %v6727_v40 = vpop.permute.xlu0 %6726 }
0x1203   : > { %v6725_v37 = vpop.permute.xlu2 %6724 }
0x1204   : > { %v6742_v54 = vsel %vm766_vm2, %v6723_v53, %v6725_v37  ;;  %v6758_v33 = vmax.f32 %v6688_v63, %v6725_v37 }
0x1205   : > { %v6757_v42 = vmax.f32 %v13624_v20, %v6742_v54 }
0x1206   : > { %8231 = vmatmul.msk.f32.vlgmr.msrb.gmra.mxu3 %vm1870_vm6, %v6758_v33 }
0x1207   : > { %6798 = vmatmul.f32.vlgmr.msra.gmra.mxu2 %v6757_v42 }
0x120b   : > { %v6731_v56 = vpop.permute.xlu2 %6730 }
0x121b   : > { %v6737_v11 = vpop.permute.xlu2 %6736 }
0x123b   : > { %v6729_v27 = vpop.permute.xlu1 %6728 }
0x123c   : > { %v6743_v17 = vsel %vm766_vm2, %v6727_v40, %v6729_v27  ;;  %v6760_v50 = vmax.f32 %v6690_v62, %v6729_v27  ;;  %v9440_v62 = vld [vmem:[%s14201_s4] sm:$0xff] }
0x123d   : > { %v6759_v24 = vmax.f32 %v13640_v58, %v6743_v17  ;;  %v6764_v58 = vmax.f32 %v13671_v36, %v6737_v11 }
0x123e   : > { %8232 = vmatmul.msk.f32.gmra.mxu3 %vm1870_vm6, %v6760_v50 }
0x123f   : > { %6801 = vmatmul.f32.gmra.mxu2 %v6759_v24  ;;  %v9444_v24 = vld [vmem:[%s14201_s4 + $0x10] sm:$0xff] }
0x1243   : > { %v6733_v29 = vpop.permute.xlu0 %6732  ;;  %v6735_v22 = vpop.permute.xlu1 %6734 }
0x1244   : > { %v6744_v1 = vsel %vm766_vm2, %v6731_v56, %v6733_v29  ;;  %v6762_v35 = vmax.f32 %v13650_v12, %v6733_v29  ;;  %v6745_v46 = vsel %vm766_vm2, %v6735_v22, %v6737_v11 }
0x1245   : > { %v6761_v20 = vmax.f32 %v13658_v9, %v6744_v1  ;;  %v6763_v44 = vmax.f32 %v13678_v26, %v6745_v46  ;;  %v9445_v46 = vld [vmem:[%s14201_s4 + $0x18] sm:$0xff] }
0x1246   : > { %8233 = vmatmul.msk.f32.gmra.mxu3 %vm1870_vm6, %v6762_v35 }
0x1247   : > { %6804 = vmatmul.f32.gmra.mxu2 %v6761_v20 }
0x124b   : > { %v6739_v14 = vpop.permute.xlu0 %6738 }
0x124e   : > { %8234 = vmatmul.msk.f32.gmra.mxu3 %vm1870_vm6, %v6764_v58 }
0x124f   : > { %6807 = vmatmul.f32.gmra.mxu2 %v6763_v44 }
0x1253   : > { %v6741_v18 = vpop.permute.xlu1 %6740 }
0x1254   : > { %v6746_v12 = vsel %vm766_vm2, %v6739_v14, %v6741_v18  ;;  %v6766_v9 = vmax.f32 %v13689_v0, %v6741_v18  ;;  %v9446_v14 = vld [vmem:[%s14202_s5 + $0x20] sm:$0xff] }
0x1255   : > { %v6765_v5 = vmax.f32 %v13691_v41, %v6746_v12  ;;  %v14415_v41 = vld [vmem:[#allocation9_spill] sm:$0xff] }
0x1256   : > { %8235 = vmatmul.msk.f32.gmra.mxu3 %vm1870_vm6, %v6766_v9 }
0x1257   : > { %6810 = vmatmul.f32.gmra.mxu2 %v6765_v5 }
0x1289   : > { %v6831_v13 = vpop.f32.mrf.mxu3 }
0x128a   : > { %v6799_v6 = vpop.f32.mrf.mxu2 }
0x128b   : > { %v6800_v36 = vadd.f32 %v6799_v6, %v14413_v31  ;;  %v9447_v6 = vld [vmem:[%s14202_s5 + $0x10] sm:$0xff] }
0x128c   : > { %v9448_v31 = vld [vmem:[%s14201_s4 + $0x30] sm:$0xff] }
0x128d   : > { %v6832_v16 = vadd.f32 %v6831_v13, %v6800_v36 }
0x128f   : > { %v6846_v7 = vmax.f32 %v6832_v16, 0.0 }
0x12c1   : > { %v6834_v48 = vpop.f32.mrf.mxu3 }
0x12c2   : > { %v6802_v26 = vpop.f32.mrf.mxu2 }
0x12c3   : > { %v6803_v52 = vadd.f32 %v6802_v26, %v14414_v3  ;;  %v9450_v26 = vld [vmem:[%s14202_s5 + $0x30] sm:$0xff]  ;;  %v9451_v3 = vld [vmem:[%s14205_s8 + $0x78] sm:$0xff] }
0x12c5   : > { %v6835_v63 = vadd.f32 %v6834_v48, %v6803_v52  ;;  %v9449_v48 = vld [vmem:[%s14202_s5 + $0x28] sm:$0xff] }
0x12c6   : > { %v9452_v52 = vld [vmem:[%s14206_s9 + $0x68] sm:$0x1f] }
0x12c7   : > { %v6847_v4 = vmax.f32 %v6835_v63, 0.0  ;;  %v9453_v63 = vld [vmem:[%s14205_s8 + $0x70] sm:$0xff] }
0x12c9   : > { %v6837_v39 = vpop.f32.mrf.mxu3  ;;  %v8976_v47 = vpack.i.bf16 %v6846_v7, %v6847_v4 }
0x12ca   : > { %v6805_v0 = vpop.f32.mrf.mxu2 }
0x12cb   : > { %8977 = vrot.lane.b32.xlu1 %v8976_v47, %s14296_s23  ;;  %v6806_v2 = vadd.f32 %v6805_v0, %v14415_v41  ;;  %v9458_v0 = vld [vmem:[%s14205_s8 + $0x68] sm:$0xff]  ;;  %v9459_v41 = vld [vmem:[%s14206_s9 + $0x58] sm:$0xff] }
0x12cd   : > { %v6838_v28 = vadd.f32 %v6837_v39, %v6806_v2  ;;  %v9456_v39 = vld [vmem:[%s14206_s9 + $0xa0] sm:$0x1f]  ;;  %v9460_v2 = vld [vmem:[%s14202_s5 + $0x38] sm:$0xff] }
0x12cf   : > { %v6848_v38 = vmax.f32 %v6838_v28, 0.0  ;;  %v9463_v28 = vld [vmem:[%s14206_s9 + $0x50] sm:$0xff] }
0x12d1   : > { %v6840_v43 = vpop.f32.mrf.mxu3 }
0x12d2   : > { %v6808_v23 = vpop.f32.mrf.mxu2 }
0x12d3   : > { %v6809_v61 = vadd.f32 %v6808_v23, %v14416_v60  ;;  %8987 = vrot.lane.b32.xlu1 %v8976_v47, %s14279_s28  ;;  %v9462_v23 = vld [vmem:[%s14205_s8 + $0x60] sm:$0xff]  ;;  %v9464_v60 = vld [vmem:[%s14206_s9 + $0x98] sm:$0xff] }
0x12d5   : > { %v6841_v49 = vadd.f32 %v6840_v43, %v6809_v61  ;;  %v9461_v43 = vld [vmem:[%s14202_s5 + $0x40] sm:$0xff]  ;;  %v9465_v61 = vld [vmem:[%s14205_s8 + $0x58] sm:$0xff] }
0x12d7   : > { %v6849_v34 = vmax.f32 %v6841_v49, 0.0  ;;  %v9466_v49 = vld [vmem:[%s14206_s9 + $0x48] sm:$0xff] }
0x12d9   : > { %v8971_v55 = vpack.i.bf16 %v6848_v38, %v6849_v34  ;;  %v6843_v59 = vpop.f32.mrf.mxu3 }
0x12da   : > { %v6811_v30 = vpop.f32.mrf.mxu2 }
0x12db   : > { %v6812_v8 = vadd.f32 %v6811_v30, %v14417_v32  ;;  %8997 = vrot.lane.b32.xlu1 %v8976_v47, %s14275_s16  ;;  %8972 = vrot.lane.b32.xlu0 %v8971_v55, %s14296_s23  ;;  %v9470_v30 = vld [vmem:[%s14206_s9 + $0x30] sm:$0x1f]  ;;  %v9471_v32 = vld [vmem:[%s14206_s9 + $0x40] sm:$0xff] }
0x12dd   : > { %v6844_v19 = vadd.f32 %v6843_v59, %v6812_v8  ;;  %v9472_v8 = vld [vmem:[%s14205_s8 + $0x48] sm:$0xff] }
0x12de   : > { %v9473_v59 = vld [vmem:[%s14206_s9 + $0x88] sm:$0xff] }
0x12df   : > { %v6850_v57 = vmax.f32 %v6844_v19, 0.0  ;;  %v9474_v19 = vld [vmem:[%s14206_s9 + $0x28] sm:$0xff] }
0x12e1   : > { %6859 = vrot.lane.b32.xlu2 %v6850_v57, %s14296_s23  ;;  %8239 = vmatpush.msk.msrb.mxu1 %vm1972_vm7, %v6850_v57 }
0x12e3   : > { %9007 = vrot.lane.b32.xlu1 %v8976_v47, %s14276_s17  ;;  %8982 = vrot.lane.b32.xlu0 %v8971_v55, %s14279_s28  ;;  %v9457_v47 = vld [vmem:[%s14201_s4 + $0x38] sm:$0xff] }
0x12e4   : > { %6902 = vmatpush.msrb.mxu1 %v6849_v34 }
0x12e6   : > { %6903 = vmatpush.msrb.mxu1 %v6848_v38 }
0x12e8   : > { %6904 = vmatpush.msrb.mxu1 %v6847_v4 }
0x12e9   : > { %6967 = vrot.lane.b32.xlu2 %v6850_v57, %s14279_s28 }
0x12ea   : > { %6905 = vmatpush.msrb.mxu1 %v6846_v7 }
0x12eb   : > { %8992 = vrot.lane.b32.xlu0 %v8971_v55, %s14275_s16  ;;  %8240 = vmatmul.msk.f32.vlgmr.msrb.gmra.mxu1 %vm1965_vm8, %v9440_v62  ;;  %v9476_v62 = vld [vmem:[%s14202_s5 + $0x48] sm:$0xff] }
0x12ec   : > { %8245 = vmatpush.msk.msra.mxu1 %vm1972_vm7, %v6850_v57 }
0x12ee   : > { %6948 = vmatpush.msra.mxu1 %v6849_v34  ;;  %v9468_v34 = vld [vmem:[%s14201_s4 + $0x20] sm:$0xff] }
0x12f0   : > { %6949 = vmatpush.msra.mxu1 %v6848_v38  ;;  %v9467_v38 = vld [vmem:[%s14206_s9 + $0x90] sm:$0xff] }
0x12f1   : > { %7030 = vrot.lane.b32.xlu2 %v6850_v57, %s14275_s16 }
0x12f2   : > { %6950 = vmatpush.msra.mxu1 %v6847_v4  ;;  %v9455_v4 = vld [vmem:[%s14202_s5 + $0x18] sm:$0xff] }
0x12f3   : > { %9002 = vrot.lane.b32.xlu0 %v8971_v55, %s14276_s17  ;;  %8241 = vmatmul.msk.f32.gmra.mxu1 %vm1965_vm8, %v9441_v51  ;;  %v9469_v55 = vld [vmem:[%s14205_s8 + $0x50] sm:$0xff]  ;;  %v9477_v51 = vld [vmem:[%s14205_s8 + $0x40] sm:$0xff] }
0x12f4   : > { %6951 = vmatpush.msra.mxu1 %v6846_v7  ;;  %v9454_v7 = vld [vmem:[%s14206_s9 + $0x60] sm:$0xff] }
0x12f9   : > { %7093 = vrot.lane.b32.xlu2 %v6850_v57, %s14276_s17  ;;  %v9475_v57 = vld [vmem:[%s14206_s9 + $0x38] sm:$0xff] }
0x12fb   : > { %8246 = vmatmul.msk.f32.vlgmr.msra.gmra.mxu1 %vm1965_vm8, %v9442_v21  ;;  %v9478_v21 = vld [vmem:[%s14206_s9 + $0x20] sm:$0xff] }
0x1303   : > { %8247 = vmatmul.msk.f32.gmra.mxu1 %vm1965_vm8, %v9443_v10  ;;  %v9479_v10 = vld [vmem:[%s14206_s9 + $0x80] sm:$0xff] }
0x133b   : > { %v6860_v45 = vpop.permute.xlu2 %6859 }
0x133c   : > { %8236 = vmatpush.msk.msra.mxu0 %vm1972_vm7, %v6860_v45 }
0x133d   : > { %v8978_v15 = vpop.permute.xlu1 %8977 }
0x133e   : > { %v8979_v42 = vunpack.i.l.bf16 %v8978_v15  ;;  %v8980_v27 = vunpack.i.h.bf16 %v8978_v15  ;;  %v9482_v15 = vld [vmem:[%s14206_s9 + $0x18] sm:$0xff] }
0x1343   : > { %v6968_v25 = vpop.permute.xlu2 %6967 }
0x1344   : > { %8251 = vmatpush.msk.msrb.mxu1 %vm1972_vm7, %v6968_v25 }
0x1345   : > { %v8988_v40 = vpop.permute.xlu1 %8987 }
0x1346   : > { %v8989_v29 = vunpack.i.l.bf16 %v8988_v40  ;;  %v8990_v1 = vunpack.i.h.bf16 %v8988_v40  ;;  %v9488_v40 = vld [vmem:[%s14205_s8 + $0x28] sm:$0xff] }
0x134b   : > { %v7031_v53 = vpop.permute.xlu2 %7030 }
0x134c   : > { %8254 = vmatpush.msk.msrb.mxu2 %vm1972_vm7, %v7031_v53  ;;  %8257 = vmatpush.msk.msra.mxu3 %vm1972_vm7, %v7031_v53  ;;  %v9483_v53 = vld [vmem:[%s14206_s9 + $0x78] sm:$0xff] }
0x134d   : > { %v8973_v37 = vpop.permute.xlu0 %8972  ;;  %v8998_v35 = vpop.permute.xlu1 %8997 }
0x134e   : > { %v8974_v54 = vunpack.i.l.bf16 %v8973_v37  ;;  %v8975_v33 = vunpack.i.h.bf16 %v8973_v37  ;;  %v8999_v44 = vunpack.i.l.bf16 %v8998_v35  ;;  %v9000_v18 = vunpack.i.h.bf16 %v8998_v35  ;;  %v9484_v37 = vld [vmem:[%s14201_s4 + $0x28] sm:$0xff]  ;;  %v9496_v35 = vld [vmem:[%s14205_s8 + $0x18] sm:$0xff] }
0x1350   : > { %6876 = vmatpush.msra.mxu0 %v8974_v54 }
0x1352   : > { %6877 = vmatpush.msra.mxu0 %v8975_v33 }
0x1353   : > { %v7094_v22 = vpop.permute.xlu2 %7093 }
0x1354   : > { %6878 = vmatpush.msra.mxu0 %v8979_v42 }
0x1355   : > { %v8983_v17 = vpop.permute.xlu0 %8982  ;;  %v9008_v5 = vpop.permute.xlu1 %9007 }
0x1356   : > { %v8984_v50 = vunpack.i.l.bf16 %v8983_v17  ;;  %6879 = vmatpush.msra.mxu0 %v8980_v27  ;;  %v8985_v56 = vunpack.i.h.bf16 %v8983_v17  ;;  %v9009_v36 = vunpack.i.l.bf16 %v9008_v5  ;;  %v9010_v16 = vunpack.i.h.bf16 %v9008_v5  ;;  %v9490_v17 = vld [vmem:[%s14206_s9 + $0x8] sm:$0xff]  ;;  %v9507_v5 = vld [vmem:[%s14205_s8] sm:$0xff] }
0x1357   : > { %8237 = vmatmul.msk.f32.vlgmr.msra.gmra.mxu0 %vm1965_vm8, %v9444_v24  ;;  %v9492_v24 = vld [vmem:[%s14205_s8 + $0x20] sm:$0xff] }
0x1358   : > { %8242 = vmatpush.msk.msrb.mxu0 %vm1972_vm7, %v6860_v45  ;;  %7009 = vmatpush.msrb.mxu1 %v8984_v50  ;;  %v9480_v45 = vld [vmem:[%s14205_s8 + $0x38] sm:$0xff] }
0x135a   : > { %6925 = vmatpush.msrb.mxu0 %v8974_v54  ;;  %7010 = vmatpush.msrb.mxu1 %v8985_v56  ;;  %v9485_v54 = vld [vmem:[%s14205_s8 + $0x30] sm:$0xff] }
0x135c   : > { %6926 = vmatpush.msrb.mxu0 %v8975_v33  ;;  %7011 = vmatpush.msrb.mxu1 %v8989_v29  ;;  %v9486_v33 = vld [vmem:[%s14206_s9 + $0x10] sm:$0xff] }
0x135d   : > { %v8993_v20 = vpop.permute.xlu0 %8992 }
0x135e   : > { %v8994_v11 = vunpack.i.l.bf16 %v8993_v20  ;;  %6927 = vmatpush.msrb.mxu0 %v8979_v42  ;;  %7012 = vmatpush.msrb.mxu1 %v8990_v1  ;;  %v8995_v58 = vunpack.i.h.bf16 %v8993_v20  ;;  %v9487_v42 = vld [vmem:[%s14206_s9 + $0xd0] sm:$0xff]  ;;  %v9497_v20 = vld [vmem:[%s14206_s9 + $0x140] sm:$0xff] }
0x135f   : > { %8238 = vmatmul.msk.f32.gmra.mxu0 %vm1965_vm8, %v9445_v46  ;;  %8252 = vmatmul.msk.f32.vlgmr.msrb.gmra.mxu1 %vm1965_vm8, %v9446_v14  ;;  %v9500_v46 = vld [vmem:[%s14205_s8 + $0x10] sm:$0xff]  ;;  %v9503_v14 = vld [vmem:[%s14205_s8 + $0x8] sm:$0xff] }
0x1360   : > { %8263 = vmatpush.msk.msra.mxu1 %vm1972_vm7, %v7094_v22  ;;  %6928 = vmatpush.msrb.mxu0 %v8980_v27  ;;  %v9489_v27 = vld [vmem:[%s14206_s9 + $0x70] sm:$0xff] }
0x1361   : > { %7047 = vmatpush.msrb.mxu2 %v8994_v11  ;;  %7072 = vmatpush.msra.mxu3 %v8994_v11  ;;  %v9499_v11 = vld [vmem:[%s14201_s4 + $0x40] sm:$0xff] }
0x1362   : > { %8248 = vmatpush.msk.msra.mxu0 %vm1972_vm7, %v6968_v25  ;;  %v9481_v25 = vld [vmem:[%s14206_s9 + $0xd8] sm:$0x1f] }
0x1363   : > { %7048 = vmatpush.msrb.mxu2 %v8995_v58  ;;  %7073 = vmatpush.msra.mxu3 %v8995_v58  ;;  %v9501_v58 = vld [vmem:[%s14206_s9 + $0xb0] sm:$0xff] }
0x1364   : > { %6984 = vmatpush.msra.mxu0 %v8984_v50  ;;  %v9491_v50 = vld [vmem:[%s14206_s9 + $0xc8] sm:$0xff] }
0x1365   : > { %7049 = vmatpush.msrb.mxu2 %v8999_v44  ;;  %7074 = vmatpush.msra.mxu3 %v8999_v44  ;;  %v9003_v12 = vpop.permute.xlu0 %9002  ;;  %v9502_v44 = vld [vmem:[%s14206_s9 + $0x110] sm:$0x1f] }
0x1366   : > { %6985 = vmatpush.msra.mxu0 %v8985_v56  ;;  %v9004_v9 = vunpack.i.l.bf16 %v9003_v12  ;;  %v9005_v13 = vunpack.i.h.bf16 %v9003_v12  ;;  %v9493_v56 = vld [vmem:[%s14206_s9 + $0x148] sm:$0x1f] }
0x1367   : > { %7050 = vmatpush.msrb.mxu2 %v9000_v18  ;;  %7075 = vmatpush.msra.mxu3 %v9000_v18  ;;  %v9504_v18 = vld [vmem:[%s14206_s9 + $0x138] sm:$0xff]  ;;  %v9505_v12 = vld [vmem:[%s14206_s9 + $0xa8] sm:$0xff] }
0x1368   : > { %6986 = vmatpush.msra.mxu0 %v8989_v29  ;;  %7135 = vmatpush.msra.mxu1 %v9004_v9  ;;  %v9494_v29 = vld [vmem:[%s14206_s9] sm:$0xff] }
0x1369   : > { %8243 = vmatmul.msk.f32.vlgmr.msrb.gmra.mxu0 %vm1965_vm8, %v9447_v6  ;;  %8255 = vmatmul.msk.f32.vlgmr.msrb.gmra.mxu2 %vm1965_vm8, %v9448_v31  ;;  %v9509_v6 = vld [vmem:[%s14206_s9 + $0x1b8] sm:$0x1f]  ;;  %v9510_v31 = vld [vmem:[%s14206_s9 + $0x100] sm:$0xff] }
0x136a   : > { %6987 = vmatpush.msra.mxu0 %v8990_v1  ;;  %7136 = vmatpush.msra.mxu1 %v9005_v13  ;;  %v9495_v1 = vld [vmem:[%s14206_s9 + $0xc0] sm:$0xff] }
0x136b   : > { %8253 = vmatmul.msk.f32.gmra.mxu1 %vm1965_vm8, %v9449_v48  ;;  %8258 = vmatmul.msk.f32.vlgmr.msra.gmra.mxu3 %vm1965_vm8, %v9450_v26  ;;  %v9512_v48 = vld [vmem:[%s14206_s9 + $0x1b0] sm:$0xff]  ;;  %v9513_v26 = vld [vmem:[%s14206_s9 + $0xf8] sm:$0xff] }
0x136c   : > { %8260 = vmatpush.msk.msrb.mxu0 %vm1972_vm7, %v7094_v22  ;;  %7137 = vmatpush.msra.mxu1 %v9009_v36  ;;  %v9498_v22 = vld [vmem:[%s14206_s9 + $0xb8] sm:$0xff] }
0x136d   : > { %7156 = vmatpush.msra.mxu2 %v9451_v3  ;;  %8266 = vmatpush.msk.msrb.mxu3 %vm2362_vm9, %v9452_v52  ;;  %v9515_v3 = vld [vmem:[%s14206_s9 + $0x120] sm:$0xff]  ;;  %v9516_v52 = vld [vmem:[%s14206_s9 + $0x1a8] sm:$0xff] }
0x136e   : > { %7110 = vmatpush.msrb.mxu0 %v9004_v9  ;;  %7138 = vmatpush.msra.mxu1 %v9010_v16  ;;  %v9506_v9 = vld [vmem:[%s14206_s9 + $0x108] sm:$0xff] }
0x136f   : > { %7157 = vmatpush.msra.mxu2 %v9453_v63  ;;  %7195 = vmatpush.msrb.mxu3 %v9454_v7  ;;  %v9517_v63 = vld [vmem:[%s14206_s9 + $0xf0] sm:$0xff]  ;;  %v9518_v7 = vld [vmem:[%s14206_s9 + $0x118] sm:$0xff] }
0x1370   : > { %7111 = vmatpush.msrb.mxu0 %v9005_v13  ;;  %8270 = vmatpush.msk.msrb.mxu1 %vm2362_vm9, %v9456_v39  ;;  %v9508_v13 = vld [vmem:[%s14206_s9 + $0x130] sm:$0xff]  ;;  %v9520_v39 = vld [vmem:[%s14206_s9 + $0xe8] sm:$0xff] }
0x1371   : > { %8244 = vmatmul.msk.f32.gmra.mxu0 %vm1965_vm8, %v9455_v4  ;;  %8256 = vmatmul.msk.f32.gmra.mxu2 %vm1965_vm8, %v9457_v47  ;;  %v9519_v4 = vld [vmem:[%s14206_s9 + $0x1a0] sm:$0xff]  ;;  %v9521_v47 = vld [vmem:[%s14206_s9 + $0x198] sm:$0xff] }
0x1372   : > { %7112 = vmatpush.msrb.mxu0 %v9009_v36  ;;  %7158 = vmatpush.msra.mxu2 %v9458_v0  ;;  %v9511_v36 = vld [vmem:[%s14206_s9 + $0x128] sm:$0xff]  ;;  %v9522_v0 = vld [vmem:[%s14206_s9 + $0xe0] sm:$0xff] }
0x1373   : > { %7196 = vmatpush.msrb.mxu3 %v9459_v41  ;;  %8264 = vmatmul.msk.f32.vlgmr.msra.gmra.mxu1 %vm1965_vm8, %v9461_v43  ;;  %v9523_v41 = vld [vmem:[%s14206_s9 + $0x190] sm:$0xff]  ;;  %v6907_v43 = vpop.f32.mrf.mxu1 }
0x1374   : > { %7113 = vmatpush.msrb.mxu0 %v9010_v16  ;;  %8259 = vmatmul.msk.f32.gmra.mxu3 %vm1965_vm8, %v9460_v2  ;;  %v9514_v16 = vld [vmem:[%s14201_s4 + $0x48] sm:$0xff] }
0x1375   : > { %7159 = vmatpush.msra.mxu2 %v9462_v23  ;;  %7197 = vmatpush.msrb.mxu3 %v9463_v28  ;;  %v9524_v2 = vld [vmem:[%s14206_s9 + $0x188] sm:$0xff] }
0x1376   : > { %7240 = vmatpush.msrb.mxu1 %v9464_v60 }
0x1377   : > { %7160 = vmatpush.msra.mxu2 %v9465_v61  ;;  %7198 = vmatpush.msrb.mxu3 %v9466_v49 }
0x1378   : > { %7241 = vmatpush.msrb.mxu1 %v9467_v38 }
0x1379   : > { %8249 = vmatmul.msk.f32.vlgmr.msra.gmra.mxu0 %vm1965_vm8, %v9468_v34  ;;  %7161 = vmatpush.msra.mxu2 %v9469_v55 }
0x137a   : > { %8268 = vmatpush.msk.msra.mxu0 %vm2362_vm9, %v9470_v30  ;;  %7199 = vmatpush.msrb.mxu3 %v9471_v32 }
0x137b   : > { %7162 = vmatpush.msra.mxu2 %v9472_v8  ;;  %7242 = vmatpush.msrb.mxu1 %v9473_v59  ;;  %v6910_v23 = vpop.f32.mrf.mxu1 }
0x137c   : > { %7217 = vmatpush.msra.mxu0 %v9474_v19  ;;  %7200 = vmatpush.msrb.mxu3 %v9475_v57 }
0x137d   : > { %8265 = vmatmul.msk.f32.gmra.mxu1 %vm1965_vm8, %v9476_v62  ;;  %7163 = vmatpush.msra.mxu2 %v9477_v51 }
0x137e   : > { %7218 = vmatpush.msra.mxu0 %v9478_v21  ;;  %7243 = vmatpush.msrb.mxu1 %v9479_v10 }
0x137f   : > { %7164 = vmatpush.msra.mxu2 %v9480_v45  ;;  %8272 = vmatpush.msk.msra.mxu3 %vm2362_vm9, %v9481_v25 }
0x1380   : > { %7219 = vmatpush.msra.mxu0 %v9482_v15  ;;  %7244 = vmatpush.msrb.mxu1 %v9483_v53 }
0x1381   : > { %8250 = vmatmul.msk.f32.gmra.mxu0 %vm1965_vm8, %v9484_v37  ;;  %7165 = vmatpush.msra.mxu2 %v9485_v54 }
0x1382   : > { %7220 = vmatpush.msra.mxu0 %v9486_v33  ;;  %7264 = vmatpush.msra.mxu3 %v9487_v42 }
0x1383   : > { %7166 = vmatpush.msra.mxu2 %v9488_v40  ;;  %7245 = vmatpush.msrb.mxu1 %v9489_v27  ;;  %v6953_v60 = vpop.f32.mrf.mxu1 }
0x1384   : > { %7221 = vmatpush.msra.mxu0 %v9490_v17  ;;  %7265 = vmatpush.msra.mxu3 %v9491_v50 }
0x1385   : > { %7167 = vmatpush.msra.mxu2 %v9492_v24  ;;  %8276 = vmatpush.msk.msra.mxu1 %vm2362_vm9, %v9493_v56 }
0x1386   : > { %7222 = vmatpush.msra.mxu0 %v9494_v29  ;;  %7266 = vmatpush.msra.mxu3 %v9495_v1 }
0x1387   : > { %7168 = vmatpush.msra.mxu2 %v9496_v35  ;;  %7312 = vmatpush.msra.mxu1 %v9497_v20 }
0x1388   : > { %7267 = vmatpush.msra.mxu3 %v9498_v22 }
0x1389   : > { %8261 = vmatmul.msk.f32.vlgmr.msrb.gmra.mxu0 %vm1965_vm8, %v9499_v11  ;;  %7169 = vmatpush.msra.mxu2 %v9500_v46 }
0x138a   : > { %7268 = vmatpush.msra.mxu3 %v9501_v58  ;;  %8274 = vmatpush.msk.msrb.mxu0 %vm2362_vm9, %v9502_v44 }
0x138b   : > { %7170 = vmatpush.msra.mxu2 %v9503_v14  ;;  %7313 = vmatpush.msra.mxu1 %v9504_v18  ;;  %v6956_v49 = vpop.f32.mrf.mxu1  ;;  %v14418_v18 = vld [vmem:[#allocation15_spill] sm:$0xff] }
0x138c   : > { %7269 = vmatpush.msra.mxu3 %v9505_v12  ;;  %7288 = vmatpush.msrb.mxu0 %v9506_v9 }
0x138d   : > { %7171 = vmatpush.msra.mxu2 %v9507_v5  ;;  %7314 = vmatpush.msra.mxu1 %v9508_v13 }
0x138e   : > { %7289 = vmatpush.msrb.mxu0 %v9510_v31  ;;  %v9526_v31 = vld [vmem:[%s14206_s9 + $0x178] sm:$0xff] }
0x138f   : > { %8280 = vmatpush.msk.msrb.mxu2 %vm2362_vm9, %v9509_v6  ;;  %7315 = vmatpush.msra.mxu1 %v9511_v36  ;;  %v9525_v6 = vld [vmem:[%s14206_s9 + $0x180] sm:$0x1f]  ;;  %v9527_v36 = vld [vmem:[%s14206_s9 + $0x170] sm:$0xff] }
0x1390   : > { %7290 = vmatpush.msrb.mxu0 %v9513_v26  ;;  %v9528_v26 = vld [vmem:[%s14206_s9 + $0x168] sm:$0xff] }
0x1391   : > { %7360 = vmatpush.msrb.mxu2 %v9512_v48  ;;  %8262 = vmatmul.msk.f32.gmra.mxu0 %vm1965_vm8, %v9514_v16  ;;  %v9529_v16 = vld [vmem:[%s14206_s9 + $0x160] sm:$0xff] }
0x1392   : > { %7316 = vmatpush.msra.mxu1 %v9515_v3  ;;  %7291 = vmatpush.msrb.mxu0 %v9517_v63  ;;  %v9530_v3 = vld [vmem:[%s14206_s9 + $0x158] sm:$0xff] }
0x1393   : > { %7361 = vmatpush.msrb.mxu2 %v9516_v52  ;;  %v9531_v52 = vld [vmem:[%s14206_s9 + $0x150] sm:$0xff] }
0x1394   : > { %7317 = vmatpush.msra.mxu1 %v9518_v7  ;;  %7292 = vmatpush.msrb.mxu0 %v9520_v39  ;;  %v14419_v7 = vld [vmem:[#allocation11_spill] sm:$0xff] }
0x1395   : > { %7362 = vmatpush.msrb.mxu2 %v9519_v4 }
0x1396   : > { %7293 = vmatpush.msrb.mxu0 %v9522_v0 }
0x1397   : > { %7363 = vmatpush.msrb.mxu2 %v9521_v47 }
0x1399   : > { %7364 = vmatpush.msrb.mxu2 %v9523_v41 }
0x139b   : > { %7365 = vmatpush.msrb.mxu2 %v9524_v2  ;;  %v7389_v2 = vld [vmem:[%s14208_s11 + $0x70] sm:$0xff] }
0x13d4   : > { %v6881_v28 = vpop.f32.mrf.mxu0 }
0x13d5   : > { %v6908_v57 = vadd.f32 %v6907_v43, %v6881_v28  ;;  %v7388_v43 = vld [vmem:[%s14208_s11 + $0x68] sm:$0xff]  ;;  %v7386_v28 = vld [vmem:[%s14208_s11 + $0x58] sm:$0xff] }
0x13dc   : > { %v6884_v61 = vpop.f32.mrf.mxu0  ;;  %v7014_v55 = vpop.f32.mrf.mxu1 }
0x13dd   : > { %v6911_v37 = vadd.f32 %v6910_v23, %v6884_v61  ;;  %v7387_v23 = vld [vmem:[%s14208_s11 + $0x60] sm:$0xff]  ;;  %v7384_v61 = vld [vmem:[%s14208_s11 + $0x48] sm:$0xff] }
0x13e6   : > { %v6930_v38 = vpop.f32.mrf.mxu0 }
0x13e7   : > { %v6954_v8 = vadd.f32 %v6953_v60, %v6930_v38  ;;  %v7385_v60 = vld [vmem:[%s14208_s11 + $0x50] sm:$0xff]  ;;  %v7382_v38 = vld [vmem:[%s14208_s11 + $0x38] sm:$0xff] }
0x13e8   : > { %v7017_v32 = vpop.f32.mrf.mxu1 }
0x13e9   : > { %v7020_v21 = vadd.f32 %v7014_v55, %v6954_v8  ;;  %v7380_v55 = vld [vmem:[%s14208_s11 + $0x28] sm:$0xff] }
0x13ec   : > { %v7052_v62 = vpop.f32.mrf.mxu2 }
0x13ee   : > { %v6933_v34 = vpop.f32.mrf.mxu0  ;;  %v7077_v19 = vpop.f32.mrf.mxu3 }
0x13ef   : > { %v7083_v45 = vadd.f32 %v7077_v19, %v7020_v21  ;;  %v6957_v25 = vadd.f32 %v6956_v49, %v6933_v34  ;;  %v7383_v49 = vld [vmem:[%s14208_s11 + $0x40] sm:$0xff]  ;;  %v7381_v34 = vld [vmem:[%s14208_s11 + $0x30] sm:$0xff]  ;;  %v7376_v19 = vld [vmem:[%s14208_s11 + $0x8] sm:$0xff] }
0x13f0   : > { %v7140_v10 = vpop.f32.mrf.mxu1  ;;  %v7428_v21 = vld [vmem:[%s14210_s13 + $0x48] sm:$0xff] }
0x13f1   : > { %v7146_v33 = vadd.f32 %v7140_v10, %v7083_v45  ;;  %v7021_v27 = vadd.f32 %v7017_v32, %v6957_v25  ;;  %v7378_v32 = vld [vmem:[%s14208_s11 + $0x18] sm:$0xff]  ;;  %v7427_v45 = vld [vmem:[%s14210_s13 + $0x40] sm:$0xff] }
0x13f4   : > { %v7055_v50 = vpop.f32.mrf.mxu2 }
0x13f6   : > { %v6989_v30 = vpop.f32.mrf.mxu0 }
0x13f7   : > { %v6995_v51 = vadd.f32 %v6989_v30, %v6908_v57  ;;  %v7080_v42 = vpop.f32.mrf.mxu3  ;;  %v7379_v30 = vld [vmem:[%s14208_s11 + $0x20] sm:$0xff] }
0x13f8   : > { %v7084_v24 = vadd.f32 %v7080_v42, %v7021_v27 }
0x13f9   : > { %v7058_v15 = vadd.f32 %v7052_v62, %v6995_v51  ;;  %v7375_v62 = vld [vmem:[%s14208_s11] sm:$0xff]  ;;  %v7429_v51 = vld [vmem:[%s14210_s13 + $0x50] sm:$0xf] }
0x13fa   : > { %v7143_v56 = vpop.f32.mrf.mxu1 }
0x13fb   : > { %v7147_v20 = vadd.f32 %v7143_v56, %v7084_v24  ;;  %v7422_v24 = vld [vmem:[%s14210_s13 + $0x18] sm:$0xff] }
0x13fe   : > { %v6992_v59 = vpop.f32.mrf.mxu0 }
0x13ff   : > { %v6996_v40 = vadd.f32 %v6992_v59, %v6911_v37  ;;  %v7377_v59 = vld [vmem:[%s14208_s11 + $0x10] sm:$0xff] }
0x1401   : > { %v7059_v29 = vadd.f32 %v7055_v50, %v6996_v40  ;;  %v7424_v40 = vld [vmem:[%s14210_s13 + $0x28] sm:$0xff] }
0x1406   : > { %v7115_v53 = vpop.f32.mrf.mxu0 }
0x1407   : > { %v7121_v54 = vadd.f32 %v7115_v53, %v7058_v15  ;;  %v7426_v15 = vld [vmem:[%s14210_s13 + $0x38] sm:$0xff] }
0x1409   : > { %v7148_v17 = vmax.f32 %v7121_v54, %v7146_v33  ;;  %v7425_v54 = vld [vmem:[%s14210_s13 + $0x30] sm:$0xff] }
0x140b   : > { %7150 = vrot.lane.b32.xlu2 %v7148_v17, %s14296_s23 }
0x140e   : > { %v7118_v1 = vpop.f32.mrf.mxu0 }
0x140f   : > { %v7122_v35 = vadd.f32 %v7118_v1, %v7059_v29 }
0x1411   : > { %v7149_v22 = vmax.f32 %v7122_v35, %v7147_v20 }
0x1413   : > { %7152 = vrot.lane.b32.xlu0 %v7149_v22, %s14296_s23 }
0x1465   : > { %v7151_v11 = vpop.permute.xlu2 %7150 }
0x1466   : > { %v7154_v46 = vmax.f32 %v7148_v17, %v7151_v11  ;;  %v7423_v17 = vld [vmem:[%s14210_s13 + $0x20] sm:$0xff] }
0x1468   : > { %7172 = vmatmul.f32.vlgmr.msra.gmra.mxu2 %v7154_v46 }
0x1485   : > { %v7153_v58 = vpop.permute.xlu0 %7152 }
0x1486   : > { %v7155_v44 = vmax.f32 %v7149_v22, %v7153_v58  ;;  %v9532_v22 = vld [vmem:[%s14207_s10] ss:$0 sm:$0xff] }
0x1488   : > { %7175 = vmatmul.f32.gmra.mxu2 %v7155_v44  ;;  %v7421_v44 = vld [vmem:[%s14210_s13 + $0x10] sm:$0xff] }
0x14eb   : > { %v7173_v14 = vpop.f32.mrf.mxu2 }
0x14ec   : > { %v7174_v12 = vadd.f32 %v7173_v14, %v14418_v18  ;;  %v7420_v14 = vld [vmem:[%s14210_s13 + $0x8] sm:$0xff]  ;;  %v7419_v18 = vld [vmem:[%s14210_s13] sm:$0xff] }
0x14ee   : > { %v7179_v9 = vmax.f32 %v7174_v12, 0.0  ;;  %v9012_v12 = vld [vmem:[%s14209_s12] ss:$0 sm:$0xff] }
0x14f0   : > { %v7182_v5 = vrot.slane %v7179_v9, 2  ;;  %v7227_v13 = vrot.slane %v7179_v9, 4  ;;  %8269 = vmatmul.msk.f32.vlgmr.msra.gmra.mxu0 %vm2359_vm10, %v7179_v9  ;;  %v7251_v48 = vrot.slane %v7179_v9, 6 }
0x14f1   : > { %7399 = vmatpush.msra.mxu0 %v7389_v2 }
0x14f2   : > { %8267 = vmatmul.msk.f32.vlgmr.msrb.gmra.mxu3 %vm2359_vm10, %v7182_v5  ;;  %8271 = vmatmul.msk.f32.vlgmr.msrb.gmra.mxu1 %vm2359_vm10, %v7227_v13 }
0x14f3   : > { %8278 = vmatpush.msk.msrb.mxu3 %vm2362_vm9, %v9525_v6  ;;  %7400 = vmatpush.msra.mxu0 %v7388_v43  ;;  %v9013_v6 = vld [vmem:[%s14211_s14] ss:$0 sm:$0xff] }
0x14f4   : > { %8283 = vmatpush.msk.msrb.mxu1 %vm1972_vm7, %v7429_v51 }
0x14f5   : > { %7336 = vmatpush.msrb.mxu3 %v9526_v31  ;;  %7401 = vmatpush.msra.mxu0 %v7387_v23 }
0x14f6   : > { %7447 = vmatpush.msrb.mxu1 %v7428_v21 }
0x14f7   : > { %7337 = vmatpush.msrb.mxu3 %v9527_v36  ;;  %7402 = vmatpush.msra.mxu0 %v7386_v28 }
0x14f8   : > { %7448 = vmatpush.msrb.mxu1 %v7427_v45 }
0x14f9   : > { %7338 = vmatpush.msrb.mxu3 %v9528_v26  ;;  %7403 = vmatpush.msra.mxu0 %v7385_v60 }
0x14fa   : > { %8273 = vmatmul.msk.f32.vlgmr.msra.gmra.mxu3 %vm2359_vm10, %v7251_v48  ;;  %7449 = vmatpush.msrb.mxu1 %v7426_v15 }
0x14fb   : > { %7339 = vmatpush.msrb.mxu3 %v9529_v16  ;;  %7404 = vmatpush.msra.mxu0 %v7384_v61 }
0x14fc   : > { %7450 = vmatpush.msrb.mxu1 %v7425_v54 }
0x14fd   : > { %7340 = vmatpush.msrb.mxu3 %v9530_v3  ;;  %7405 = vmatpush.msra.mxu0 %v7383_v49 }
0x14fe   : > { %7451 = vmatpush.msrb.mxu1 %v7424_v40 }
0x14ff   : > { %7341 = vmatpush.msrb.mxu3 %v9531_v52  ;;  %7406 = vmatpush.msra.mxu0 %v7382_v38 }
0x1500   : > { %7452 = vmatpush.msrb.mxu1 %v7423_v17 }
0x1501   : > { %7407 = vmatpush.msra.mxu0 %v7381_v34 }
0x1502   : > { %7453 = vmatpush.msrb.mxu1 %v7422_v24 }
0x1503   : > { %7408 = vmatpush.msra.mxu0 %v7380_v55 }
0x1504   : > { %7454 = vmatpush.msrb.mxu1 %v7421_v44 }
0x1505   : > { %7409 = vmatpush.msra.mxu0 %v7379_v30 }
0x1506   : > { %7455 = vmatpush.msrb.mxu1 %v7420_v14 }
0x1507   : > { %7410 = vmatpush.msra.mxu0 %v7378_v32 }
0x1508   : > { %7456 = vmatpush.msrb.mxu1 %v7419_v18 }
0x1509   : > { %7411 = vmatpush.msra.mxu0 %v7377_v59 }
0x150b   : > { %v7176_v63 = vpop.f32.mrf.mxu2  ;;  %7412 = vmatpush.msra.mxu0 %v7376_v19 }
0x150c   : > { %v7177_v4 = vadd.f32 %v7176_v63, %v14419_v7 }
0x150d   : > { %7413 = vmatpush.msra.mxu0 %v7375_v62 }
0x150e   : > { %v7180_v39 = vmax.f32 %v7177_v4, 0.0 }
0x1510   : > { %v7299_v47 = vrot.slane %v7180_v39, 2  ;;  %v7323_v0 = vrot.slane %v7180_v39, 4  ;;  %v7347_v41 = vrot.slane %v7180_v39, 6  ;;  %8275 = vmatmul.msk.f32.vlgmr.msrb.gmra.mxu0 %vm2359_vm10, %v7180_v39 }
0x1512   : > { %8277 = vmatmul.msk.f32.vlgmr.msra.gmra.mxu1 %vm2359_vm10, %v7299_v47  ;;  %8279 = vmatmul.msk.f32.vlgmr.msrb.gmra.mxu3 %vm2359_vm10, %v7323_v0 }
0x1513   : > { %8281 = vmatmul.msk.f32.vlgmr.msrb.gmra.mxu2 %vm2359_vm10, %v7347_v41 }
0x156d   : > { %v7224_v57 = vpop.f32.mrf.mxu0 }
0x156f   : > { %v7247_v25 = vpop.f32.mrf.mxu1 }
0x1575   : > { %v7202_v8 = vpop.f32.mrf.mxu3 }
0x1576   : > { %v7225_v10 = vadd.f32 %v7224_v57, %v7202_v8 }
0x1578   : > { %v7250_v37 = vadd.f32 %v7247_v25, %v7225_v10 }
0x157d   : > { %v7271_v53 = vpop.f32.mrf.mxu3 }
0x157e   : > { %v7274_v42 = vadd.f32 %v7271_v53, %v7250_v37 }
0x158d   : > { %v7295_v33 = vpop.f32.mrf.mxu0 }
0x158e   : > { %v7298_v27 = vadd.f32 %v7295_v33, %v7274_v42 }
0x158f   : > { %v7319_v50 = vpop.f32.mrf.mxu1 }
0x1590   : > { %v7322_v56 = vadd.f32 %v7319_v50, %v7298_v27 }
0x1595   : > { %v7343_v29 = vpop.f32.mrf.mxu3 }
0x1596   : > { %v7346_v1 = vadd.f32 %v7343_v29, %v7322_v56  ;;  %v7367_v35 = vpop.f32.mrf.mxu2 }
0x1598   : > { %v7370_v20 = vadd.f32 %v7367_v35, %v7346_v1 }
0x159a   : > { %v7371_v11 = vadd.f32 %v9532_v22, %v7370_v20 }
0x159c   : > { %v7372_v46 = vmax.f32 %v7371_v11, 0.0 }
0x159e   : > { %7373 = vst.msk [vmem:[#allocation2 + $0x6] sm:$0x3] %vm2578_vm11, %v7372_v46 }
0x15a5   : > { %v7374_v58 = vld [vmem:[#allocation2] sm:$0xff] }
0x15a6   : > { %8282 = vmatmul.msk.f32.vlgmr.msra.gmra.mxu0 %vm7394_vm12, %v7374_v58 }
0x1623   : > { %v7415_v9 = vpop.f32.mrf.mxu0 }
0x1624   : > { %v7416_v5 = vadd.f32 %v9012_v12, %v7415_v9 }
0x1626   : > { %v7418_v13 = vmax.f32 %v7416_v5, 0.0 }
0x1628   : > { %8284 = vmatmul.msk.f32.vlgmr.msrb.gmra.mxu1 %vm7434_vm13, %v7418_v13 }
0x16a5   : > { %v7458_v31 = vpop.f32.mrf.mxu1 }
0x16a6   : > { %v7459_v36 = vadd.f32 %v9013_v6, %v7458_v31 }
0x16a8   : > { %v7462_v48 = vsel %vm7461_vm14, %v7459_v36, -inf }
0x16a9   : > { %7463 = vmax.xlane.f32.xlu1 %v7462_v48 }
0x171c   : > { %v7464_v26 = vpop.xlane.xlu1 %7463 }
0x171d   : > { %v7465_v16 = vsub.f32 %v7459_v36, %v7464_v26 }
0x171f   : > { %v7466_v3 = vmul.f32 1.442695, %v7465_v16 }
0x1721   : > { %9014 = vpow2.f32 %v7466_v3 }
0x1727   : > { %v9015_v52 = vpop.eup %9014 }
0x1728   : > { %v7468_v63 = vsel %vm7461_vm14, %v9015_v52, 0.0 }
0x1729   : > { %7469 = vadd.xlane.f32.xlu2 %v7468_v63 }
0x179c   : > { %v7470_v7 = vpop.xlane.xlu2 %7469 }
0x179d   : > { %9016 = vlog2.f32 %v7470_v7 }
0x17a3   : > { %v9017_v4 = vpop.eup %9016 }
0x17a4   : > { %v7472_v39 = vmul.f32 0.6931472, %v9017_v4 }
0x17a6   : > { %v7473_v47 = vadd.f32 %v7472_v39, %v7464_v26 }
0x17a8   : > { %v7474_v0 = vsub.f32 %v7459_v36, %v7473_v47 }
0x17aa   : > { %7475 = vst.msk [vmem:[%s497_s20] sm:$0xff] %vm7461_vm14, %v7474_v0 }
0x17ab PF: > { %s25_s18 = sadd.s32 1, %s9539_s18  }
0x17ac   : > { %p22_p5 = scmp.ge.s32.totalorder %s25_s18, 4  }
0x17ae   :  { %24 = sbr.rel (!%p22_p5) target bundleno = 4 (0x4), region = 136 }

</bundles_post_ra>
